<compile_context>
chip_gen: v6e
topology: v6e:2x2x1
jax: 0.10.0
libtpu: 0.0.40
codegen_flags: <defaults>
</compile_context>

<pallas_src>
import functools

import jax
import jax.numpy as jnp
from jax.experimental import pallas as pl
from jax.experimental.pallas import tpu as pltpu


# ----------------------------------------------------------------------------
# shared forward math (used by the Pallas kernel on Refs and by the pure-JAX
# reference on arrays; `w[...]` works on both)
# ----------------------------------------------------------------------------
def _conv1d_same_relu(x, w, b):
    """'same' Conv1d + bias + ReLU in NLC layout as a single im2col GEMM.

    x: (B, L, Cin) f32 activation.
    w: (K*Cin, Cout) bf16 weight, rows ordered (tap, cin).
    b: (1, Cout) f32 bias.
    """
    B, L, cin = x.shape
    kc, cout = w.shape
    K = kc // cin
    p = (K - 1) // 2
    halo = jnp.zeros((B, p, cin), x.dtype)
    xp = jnp.concatenate([halo, x, halo], axis=1)                 # (B, L+K-1, Cin)
    cols = jnp.concatenate([xp[:, t:t + L, :] for t in range(K)], axis=-1)
    cols = cols.reshape(B * L, kc).astype(jnp.bfloat16)           # im2col block
    y = jnp.dot(cols, w[...], preferred_element_type=jnp.float32)  # one MXU GEMM
    y = jnp.maximum(y + b[...], 0.0)                              # bias + ReLU (f32)
    return y.reshape(B, L, cout)


def _maxpool1d_k2s2(x):
    """MaxPool1d(kernel=2, stride=2) over L in NLC layout (floor mode)."""
    B, L, C = x.shape
    Lh = L // 2                                   # drops odd tail (matches PyTorch)
    r = x[:, :2 * Lh, :].reshape(B, Lh, 2, C)     # sublane pairs, C stays on lanes
    return jnp.maximum(r[:, :, 0, :], r[:, :, 1, :])


def _encode_branch(x, w1, b1, w2, b2, w3, b3):
    h = _conv1d_same_relu(x, w1, b1)              # (B, L,   32)
    h = _maxpool1d_k2s2(h)                        # (B, L/2, 32)
    h = _conv1d_same_relu(h, w2, b2)              # (B, L/2, 64)
    h = _maxpool1d_k2s2(h)                        # (B, L/4, 64)
    h = _conv1d_same_relu(h, w3, b3)              # (B, L/4, 128)
    B, L2, C2 = h.shape
    # NLC (L-major) flatten; differs from PyTorch's NCL flatten only by a fixed
    # permutation of enc_fc1's input columns, absorbed into the random init.
    return h.reshape(B, L2 * C2)                  # (B, 1536)


def _dense(x, w, b, relu):
    y = jnp.dot(x.astype(jnp.bfloat16), w[...],
                preferred_element_type=jnp.float32) + b[...]
    return jnp.maximum(y, 0.0) if relu else y


def _forward_math(imu_nlc, act_nlc, eps,
                  iw1, ib1, iw2, ib2, iw3, ib3,
                  aw1, ab1, aw2, ab2, aw3, ab3,
                  we1, be1, we2, be2, we3, be3,
                  wd1, bd1, wd2, bd2, wd3, bd3,
                  latent_dim):
    imu_flat = _encode_branch(imu_nlc, iw1, ib1, iw2, ib2, iw3, ib3)
    act_flat = _encode_branch(act_nlc, aw1, ab1, aw2, ab2, aw3, ab3)
    combined = jnp.concatenate([imu_flat, act_flat], axis=-1)     # (B, 3072)

    h = _dense(combined, we1, be1, True)                          # (B, 256)
    h = _dense(h, we2, be2, True)                                 # (B, 128)
    enc = _dense(h, we3, be3, False)                              # (B, 2*latent)

    mu = enc[:, :latent_dim]
    logvar = enc[:, latent_dim:]
    z = mu + eps * jnp.exp(0.5 * logvar)                          # reparameterize (EUP exp)

    d = _dense(z, wd1, bd1, True)                                 # (B, 128)
    d = _dense(d, wd2, bd2, True)                                 # (B, 256)
    dec = _dense(d, wd3, bd3, False)                              # (B, recon_dim)
    return dec, enc


# ----------------------------------------------------------------------------
# fused Pallas kernel (single launch for the whole forward)
# ----------------------------------------------------------------------------
def _vae_kernel(latent_dim, imu_ref, act_ref, eps_ref, *rest):
    *w_refs, dec_ref, mlv_ref = rest
    dec, enc = _forward_math(imu_ref[...], act_ref[...], eps_ref[...],
                             *w_refs, latent_dim=latent_dim)
    dec_ref[...] = dec
    mlv_ref[...] = enc                       # (B, 2*latent) lane-contiguous store


_PARAM_ORDER = ("imu_conv1", "imu_conv2", "imu_conv3",
                "act_conv1", "act_conv2", "act_conv3",
                "enc_fc1", "enc_fc2", "enc_fc3",
                "dec_fc1", "dec_fc2", "dec_fc3")


def _param_list(params):
    return tuple(t for name in _PARAM_ORDER
                 for t in (params[name]["w"], params[name]["b"]))


def _full_spec(shape):
    """BlockSpec covering the whole array (single block, grid=(1,))."""
    n = len(shape)
    return pl.BlockSpec(tuple(shape), lambda i, _n=n: (0,) * _n)


def vae_forward(params, imu, action, eps,
                imu_dim=(50, 10), action_dim=(50, 6), latent_dim=32):
    B = imu.shape[0]
    # NCL -> NLC once at the module boundary (channels land on the lane axis).
    imu_nlc = jnp.transpose(imu, (0, 2, 1))          # (B, 50, 10)
    act_nlc = jnp.transpose(action, (0, 2, 1))       # (B, 50, 6)

    w_args = _param_list(params)
    args = (imu_nlc, act_nlc, eps) + w_args
    recon_dim = params["dec_fc3"]["w"].shape[1]

    # advisory cost estimate: one GEMM per conv layer + 6 FC GEMMs
    L = imu_dim[0]
    rows = {"conv1": B * L, "conv2": B * (L // 2), "conv3": B * ((L // 2) // 2)}
    flops = 0
    for name in _PARAM_ORDER:
        fin, fout = params[name]["w"].shape
        n_rows = rows[name.split("_")[1]] if "conv" in name else B
        flops += 2 * n_rows * fin * fout
    bytes_accessed = (sum(int(a.size) * a.dtype.itemsize for a in args)
                      + B * (recon_dim + 2 * latent_dim) * 4)

    out_shape = (jax.ShapeDtypeStruct((B, recon_dim), jnp.float32),
                 jax.ShapeDtypeStruct((B, 2 * latent_dim), jnp.float32))
    dec, mu_logvar = pl.pallas_call(
        functools.partial(_vae_kernel, latent_dim),
        out_shape=out_shape,
        grid=(1,),
        in_specs=[_full_spec(a.shape) for a in args],
        out_specs=(_full_spec((B, recon_dim)),
                   _full_spec((B, 2 * latent_dim))),
        compiler_params=pltpu.CompilerParams(dimension_semantics=("arbitrary",)),
        cost_estimate=pl.CostEstimate(flops=int(flops),
                                      transcendentals=int(B * latent_dim),
                                      bytes_accessed=int(bytes_accessed)),
    )(*args)

    mu = mu_logvar[:, :latent_dim]
    logvar = mu_logvar[:, latent_dim:]
    n_imu = imu_dim[0] * imu_dim[1]
    imu_recon = dec[:, :n_imu].reshape(B, imu_dim[0], imu_dim[1])
    action_recon = dec[:, n_imu:].reshape(B, action_dim[0], action_dim[1])
    return imu_recon, action_recon, mu, logvar


def vae_forward_ref(params, imu, action, eps,
                    imu_dim=(50, 10), action_dim=(50, 6), latent_dim=32):
    """Pure-JAX reference with identical math (for correctness checking)."""
    B = imu.shape[0]
    imu_nlc = jnp.transpose(imu, (0, 2, 1))
    act_nlc = jnp.transpose(action, (0, 2, 1))
    dec, enc = _forward_math(imu_nlc, act_nlc, eps, *_param_list(params),
                             latent_dim=latent_dim)
    mu = enc[:, :latent_dim]
    logvar = enc[:, latent_dim:]
    n_imu = imu_dim[0] * imu_dim[1]
    return (dec[:, :n_imu].reshape(B, imu_dim[0], imu_dim[1]),
            dec[:, n_imu:].reshape(B, action_dim[0], action_dim[1]),
            mu, logvar)


# ----------------------------------------------------------------------------
# Parameter init (deterministic, PyTorch-default-like uniform bounds).
# Weights stored in kernel-ready layouts: conv (K*Cin, Cout) bf16 row-ordered
# (tap, cin), linear (in, out) bf16, bias (1, N) f32.
# ----------------------------------------------------------------------------
def _uniform(key, shape, bound, dtype=jnp.float32):
    return jax.random.uniform(key, shape, jnp.float32, -bound, bound).astype(dtype)


def init_params(key, imu_dim=(50, 10), action_dim=(50, 6), latent_dim=32):
    def conv_p(k, cin, cout, ks):
        kw, kb = jax.random.split(k)
        bound = 1.0 / (cin * ks) ** 0.5
        return {"w": _uniform(kw, (ks * cin, cout), bound, jnp.bfloat16),  # im2col-ready
                "b": _uniform(kb, (1, cout), bound)}

    def lin_p(k, fin, fout):
        kw, kb = jax.random.split(k)
        bound = 1.0 / fin ** 0.5
        return {"w": _uniform(kw, (fin, fout), bound, jnp.bfloat16),       # (in, out)
                "b": _uniform(kb, (1, fout), bound)}

    keys = jax.random.split(key, 12)
    enc_len = (imu_dim[0] // 2) // 2                         # 50 -> 25 -> 12
    flat = 128 * enc_len                                     # 1536 per branch
    recon_dim = imu_dim[0] * imu_dim[1] + action_dim[0] * action_dim[1]
    return {
        "imu_conv1": conv_p(keys[0], imu_dim[1], 32, 5),
        "imu_conv2": conv_p(keys[1], 32, 64, 5),
        "imu_conv3": conv_p(keys[2], 64, 128, 3),
        "act_conv1": conv_p(keys[3], action_dim[1], 32, 5),
        "act_conv2": conv_p(keys[4], 32, 64, 5),
        "act_conv3": conv_p(keys[5], 64, 128, 3),
        "enc_fc1": lin_p(keys[6], 2 * flat, 256),
        "enc_fc2": lin_p(keys[7], 256, 128),
        "enc_fc3": lin_p(keys[8], 128, latent_dim * 2),
        "dec_fc1": lin_p(keys[9], latent_dim, 128),
        "dec_fc2": lin_p(keys[10], 128, 256),
        "dec_fc3": lin_p(keys[11], 256, recon_dim),
    }


# ----------------------------------------------------------------------------
if __name__ == "__main__":
    IMU_DIM = (50, 10)
    ACTION_DIM = (50, 6)
    LATENT = 32
    B = 2

    key = jax.random.PRNGKey(0)
    k_imu, k_act, k_eps, k_params = jax.random.split(key, 4)

    # PyTorch Conv1d inputs are (N, C, L): imu (B, 10, 50), action (B, 6, 50)
    imu = jax.random.normal(k_imu, (B, IMU_DIM[1], IMU_DIM[0]), jnp.float32)
    action = jax.random.normal(k_act, (B, ACTION_DIM[1], ACTION_DIM[0]), jnp.float32)
    eps = jax.random.normal(k_eps, (B, LATENT), jnp.float32)  # torch.randn_like(std)

    params = init_params(k_params, IMU_DIM, ACTION_DIM, LATENT)

    fwd = jax.jit(functools.partial(vae_forward, imu_dim=IMU_DIM,
                                    action_dim=ACTION_DIM, latent_dim=LATENT))
    outs = fwd(params, imu, action, eps)
    jax.block_until_ready(outs)
    imu_recon, action_recon, mu, logvar = outs

    assert imu_recon.shape == (B, IMU_DIM[0], IMU_DIM[1])
    assert action_recon.shape == (B, ACTION_DIM[0], ACTION_DIM[1])
    assert mu.shape == (B, LATENT) and logvar.shape == (B, LATENT)
    for t in outs:
        assert bool(jnp.all(jnp.isfinite(t)))

    # pure-JAX reference with identical math (bf16 weights, f32 accumulation)
    ref = jax.jit(functools.partial(vae_forward_ref, imu_dim=IMU_DIM,
                                    action_dim=ACTION_DIM, latent_dim=LATENT))
    ref_outs = jax.block_until_ready(ref(params, imu, action, eps))
    for got, want in zip(outs, ref_outs):
        err = float(jnp.max(jnp.abs(got - want)))
        assert bool(jnp.allclose(got, want, atol=5e-2, rtol=5e-2)), err

    print("KERNEL_OK")
</pallas_src>

<mosaic_0001>
module attributes {stable_mosaic.version = 11 : i64} {
  func.func @_vae_kernel(%arg0: i32, %arg1: memref<2x50x10xf32, #tpu.memory_space<vmem>>, %arg2: memref<2x50x6xf32, #tpu.memory_space<vmem>>, %arg3: memref<2x32xf32, #tpu.memory_space<vmem>>, %arg4: memref<50x32xbf16, #tpu.memory_space<vmem>>, %arg5: memref<1x32xf32, #tpu.memory_space<vmem>>, %arg6: memref<160x64xbf16, #tpu.memory_space<vmem>>, %arg7: memref<1x64xf32, #tpu.memory_space<vmem>>, %arg8: memref<192x128xbf16, #tpu.memory_space<vmem>>, %arg9: memref<1x128xf32, #tpu.memory_space<vmem>>, %arg10: memref<30x32xbf16, #tpu.memory_space<vmem>>, %arg11: memref<1x32xf32, #tpu.memory_space<vmem>>, %arg12: memref<160x64xbf16, #tpu.memory_space<vmem>>, %arg13: memref<1x64xf32, #tpu.memory_space<vmem>>, %arg14: memref<192x128xbf16, #tpu.memory_space<vmem>>, %arg15: memref<1x128xf32, #tpu.memory_space<vmem>>, %arg16: memref<3072x256xbf16, #tpu.memory_space<vmem>>, %arg17: memref<1x256xf32, #tpu.memory_space<vmem>>, %arg18: memref<256x128xbf16, #tpu.memory_space<vmem>>, %arg19: memref<1x128xf32, #tpu.memory_space<vmem>>, %arg20: memref<128x64xbf16, #tpu.memory_space<vmem>>, %arg21: memref<1x64xf32, #tpu.memory_space<vmem>>, %arg22: memref<32x128xbf16, #tpu.memory_space<vmem>>, %arg23: memref<1x128xf32, #tpu.memory_space<vmem>>, %arg24: memref<128x256xbf16, #tpu.memory_space<vmem>>, %arg25: memref<1x256xf32, #tpu.memory_space<vmem>>, %arg26: memref<256x800xbf16, #tpu.memory_space<vmem>>, %arg27: memref<1x800xf32, #tpu.memory_space<vmem>>, %arg28: memref<2x800xf32, #tpu.memory_space<vmem>>, %arg29: memref<2x64xf32, #tpu.memory_space<vmem>>) attributes {dimension_semantics = [#tpu.dimension_semantics<arbitrary>], iteration_bounds = array<i64: 1>, scalar_prefetch = 0 : i64, scratch_operands = 0 : i64, tpu.core_type = #tpu.core_type<tc>, window_params = [{pipeline_mode = #tpu.pipeline_mode<synchronous>, transform_indices = @transform_0, window_bounds = array<i64: 2, 50, 10>}, {pipeline_mode = #tpu.pipeline_mode<synchronous>, transform_indices = @transform_1, window_bounds = array<i64: 2, 50, 6>}, {pipeline_mode = #tpu.pipeline_mode<synchronous>, transform_indices = @transform_2, window_bounds = array<i64: 2, 32>}, {pipeline_mode = #tpu.pipeline_mode<synchronous>, transform_indices = @transform_3, window_bounds = array<i64: 50, 32>}, {pipeline_mode = #tpu.pipeline_mode<synchronous>, transform_indices = @transform_4, window_bounds = array<i64: 1, 32>}, {pipeline_mode = #tpu.pipeline_mode<synchronous>, transform_indices = @transform_5, window_bounds = array<i64: 160, 64>}, {pipeline_mode = #tpu.pipeline_mode<synchronous>, transform_indices = @transform_6, window_bounds = array<i64: 1, 64>}, {pipeline_mode = #tpu.pipeline_mode<synchronous>, transform_indices = @transform_7, window_bounds = array<i64: 192, 128>}, {pipeline_mode = #tpu.pipeline_mode<synchronous>, transform_indices = @transform_8, window_bounds = array<i64: 1, 128>}, {pipeline_mode = #tpu.pipeline_mode<synchronous>, transform_indices = @transform_9, window_bounds = array<i64: 30, 32>}, {pipeline_mode = #tpu.pipeline_mode<synchronous>, transform_indices = @transform_10, window_bounds = array<i64: 1, 32>}, {pipeline_mode = #tpu.pipeline_mode<synchronous>, transform_indices = @transform_11, window_bounds = array<i64: 160, 64>}, {pipeline_mode = #tpu.pipeline_mode<synchronous>, transform_indices = @transform_12, window_bounds = array<i64: 1, 64>}, {pipeline_mode = #tpu.pipeline_mode<synchronous>, transform_indices = @transform_13, window_bounds = array<i64: 192, 128>}, {pipeline_mode = #tpu.pipeline_mode<synchronous>, transform_indices = @transform_14, window_bounds = array<i64: 1, 128>}, {pipeline_mode = #tpu.pipeline_mode<synchronous>, transform_indices = @transform_15, window_bounds = array<i64: 3072, 256>}, {pipeline_mode = #tpu.pipeline_mode<synchronous>, transform_indices = @transform_16, window_bounds = array<i64: 1, 256>}, {pipeline_mode = #tpu.pipeline_mode<synchronous>, transform_indices = @transform_17, window_bounds = array<i64: 256, 128>}, {pipeline_mode = #tpu.pipeline_mode<synchronous>, transform_indices = @transform_18, window_bounds = array<i64: 1, 128>}, {pipeline_mode = #tpu.pipeline_mode<synchronous>, transform_indices = @transform_19, window_bounds = array<i64: 128, 64>}, {pipeline_mode = #tpu.pipeline_mode<synchronous>, transform_indices = @transform_20, window_bounds = array<i64: 1, 64>}, {pipeline_mode = #tpu.pipeline_mode<synchronous>, transform_indices = @transform_21, window_bounds = array<i64: 32, 128>}, {pipeline_mode = #tpu.pipeline_mode<synchronous>, transform_indices = @transform_22, window_bounds = array<i64: 1, 128>}, {pipeline_mode = #tpu.pipeline_mode<synchronous>, transform_indices = @transform_23, window_bounds = array<i64: 128, 256>}, {pipeline_mode = #tpu.pipeline_mode<synchronous>, transform_indices = @transform_24, window_bounds = array<i64: 1, 256>}, {pipeline_mode = #tpu.pipeline_mode<synchronous>, transform_indices = @transform_25, window_bounds = array<i64: 256, 800>}, {pipeline_mode = #tpu.pipeline_mode<synchronous>, transform_indices = @transform_26, window_bounds = array<i64: 1, 800>}, {pipeline_mode = #tpu.pipeline_mode<synchronous>, transform_indices = @transform_27, window_bounds = array<i64: 2, 800>}, {pipeline_mode = #tpu.pipeline_mode<synchronous>, transform_indices = @transform_28, window_bounds = array<i64: 2, 64>}]} {
    %c0 = arith.constant 0 : index
    %c0_0 = arith.constant 0 : index
    %c0_1 = arith.constant 0 : index
    %0 = vector.load %arg1[%c0, %c0_0, %c0_1] : memref<2x50x10xf32, #tpu.memory_space<vmem>>, vector<2x50x10xf32>
    %c0_2 = arith.constant 0 : index
    %c0_3 = arith.constant 0 : index
    %c0_4 = arith.constant 0 : index
    %1 = vector.load %arg2[%c0_2, %c0_3, %c0_4] : memref<2x50x6xf32, #tpu.memory_space<vmem>>, vector<2x50x6xf32>
    %c0_5 = arith.constant 0 : index
    %c0_6 = arith.constant 0 : index
    %2 = vector.load %arg3[%c0_5, %c0_6] : memref<2x32xf32, #tpu.memory_space<vmem>>, vector<2x32xf32>
    %cst = arith.constant 0.000000e+00 : f32
    %3 = vector.broadcast %cst : f32 to vector<2x2x10xf32>
    %4 = tpu.concatenate %3, %0, %3 in 1 : vector<2x2x10xf32>, vector<2x50x10xf32>, vector<2x2x10xf32> -> vector<2x54x10xf32>
    %5 = vector.extract_strided_slice %4 {offsets = [0, 0, 0], sizes = [2, 50, 10], strides = [1, 1, 1]} : vector<2x54x10xf32> to vector<2x50x10xf32>
    %6 = vector.extract_strided_slice %4 {offsets = [0, 1, 0], sizes = [2, 50, 10], strides = [1, 1, 1]} : vector<2x54x10xf32> to vector<2x50x10xf32>
    %7 = vector.extract_strided_slice %4 {offsets = [0, 2, 0], sizes = [2, 50, 10], strides = [1, 1, 1]} : vector<2x54x10xf32> to vector<2x50x10xf32>
    %8 = vector.extract_strided_slice %4 {offsets = [0, 3, 0], sizes = [2, 50, 10], strides = [1, 1, 1]} : vector<2x54x10xf32> to vector<2x50x10xf32>
    %9 = vector.extract_strided_slice %4 {offsets = [0, 4, 0], sizes = [2, 50, 10], strides = [1, 1, 1]} : vector<2x54x10xf32> to vector<2x50x10xf32>
    %10 = tpu.concatenate %5, %6, %7, %8, %9 in 2 : vector<2x50x10xf32>, vector<2x50x10xf32>, vector<2x50x10xf32>, vector<2x50x10xf32>, vector<2x50x10xf32> -> vector<2x50x50xf32>
    %11 = vector.shape_cast %10 : vector<2x50x50xf32> to vector<100x50xf32>
    %12 = arith.truncf %11 : vector<100x50xf32> to vector<100x50xbf16>
    %c0_7 = arith.constant 0 : index
    %c0_8 = arith.constant 0 : index
    %13 = vector.load %arg4[%c0_7, %c0_8] : memref<50x32xbf16, #tpu.memory_space<vmem>>, vector<50x32xbf16>
    %cst_9 = arith.constant dense<0.000000e+00> : vector<100x32xf32>
    %14 = tpu.matmul %12, %13, %cst_9 {dimension_numbers = #tpu.dot_dimension_numbers<[1], [0], [0], [1], [0, 0, 1, 1], [], []>} : vector<100x50xbf16>, vector<50x32xbf16>, vector<100x32xf32> -> vector<100x32xf32>
    %c0_10 = arith.constant 0 : index
    %c0_11 = arith.constant 0 : index
    %15 = vector.load %arg5[%c0_10, %c0_11] : memref<1x32xf32, #tpu.memory_space<vmem>>, vector<1x32xf32>
    %16 = vector.broadcast %15 : vector<1x32xf32> to vector<100x32xf32>
    %17 = arith.addf %14, %16 : vector<100x32xf32>
    %cst_12 = arith.constant 0.000000e+00 : f32
    %18 = vector.broadcast %cst_12 : f32 to vector<100x32xf32>
    %19 = arith.maximumf %17, %18 : vector<100x32xf32>
    %20 = vector.shape_cast %19 : vector<100x32xf32> to vector<2x50x32xf32>
    %21 = vector.shape_cast %20 : vector<2x50x32xf32> to vector<2x25x2x32xf32>
    %22 = vector.extract_strided_slice %21 {offsets = [0, 0, 0, 0], sizes = [2, 25, 1, 32], strides = [1, 1, 1, 1]} : vector<2x25x2x32xf32> to vector<2x25x1x32xf32>
    %23 = vector.shape_cast %22 : vector<2x25x1x32xf32> to vector<2x25x32xf32>
    %24 = vector.extract_strided_slice %21 {offsets = [0, 0, 1, 0], sizes = [2, 25, 1, 32], strides = [1, 1, 1, 1]} : vector<2x25x2x32xf32> to vector<2x25x1x32xf32>
    %25 = vector.shape_cast %24 : vector<2x25x1x32xf32> to vector<2x25x32xf32>
    %26 = arith.maximumf %23, %25 : vector<2x25x32xf32>
    %cst_13 = arith.constant 0.000000e+00 : f32
    %27 = vector.broadcast %cst_13 : f32 to vector<2x2x32xf32>
    %28 = tpu.concatenate %27, %26, %27 in 1 : vector<2x2x32xf32>, vector<2x25x32xf32>, vector<2x2x32xf32> -> vector<2x29x32xf32>
    %29 = vector.extract_strided_slice %28 {offsets = [0, 0, 0], sizes = [2, 25, 32], strides = [1, 1, 1]} : vector<2x29x32xf32> to vector<2x25x32xf32>
    %30 = vector.extract_strided_slice %28 {offsets = [0, 1, 0], sizes = [2, 25, 32], strides = [1, 1, 1]} : vector<2x29x32xf32> to vector<2x25x32xf32>
    %31 = vector.extract_strided_slice %28 {offsets = [0, 2, 0], sizes = [2, 25, 32], strides = [1, 1, 1]} : vector<2x29x32xf32> to vector<2x25x32xf32>
    %32 = vector.extract_strided_slice %28 {offsets = [0, 3, 0], sizes = [2, 25, 32], strides = [1, 1, 1]} : vector<2x29x32xf32> to vector<2x25x32xf32>
    %33 = vector.extract_strided_slice %28 {offsets = [0, 4, 0], sizes = [2, 25, 32], strides = [1, 1, 1]} : vector<2x29x32xf32> to vector<2x25x32xf32>
    %34 = tpu.concatenate %29, %30, %31, %32, %33 in 2 : vector<2x25x32xf32>, vector<2x25x32xf32>, vector<2x25x32xf32>, vector<2x25x32xf32>, vector<2x25x32xf32> -> vector<2x25x160xf32>
    %35 = vector.shape_cast %34 : vector<2x25x160xf32> to vector<50x160xf32>
    %36 = arith.truncf %35 : vector<50x160xf32> to vector<50x160xbf16>
    %c0_14 = arith.constant 0 : index
    %c0_15 = arith.constant 0 : index
    %37 = vector.load %arg6[%c0_14, %c0_15] : memref<160x64xbf16, #tpu.memory_space<vmem>>, vector<160x64xbf16>
    %cst_16 = arith.constant dense<0.000000e+00> : vector<50x64xf32>
    %38 = tpu.matmul %36, %37, %cst_16 {dimension_numbers = #tpu.dot_dimension_numbers<[1], [0], [0], [1], [0, 0, 1, 1], [], []>} : vector<50x160xbf16>, vector<160x64xbf16>, vector<50x64xf32> -> vector<50x64xf32>
    %c0_17 = arith.constant 0 : index
    %c0_18 = arith.constant 0 : index
    %39 = vector.load %arg7[%c0_17, %c0_18] : memref<1x64xf32, #tpu.memory_space<vmem>>, vector<1x64xf32>
    %40 = vector.broadcast %39 : vector<1x64xf32> to vector<50x64xf32>
    %41 = arith.addf %38, %40 : vector<50x64xf32>
    %cst_19 = arith.constant 0.000000e+00 : f32
    %42 = vector.broadcast %cst_19 : f32 to vector<50x64xf32>
    %43 = arith.maximumf %41, %42 : vector<50x64xf32>
    %44 = vector.shape_cast %43 : vector<50x64xf32> to vector<2x25x64xf32>
    %45 = vector.extract_strided_slice %44 {offsets = [0, 0, 0], sizes = [2, 24, 64], strides = [1, 1, 1]} : vector<2x25x64xf32> to vector<2x24x64xf32>
    %46 = vector.shape_cast %45 : vector<2x24x64xf32> to vector<2x12x2x64xf32>
    %47 = vector.extract_strided_slice %46 {offsets = [0, 0, 0, 0], sizes = [2, 12, 1, 64], strides = [1, 1, 1, 1]} : vector<2x12x2x64xf32> to vector<2x12x1x64xf32>
    %48 = vector.shape_cast %47 : vector<2x12x1x64xf32> to vector<2x12x64xf32>
    %49 = vector.extract_strided_slice %46 {offsets = [0, 0, 1, 0], sizes = [2, 12, 1, 64], strides = [1, 1, 1, 1]} : vector<2x12x2x64xf32> to vector<2x12x1x64xf32>
    %50 = vector.shape_cast %49 : vector<2x12x1x64xf32> to vector<2x12x64xf32>
    %51 = arith.maximumf %48, %50 : vector<2x12x64xf32>
    %cst_20 = arith.constant 0.000000e+00 : f32
    %52 = vector.broadcast %cst_20 : f32 to vector<2x1x64xf32>
    %53 = tpu.concatenate %52, %51, %52 in 1 : vector<2x1x64xf32>, vector<2x12x64xf32>, vector<2x1x64xf32> -> vector<2x14x64xf32>
    %54 = vector.extract_strided_slice %53 {offsets = [0, 0, 0], sizes = [2, 12, 64], strides = [1, 1, 1]} : vector<2x14x64xf32> to vector<2x12x64xf32>
    %55 = vector.extract_strided_slice %53 {offsets = [0, 1, 0], sizes = [2, 12, 64], strides = [1, 1, 1]} : vector<2x14x64xf32> to vector<2x12x64xf32>
    %56 = vector.extract_strided_slice %53 {offsets = [0, 2, 0], sizes = [2, 12, 64], strides = [1, 1, 1]} : vector<2x14x64xf32> to vector<2x12x64xf32>
    %57 = tpu.concatenate %54, %55, %56 in 2 : vector<2x12x64xf32>, vector<2x12x64xf32>, vector<2x12x64xf32> -> vector<2x12x192xf32>
    %58 = vector.shape_cast %57 : vector<2x12x192xf32> to vector<24x192xf32>
    %59 = arith.truncf %58 : vector<24x192xf32> to vector<24x192xbf16>
    %c0_21 = arith.constant 0 : index
    %c0_22 = arith.constant 0 : index
    %60 = vector.load %arg8[%c0_21, %c0_22] : memref<192x128xbf16, #tpu.memory_space<vmem>>, vector<192x128xbf16>
    %cst_23 = arith.constant dense<0.000000e+00> : vector<24x128xf32>
    %61 = tpu.matmul %59, %60, %cst_23 {dimension_numbers = #tpu.dot_dimension_numbers<[1], [0], [0], [1], [0, 0, 1, 1], [], []>} : vector<24x192xbf16>, vector<192x128xbf16>, vector<24x128xf32> -> vector<24x128xf32>
    %c0_24 = arith.constant 0 : index
    %c0_25 = arith.constant 0 : index
    %62 = vector.load %arg9[%c0_24, %c0_25] : memref<1x128xf32, #tpu.memory_space<vmem>>, vector<1x128xf32>
    %63 = vector.broadcast %62 : vector<1x128xf32> to vector<24x128xf32>
    %64 = arith.addf %61, %63 : vector<24x128xf32>
    %cst_26 = arith.constant 0.000000e+00 : f32
    %65 = vector.broadcast %cst_26 : f32 to vector<24x128xf32>
    %66 = arith.maximumf %64, %65 : vector<24x128xf32>
    %67 = vector.shape_cast %66 : vector<24x128xf32> to vector<2x12x128xf32>
    %68 = vector.shape_cast %67 : vector<2x12x128xf32> to vector<2x1536xf32>
    %cst_27 = arith.constant 0.000000e+00 : f32
    %69 = vector.broadcast %cst_27 : f32 to vector<2x2x6xf32>
    %70 = tpu.concatenate %69, %1, %69 in 1 : vector<2x2x6xf32>, vector<2x50x6xf32>, vector<2x2x6xf32> -> vector<2x54x6xf32>
    %71 = vector.extract_strided_slice %70 {offsets = [0, 0, 0], sizes = [2, 50, 6], strides = [1, 1, 1]} : vector<2x54x6xf32> to vector<2x50x6xf32>
    %72 = vector.extract_strided_slice %70 {offsets = [0, 1, 0], sizes = [2, 50, 6], strides = [1, 1, 1]} : vector<2x54x6xf32> to vector<2x50x6xf32>
    %73 = vector.extract_strided_slice %70 {offsets = [0, 2, 0], sizes = [2, 50, 6], strides = [1, 1, 1]} : vector<2x54x6xf32> to vector<2x50x6xf32>
    %74 = vector.extract_strided_slice %70 {offsets = [0, 3, 0], sizes = [2, 50, 6], strides = [1, 1, 1]} : vector<2x54x6xf32> to vector<2x50x6xf32>
    %75 = vector.extract_strided_slice %70 {offsets = [0, 4, 0], sizes = [2, 50, 6], strides = [1, 1, 1]} : vector<2x54x6xf32> to vector<2x50x6xf32>
    %76 = tpu.concatenate %71, %72, %73, %74, %75 in 2 : vector<2x50x6xf32>, vector<2x50x6xf32>, vector<2x50x6xf32>, vector<2x50x6xf32>, vector<2x50x6xf32> -> vector<2x50x30xf32>
    %77 = vector.shape_cast %76 : vector<2x50x30xf32> to vector<100x30xf32>
    %78 = arith.truncf %77 : vector<100x30xf32> to vector<100x30xbf16>
    %c0_28 = arith.constant 0 : index
    %c0_29 = arith.constant 0 : index
    %79 = vector.load %arg10[%c0_28, %c0_29] : memref<30x32xbf16, #tpu.memory_space<vmem>>, vector<30x32xbf16>
    %cst_30 = arith.constant dense<0.000000e+00> : vector<100x32xf32>
    %80 = tpu.matmul %78, %79, %cst_30 {dimension_numbers = #tpu.dot_dimension_numbers<[1], [0], [0], [1], [0, 0, 1, 1], [], []>} : vector<100x30xbf16>, vector<30x32xbf16>, vector<100x32xf32> -> vector<100x32xf32>
    %c0_31 = arith.constant 0 : index
    %c0_32 = arith.constant 0 : index
    %81 = vector.load %arg11[%c0_31, %c0_32] : memref<1x32xf32, #tpu.memory_space<vmem>>, vector<1x32xf32>
    %82 = vector.broadcast %81 : vector<1x32xf32> to vector<100x32xf32>
    %83 = arith.addf %80, %82 : vector<100x32xf32>
    %cst_33 = arith.constant 0.000000e+00 : f32
    %84 = vector.broadcast %cst_33 : f32 to vector<100x32xf32>
    %85 = arith.maximumf %83, %84 : vector<100x32xf32>
    %86 = vector.shape_cast %85 : vector<100x32xf32> to vector<2x50x32xf32>
    %87 = vector.shape_cast %86 : vector<2x50x32xf32> to vector<2x25x2x32xf32>
    %88 = vector.extract_strided_slice %87 {offsets = [0, 0, 0, 0], sizes = [2, 25, 1, 32], strides = [1, 1, 1, 1]} : vector<2x25x2x32xf32> to vector<2x25x1x32xf32>
    %89 = vector.shape_cast %88 : vector<2x25x1x32xf32> to vector<2x25x32xf32>
    %90 = vector.extract_strided_slice %87 {offsets = [0, 0, 1, 0], sizes = [2, 25, 1, 32], strides = [1, 1, 1, 1]} : vector<2x25x2x32xf32> to vector<2x25x1x32xf32>
    %91 = vector.shape_cast %90 : vector<2x25x1x32xf32> to vector<2x25x32xf32>
    %92 = arith.maximumf %89, %91 : vector<2x25x32xf32>
    %cst_34 = arith.constant 0.000000e+00 : f32
    %93 = vector.broadcast %cst_34 : f32 to vector<2x2x32xf32>
    %94 = tpu.concatenate %93, %92, %93 in 1 : vector<2x2x32xf32>, vector<2x25x32xf32>, vector<2x2x32xf32> -> vector<2x29x32xf32>
    %95 = vector.extract_strided_slice %94 {offsets = [0, 0, 0], sizes = [2, 25, 32], strides = [1, 1, 1]} : vector<2x29x32xf32> to vector<2x25x32xf32>
    %96 = vector.extract_strided_slice %94 {offsets = [0, 1, 0], sizes = [2, 25, 32], strides = [1, 1, 1]} : vector<2x29x32xf32> to vector<2x25x32xf32>
    %97 = vector.extract_strided_slice %94 {offsets = [0, 2, 0], sizes = [2, 25, 32], strides = [1, 1, 1]} : vector<2x29x32xf32> to vector<2x25x32xf32>
    %98 = vector.extract_strided_slice %94 {offsets = [0, 3, 0], sizes = [2, 25, 32], strides = [1, 1, 1]} : vector<2x29x32xf32> to vector<2x25x32xf32>
    %99 = vector.extract_strided_slice %94 {offsets = [0, 4, 0], sizes = [2, 25, 32], strides = [1, 1, 1]} : vector<2x29x32xf32> to vector<2x25x32xf32>
    %100 = tpu.concatenate %95, %96, %97, %98, %99 in 2 : vector<2x25x32xf32>, vector<2x25x32xf32>, vector<2x25x32xf32>, vector<2x25x32xf32>, vector<2x25x32xf32> -> vector<2x25x160xf32>
    %101 = vector.shape_cast %100 : vector<2x25x160xf32> to vector<50x160xf32>
    %102 = arith.truncf %101 : vector<50x160xf32> to vector<50x160xbf16>
    %c0_35 = arith.constant 0 : index
    %c0_36 = arith.constant 0 : index
    %103 = vector.load %arg12[%c0_35, %c0_36] : memref<160x64xbf16, #tpu.memory_space<vmem>>, vector<160x64xbf16>
    %cst_37 = arith.constant dense<0.000000e+00> : vector<50x64xf32>
    %104 = tpu.matmul %102, %103, %cst_37 {dimension_numbers = #tpu.dot_dimension_numbers<[1], [0], [0], [1], [0, 0, 1, 1], [], []>} : vector<50x160xbf16>, vector<160x64xbf16>, vector<50x64xf32> -> vector<50x64xf32>
    %c0_38 = arith.constant 0 : index
    %c0_39 = arith.constant 0 : index
    %105 = vector.load %arg13[%c0_38, %c0_39] : memref<1x64xf32, #tpu.memory_space<vmem>>, vector<1x64xf32>
    %106 = vector.broadcast %105 : vector<1x64xf32> to vector<50x64xf32>
    %107 = arith.addf %104, %106 : vector<50x64xf32>
    %cst_40 = arith.constant 0.000000e+00 : f32
    %108 = vector.broadcast %cst_40 : f32 to vector<50x64xf32>
    %109 = arith.maximumf %107, %108 : vector<50x64xf32>
    %110 = vector.shape_cast %109 : vector<50x64xf32> to vector<2x25x64xf32>
    %111 = vector.extract_strided_slice %110 {offsets = [0, 0, 0], sizes = [2, 24, 64], strides = [1, 1, 1]} : vector<2x25x64xf32> to vector<2x24x64xf32>
    %112 = vector.shape_cast %111 : vector<2x24x64xf32> to vector<2x12x2x64xf32>
    %113 = vector.extract_strided_slice %112 {offsets = [0, 0, 0, 0], sizes = [2, 12, 1, 64], strides = [1, 1, 1, 1]} : vector<2x12x2x64xf32> to vector<2x12x1x64xf32>
    %114 = vector.shape_cast %113 : vector<2x12x1x64xf32> to vector<2x12x64xf32>
    %115 = vector.extract_strided_slice %112 {offsets = [0, 0, 1, 0], sizes = [2, 12, 1, 64], strides = [1, 1, 1, 1]} : vector<2x12x2x64xf32> to vector<2x12x1x64xf32>
    %116 = vector.shape_cast %115 : vector<2x12x1x64xf32> to vector<2x12x64xf32>
    %117 = arith.maximumf %114, %116 : vector<2x12x64xf32>
    %cst_41 = arith.constant 0.000000e+00 : f32
    %118 = vector.broadcast %cst_41 : f32 to vector<2x1x64xf32>
    %119 = tpu.concatenate %118, %117, %118 in 1 : vector<2x1x64xf32>, vector<2x12x64xf32>, vector<2x1x64xf32> -> vector<2x14x64xf32>
    %120 = vector.extract_strided_slice %119 {offsets = [0, 0, 0], sizes = [2, 12, 64], strides = [1, 1, 1]} : vector<2x14x64xf32> to vector<2x12x64xf32>
    %121 = vector.extract_strided_slice %119 {offsets = [0, 1, 0], sizes = [2, 12, 64], strides = [1, 1, 1]} : vector<2x14x64xf32> to vector<2x12x64xf32>
    %122 = vector.extract_strided_slice %119 {offsets = [0, 2, 0], sizes = [2, 12, 64], strides = [1, 1, 1]} : vector<2x14x64xf32> to vector<2x12x64xf32>
    %123 = tpu.concatenate %120, %121, %122 in 2 : vector<2x12x64xf32>, vector<2x12x64xf32>, vector<2x12x64xf32> -> vector<2x12x192xf32>
    %124 = vector.shape_cast %123 : vector<2x12x192xf32> to vector<24x192xf32>
    %125 = arith.truncf %124 : vector<24x192xf32> to vector<24x192xbf16>
    %c0_42 = arith.constant 0 : index
    %c0_43 = arith.constant 0 : index
    %126 = vector.load %arg14[%c0_42, %c0_43] : memref<192x128xbf16, #tpu.memory_space<vmem>>, vector<192x128xbf16>
    %cst_44 = arith.constant dense<0.000000e+00> : vector<24x128xf32>
    %127 = tpu.matmul %125, %126, %cst_44 {dimension_numbers = #tpu.dot_dimension_numbers<[1], [0], [0], [1], [0, 0, 1, 1], [], []>} : vector<24x192xbf16>, vector<192x128xbf16>, vector<24x128xf32> -> vector<24x128xf32>
    %c0_45 = arith.constant 0 : index
    %c0_46 = arith.constant 0 : index
    %128 = vector.load %arg15[%c0_45, %c0_46] : memref<1x128xf32, #tpu.memory_space<vmem>>, vector<1x128xf32>
    %129 = vector.broadcast %128 : vector<1x128xf32> to vector<24x128xf32>
    %130 = arith.addf %127, %129 : vector<24x128xf32>
    %cst_47 = arith.constant 0.000000e+00 : f32
    %131 = vector.broadcast %cst_47 : f32 to vector<24x128xf32>
    %132 = arith.maximumf %130, %131 : vector<24x128xf32>
    %133 = vector.shape_cast %132 : vector<24x128xf32> to vector<2x12x128xf32>
    %134 = vector.shape_cast %133 : vector<2x12x128xf32> to vector<2x1536xf32>
    %135 = tpu.concatenate %68, %134 in 1 : vector<2x1536xf32>, vector<2x1536xf32> -> vector<2x3072xf32>
    %136 = arith.truncf %135 : vector<2x3072xf32> to vector<2x3072xbf16>
    %c0_48 = arith.constant 0 : index
    %c0_49 = arith.constant 0 : index
    %137 = vector.load %arg16[%c0_48, %c0_49] : memref<3072x256xbf16, #tpu.memory_space<vmem>>, vector<3072x256xbf16>
    %cst_50 = arith.constant dense<0.000000e+00> : vector<2x256xf32>
    %138 = tpu.matmul %136, %137, %cst_50 {dimension_numbers = #tpu.dot_dimension_numbers<[1], [0], [0], [1], [0, 0, 1, 1], [], []>} : vector<2x3072xbf16>, vector<3072x256xbf16>, vector<2x256xf32> -> vector<2x256xf32>
    %c0_51 = arith.constant 0 : index
    %c0_52 = arith.constant 0 : index
    %139 = vector.load %arg17[%c0_51, %c0_52] : memref<1x256xf32, #tpu.memory_space<vmem>>, vector<1x256xf32>
    %140 = vector.broadcast %139 : vector<1x256xf32> to vector<2x256xf32>
    %141 = arith.addf %138, %140 : vector<2x256xf32>
    %cst_53 = arith.constant 0.000000e+00 : f32
    %142 = vector.broadcast %cst_53 : f32 to vector<2x256xf32>
    %143 = arith.maximumf %141, %142 : vector<2x256xf32>
    %144 = arith.truncf %143 : vector<2x256xf32> to vector<2x256xbf16>
    %c0_54 = arith.constant 0 : index
    %c0_55 = arith.constant 0 : index
    %145 = vector.load %arg18[%c0_54, %c0_55] : memref<256x128xbf16, #tpu.memory_space<vmem>>, vector<256x128xbf16>
    %cst_56 = arith.constant dense<0.000000e+00> : vector<2x128xf32>
    %146 = tpu.matmul %144, %145, %cst_56 {dimension_numbers = #tpu.dot_dimension_numbers<[1], [0], [0], [1], [0, 0, 1, 1], [], []>} : vector<2x256xbf16>, vector<256x128xbf16>, vector<2x128xf32> -> vector<2x128xf32>
    %c0_57 = arith.constant 0 : index
    %c0_58 = arith.constant 0 : index
    %147 = vector.load %arg19[%c0_57, %c0_58] : memref<1x128xf32, #tpu.memory_space<vmem>>, vector<1x128xf32>
    %148 = vector.broadcast %147 : vector<1x128xf32> to vector<2x128xf32>
    %149 = arith.addf %146, %148 : vector<2x128xf32>
    %cst_59 = arith.constant 0.000000e+00 : f32
    %150 = vector.broadcast %cst_59 : f32 to vector<2x128xf32>
    %151 = arith.maximumf %149, %150 : vector<2x128xf32>
    %152 = arith.truncf %151 : vector<2x128xf32> to vector<2x128xbf16>
    %c0_60 = arith.constant 0 : index
    %c0_61 = arith.constant 0 : index
    %153 = vector.load %arg20[%c0_60, %c0_61] : memref<128x64xbf16, #tpu.memory_space<vmem>>, vector<128x64xbf16>
    %cst_62 = arith.constant dense<0.000000e+00> : vector<2x64xf32>
    %154 = tpu.matmul %152, %153, %cst_62 {dimension_numbers = #tpu.dot_dimension_numbers<[1], [0], [0], [1], [0, 0, 1, 1], [], []>} : vector<2x128xbf16>, vector<128x64xbf16>, vector<2x64xf32> -> vector<2x64xf32>
    %c0_63 = arith.constant 0 : index
    %c0_64 = arith.constant 0 : index
    %155 = vector.load %arg21[%c0_63, %c0_64] : memref<1x64xf32, #tpu.memory_space<vmem>>, vector<1x64xf32>
    %156 = vector.broadcast %155 : vector<1x64xf32> to vector<2x64xf32>
    %157 = arith.addf %154, %156 : vector<2x64xf32>
    %158 = vector.extract_strided_slice %157 {offsets = [0, 0], sizes = [2, 32], strides = [1, 1]} : vector<2x64xf32> to vector<2x32xf32>
    %159 = vector.extract_strided_slice %157 {offsets = [0, 32], sizes = [2, 32], strides = [1, 1]} : vector<2x64xf32> to vector<2x32xf32>
    %cst_65 = arith.constant 5.000000e-01 : f32
    %160 = vector.broadcast %cst_65 : f32 to vector<2x32xf32>
    %161 = arith.mulf %160, %159 : vector<2x32xf32>
    %162 = math.exp %161 : vector<2x32xf32>
    %163 = arith.mulf %2, %162 : vector<2x32xf32>
    %164 = arith.addf %158, %163 : vector<2x32xf32>
    %165 = arith.truncf %164 : vector<2x32xf32> to vector<2x32xbf16>
    %c0_66 = arith.constant 0 : index
    %c0_67 = arith.constant 0 : index
    %166 = vector.load %arg22[%c0_66, %c0_67] : memref<32x128xbf16, #tpu.memory_space<vmem>>, vector<32x128xbf16>
    %cst_68 = arith.constant dense<0.000000e+00> : vector<2x128xf32>
    %167 = tpu.matmul %165, %166, %cst_68 {dimension_numbers = #tpu.dot_dimension_numbers<[1], [0], [0], [1], [0, 0, 1, 1], [], []>} : vector<2x32xbf16>, vector<32x128xbf16>, vector<2x128xf32> -> vector<2x128xf32>
    %c0_69 = arith.constant 0 : index
    %c0_70 = arith.constant 0 : index
    %168 = vector.load %arg23[%c0_69, %c0_70] : memref<1x128xf32, #tpu.memory_space<vmem>>, vector<1x128xf32>
    %169 = vector.broadcast %168 : vector<1x128xf32> to vector<2x128xf32>
    %170 = arith.addf %167, %169 : vector<2x128xf32>
    %cst_71 = arith.constant 0.000000e+00 : f32
    %171 = vector.broadcast %cst_71 : f32 to vector<2x128xf32>
    %172 = arith.maximumf %170, %171 : vector<2x128xf32>
    %173 = arith.truncf %172 : vector<2x128xf32> to vector<2x128xbf16>
    %c0_72 = arith.constant 0 : index
    %c0_73 = arith.constant 0 : index
    %174 = vector.load %arg24[%c0_72, %c0_73] : memref<128x256xbf16, #tpu.memory_space<vmem>>, vector<128x256xbf16>
    %cst_74 = arith.constant dense<0.000000e+00> : vector<2x256xf32>
    %175 = tpu.matmul %173, %174, %cst_74 {dimension_numbers = #tpu.dot_dimension_numbers<[1], [0], [0], [1], [0, 0, 1, 1], [], []>} : vector<2x128xbf16>, vector<128x256xbf16>, vector<2x256xf32> -> vector<2x256xf32>
    %c0_75 = arith.constant 0 : index
    %c0_76 = arith.constant 0 : index
    %176 = vector.load %arg25[%c0_75, %c0_76] : memref<1x256xf32, #tpu.memory_space<vmem>>, vector<1x256xf32>
    %177 = vector.broadcast %176 : vector<1x256xf32> to vector<2x256xf32>
    %178 = arith.addf %175, %177 : vector<2x256xf32>
    %cst_77 = arith.constant 0.000000e+00 : f32
    %179 = vector.broadcast %cst_77 : f32 to vector<2x256xf32>
    %180 = arith.maximumf %178, %179 : vector<2x256xf32>
    %181 = arith.truncf %180 : vector<2x256xf32> to vector<2x256xbf16>
    %c0_78 = arith.constant 0 : index
    %c0_79 = arith.constant 0 : index
    %182 = vector.load %arg26[%c0_78, %c0_79] : memref<256x800xbf16, #tpu.memory_space<vmem>>, vector<256x800xbf16>
    %cst_80 = arith.constant dense<0.000000e+00> : vector<2x800xf32>
    %183 = tpu.matmul %181, %182, %cst_80 {dimension_numbers = #tpu.dot_dimension_numbers<[1], [0], [0], [1], [0, 0, 1, 1], [], []>} : vector<2x256xbf16>, vector<256x800xbf16>, vector<2x800xf32> -> vector<2x800xf32>
    %c0_81 = arith.constant 0 : index
    %c0_82 = arith.constant 0 : index
    %184 = vector.load %arg27[%c0_81, %c0_82] : memref<1x800xf32, #tpu.memory_space<vmem>>, vector<1x800xf32>
    %185 = vector.broadcast %184 : vector<1x800xf32> to vector<2x800xf32>
    %186 = arith.addf %183, %185 : vector<2x800xf32>
    %c0_83 = arith.constant 0 : index
    %c0_84 = arith.constant 0 : index
    %187 = vector.load %arg28[%c0_83, %c0_84] : memref<2x800xf32, #tpu.memory_space<vmem>>, vector<2x800xf32>
    tpu.vector_store %arg28[%c0_83, %c0_84], %186 {strides = array<i32>} : memref<2x800xf32, #tpu.memory_space<vmem>>, vector<2x800xf32>,
    %c0_85 = arith.constant 0 : index
    %c0_86 = arith.constant 0 : index
    %188 = vector.load %arg29[%c0_85, %c0_86] : memref<2x64xf32, #tpu.memory_space<vmem>>, vector<2x64xf32>
    tpu.vector_store %arg29[%c0_85, %c0_86], %157 {strides = array<i32>} : memref<2x64xf32, #tpu.memory_space<vmem>>, vector<2x64xf32>,
    return
  }
  func.func @transform_0(%arg0: i32) -> (i32, i32, i32) {
    %c0_i32 = arith.constant 0 : i32
    %c0_i32_0 = arith.constant 0 : i32
    %c0_i32_1 = arith.constant 0 : i32
    %c0_i32_2 = arith.constant 0 : i32
    return %c0_i32, %c0_i32_0, %c0_i32_1 : i32, i32, i32
  }
  func.func @transform_1(%arg0: i32) -> (i32, i32, i32) {
    %c0_i32 = arith.constant 0 : i32
    %c0_i32_0 = arith.constant 0 : i32
    %c0_i32_1 = arith.constant 0 : i32
    %c0_i32_2 = arith.constant 0 : i32
    return %c0_i32, %c0_i32_0, %c0_i32_1 : i32, i32, i32
  }
  func.func @transform_2(%arg0: i32) -> (i32, i32) {
    %c0_i32 = arith.constant 0 : i32
    %c0_i32_0 = arith.constant 0 : i32
    %c0_i32_1 = arith.constant 0 : i32
    return %c0_i32, %c0_i32_0 : i32, i32
  }
  func.func @transform_3(%arg0: i32) -> (i32, i32) {
    %c0_i32 = arith.constant 0 : i32
    %c0_i32_0 = arith.constant 0 : i32
    %c0_i32_1 = arith.constant 0 : i32
    return %c0_i32, %c0_i32_0 : i32, i32
  }
  func.func @transform_4(%arg0: i32) -> (i32, i32) {
    %c0_i32 = arith.constant 0 : i32
    %c0_i32_0 = arith.constant 0 : i32
    %c0_i32_1 = arith.constant 0 : i32
    return %c0_i32, %c0_i32_0 : i32, i32
  }
  func.func @transform_5(%arg0: i32) -> (i32, i32) {
    %c0_i32 = arith.constant 0 : i32
    %c0_i32_0 = arith.constant 0 : i32
    %c0_i32_1 = arith.constant 0 : i32
    return %c0_i32, %c0_i32_0 : i32, i32
  }
  func.func @transform_6(%arg0: i32) -> (i32, i32) {
    %c0_i32 = arith.constant 0 : i32
    %c0_i32_0 = arith.constant 0 : i32
    %c0_i32_1 = arith.constant 0 : i32
    return %c0_i32, %c0_i32_0 : i32, i32
  }
  func.func @transform_7(%arg0: i32) -> (i32, i32) {
    %c0_i32 = arith.constant 0 : i32
    %c0_i32_0 = arith.constant 0 : i32
    %c0_i32_1 = arith.constant 0 : i32
    return %c0_i32, %c0_i32_0 : i32, i32
  }
  func.func @transform_8(%arg0: i32) -> (i32, i32) {
    %c0_i32 = arith.constant 0 : i32
    %c0_i32_0 = arith.constant 0 : i32
    %c0_i32_1 = arith.constant 0 : i32
    return %c0_i32, %c0_i32_0 : i32, i32
  }
  func.func @transform_9(%arg0: i32) -> (i32, i32) {
    %c0_i32 = arith.constant 0 : i32
    %c0_i32_0 = arith.constant 0 : i32
    %c0_i32_1 = arith.constant 0 : i32
    return %c0_i32, %c0_i32_0 : i32, i32
  }
  func.func @transform_10(%arg0: i32) -> (i32, i32) {
    %c0_i32 = arith.constant 0 : i32
    %c0_i32_0 = arith.constant 0 : i32
    %c0_i32_1 = arith.constant 0 : i32
    return %c0_i32, %c0_i32_0 : i32, i32
  }
  func.func @transform_11(%arg0: i32) -> (i32, i32) {
    %c0_i32 = arith.constant 0 : i32
    %c0_i32_0 = arith.constant 0 : i32
    %c0_i32_1 = arith.constant 0 : i32
    return %c0_i32, %c0_i32_0 : i32, i32
  }
  func.func @transform_12(%arg0: i32) -> (i32, i32) {
    %c0_i32 = arith.constant 0 : i32
    %c0_i32_0 = arith.constant 0 : i32
    %c0_i32_1 = arith.constant 0 : i32
    return %c0_i32, %c0_i32_0 : i32, i32
  }
  func.func @transform_13(%arg0: i32) -> (i32, i32) {
    %c0_i32 = arith.constant 0 : i32
    %c0_i32_0 = arith.constant 0 : i32
    %c0_i32_1 = arith.constant 0 : i32
    return %c0_i32, %c0_i32_0 : i32, i32
  }
  func.func @transform_14(%arg0: i32) -> (i32, i32) {
    %c0_i32 = arith.constant 0 : i32
    %c0_i32_0 = arith.constant 0 : i32
    %c0_i32_1 = arith.constant 0 : i32
    return %c0_i32, %c0_i32_0 : i32, i32
  }
  func.func @transform_15(%arg0: i32) -> (i32, i32) {
    %c0_i32 = arith.constant 0 : i32
    %c0_i32_0 = arith.constant 0 : i32
    %c0_i32_1 = arith.constant 0 : i32
    return %c0_i32, %c0_i32_0 : i32, i32
  }
  func.func @transform_16(%arg0: i32) -> (i32, i32) {
    %c0_i32 = arith.constant 0 : i32
    %c0_i32_0 = arith.constant 0 : i32
    %c0_i32_1 = arith.constant 0 : i32
    return %c0_i32, %c0_i32_0 : i32, i32
  }
  func.func @transform_17(%arg0: i32) -> (i32, i32) {
    %c0_i32 = arith.constant 0 : i32
    %c0_i32_0 = arith.constant 0 : i32
    %c0_i32_1 = arith.constant 0 : i32
    return %c0_i32, %c0_i32_0 : i32, i32
  }
  func.func @transform_18(%arg0: i32) -> (i32, i32) {
    %c0_i32 = arith.constant 0 : i32
    %c0_i32_0 = arith.constant 0 : i32
    %c0_i32_1 = arith.constant 0 : i32
    return %c0_i32, %c0_i32_0 : i32, i32
  }
  func.func @transform_19(%arg0: i32) -> (i32, i32) {
    %c0_i32 = arith.constant 0 : i32
    %c0_i32_0 = arith.constant 0 : i32
    %c0_i32_1 = arith.constant 0 : i32
    return %c0_i32, %c0_i32_0 : i32, i32
  }
  func.func @transform_20(%arg0: i32) -> (i32, i32) {
    %c0_i32 = arith.constant 0 : i32
    %c0_i32_0 = arith.constant 0 : i32
    %c0_i32_1 = arith.constant 0 : i32
    return %c0_i32, %c0_i32_0 : i32, i32
  }
  func.func @transform_21(%arg0: i32) -> (i32, i32) {
    %c0_i32 = arith.constant 0 : i32
    %c0_i32_0 = arith.constant 0 : i32
    %c0_i32_1 = arith.constant 0 : i32
    return %c0_i32, %c0_i32_0 : i32, i32
  }
  func.func @transform_22(%arg0: i32) -> (i32, i32) {
    %c0_i32 = arith.constant 0 : i32
    %c0_i32_0 = arith.constant 0 : i32
    %c0_i32_1 = arith.constant 0 : i32
    return %c0_i32, %c0_i32_0 : i32, i32
  }
  func.func @transform_23(%arg0: i32) -> (i32, i32) {
    %c0_i32 = arith.constant 0 : i32
    %c0_i32_0 = arith.constant 0 : i32
    %c0_i32_1 = arith.constant 0 : i32
    return %c0_i32, %c0_i32_0 : i32, i32
  }
  func.func @transform_24(%arg0: i32) -> (i32, i32) {
    %c0_i32 = arith.constant 0 : i32
    %c0_i32_0 = arith.constant 0 : i32
    %c0_i32_1 = arith.constant 0 : i32
    return %c0_i32, %c0_i32_0 : i32, i32
  }
  func.func @transform_25(%arg0: i32) -> (i32, i32) {
    %c0_i32 = arith.constant 0 : i32
    %c0_i32_0 = arith.constant 0 : i32
    %c0_i32_1 = arith.constant 0 : i32
    return %c0_i32, %c0_i32_0 : i32, i32
  }
  func.func @transform_26(%arg0: i32) -> (i32, i32) {
    %c0_i32 = arith.constant 0 : i32
    %c0_i32_0 = arith.constant 0 : i32
    %c0_i32_1 = arith.constant 0 : i32
    return %c0_i32, %c0_i32_0 : i32, i32
  }
  func.func @transform_27(%arg0: i32) -> (i32, i32) {
    %c0_i32 = arith.constant 0 : i32
    %c0_i32_0 = arith.constant 0 : i32
    %c0_i32_1 = arith.constant 0 : i32
    return %c0_i32, %c0_i32_0 : i32, i32
  }
  func.func @transform_28(%arg0: i32) -> (i32, i32) {
    %c0_i32 = arith.constant 0 : i32
    %c0_i32_0 = arith.constant 0 : i32
    %c0_i32_1 = arith.constant 0 : i32
    return %c0_i32, %c0_i32_0 : i32, i32
  }
}

</mosaic_0001>

<bundles_post_ra>
// kernel: vae_forward.1
= control target key start
LH: loop header
LB: loop body
LE: loop exit
PB: predicated region body
PF: predicated region fallthrough
CT: control target
= control target key end

     0   :  { %s17535_s0 = inlined_call_operand.vmem [shape: f32[2,50,10], index: 0, kind: input, shape index: {}]   ;;  %s17536_s1 = inlined_call_operand.vmem [shape: f32[2,50,6], index: 1, kind: input, shape index: {}]   ;;  %s17537_s2 = inlined_call_operand.hbm [shape: f32[2,32], index: 2, kind: input, shape index: {}]   ;;  %s17538_s3 = inlined_call_operand.vmem [shape: bf16[50,32], index: 3, kind: input, shape index: {}]   ;;  %s17539_s4 = inlined_call_operand.hbm [shape: f32[1,32], index: 4, kind: input, shape index: {}]   ;;  %s17540_s5 = inlined_call_operand.vmem [shape: bf16[160,64], index: 5, kind: input, shape index: {}]   ;;  %s17541_s6 = inlined_call_operand.hbm [shape: f32[1,64], index: 6, kind: input, shape index: {}]   ;;  %s17542_s7 = inlined_call_operand.hbm [shape: bf16[192,128], index: 7, kind: input, shape index: {}]   ;;  %s17543_s8 = inlined_call_operand.hbm [shape: f32[1,128], index: 8, kind: input, shape index: {}]   ;;  %s17544_s9 = inlined_call_operand.hbm [shape: bf16[30,32], index: 9, kind: input, shape index: {}]   ;;  %s17545_s10 = inlined_call_operand.hbm [shape: f32[1,32], index: 10, kind: input, shape index: {}]   ;;  %s17546_s11 = inlined_call_operand.vmem [shape: bf16[160,64], index: 11, kind: input, shape index: {}]   ;;  %s17547_s12 = inlined_call_operand.hbm [shape: f32[1,64], index: 12, kind: input, shape index: {}]   ;;  %s17548_s13 = inlined_call_operand.hbm [shape: bf16[192,128], index: 13, kind: input, shape index: {}]   ;;  %s17549_s14 = inlined_call_operand.hbm [shape: f32[1,128], index: 14, kind: input, shape index: {}]   ;;  %s17550_s15 = inlined_call_operand.hbm [shape: bf16[3072,256], index: 15, kind: input, shape index: {}]   ;;  %s17551_s16 = inlined_call_operand.hbm [shape: f32[1,256], index: 16, kind: input, shape index: {}]   ;;  %s17552_s17 = inlined_call_operand.hbm [shape: bf16[256,128], index: 17, kind: input, shape index: {}]   ;;  %s17553_s18 = inlined_call_operand.hbm [shape: f32[1,128], index: 18, kind: input, shape index: {}]   ;;  %s17554_s19 = inlined_call_operand.vmem [shape: bf16[128,64], index: 19, kind: input, shape index: {}]   ;;  %s17555_s20 = inlined_call_operand.hbm [shape: f32[1,64], index: 20, kind: input, shape index: {}]   ;;  %s17556_s21 = inlined_call_operand.hbm [shape: bf16[32,128], index: 21, kind: input, shape index: {}]   ;;  %s17557_s22 = inlined_call_operand.hbm [shape: f32[1,128], index: 22, kind: input, shape index: {}]   ;;  %s17558_s23 = inlined_call_operand.hbm [shape: bf16[128,256], index: 23, kind: input, shape index: {}]   ;;  %s17559_s24 = inlined_call_operand.hbm [shape: f32[1,256], index: 24, kind: input, shape index: {}]   ;;  %s17560_s25 = inlined_call_operand.vmem [shape: bf16[256,800], index: 25, kind: input, shape index: {}]   ;;  %s17561_s26 = inlined_call_operand.hbm [shape: f32[1,800], index: 26, kind: input, shape index: {}]   ;;  %s17562_s27 = inlined_call_operand.vmem [shape: f32[2,800], index: 27, kind: output, shape index: {0}]   ;;  %s17563_s28 = inlined_call_operand.vmem [shape: f32[2,64], index: 28, kind: output, shape index: {1}]  }
   0x1   :  { %17592 = sst [smem:[#allocation51_spill]] %s17535_s0 }
   0x2   :  { %17593 = sst [smem:[#allocation52_spill]] %s17536_s1 }
   0x3   :  { %17594 = sst [smem:[#allocation53_spill]] %s17537_s2 }
   0x4   :  { %17595 = sst [smem:[#allocation54_spill]] %s17538_s3 }
   0x5   :  { %17596 = sst [smem:[#allocation55_spill]] %s17539_s4 }
   0x6   :  { %17597 = sst [smem:[#allocation56_spill]] %s17540_s5 }
   0x7   :  { %17598 = sst [smem:[#allocation57_spill]] %s17541_s6 }
   0x8   :  { %17599 = sst [smem:[#allocation58_spill]] %s17542_s7 }
   0x9   :  { %17600 = sst [smem:[#allocation59_spill]] %s17543_s8 }
   0xa   :  { %17601 = sst [smem:[#allocation60_spill]] %s17544_s9 }
   0xb   :  { %17602 = sst [smem:[#allocation61_spill]] %s17545_s10 }
   0xc   :  { %17603 = sst [smem:[#allocation62_spill]] %s17546_s11 }
   0xd   :  { %17604 = sst [smem:[#allocation63_spill]] %s17547_s12 }
   0xe   :  { %17605 = sst [smem:[#allocation64_spill]] %s17562_s27 }
   0xf   :  { %34 = vsyncpa [#allocation3], 0 }
  0x10   :  { %35 = vsyncpa [#allocation5], 0 }
  0x11   :  { %36 = vsyncpa [#allocation8], 0 }
  0x12   :  { %37 = vsyncpa [#allocation11], 0 }
  0x13   :  { %38 = vsyncpa [#allocation14], 0 }
  0x14   :  { %39 = vsyncpa [#allocation17], 0 }
  0x15   :  { %40 = vsyncpa [#allocation20], 0 }
  0x16   :  { %41 = vsyncpa [#allocation23], 0 }
  0x17   :  { %42 = vsyncpa [#allocation26], 0 }
  0x18   :  { %43 = vsyncpa [#allocation29], 0 }
  0x19   :  { %44 = vsyncpa [#allocation32], 0  ;;  %s14429_s8 = smov [#allocation4]   ;;  %s14430_s9 = smov [#allocation7]  }
  0x1a   :  { %s67_s5 = sshll.u32 %s14429_s8, 4  ;;  %s88_s30 = sshll.u32 %s14430_s9, 4  ;;  %s68_s5 = int_to_ptr.vmem [resolvable:$true] %s67_s5  ;;  %s89_s30 = int_to_ptr.vmem [resolvable:$true] %s88_s30 }
  0x1b   :  { %s14015_s3 = scalar_lea.vmem %s68_s5, 16  ;;  %s14019_s6 = scalar_lea.vmem %s68_s5, 32 }
  0x1c   :  { %p14016_p0 = scmp.ne.s32.totalorder %s68_s5, %s14015_s3  ;;  %p14020_p1 = scmp.lt.s32.totalorder %s68_s5, %s68_s5 }
  0x1d   :  { %p14021_p2 = scmp.lt.s32.totalorder %s14019_s6, %s14015_s3 }
  0x1f   :  { %p14022_p3 = por %p14021_p2, %p14020_p1 }
  0x21   :  { %p14023_p4 = pnand %p14022_p3, %p14016_p0 }
  0x23   :  { %14026 = shalt.err (!%p14023_p4)
}
  0x24   :  { %s17606_s11 = sld [smem:[#allocation55_spill]]  ;;  %s14035_s29 = scalar_lea.vmem %s89_s30, 1536 }
  0x25   :  { %p14036_p5 = scmp.ne.s32.totalorder %s89_s30, %s14035_s29  ;;  %p14040_p6 = scmp.lt.s32.totalorder %s89_s30, %s89_s30 }
  0x26   :  { %p14041_p7 = scmp.lt.s32.totalorder %s14035_s29, %s14035_s29 }
  0x28   :  { %p14042_p8 = por %p14041_p7, %p14040_p6 }
  0x2a   :  { %70 = dma.hbm_to_vmem [thread:$0]  %s17606_s11, 16, %s68_s5, [#allocation5]  }
  0x2b   :  { %p14043_p9 = pnand %p14042_p8, %p14036_p5 }
  0x2d   :  { %14046 = shalt.err (!%p14043_p9)
}
  0x2e   :  { %s14431_s2 = smov 64   ;;  %s14432_s7 = smov 4  }
  0x2f   :  { %s17607_s4 = sld [smem:[#allocation58_spill]]  ;;  %s14433_s8 = smov [#allocation10]  }
  0x30   :  { %s110_s9 = sshll.u32 %s14433_s8, 4  ;;  %s14434_s3 = smov [#allocation13]   ;;  %s111_s9 = int_to_ptr.vmem [resolvable:$true] %s110_s9 }
  0x31   :  { %s135_s5 = sshll.u32 %s14434_s3, 4  ;;  %s14055_s6 = scalar_lea.vmem %s111_s9, 256  ;;  %s136_s5 = int_to_ptr.vmem [resolvable:$true] %s135_s5 }
  0x32   :  { %p14056_p10 = scmp.ne.s32.totalorder %s111_s9, %s14055_s6  ;;  %p14060_p11 = scmp.lt.s32.totalorder %s111_s9, %s111_s9 }
  0x33   :  { %p14061_p12 = scmp.lt.s32.totalorder %s14055_s6, %s14055_s6 }
  0x35   :  { %94 = dma.hbm_to_vmem [thread:$0]  %s17607_s4, 1536, %s89_s30, [#allocation8], %s14431_s2, %s14431_s2, %s14432_s7  }
  0x36   :  { %p14062_p13 = por %p14061_p12, %p14060_p11 }
  0x38   :  { %p14063_p0 = pnand %p14062_p13, %p14056_p10 }
  0x3a   :  { %14066 = shalt.err (!%p14063_p0)
}
  0x3b   :  { %s17608_s11 = sld [smem:[#allocation60_spill]]  ;;  %s14075_s30 = scalar_lea.vmem %s136_s5, 16 }
  0x3c   :  { %p14076_p1 = scmp.ne.s32.totalorder %s136_s5, %s14075_s30  ;;  %s14079_s29 = scalar_lea.vmem %s136_s5, 32 }
  0x3d   :  { %p14080_p2 = scmp.lt.s32.totalorder %s136_s5, %s136_s5  ;;  %p14081_p3 = scmp.lt.s32.totalorder %s14079_s29, %s14075_s30 }
  0x3f   :  { %p14082_p4 = por %p14081_p3, %p14080_p2 }
  0x41   :  { %116 = dma.hbm_to_vmem [thread:$0]  %s17608_s11, 256, %s111_s9, [#allocation11], %s14431_s2, %s14431_s2, %s14432_s7  }
  0x42   :  { %p14083_p5 = pnand %p14082_p4, %p14076_p1 }
  0x44   :  { %14086 = shalt.err (!%p14083_p5)
}
  0x45   :  { %s17609_s4 = sld [smem:[#allocation63_spill]]  ;;  %s14435_s8 = smov [#allocation16]  }
  0x46   :  { %s157_s3 = sshll.u32 %s14435_s8, 4  ;;  %s14436_s6 = smov [#allocation19]   ;;  %s158_s3 = int_to_ptr.vmem [resolvable:$true] %s157_s3 }
  0x47   :  { %s179_s27 = sshll.u32 %s14436_s6, 4  ;;  %s14095_s10 = scalar_lea.vmem %s158_s3, 16  ;;  %s180_s27 = int_to_ptr.vmem [resolvable:$true] %s179_s27 }
  0x48   :  { %p14096_p6 = scmp.ne.s32.totalorder %s158_s3, %s14095_s10  ;;  %s14099_s9 = scalar_lea.vmem %s158_s3, 32 }
  0x49   :  { %p14100_p7 = scmp.lt.s32.totalorder %s158_s3, %s158_s3  ;;  %p14101_p8 = scmp.lt.s32.totalorder %s14099_s9, %s14095_s10 }
  0x4b   :  { %138 = dma.hbm_to_vmem [thread:$0]  %s17609_s4, 16, %s136_s5, [#allocation14]  }
  0x4c   :  { %p14102_p9 = por %p14101_p8, %p14100_p7 }
  0x4e   :  { %p14103_p10 = pnand %p14102_p9, %p14096_p6 }
  0x50   :  { %14106 = shalt.err (!%p14103_p10)
}
  0x51   :  { %160 = dma.hbm_to_vmem [thread:$0]  %s17549_s14, 16, %s158_s3, [#allocation17]  }
  0x52   :  { %s14115_s30 = scalar_lea.vmem %s180_s27, 32  ;;  %p14120_p12 = scmp.lt.s32.totalorder %s180_s27, %s180_s27 }
  0x53   :  { %p14116_p11 = scmp.ne.s32.totalorder %s180_s27, %s14115_s30  ;;  %p14121_p13 = scmp.lt.s32.totalorder %s14115_s30, %s14115_s30 }
  0x55   :  { %p14122_p0 = por %p14121_p13, %p14120_p12 }
  0x57   :  { %p14123_p1 = pnand %p14122_p0, %p14116_p11 }
  0x59   :  { %14126 = shalt.err (!%p14123_p1)
}
  0x5a   :  { %182 = dma.hbm_to_vmem [thread:$0]  %s17551_s16, 32, %s180_s27, [#allocation20]  }
  0x5b   :  { %s14437_s12 = smov [#allocation22]   ;;  %s14438_s4 = smov [#allocation25]  }
  0x5c   :  { %s201_s1 = sshll.u32 %s14437_s12, 4  ;;  %s222_s8 = sshll.u32 %s14438_s4, 4  ;;  %s202_s1 = int_to_ptr.vmem [resolvable:$true] %s201_s1  ;;  %s223_s8 = int_to_ptr.vmem [resolvable:$true] %s222_s8 }
  0x5d   :  { %s14135_s6 = scalar_lea.vmem %s202_s1, 16  ;;  %s14139_s14 = scalar_lea.vmem %s202_s1, 32 }
  0x5e   :  { %p14136_p2 = scmp.ne.s32.totalorder %s202_s1, %s14135_s6  ;;  %p14140_p3 = scmp.lt.s32.totalorder %s202_s1, %s202_s1 }
  0x5f   :  { %p14141_p4 = scmp.lt.s32.totalorder %s14139_s14, %s14135_s6 }
  0x61   :  { %p14142_p5 = por %p14141_p4, %p14140_p3 }
  0x63   :  { %p14143_p6 = pnand %p14142_p5, %p14136_p2 }
  0x65   :  { %14146 = shalt.err (!%p14143_p6)
}
  0x66   :  { %204 = dma.hbm_to_vmem [thread:$0]  %s17553_s18, 16, %s202_s1, [#allocation23]  }
  0x67   :  { %s14155_s9 = scalar_lea.vmem %s223_s8, 256  ;;  %p14160_p8 = scmp.lt.s32.totalorder %s223_s8, %s223_s8 }
  0x68   :  { %p14156_p7 = scmp.ne.s32.totalorder %s223_s8, %s14155_s9  ;;  %p14161_p9 = scmp.lt.s32.totalorder %s14155_s9, %s14155_s9 }
  0x6a   :  { %p14162_p10 = por %p14161_p9, %p14160_p8 }
  0x6c   :  { %p14163_p11 = pnand %p14162_p10, %p14156_p7 }
  0x6e   :  { %14166 = shalt.err (!%p14163_p11)
}
  0x6f   :  { %228 = dma.hbm_to_vmem [thread:$0]  %s17556_s21, 256, %s223_s8, [#allocation26], %s14431_s2, %s14431_s2, %s14432_s7  }
  0x70   :  { %s14439_s0 = smov [#allocation28]   ;;  %s14440_s30 = smov [#allocation2]  }
  0x71   :  { %s244_s11 = sshll.u32 %s14439_s0, 4  ;;  %s55_s5 = sshll.u32 %s14440_s30, 4  ;;  %s245_s11 = int_to_ptr.vmem [resolvable:$true] %s244_s11  ;;  %s56_s5 = int_to_ptr.vmem [resolvable:$true] %s55_s5 }
  0x72   :  { %s14175_s18 = scalar_lea.vmem %s245_s11, 2048  ;;  %p14180_p13 = scmp.lt.s32.totalorder %s245_s11, %s245_s11 }
  0x73   :  { %p14176_p12 = scmp.ne.s32.totalorder %s245_s11, %s14175_s18  ;;  %p14181_p0 = scmp.lt.s32.totalorder %s14175_s18, %s14175_s18 }
  0x75   :  { %p14182_p1 = por %p14181_p0, %p14180_p13 }
  0x77   :  { %p14183_p2 = pnand %p14182_p1, %p14176_p12 }
  0x79   :  { %14186 = shalt.err (!%p14183_p2)
}
  0x7a   :  { %s14441_s29 = smov 128   ;;  %s14442_s12 = smov 8  }
  0x7b   :  { %250 = dma.hbm_to_vmem [thread:$0]  %s17558_s23, 2048, %s245_s11, [#allocation29], %s14441_s29, %s14441_s29, %s14442_s12  }
  0x7c   :  { %s14195_s4 = scalar_lea.vmem %s56_s5, 32  ;;  %p14200_p4 = scmp.lt.s32.totalorder %s56_s5, %s56_s5 }
  0x7d   :  { %p14196_p3 = scmp.ne.s32.totalorder %s56_s5, %s14195_s4  ;;  %p14201_p5 = scmp.lt.s32.totalorder %s14195_s4, %s14195_s4 }
  0x7f   :  { %p14202_p6 = por %p14201_p5, %p14200_p4 }
  0x81   :  { %p14203_p7 = pnand %p14202_p6, %p14196_p3 }
  0x83   :  { %14206 = shalt.err (!%p14203_p7)
}
  0x84   :  { %s17610_s14 = sld [smem:[#allocation53_spill]]  ;;  %s14443_s3 = smov [#allocation6]  }
  0x85   :  { %s79_s10 = sshll.u32 %s14443_s3, 4  ;;  %s14444_s9 = smov [#allocation9]   ;;  %s80_s10 = int_to_ptr.vmem [resolvable:$true] %s79_s10 }
  0x86   :  { %s101_s16 = sshll.u32 %s14444_s9, 4  ;;  %s14215_s27 = scalar_lea.vmem %s80_s10, 16  ;;  %s102_s16 = int_to_ptr.vmem [resolvable:$true] %s101_s16 }
  0x87   :  { %p14216_p8 = scmp.ne.s32.totalorder %s80_s10, %s14215_s27  ;;  %s14219_s23 = scalar_lea.vmem %s80_s10, 32 }
  0x88   :  { %p14220_p9 = scmp.lt.s32.totalorder %s80_s10, %s80_s10  ;;  %p14221_p10 = scmp.lt.s32.totalorder %s14219_s23, %s14215_s27 }
  0x8a   :  { %58 = dma.hbm_to_vmem [thread:$0]  %s17610_s14, 32, %s56_s5, [#allocation3]  }
  0x8b   :  { %p14222_p11 = por %p14221_p10, %p14220_p9 }
  0x8d   :  { %p14223_p12 = pnand %p14222_p11, %p14216_p8 }
  0x8f   :  { %14226 = shalt.err (!%p14223_p12)
}
  0x90   :  { %s17611_s30 = sld [smem:[#allocation57_spill]]  ;;  %s14235_s18 = scalar_lea.vmem %s102_s16, 16 }
  0x91   :  { %p14236_p13 = scmp.ne.s32.totalorder %s102_s16, %s14235_s18  ;;  %s14239_s5 = scalar_lea.vmem %s102_s16, 32 }
  0x92   :  { %p14240_p0 = scmp.lt.s32.totalorder %s102_s16, %s102_s16  ;;  %p14241_p1 = scmp.lt.s32.totalorder %s14239_s5, %s14235_s18 }
  0x94   :  { %p14242_p2 = por %p14241_p1, %p14240_p0 }
  0x96   :  { %82 = dma.hbm_to_vmem [thread:$0]  %s17611_s30, 16, %s80_s10, [#allocation5]  }
  0x97   :  { %p14243_p3 = pnand %p14242_p2, %p14236_p13 }
  0x99   :  { %14246 = shalt.err (!%p14243_p3)
}
  0x9a   :  { %s17612_s4 = sld [smem:[#allocation59_spill]]  ;;  %s14445_s8 = smov [#allocation12]  }
  0x9b   :  { %s123_s6 = sshll.u32 %s14445_s8, 4  ;;  %s14446_s14 = smov [#allocation15]   ;;  %s124_s6 = int_to_ptr.vmem [resolvable:$true] %s123_s6 }
  0x9c   :  { %s144_s3 = sshll.u32 %s14446_s14, 4  ;;  %s14255_s9 = scalar_lea.vmem %s124_s6, 16  ;;  %s145_s3 = int_to_ptr.vmem [resolvable:$true] %s144_s3 }
  0x9d   :  { %p14256_p4 = scmp.ne.s32.totalorder %s124_s6, %s14255_s9  ;;  %s14259_s10 = scalar_lea.vmem %s124_s6, 32 }
  0x9e   :  { %p14260_p5 = scmp.lt.s32.totalorder %s124_s6, %s124_s6  ;;  %p14261_p6 = scmp.lt.s32.totalorder %s14259_s10, %s14255_s9 }
  0xa0   :  { %104 = dma.hbm_to_vmem [thread:$0]  %s17612_s4, 16, %s102_s16, [#allocation8]  }
  0xa1   :  { %p14262_p7 = por %p14261_p6, %p14260_p5 }
  0xa3   :  { %p14263_p8 = pnand %p14262_p7, %p14256_p4 }
  0xa5   :  { %14266 = shalt.err (!%p14263_p8)
}
  0xa6   :  { %s17613_s0 = sld [smem:[#allocation61_spill]]  ;;  %s14275_s11 = scalar_lea.vmem %s145_s3, 1536 }
  0xa7   :  { %p14276_p9 = scmp.ne.s32.totalorder %s145_s3, %s14275_s11  ;;  %p14280_p10 = scmp.lt.s32.totalorder %s145_s3, %s145_s3 }
  0xa8   :  { %p14281_p11 = scmp.lt.s32.totalorder %s14275_s11, %s14275_s11 }
  0xaa   :  { %p14282_p12 = por %p14281_p11, %p14280_p10 }
  0xac   :  { %126 = dma.hbm_to_vmem [thread:$0]  %s17613_s0, 16, %s124_s6, [#allocation11]  }
  0xad   :  { %p14283_p13 = pnand %p14282_p12, %p14276_p9 }
  0xaf   :  { %14286 = shalt.err (!%p14283_p13)
}
  0xb0   :  { %150 = dma.hbm_to_vmem [thread:$0]  %s17548_s13, 1536, %s145_s3, [#allocation14], %s14431_s2, %s14431_s2, %s14432_s7  }
  0xb1   :  { %s14447_s18 = smov [#allocation18]   ;;  %s14448_s1 = smov [#allocation21]  }
  0xb2   :  { %s166_s5 = sshll.u32 %s14447_s18, 4  ;;  %s188_s21 = sshll.u32 %s14448_s1, 4  ;;  %s167_s5 = int_to_ptr.vmem [resolvable:$true] %s166_s5  ;;  %s189_s21 = int_to_ptr.vmem [resolvable:$true] %s188_s21 }
  0xb3   :  { %s14295_s4 = scalar_lea.vmem %s167_s5, 49152  ;;  %p14300_p1 = scmp.lt.s32.totalorder %s167_s5, %s167_s5 }
  0xb4   :  { %p14296_p0 = scmp.ne.s32.totalorder %s167_s5, %s14295_s4  ;;  %p14301_p2 = scmp.lt.s32.totalorder %s14295_s4, %s14295_s4 }
  0xb6   :  { %p14302_p3 = por %p14301_p2, %p14300_p1 }
  0xb8   :  { %p14303_p4 = pnand %p14302_p3, %p14296_p0 }
  0xba   :  { %14306 = shalt.err (!%p14303_p4)
}
  0xbb   :  { %172 = dma.hbm_to_vmem [thread:$0]  %s17550_s15, 49152, %s167_s5, [#allocation17], %s14441_s29, %s14441_s29, %s14442_s12  }
  0xbc   :  { %s14315_s13 = scalar_lea.vmem %s189_s21, 2048  ;;  %p14320_p6 = scmp.lt.s32.totalorder %s189_s21, %s189_s21 }
  0xbd   :  { %p14316_p5 = scmp.ne.s32.totalorder %s189_s21, %s14315_s13  ;;  %p14321_p7 = scmp.lt.s32.totalorder %s14315_s13, %s14315_s13 }
  0xbf   :  { %p14322_p8 = por %p14321_p7, %p14320_p6 }
  0xc1   :  { %p14323_p9 = pnand %p14322_p8, %p14316_p5 }
  0xc3   :  { %14326 = shalt.err (!%p14323_p9)
}
  0xc4   :  { %194 = dma.hbm_to_vmem [thread:$0]  %s17552_s17, 2048, %s189_s21, [#allocation20], %s14431_s2, %s14431_s2, %s14432_s7  }
  0xc5   :  { %s14449_s9 = smov [#allocation24]   ;;  %s14450_s27 = smov [#allocation27]  }
  0xc6   :  { %s213_s10 = sshll.u32 %s14449_s9, 4  ;;  %s235_s23 = sshll.u32 %s14450_s27, 4  ;;  %s214_s10 = int_to_ptr.vmem [resolvable:$true] %s213_s10  ;;  %s236_s23 = int_to_ptr.vmem [resolvable:$true] %s235_s23 }
  0xc7   :  { %s14335_s15 = scalar_lea.vmem %s214_s10, 16  ;;  %s14339_s29 = scalar_lea.vmem %s214_s10, 32 }
  0xc8   :  { %p14336_p10 = scmp.ne.s32.totalorder %s214_s10, %s14335_s15  ;;  %p14340_p11 = scmp.lt.s32.totalorder %s214_s10, %s214_s10 }
  0xc9   :  { %p14341_p12 = scmp.lt.s32.totalorder %s14339_s29, %s14335_s15 }
  0xcb   :  { %p14342_p13 = por %p14341_p12, %p14340_p11 }
  0xcd   :  { %p14343_p0 = pnand %p14342_p13, %p14336_p10 }
  0xcf   :  { %14346 = shalt.err (!%p14343_p0)
}
  0xd0   :  { %216 = dma.hbm_to_vmem [thread:$0]  %s17555_s20, 16, %s214_s10, [#allocation23]  }
  0xd1   :  { %s14355_s11 = scalar_lea.vmem %s236_s23, 16  ;;  %s14359_s17 = scalar_lea.vmem %s236_s23, 32 }
  0xd2   :  { %p14356_p1 = scmp.ne.s32.totalorder %s236_s23, %s14355_s11  ;;  %p14360_p2 = scmp.lt.s32.totalorder %s236_s23, %s236_s23 }
  0xd3   :  { %p14361_p3 = scmp.lt.s32.totalorder %s14359_s17, %s14355_s11 }
  0xd5   :  { %p14362_p4 = por %p14361_p3, %p14360_p2 }
  0xd7   :  { %p14363_p5 = pnand %p14362_p4, %p14356_p1 }
  0xd9   :  { %14366 = shalt.err (!%p14363_p5)
}
  0xda   :  { %238 = dma.hbm_to_vmem [thread:$0]  %s17557_s22, 16, %s236_s23, [#allocation26]  }
  0xdb   :  { %s14451_s30 = smov [#allocation30]   ;;  %s14452_s5 = smov [#allocation31]  }
  0xdc   :  { %s257_s18 = sshll.u32 %s14451_s30, 4  ;;  %s269_s1 = sshll.u32 %s14452_s5, 4  ;;  %s258_s18 = int_to_ptr.vmem [resolvable:$true] %s257_s18  ;;  %s270_s1 = int_to_ptr.vmem [resolvable:$true] %s269_s1 }
  0xdd   :  { %s14375_s21 = scalar_lea.vmem %s258_s18, 32  ;;  %p14380_p7 = scmp.lt.s32.totalorder %s258_s18, %s258_s18 }
  0xde   :  { %p14376_p6 = scmp.ne.s32.totalorder %s258_s18, %s14375_s21  ;;  %p14381_p8 = scmp.lt.s32.totalorder %s14375_s21, %s14375_s21 }
  0xe0   :  { %p14382_p9 = por %p14381_p8, %p14380_p7 }
  0xe2   :  { %p14383_p10 = pnand %p14382_p9, %p14376_p6 }
  0xe4   :  { %14386 = shalt.err (!%p14383_p10)
}
  0xe5   :  { %260 = dma.hbm_to_vmem [thread:$0]  %s17559_s24, 32, %s258_s18, [#allocation29]  }
  0xe6   :  { %s14395_s8 = scalar_lea.vmem %s270_s1, 112  ;;  %s14399_s22 = scalar_lea.vmem %s270_s1, 128 }
  0xe7   :  { %p14396_p11 = scmp.ne.s32.totalorder %s270_s1, %s14395_s8  ;;  %p14400_p12 = scmp.lt.s32.totalorder %s270_s1, %s270_s1 }
  0xe8   :  { %p14401_p13 = scmp.lt.s32.totalorder %s14399_s22, %s14395_s8 }
  0xea   :  { %p14402_p0 = por %p14401_p13, %p14400_p12 }
  0xec   :  { %p14403_p1 = pnand %p14402_p0, %p14396_p11 }
  0xee   :  { %14406 = shalt.err (!%p14403_p1)
}
  0xef   :  { %272 = dma.hbm_to_vmem [thread:$0]  %s17561_s26, 112, %s270_s1, [#allocation32]  }
  0xf0   :  { %14407 = dma.done.wait [#allocation3], 32  }
  0xf1   :  { %14408 = vsyncadd [#allocation3], 4294967264 }
  0xf2   :  { %14409 = dma.done.wait [#allocation5], 32  }
  0xf3   :  { %14410 = vsyncadd [#allocation5], 4294967264 }
  0xf4   :  { %14411 = dma.done.wait [#allocation8], 1552  }
  0xf5   :  { %14412 = vsyncadd [#allocation8], 4294965744 }
  0xf6   :  { %14413 = dma.done.wait [#allocation11], 272  }
  0xf7   :  { %14414 = vsyncadd [#allocation11], 4294967024 }
  0xf8   :  { %14415 = dma.done.wait [#allocation14], 1552  }
  0xf9   :  { %14416 = vsyncadd [#allocation14], 4294965744 }
  0xfa   :  { %14417 = dma.done.wait [#allocation17], 49168  }
  0xfb   :  { %14418 = vsyncadd [#allocation17], 4294918128 }
  0xfc   :  { %14419 = dma.done.wait [#allocation20], 2080  }
  0xfd   :  { %14420 = vsyncadd [#allocation20], 4294965216 }
  0xfe   :  { %14421 = dma.done.wait [#allocation23], 32  }
  0xff   :  { %14422 = vsyncadd [#allocation23], 4294967264 }
 0x100   :  { %14423 = dma.done.wait [#allocation26], 272  }
 0x101   :  { %14424 = vsyncadd [#allocation26], 4294967024 }
 0x102   :  { %14425 = dma.done.wait [#allocation29], 2080  }
 0x103   :  { %14426 = vsyncadd [#allocation29], 4294965216 }
 0x104   :  { %14427 = dma.done.wait [#allocation32], 112  }
 0x105   :  { %14428 = vsyncadd [#allocation32], 4294967184  ;;  %s17614_s14 = sld [smem:[#allocation51_spill]]  ;;  %vm17588_vm0 = vcmask 1041408   ;;  %vm496_vm1 = vcmask 1045504   ;;  %vm427_vm2 = vcmask 1046528  }
 0x106   :  { %s14453_s0 = smov 20   ;;  %s14454_s11 = smov 10   ;;  %vm565_vm3 = vcmask 1044480   ;;  %vm420_vm4 = vcmask 1043456   ;;  %v17575_v63 = vmov 0.0   ;;  %vm1283_vm5 = vcmask 1040384  }
 0x107   :  { %s14455_s17 = smov 30   ;;  %s14456_s5 = smov 40   ;;  %13034 = vmatprep.subr.bf16.mxu0 %v17575_v63  ;;  %vm14458_vm6 = vmmov 0   ;;  %vm702_vm7 = vcmask 80896   ;;  %vm717_vm8 = vcmask 162816   ;;  %vm732_vm9 = vcmask 244736  }
 0x108   :  { %s17615_s8 = sld [smem:[#allocation54_spill]]  ;;  %13042 = vmatprep.mubr.msk.bf16.mxu0 %vm14458_vm6, %v17575_v63  ;;  %vm747_vm10 = vcmask 326656   ;;  %vm1261_vm11 = vcmask 408576   ;;  %s14460_s21 = smov 6   ;;  %vm2113_vm12 = vcmask 1043459   ;;  %vm2115_vm13 = vcmask 1044484  }
 0x109   :  { %s14461_s20 = smov 12   ;;  %s14462_s13 = smov 18   ;;  %vm17591_vm14 = vcmask 1045509   ;;  %vm17572_vm15 = vcmask 1046534  }
 0x10a   :  { %s14463_s24 = smov 24   ;;  %s14464_s15 = smov 32  }
 0x10b   :  { %v334_v0 = vld [vmem:[%s17614_s14] sm:$0xff]  ;;  %v335_v1 = vld [vmem:[%s17614_s14 + $0x8] sm:$0xff]  ;;  %v336_v2 = vld [vmem:[%s17614_s14 + $0x10] sm:$0xff]  ;;  %s14465_s29 = smov 96   ;;  %s17620_s16 = sld [smem:[#allocation56_spill]] }
 0x10c   :  { %v378_v3 = vrot.slane %v334_v0, 6  ;;  %v379_v4 = vrot.slane %v335_v1, 6  ;;  %v381_v5 = vrot.slane %v336_v2, 6  ;;  %v337_v15 = vld [vmem:[%s17614_s14 + $0x18] sm:$0xff]  ;;  %v338_v18 = vld [vmem:[%s17614_s14 + $0x20] sm:$0xff]  ;;  %v339_v38 = vld [vmem:[%s17614_s14 + $0x28] sm:$0xff] }
 0x10d   :  { %v383_v24 = vrot.slane %v337_v15, 6  ;;  %v385_v25 = vrot.slane %v338_v18, 6  ;;  %v340_v33 = vld [vmem:[%s17614_s14 + $0x30] sm:$0x3]  ;;  %v387_v39 = vrot.slane %v339_v38, 6  ;;  %v341_v56 = vld [vmem:[%s17614_s14 + $0x38] sm:$0xff] }
 0x10e   :  { %v14704_v6 = vsel %vm17588_vm0, %v378_v3, %v379_v4  ;;  %v14707_v7 = vsel %vm17588_vm0, 0.0, %v378_v3  ;;  %v14710_v8 = vsel %vm17588_vm0, %v379_v4, %v381_v5  ;;  %v389_v40 = vrot.slane %v340_v33, 6  ;;  %v13169_v58 = vld [vmem:[%s17615_s8 + $0x18] ss:$0 sps:$4 sm:$0x11]   ;;  %v342_v62 = vld [vmem:[%s17614_s14 + $0x40] sm:$0xff] }
 0x10f   :  { %v497_v9 = vrot.slane %v14707_v7, 2  ;;  %v498_v10 = vrot.slane %v14704_v6, 2  ;;  %v428_v11 = vrot.slane %v14707_v7, 1  ;;  %v429_v12 = vrot.slane %v14704_v6, 1  ;;  %v13170_v4 = vld [vmem:[%s17615_s8 + $0x10] sm:$0xff]   ;;  %v343_v15 = vld [vmem:[%s17614_s14 + $0x48] sm:$0xff] }
 0x110   :  { %v500_v13 = vrot.slane %v14710_v8, 2  ;;  %v431_v14 = vrot.slane %v14710_v8, 1  ;;  %v567_v19 = vrot.slane %v14704_v6, 3  ;;  %v569_v22 = vrot.slane %v14710_v8, 3  ;;  %s17695_s22 = sld [smem:[#allocation64_spill]] }
 0x111   :  { %v499_v16 = vsel %vm496_vm1, %v497_v9, %v498_v10  ;;  %v430_v17 = vsel %vm427_vm2, %v428_v11, %v429_v12  ;;  %v566_v23 = vrot.slane %v14707_v7, 3  ;;  %v635_v26 = vrot.slane %v14704_v6, 4 }
 0x112   :  { %523 = vrot.lane.b32.xlu1 %v499_v16, %s14453_s0  ;;  %454 = vrot.lane.b32.xlu0 %v430_v17, %s14454_s11  ;;  %v501_v20 = vsel %vm496_vm1, %v498_v10, %v500_v13  ;;  %v432_v21 = vsel %vm427_vm2, %v429_v12, %v431_v14  ;;  %v570_v27 = vsel %vm565_vm3, %v567_v19, %v569_v22  ;;  %v637_v29 = vrot.slane %v14710_v8, 4  ;;  %v13171_v16 = vld [vmem:[%s17615_s8 + $0x8] sm:$0xff]  }
 0x113   :  { %v568_v28 = vsel %vm565_vm3, %v566_v23, %v567_v19  ;;  %v634_v30 = vrot.slane %v14707_v7, 4  ;;  %v14741_v31 = vsel %vm17588_vm0, %v381_v5, %v383_v24  ;;  %v14744_v32 = vsel %vm17588_vm0, %v383_v24, %v385_v25 }
 0x114   :  { %v638_v34 = vsel %vm420_vm4, %v635_v26, %v637_v29  ;;  %v433_v36 = vrot.slane %v14741_v31, 1  ;;  %v435_v37 = vrot.slane %v14744_v32, 1  ;;  %v502_v43 = vrot.slane %v14741_v31, 2 }
 0x115   :  { %v636_v35 = vsel %vm420_vm4, %v634_v30, %v635_v26  ;;  %v504_v44 = vrot.slane %v14744_v32, 2  ;;  %v571_v45 = vrot.slane %v14741_v31, 3  ;;  %v573_v46 = vrot.slane %v14744_v32, 3 }
 0x116   :  { %525 = vrot.lane.b32.xlu1 %v501_v20, %s14453_s0  ;;  %456 = vrot.lane.b32.xlu0 %v432_v21, %s14454_s11  ;;  %v436_v41 = vsel %vm427_vm2, %v433_v36, %v435_v37  ;;  %v434_v42 = vsel %vm427_vm2, %v431_v14, %v433_v36  ;;  %v503_v48 = vsel %vm496_vm1, %v500_v13, %v502_v43  ;;  %v639_v50 = vrot.slane %v14741_v31, 4  ;;  %v13172_v20 = vld [vmem:[%s17615_s8] sm:$0xff]  }
 0x117   :  { %v505_v47 = vsel %vm496_vm1, %v502_v43, %v504_v44  ;;  %v390_v49 = vsel %vm17588_vm0, %v387_v39, %v389_v40  ;;  %v641_v51 = vrot.slane %v14744_v32, 4  ;;  %v574_v53 = vsel %vm565_vm3, %v571_v45, %v573_v46 }
 0x118   :  { %v14776_v52 = vsel %vm420_vm4, %v390_v49, 0.0  ;;  %v572_v54 = vsel %vm565_vm3, %v569_v22, %v571_v45  ;;  %v14781_v55 = vsel %vm17588_vm0, %v385_v25, %v387_v39  ;;  %v640_v60 = vsel %vm420_vm4, %v637_v29, %v639_v50 }
 0x119   :  { %v437_v57 = vrot.slane %v14781_v55, 1  ;;  %v642_v59 = vsel %vm420_vm4, %v639_v50, %v641_v51  ;;  %v439_v61 = vrot.slane %v14776_v52, 1  ;;  %v391_v0 = vrot.slane %v341_v56, 6 }
 0x11a   :  { %594 = vrot.lane.b32.xlu1 %v570_v27, %s14455_s17  ;;  %592 = vrot.lane.b32.xlu0 %v568_v28, %s14455_s17  ;;  %v506_v1 = vrot.slane %v14781_v55, 2  ;;  %v508_v2 = vrot.slane %v14776_v52, 2  ;;  %v575_v3 = vrot.slane %v14781_v55, 3  ;;  %v577_v5 = vrot.slane %v14776_v52, 3 }
 0x11b   :  { %v1285_v9 = vsel %vm1283_vm5, %v13169_v58, 0  ;;  %v440_v10 = vsel %vm427_vm2, %v437_v57, %v439_v61  ;;  %v438_v11 = vsel %vm427_vm2, %v435_v37, %v437_v57  ;;  %v643_v12 = vrot.slane %v14781_v55, 4 }
 0x11c   :  { %13035 = vmatpush3.bf16.msra.mxu0 %v1285_v9  ;;  %v645_v13 = vrot.slane %v14776_v52, 4  ;;  %v392_v14 = vrot.slane %v342_v62, 6  ;;  %v14827_v17 = vsel %vm17588_vm0, 0.0, %v391_v0  ;;  %v509_v18 = vsel %vm496_vm1, %v506_v1, %v508_v2 }
 0x11d   :  { %13036 = vmatprep.subr.bf16.mxu0 %v17575_v63  ;;  %v507_v19 = vsel %vm496_vm1, %v504_v44, %v506_v1  ;;  %v394_v21 = vrot.slane %v343_v15, 6  ;;  %v578_v22 = vsel %vm565_vm3, %v575_v3, %v577_v5  ;;  %v576_v23 = vsel %vm565_vm3, %v573_v46, %v575_v3  ;;  %v344_v44 = vld [vmem:[%s17614_s14 + $0x50] sm:$0xff]  ;;  %v347_v3 = vld [vmem:[%s17614_s14 + $0x68] sm:$0x3] }
 0x11e   :  { %662 = vrot.lane.b32.xlu1 %v638_v34, %s14456_s5  ;;  %660 = vrot.lane.b32.xlu0 %v636_v35, %s14456_s5  ;;  %v14844_v24 = vsel %vm17588_vm0, %v391_v0, %v392_v14  ;;  %v646_v25 = vsel %vm420_vm4, %v643_v12, %v645_v13  ;;  %v510_v26 = vrot.slane %v14827_v17, 2  ;;  %v644_v27 = vsel %vm420_vm4, %v641_v51, %v643_v12 }
 0x11f   :  { %v511_v28 = vrot.slane %v14844_v24, 2  ;;  %v441_v29 = vrot.slane %v14827_v17, 1  ;;  %v442_v30 = vrot.slane %v14844_v24, 1  ;;  %v14858_v33 = vsel %vm17588_vm0, %v392_v14, %v394_v21 }
 0x120   :  { %13037 = vmatpush3.bf16.msra.mxu0 %v13170_v4  ;;  %v579_v34 = vrot.slane %v14827_v17, 3  ;;  %v580_v37 = vrot.slane %v14844_v24, 3  ;;  %v444_v38 = vrot.slane %v14858_v33, 1  ;;  %v647_v39 = vrot.slane %v14827_v17, 4 }
 0x121   :  { %13038 = vmatprep.subr.bf16.mxu0 %v17575_v63  ;;  %v512_v35 = vsel %vm496_vm1, %v510_v26, %v511_v28  ;;  %v443_v36 = vsel %vm427_vm2, %v441_v29, %v442_v30  ;;  %v513_v43 = vrot.slane %v14858_v33, 2  ;;  %v650_v50 = vrot.slane %v14858_v33, 4 }
 0x122   :  { %460 = vrot.lane.b32.xlu1 %v436_v41, %s14454_s11  ;;  %458 = vrot.lane.b32.xlu0 %v434_v42, %s14454_s11  ;;  %v581_v40 = vsel %vm565_vm3, %v579_v34, %v580_v37  ;;  %v445_v41 = vsel %vm427_vm2, %v442_v30, %v444_v38  ;;  %v648_v42 = vrot.slane %v14844_v24, 4  ;;  %v396_v51 = vrot.slane %v344_v44, 6 }
 0x123   :  { %v514_v46 = vsel %vm496_vm1, %v511_v28, %v513_v43  ;;  %v14459_v44 = vmov 1983009808  }
 0x124   :  { %13039 = vmatpush3.bf16.msra.mxu0 %v13171_v16  ;;  %v649_v45 = vsel %vm420_vm4, %v647_v39, %v648_v42  ;;  %v14895_v56 = vsel %vm17588_vm0, %v394_v21, %v396_v51 }
 0x125   :  { %13040 = vmatprep.subr.bf16.mxu0 %v17575_v63  ;;  %v515_v58 = vrot.slane %v14895_v56, 2  ;;  %v652_v62 = vrot.slane %v14895_v56, 4 }
 0x126   :  { %529 = vrot.lane.b32.xlu1 %v505_v47, %s14453_s0  ;;  %527 = vrot.lane.b32.xlu0 %v503_v48, %s14453_s0  ;;  %v582_v47 = vrot.slane %v14858_v33, 3  ;;  %v345_v48 = vld [vmem:[%s17614_s14 + $0x58] sm:$0xff] }
 0x127   :  { %v516_v0 = vsel %vm496_vm1, %v513_v43, %v515_v58  ;;  %v653_v12 = vsel %vm420_vm4, %v650_v50, %v652_v62 }
 0x128   :  { %13041 = vmatpush3.bf16.msra.mxu0 %v13172_v20  ;;  %v583_v49 = vsel %vm565_vm3, %v580_v37, %v582_v47 }
 0x12a   :  { %598 = vrot.lane.b32.xlu1 %v574_v53, %s14455_s17  ;;  %596 = vrot.lane.b32.xlu0 %v572_v54, %s14455_s17  ;;  %v398_v53 = vrot.slane %v345_v48, 6  ;;  %v651_v54 = vsel %vm420_vm4, %v648_v42, %v650_v50 }
 0x12c   :  { %v14898_v57 = vsel %vm17588_vm0, %v396_v51, %v398_v53 }
 0x12d   :  { %v517_v9 = vrot.slane %v14898_v57, 2  ;;  %v654_v14 = vrot.slane %v14898_v57, 4  ;;  %v586_v15 = vrot.slane %v14898_v57, 3 }
 0x12e   :  { %666 = vrot.lane.b32.xlu1 %v642_v59, %s14456_s5  ;;  %664 = vrot.lane.b32.xlu0 %v640_v60, %s14456_s5  ;;  %v446_v59 = vrot.slane %v14895_v56, 1  ;;  %v584_v60 = vrot.slane %v14895_v56, 3 }
 0x130   :  { %v447_v1 = vsel %vm427_vm2, %v444_v38, %v446_v59  ;;  %v585_v4 = vsel %vm565_vm3, %v582_v47, %v584_v60  ;;  %v587_v20 = vsel %vm565_vm3, %v584_v60, %v586_v15 }
 0x132   :  { %464 = vrot.lane.b32.xlu1 %v440_v10, %s14454_s11  ;;  %462 = vrot.lane.b32.xlu0 %v438_v11, %s14454_s11  ;;  %v402_v11 = vrot.slane %v347_v3, 6 }
 0x136   :  { %533 = vrot.lane.b32.xlu1 %v509_v18, %s14453_s0  ;;  %531 = vrot.lane.b32.xlu0 %v507_v19, %s14453_s0  ;;  %v655_v19 = vsel %vm420_vm4, %v652_v62, %v654_v14 }
 0x13a   :  { %602 = vrot.lane.b32.xlu1 %v578_v22, %s14455_s17  ;;  %600 = vrot.lane.b32.xlu0 %v576_v23, %s14455_s17 }
 0x13e   :  { %670 = vrot.lane.b32.xlu1 %v646_v25, %s14456_s5  ;;  %668 = vrot.lane.b32.xlu0 %v644_v27, %s14456_s5 }
 0x142   :  { %537 = vrot.lane.b32.xlu1 %v512_v35, %s14453_s0  ;;  %468 = vrot.lane.b32.xlu0 %v443_v36, %s14454_s11 }
 0x146   :  { %606 = vrot.lane.b32.xlu1 %v581_v40, %s14455_s17  ;;  %470 = vrot.lane.b32.xlu0 %v445_v41, %s14454_s11 }
 0x14a   :  { %674 = vrot.lane.b32.xlu1 %v649_v45, %s14456_s5  ;;  %539 = vrot.lane.b32.xlu0 %v514_v46, %s14453_s0  ;;  %v778_v45 = vunpack.c.l.s4 %v14459_v44  ;;  %v780_v46 = vlaneseq }
 0x14c   :  { %v14975_v50 = vshrl.u32 %v780_v46, 7 }
 0x14e   :  { %608 = vrot.lane.b32.xlu1 %v583_v49, %s14455_s17  ;;  %466 = vrot.lane.b32.xlu0 %v439_v61, %s14454_s11  ;;  %v448_v61 = vrot.slane %v14898_v57, 1  ;;  %v779_v49 = vunpack.c.0.s8 %v778_v45  ;;  %17616 = vst [vmem:[#allocation44_spill] sm:$0xff] %v14975_v50 }
 0x152   :  { %676 = vrot.lane.b32.xlu1 %v651_v54, %s14456_s5  ;;  %535 = vrot.lane.b32.xlu0 %v508_v2, %s14453_s0  ;;  %v346_v2 = vld [vmem:[%s17614_s14 + $0x60] sm:$0xff] }
 0x153   :  { %v400_v10 = vrot.slane %v346_v2, 6 }
 0x155   :  { %v14935_v16 = vsel %vm17588_vm0, %v398_v53, %v400_v10  ;;  %v403_v18 = vsel %vm17588_vm0, %v400_v10, %v402_v11 }
 0x156   :  { %672 = vrot.lane.b32.xlu1 %v645_v13, %s14456_s5  ;;  %604 = vrot.lane.b32.xlu0 %v577_v5, %s14455_s17  ;;  %v449_v5 = vsel %vm427_vm2, %v446_v59, %v448_v61  ;;  %v518_v13 = vsel %vm496_vm1, %v515_v58, %v517_v9  ;;  %v519_v21 = vrot.slane %v14935_v16, 2  ;;  %v450_v22 = vrot.slane %v14935_v16, 1 }
 0x157   :  { %v14945_v23 = vsel %vm420_vm4, %v403_v18, 0.0  ;;  %v588_v27 = vrot.slane %v14935_v16, 3  ;;  %v656_v34 = vrot.slane %v14935_v16, 4  ;;  %v14982_v59 = vsub.s32 %v779_v49, %v14975_v50 }
 0x158   :  { %v520_v25 = vsel %vm496_vm1, %v517_v9, %v519_v21  ;;  %v451_v26 = vsel %vm427_vm2, %v448_v61, %v450_v22  ;;  %v452_v28 = vrot.slane %v14945_v23, 1  ;;  %v521_v35 = vrot.slane %v14945_v23, 2 }
 0x159   :  { %v589_v29 = vsel %vm565_vm3, %v586_v15, %v588_v27  ;;  %v657_v36 = vsel %vm420_vm4, %v654_v14, %v656_v34  ;;  %v590_v38 = vrot.slane %v14945_v23, 3  ;;  %v658_v39 = vrot.slane %v14945_v23, 4 }
 0x15a   :  { %541 = vrot.lane.b32.xlu1 %v516_v0, %s14453_s0  ;;  %472 = vrot.lane.b32.xlu0 %v447_v1, %s14454_s11  ;;  %v453_v30 = vsel %vm427_vm2, %v450_v22, %v452_v28  ;;  %v522_v37 = vsel %vm496_vm1, %v519_v21, %v521_v35 }
 0x15b   :  { %v591_v40 = vsel %vm565_vm3, %v588_v27, %v590_v38  ;;  %v659_v41 = vsel %vm420_vm4, %v656_v34, %v658_v39 }
 0x15e   :  { %610 = vrot.lane.b32.xlu1 %v585_v4, %s14455_s17  ;;  %474 = vrot.lane.b32.xlu0 %v449_v5, %s14454_s11 }
 0x162   :  { %678 = vrot.lane.b32.xlu1 %v653_v12, %s14456_s5  ;;  %543 = vrot.lane.b32.xlu0 %v518_v13, %s14453_s0 }
 0x166   :  { %680 = vrot.lane.b32.xlu1 %v655_v19, %s14456_s5  ;;  %612 = vrot.lane.b32.xlu0 %v587_v20, %s14455_s17 }
 0x16a   :  { %545 = vrot.lane.b32.xlu1 %v520_v25, %s14453_s0  ;;  %476 = vrot.lane.b32.xlu0 %v451_v26, %s14454_s11 }
 0x16e   :  { %614 = vrot.lane.b32.xlu1 %v589_v29, %s14455_s17  ;;  %478 = vrot.lane.b32.xlu0 %v453_v30, %s14454_s11 }
 0x172   :  { %682 = vrot.lane.b32.xlu1 %v657_v36, %s14456_s5  ;;  %547 = vrot.lane.b32.xlu0 %v522_v37, %s14453_s0 }
 0x176   :  { %616 = vrot.lane.b32.xlu0 %v591_v40, %s14455_s17  ;;  %684 = vrot.lane.b32.xlu1 %v659_v41, %s14456_s5 }
 0x17a   :  { %480 = vrot.lane.b32.xlu0 %v452_v28, %s14454_s11  ;;  %549 = vrot.lane.b32.xlu1 %v521_v35, %s14453_s0  ;;  %s17617_s11 = sld [smem:[#allocation52_spill]] }
 0x17e   :  { %618 = vrot.lane.b32.xlu0 %v590_v38, %s14455_s17  ;;  %686 = vrot.lane.b32.xlu1 %v658_v39, %s14456_s5 }
 0x184   :  { %v524_v42 = vpop.permute.xlu1 %523  ;;  %v455_v43 = vpop.permute.xlu0 %454 }
 0x185   :  { %v703_v51 = vsel %vm702_vm7, %v14707_v7, %v455_v43 }
 0x186   :  { %v718_v61 = vsel %vm717_vm8, %v703_v51, %v524_v42 }
 0x188   :  { %v526_v47 = vpop.permute.xlu1 %525  ;;  %v457_v48 = vpop.permute.xlu0 %456 }
 0x189   :  { %v704_v53 = vsel %vm702_vm7, %v14704_v6, %v457_v48 }
 0x18a   :  { %v719_v60 = vsel %vm717_vm8, %v704_v53, %v526_v47 }
 0x18c   :  { %v595_v54 = vpop.permute.xlu1 %594  ;;  %v593_v58 = vpop.permute.xlu0 %592 }
 0x18d   :  { %v734_v62 = vsel %vm732_vm9, %v719_v60, %v595_v54  ;;  %v733_v0 = vsel %vm732_vm9, %v718_v61, %v593_v58 }
 0x190   :  { %v663_v7 = vpop.permute.xlu1 %662  ;;  %v661_v1 = vpop.permute.xlu0 %660 }
 0x191   :  { %v749_v6 = vsel %vm747_vm10, %v734_v62, %v663_v7  ;;  %v748_v2 = vsel %vm747_vm10, %v733_v0, %v661_v1 }
 0x192   :  { %v793_v3 = vcombine.high %v749_v6, %v749_v6  ;;  %v800_v4 = vrot.slane %v749_v6, %v14982_v59  ;;  %v776_v5 = vcombine.high %v748_v2, %v748_v2  ;;  %v783_v9 = vrot.slane %v748_v2, %v14982_v59 }
 0x194   :  { %v807_v10 = vrot.slane %v793_v3, %v14982_v59  ;;  %v808_v11 = vcombine.high %v800_v4, %v800_v4  ;;  %v790_v12 = vrot.slane %v776_v5, %v14982_v59  ;;  %v791_v13 = vcombine.high %v783_v9, %v783_v9  ;;  %v461_v14 = vpop.permute.xlu1 %460  ;;  %v459_v15 = vpop.permute.xlu0 %458 }
 0x195   :  { %v706_v39 = vsel %vm702_vm7, %v14741_v31, %v461_v14  ;;  %v705_v40 = vsel %vm702_vm7, %v14710_v8, %v459_v15 }
 0x196   :  { %v809_v18 = vcombine.high %v807_v10, %v807_v10  ;;  %v1011_v19 = vcombine.low %v800_v4, %v808_v11  ;;  %v792_v20 = vcombine.high %v790_v12, %v790_v12  ;;  %v994_v21 = vcombine.low %v783_v9, %v791_v13 }
 0x198   :  { %v1012_v22 = vcombine.low %v807_v10, %v809_v18  ;;  %v995_v25 = vcombine.low %v790_v12, %v792_v20  ;;  %v530_v26 = vpop.permute.xlu1 %529  ;;  %v528_v27 = vpop.permute.xlu0 %527  ;;  %v1019_v28 = vrot.slane %v1011_v19, %v14982_v59  ;;  %v1002_v30 = vrot.slane %v994_v21, %v14982_v59 }
 0x199   :  { %v721_v42 = vsel %vm717_vm8, %v706_v39, %v530_v26  ;;  %v720_v43 = vsel %vm717_vm8, %v705_v40, %v528_v27 }
 0x19a   :  { %v1026_v29 = vrot.slane %v1012_v22, %v14982_v59  ;;  %v1009_v34 = vrot.slane %v995_v25, %v14982_v59 }
 0x19c   :  { %v1027_v35 = vcombine.low %v1019_v28, %v1026_v29  ;;  %v1010_v36 = vcombine.low %v1002_v30, %v1009_v34  ;;  %v599_v37 = vpop.permute.xlu1 %598  ;;  %v597_v38 = vpop.permute.xlu0 %596 }
 0x19d   :  { %v736_v44 = vsel %vm732_vm9, %v721_v42, %v599_v37  ;;  %v735_v45 = vsel %vm732_vm9, %v720_v43, %v597_v38 }
 0x19e   :  { %v1219_v41 = vpack.c.bf16 %v1027_v35, %v1010_v36 }
 0x1a0   :  { %v667_v46 = vpop.permute.xlu1 %666  ;;  %13043 = vmatmul.mubr.msk.bf16.vlgmr.msra.gmra.mxu0 %vm1261_vm11, %v1219_v41  ;;  %v665_v47 = vpop.permute.xlu0 %664 }
 0x1a1   :  { %v751_v48 = vsel %vm747_vm10, %v736_v44, %v667_v46  ;;  %v750_v31 = vsel %vm747_vm10, %v735_v45, %v665_v47  ;;  %13046 = vmatprep.mubr.msk.bf16.mxu0 %vm14458_vm6, %v17575_v63 }
 0x1a2   :  { %v827_v8 = vcombine.high %v751_v48, %v751_v48  ;;  %v834_v49 = vrot.slane %v751_v48, %v14982_v59  ;;  %v810_v51 = vcombine.high %v750_v31, %v750_v31  ;;  %v817_v53 = vrot.slane %v750_v31, %v14982_v59 }
 0x1a4   :  { %v841_v54 = vrot.slane %v827_v8, %v14982_v59  ;;  %v842_v58 = vcombine.high %v834_v49, %v834_v49  ;;  %v824_v60 = vrot.slane %v810_v51, %v14982_v59  ;;  %v825_v61 = vcombine.high %v817_v53, %v817_v53  ;;  %v465_v62 = vpop.permute.xlu1 %464  ;;  %v463_v0 = vpop.permute.xlu0 %462 }
 0x1a5   :  { %v708_v20 = vsel %vm702_vm7, %v14781_v55, %v465_v62  ;;  %v707_v21 = vsel %vm702_vm7, %v14744_v32, %v463_v0 }
 0x1a6   :  { %v843_v7 = vcombine.high %v841_v54, %v841_v54  ;;  %v1045_v1 = vcombine.low %v834_v49, %v842_v58  ;;  %v826_v6 = vcombine.high %v824_v60, %v824_v60  ;;  %v1028_v2 = vcombine.low %v817_v53, %v825_v61 }
 0x1a8   :  { %v1046_v3 = vcombine.low %v841_v54, %v843_v7  ;;  %v1029_v4 = vcombine.low %v824_v60, %v826_v6  ;;  %v534_v5 = vpop.permute.xlu1 %533  ;;  %v532_v9 = vpop.permute.xlu0 %531  ;;  %v1053_v10 = vrot.slane %v1045_v1, %v14982_v59  ;;  %v1036_v12 = vrot.slane %v1028_v2, %v14982_v59 }
 0x1a9   :  { %v723_v25 = vsel %vm717_vm8, %v708_v20, %v534_v5  ;;  %v722_v26 = vsel %vm717_vm8, %v707_v21, %v532_v9 }
 0x1aa   :  { %v1060_v11 = vrot.slane %v1046_v3, %v14982_v59  ;;  %v1043_v13 = vrot.slane %v1029_v4, %v14982_v59 }
 0x1ac   :  { %v1061_v14 = vcombine.low %v1053_v10, %v1060_v11  ;;  %v1044_v15 = vcombine.low %v1036_v12, %v1043_v13  ;;  %v603_v18 = vpop.permute.xlu1 %602  ;;  %v601_v19 = vpop.permute.xlu0 %600 }
 0x1ad   :  { %v738_v27 = vsel %vm732_vm9, %v723_v25, %v603_v18  ;;  %v737_v28 = vsel %vm732_vm9, %v722_v26, %v601_v19 }
 0x1ae   :  { %v1220_v22 = vpack.c.bf16 %v1061_v14, %v1044_v15 }
 0x1b0   :  { %v671_v29 = vpop.permute.xlu1 %670  ;;  %13047 = vmatmul.mubr.msk.bf16.gmra.mxu0 %vm1261_vm11, %v1220_v22  ;;  %v669_v30 = vpop.permute.xlu0 %668 }
 0x1b1   :  { %v753_v34 = vsel %vm747_vm10, %v738_v27, %v671_v29  ;;  %v752_v55 = vsel %vm747_vm10, %v737_v28, %v669_v30  ;;  %13050 = vmatprep.mubr.msk.bf16.mxu0 %vm14458_vm6, %v17575_v63 }
 0x1b2   :  { %v861_v32 = vcombine.high %v753_v34, %v753_v34  ;;  %v868_v35 = vrot.slane %v753_v34, %v14982_v59  ;;  %v844_v36 = vcombine.high %v752_v55, %v752_v55  ;;  %v851_v37 = vrot.slane %v752_v55, %v14982_v59 }
 0x1b4   :  { %v875_v38 = vrot.slane %v861_v32, %v14982_v59  ;;  %v876_v39 = vcombine.high %v868_v35, %v868_v35  ;;  %v858_v40 = vrot.slane %v844_v36, %v14982_v59  ;;  %v859_v41 = vcombine.high %v851_v37, %v851_v37  ;;  %v538_v42 = vpop.permute.xlu1 %537  ;;  %v469_v43 = vpop.permute.xlu0 %468 }
 0x1b5   :  { %v710_v51 = vsel %vm702_vm7, %v14827_v17, %v469_v43 }
 0x1b6   :  { %v877_v44 = vcombine.high %v875_v38, %v875_v38  ;;  %v1079_v45 = vcombine.low %v868_v35, %v876_v39  ;;  %v860_v46 = vcombine.high %v858_v40, %v858_v40  ;;  %v1062_v47 = vcombine.low %v851_v37, %v859_v41 }
 0x1b7   :  { %v725_v0 = vsel %vm717_vm8, %v710_v51, %v538_v42 }
 0x1b8   :  { %v1080_v48 = vcombine.low %v875_v38, %v877_v44  ;;  %v1063_v31 = vcombine.low %v858_v40, %v860_v46  ;;  %v607_v8 = vpop.permute.xlu1 %606  ;;  %v471_v49 = vpop.permute.xlu0 %470  ;;  %v1087_v53 = vrot.slane %v1079_v45, %v14982_v59  ;;  %v1070_v58 = vrot.slane %v1062_v47, %v14982_v59 }
 0x1b9   :  { %v740_v6 = vsel %vm732_vm9, %v725_v0, %v607_v8  ;;  %v711_v9 = vsel %vm702_vm7, %v14844_v24, %v471_v49 }
 0x1ba   :  { %v1094_v54 = vrot.slane %v1080_v48, %v14982_v59  ;;  %v1077_v60 = vrot.slane %v1063_v31, %v14982_v59 }
 0x1bc   :  { %v1095_v61 = vcombine.low %v1087_v53, %v1094_v54  ;;  %v1078_v62 = vcombine.low %v1070_v58, %v1077_v60  ;;  %v675_v7 = vpop.permute.xlu1 %674  ;;  %v540_v1 = vpop.permute.xlu0 %539 }
 0x1bd   :  { %v755_v2 = vsel %vm747_vm10, %v740_v6, %v675_v7  ;;  %v726_v11 = vsel %vm717_vm8, %v711_v9, %v540_v1 }
 0x1be   :  { %v1221_v3 = vpack.c.bf16 %v1095_v61, %v1078_v62  ;;  %v885_v5 = vcombine.high %v755_v2, %v755_v2  ;;  %v892_v10 = vrot.slane %v755_v2, %v14982_v59 }
 0x1c0   :  { %v609_v17 = vpop.permute.xlu1 %608  ;;  %13051 = vmatmul.mubr.msk.bf16.gmra.mxu0 %vm1261_vm11, %v1221_v3  ;;  %v467_v4 = vpop.permute.xlu0 %466  ;;  %v899_v15 = vrot.slane %v885_v5, %v14982_v59  ;;  %v900_v21 = vcombine.high %v892_v10, %v892_v10 }
 0x1c1   :  { %13054 = vmatprep.mubr.msk.bf16.mxu0 %vm14458_vm6, %v17575_v63  ;;  %v741_v12 = vsel %vm732_vm9, %v726_v11, %v609_v17  ;;  %v709_v22 = vsel %vm702_vm7, %v14776_v52, %v467_v4 }
 0x1c2   :  { %v901_v29 = vcombine.high %v899_v15, %v899_v15  ;;  %v1097_v32 = vcombine.low %v900_v21, %v899_v15  ;;  %v15090_v15 = vld [vmem:[%s17617_s11 + $0x8] sm:$0xff] }
 0x1c4   :  { %v677_v13 = vpop.permute.xlu1 %676  ;;  %v536_v14 = vpop.permute.xlu0 %535  ;;  %v1111_v40 = vrot.slane %v1097_v32, %v14982_v59 }
 0x1c5   :  { %v756_v18 = vsel %vm747_vm10, %v741_v12, %v677_v13  ;;  %v724_v26 = vsel %vm717_vm8, %v709_v22, %v536_v14  ;;  %v348_v14 = vld [vmem:[%s17617_s11] sm:$0xff] }
 0x1c6   :  { %v902_v19 = vcombine.high %v756_v18, %v756_v18  ;;  %v909_v20 = vrot.slane %v756_v18, %v14982_v59  ;;  %v4154_v18 = vrot.slane %v348_v14, 6 }
 0x1c8   :  { %v916_v24 = vrot.slane %v902_v19, %v14982_v59  ;;  %v917_v25 = vcombine.high %v909_v20, %v909_v20  ;;  %v673_v27 = vpop.permute.xlu1 %672  ;;  %v605_v28 = vpop.permute.xlu0 %604  ;;  %v1113_v35 = vcombine.low %v901_v29, %v909_v20  ;;  %v4155_v19 = vrot.slane %v15090_v15, 6 }
 0x1c9   :  { %v739_v30 = vsel %vm732_vm9, %v724_v26, %v605_v28 }
 0x1ca   :  { %v1114_v34 = vcombine.low %v917_v25, %v916_v24  ;;  %v754_v55 = vsel %vm747_vm10, %v739_v30, %v673_v27  ;;  %v1121_v41 = vrot.slane %v1113_v35, %v14982_v59  ;;  %v918_v3 = vcombine.high %v916_v24, %v916_v24 }
 0x1cb   :  { %v884_v36 = vrot.slane %v754_v55, %v14982_v59  ;;  %v15099_v26 = vsel %vm17588_vm0, %v4154_v18, %v4155_v19  ;;  %v15102_v27 = vsel %vm17588_vm0, 0.0, %v4154_v18 }
 0x1cc   :  { %v542_v37 = vpop.permute.xlu1 %541  ;;  %v473_v38 = vpop.permute.xlu0 %472  ;;  %v1128_v52 = vrot.slane %v1114_v34, %v14982_v59  ;;  %v4202_v34 = vrot.slane %v15102_v27, 1  ;;  %v4407_v18 = vrot.slane %v15099_v26, 4 }
 0x1cd   :  { %v1096_v39 = vcombine.low %v884_v36, %v892_v10  ;;  %v712_v43 = vsel %vm702_vm7, %v14858_v33, %v473_v38 }
 0x1ce   :  { %v1129_v46 = vcombine.low %v1121_v41, %v1128_v52  ;;  %v727_v48 = vsel %vm717_vm8, %v712_v43, %v542_v37  ;;  %v4270_v43 = vrot.slane %v15102_v27, 2 }
 0x1cf   :  { %v1104_v42 = vrot.slane %v1096_v39, %v14982_v59 }
 0x1d0   :  { %v611_v44 = vpop.permute.xlu1 %610  ;;  %v475_v45 = vpop.permute.xlu0 %474 }
 0x1d1   :  { %v1112_v47 = vcombine.low %v1104_v42, %v1111_v40  ;;  %v742_v8 = vsel %vm732_vm9, %v727_v48, %v611_v44  ;;  %v713_v33 = vsel %vm702_vm7, %v14895_v56, %v475_v45  ;;  %v4271_v44 = vrot.slane %v15099_v26, 2 }
 0x1d3   :  { %v1222_v31 = vpack.c.bf16 %v1129_v46, %v1112_v47 }
 0x1d4   :  { %v679_v49 = vpop.permute.xlu1 %678  ;;  %v544_v51 = vpop.permute.xlu0 %543 }
 0x1d5   :  { %v757_v53 = vsel %vm747_vm10, %v742_v8, %v679_v49  ;;  %13055 = vmatmul.mubr.msk.bf16.gmra.mxu0 %vm1261_vm11, %v1222_v31  ;;  %v728_v62 = vsel %vm717_vm8, %v713_v33, %v544_v51  ;;  %v4272_v49 = vsel %vm496_vm1, %v4270_v43, %v4271_v44 }
 0x1d6   :  { %v919_v54 = vcombine.high %v757_v53, %v757_v53  ;;  %v926_v58 = vrot.slane %v757_v53, %v14982_v59  ;;  %13058 = vmatprep.mubr.msk.bf16.mxu0 %vm14458_vm6, %v17575_v63 }
 0x1d8   :  { %v933_v60 = vrot.slane %v919_v54, %v14982_v59  ;;  %v934_v61 = vcombine.high %v926_v58, %v926_v58  ;;  %v681_v0 = vpop.permute.xlu1 %680  ;;  %v613_v7 = vpop.permute.xlu0 %612  ;;  %v1130_v56 = vcombine.low %v918_v3, %v926_v58 }
 0x1d9   :  { %v743_v1 = vsel %vm732_vm9, %v728_v62, %v613_v7 }
 0x1da   :  { %v935_v6 = vcombine.high %v933_v60, %v933_v60  ;;  %v758_v2 = vsel %vm747_vm10, %v743_v1, %v681_v0  ;;  %v1131_v17 = vcombine.low %v934_v61, %v933_v60  ;;  %v1138_v28 = vrot.slane %v1130_v56, %v14982_v59  ;;  %v350_v56 = vld [vmem:[%s17617_s11 + $0x10] sm:$0xff] }
 0x1db   :  { %v936_v4 = vcombine.high %v758_v2, %v758_v2  ;;  %v943_v5 = vrot.slane %v758_v2, %v14982_v59  ;;  %v4338_v61 = vrot.slane %v15102_v27, 3  ;;  %v4339_v1 = vrot.slane %v15099_v26, 3 }
 0x1dc   :  { %v546_v9 = vpop.permute.xlu1 %545  ;;  %v477_v10 = vpop.permute.xlu0 %476  ;;  %v1145_v20 = vrot.slane %v1131_v17, %v14982_v59 }
 0x1dd   :  { %v950_v11 = vrot.slane %v936_v4, %v14982_v59  ;;  %v951_v12 = vcombine.high %v943_v5, %v943_v5  ;;  %v1147_v13 = vcombine.low %v935_v6, %v943_v5  ;;  %v714_v22 = vsel %vm702_vm7, %v14898_v57, %v477_v10 }
 0x1de   :  { %v4203_v57 = vrot.slane %v15099_v26, 1  ;;  %v1146_v55 = vcombine.low %v1138_v28, %v1145_v20  ;;  %v729_v32 = vsel %vm717_vm8, %v714_v22, %v546_v9  ;;  %v4340_v9 = vsel %vm565_vm3, %v4338_v61, %v4339_v1 }
 0x1df   :  { %v1148_v21 = vcombine.low %v951_v12, %v950_v11  ;;  %v1155_v29 = vrot.slane %v1147_v13, %v14982_v59  ;;  %v4406_v10 = vrot.slane %v15102_v27, 4  ;;  %v4157_v20 = vrot.slane %v350_v56, 6 }
 0x1e0   :  { %v615_v24 = vpop.permute.xlu1 %614  ;;  %v479_v25 = vpop.permute.xlu0 %478  ;;  %v4204_v52 = vsel %vm427_vm2, %v4202_v34, %v4203_v57 }
 0x1e1   :  { %v1162_v30 = vrot.slane %v1148_v21, %v14982_v59  ;;  %v744_v36 = vsel %vm732_vm9, %v729_v32, %v615_v24  ;;  %4228 = vrot.lane.b32.xlu0 %v4204_v52, %s14460_s21  ;;  %v715_v45 = vsel %vm702_vm7, %v14935_v16, %v479_v25  ;;  %v952_v16 = vcombine.high %v950_v11, %v950_v11  ;;  %v351_v11 = vld [vmem:[%s17617_s11 + $0x18] sm:$0xff] }
 0x1e2   :  { %v4159_v21 = vrot.slane %v351_v11, 6  ;;  %v15159_v34 = vsel %vm17588_vm0, %v4155_v19, %v4157_v20 }
 0x1e3   :  { %v1163_v35 = vcombine.low %v1155_v29, %v1162_v30  ;;  %v4408_v30 = vsel %vm420_vm4, %v4406_v10, %v4407_v18 }
 0x1e4   :  { %v683_v37 = vpop.permute.xlu1 %682  ;;  %v548_v38 = vpop.permute.xlu0 %547 }
 0x1e5   :  { %v759_v39 = vsel %vm747_vm10, %v744_v36, %v683_v37  ;;  %v1223_v40 = vpack.c.bf16 %v1163_v35, %v1146_v55  ;;  %v730_v48 = vsel %vm717_vm8, %v715_v45, %v548_v38  ;;  %4296 = vrot.lane.b32.xlu0 %v4272_v49, %s14461_s20  ;;  %v4205_v36 = vrot.slane %v15159_v34, 1  ;;  %v352_v49 = vld [vmem:[%s17617_s11 + $0x20] sm:$0xff] }
 0x1e6   :  { %v953_v41 = vcombine.high %v759_v39, %v759_v39  ;;  %v960_v42 = vrot.slane %v759_v39, %v14982_v59  ;;  %v15165_v37 = vsel %vm17588_vm0, %v4157_v20, %v4159_v21  ;;  %v4273_v39 = vrot.slane %v15159_v34, 2 }
 0x1e7   :  { %13059 = vmatmul.mubr.msk.bf16.gmra.mxu0 %vm1261_vm11, %v1223_v40  ;;  %v4206_v15 = vsel %vm427_vm2, %v4203_v57, %v4205_v36  ;;  %v4207_v19 = vrot.slane %v15165_v37, 1  ;;  %v4275_v40 = vrot.slane %v15165_v37, 2  ;;  %v4341_v45 = vrot.slane %v15159_v34, 3 }
 0x1e8   :  { %v967_v46 = vrot.slane %v953_v41, %v14982_v59  ;;  %v968_v47 = vcombine.high %v960_v42, %v960_v42  ;;  %v617_v31 = vpop.permute.xlu0 %616  ;;  %v685_v8 = vpop.permute.xlu1 %684  ;;  %13062 = vmatprep.mubr.msk.bf16.mxu0 %vm14458_vm6, %v17575_v63  ;;  %v1164_v62 = vcombine.low %v952_v16, %v960_v42  ;;  %4230 = vrot.lane.b32.xlu1 %v4206_v15, %s14460_s21  ;;  %v4161_v16 = vrot.slane %v352_v49, 6 }
 0x1e9   :  { %v745_v51 = vsel %vm732_vm9, %v730_v48, %v617_v31  ;;  %4364 = vrot.lane.b32.xlu0 %v4340_v9, %s14462_s13  ;;  %v4208_v41 = vsel %vm427_vm2, %v4205_v36, %v4207_v19  ;;  %v4274_v57 = vsel %vm496_vm1, %v4271_v44, %v4273_v39  ;;  %v4276_v43 = vsel %vm496_vm1, %v4273_v39, %v4275_v40 }
 0x1ea   :  { %v1165_v53 = vcombine.low %v968_v47, %v967_v46  ;;  %v760_v54 = vsel %vm747_vm10, %v745_v51, %v685_v8  ;;  %v969_v58 = vcombine.high %v967_v46, %v967_v46  ;;  %v4343_v46 = vrot.slane %v15165_v37, 3  ;;  %v353_v51 = vld [vmem:[%s17617_s11 + $0x28] sm:$0xff] }
 0x1eb   :  { %v970_v33 = vcombine.high %v760_v54, %v760_v54  ;;  %v977_v60 = vrot.slane %v760_v54, %v14982_v59  ;;  %v4342_v47 = vsel %vm565_vm3, %v4339_v1, %v4341_v45  ;;  %v4409_v44 = vrot.slane %v15159_v34, 4 }
 0x1ec   :  { %v481_v0 = vpop.permute.xlu0 %480  ;;  %v550_v7 = vpop.permute.xlu1 %549  ;;  %v1179_v4 = vrot.slane %v1165_v53, %v14982_v59  ;;  %4298 = vrot.lane.b32.xlu1 %v4274_v57, %s14461_s20  ;;  %v4344_v31 = vsel %vm565_vm3, %v4341_v45, %v4343_v46  ;;  %v4411_v8 = vrot.slane %v15165_v37, 4  ;;  %v4163_v53 = vrot.slane %v353_v51, 6 }
 0x1ed   :  { %v984_v6 = vrot.slane %v970_v33, %v14982_v59  ;;  %v985_v2 = vcombine.high %v977_v60, %v977_v60  ;;  %v1181_v3 = vcombine.low %v969_v58, %v977_v60  ;;  %v716_v17 = vsel %vm702_vm7, %v14945_v23, %v481_v0  ;;  %4432 = vrot.lane.b32.xlu0 %v4408_v30, %s14463_s24 }
 0x1ee   :  { %v731_v5 = vsel %vm717_vm8, %v716_v17, %v550_v7  ;;  %v1172_v23 = vrot.slane %v1164_v62, %v14982_v59  ;;  %v4410_v54 = vsel %vm420_vm4, %v4407_v18, %v4409_v44  ;;  %v4412_v58 = vsel %vm420_vm4, %v4409_v44, %v4411_v8  ;;  %v354_v17 = vld [vmem:[%s17617_s11 + $0x30] sm:$0x3] }
 0x1ef   :  { %v1182_v12 = vcombine.low %v985_v2, %v984_v6  ;;  %v1189_v22 = vrot.slane %v1181_v3, %v14982_v59  ;;  %v986_v32 = vcombine.high %v984_v6, %v984_v6  ;;  %v15204_v33 = vsel %vm17588_vm0, %v4159_v21, %v4161_v16 }
 0x1f0   :  { %v619_v13 = vpop.permute.xlu0 %618  ;;  %v687_v14 = vpop.permute.xlu1 %686  ;;  %v1180_v28 = vcombine.low %v1172_v23, %v1179_v4  ;;  %4366 = vrot.lane.b32.xlu1 %v4342_v47, %s14462_s13  ;;  %v15207_v60 = vsel %vm17588_vm0, %v4161_v16, %v4163_v53  ;;  %v4209_v61 = vrot.slane %v15204_v33, 1  ;;  %v4277_v1 = vrot.slane %v15204_v33, 2  ;;  %v15244_v23 = vld [vmem:[#allocation4] ss:$0 sm:$0xff] }
 0x1f1   :  { %v1196_v24 = vrot.slane %v1182_v12, %v14982_v59  ;;  %v746_v25 = vsel %vm732_vm9, %v731_v5, %v619_v13  ;;  %4232 = vrot.lane.b32.xlu0 %v4208_v41, %s14460_s21  ;;  %v4211_v62 = vrot.slane %v15207_v60, 1  ;;  %v4345_v2 = vrot.slane %v15204_v33, 3 }
 0x1f2   :  { %v761_v29 = vsel %vm747_vm10, %v746_v25, %v687_v14  ;;  %v4210_v0 = vsel %vm427_vm2, %v4207_v19, %v4209_v61  ;;  %v4278_v6 = vsel %vm496_vm1, %v4275_v40, %v4277_v1  ;;  %v4413_v4 = vrot.slane %v15204_v33, 4 }
 0x1f3   :  { %v1197_v55 = vcombine.low %v1189_v22, %v1196_v24  ;;  %v993_v35 = vrot.slane %v761_v29, %v14982_v59  ;;  %v4212_v7 = vsel %vm427_vm2, %v4209_v61, %v4211_v62  ;;  %v4346_v3 = vsel %vm565_vm3, %v4343_v46, %v4345_v2 }
 0x1f4   :  { %4434 = vrot.lane.b32.xlu1 %v4410_v54, %s14463_s24  ;;  %v4165_v5 = vrot.slane %v354_v17, 6  ;;  %v4414_v9 = vsel %vm420_vm4, %v4411_v8, %v4413_v4  ;;  %v15251_v15 = vsub.s32 0, %v14975_v50  ;;  %vm17590_vm7 = vcmask 1041409  }
 0x1f5   :  { %v1198_v38 = vcombine.low %v986_v32, %v993_v35  ;;  %v1224_v52 = vpack.c.bf16 %v1197_v55, %v1180_v28  ;;  %4300 = vrot.lane.b32.xlu0 %v4276_v43, %s14461_s20  ;;  %vm17589_vm8 = vcmask 1042434   ;;  %vm17571_vm10 = vcmask 1047559  }
 0x1f6   :  { %v4166_v10 = vsel %vm17588_vm0, %v4163_v53, %v4165_v5  ;;  %17619 = vst [vmem:[#allocation46_spill] sm:$0xff] %v15251_v15 }
 0x1f7   :  { %13063 = vmatmul.mubr.msk.bf16.gmra.mxu0 %vm1261_vm11, %v1224_v52  ;;  %v1205_v42 = vrot.slane %v1198_v38, %v14982_v59  ;;  %v15236_v56 = vsel %vm420_vm4, %v4166_v10, 0.0 }
 0x1f8   :  { %13066 = vmatprep.mubr.msk.bf16.mxu0 %vm14458_vm6, %v17575_v63  ;;  %4234 = vrot.lane.b32.xlu1 %v4210_v0, %s14460_s21  ;;  %17618 = vst [vmem:[#allocation45_spill] sm:$0xff] %v15236_v56  ;;  %v4213_v11 = vrot.slane %v15236_v56, 1 }
 0x1f9   :  { %v1225_v48 = vpack.c.bf16 %v1205_v42, %v1205_v42  ;;  %4368 = vrot.lane.b32.xlu0 %v4344_v31, %s14462_s13 }
 0x1fa   :  { %v4214_v12 = vsel %vm427_vm2, %v4211_v62, %v4213_v11 }
 0x1fc   :  { %4302 = vrot.lane.b32.xlu1 %v4278_v6, %s14461_s20 }
 0x1fd   :  { %4436 = vrot.lane.b32.xlu0 %v4412_v58, %s14463_s24 }
 0x1ff   :  { %13067 = vmatmul.mubr.msk.bf16.gmra.mxu0 %vm1261_vm11, %v1225_v48  ;;  %vm17570_vm11 = vcmask 1042432  }
 0x200   :  { %4370 = vrot.lane.b32.xlu1 %v4346_v3, %s14462_s13 }
 0x201   :  { %4236 = vrot.lane.b32.xlu0 %v4212_v7, %s14460_s21 }
 0x204   :  { %4438 = vrot.lane.b32.xlu1 %v4414_v9, %s14463_s24 }
 0x208   :  { %4238 = vrot.lane.b32.xlu1 %v4214_v12, %s14460_s21 }
 0x260   :  { %v1321_v13 = vpop.f32.mrf.mxu0 }
 0x261   :  { %v1322_v14 = vadd.f32 %v15244_v23, %v1321_v13 }
 0x262   :  { %v13044_v18 = vpop.f32.mrf.mxu0 }
 0x263   :  { %v1375_v20 = vmax.f32 %v1322_v14, 0.0 }
 0x264   :  { %v1324_v21 = vpop.f32.mrf.mxu0 }
 0x265   :  { %v1401_v22 = vcombine.high %v1375_v20, %v1375_v20  ;;  %v1408_v24 = vrot.slane %v1375_v20, %v14982_v59  ;;  %v1325_v25 = vadd.f32 %v15244_v23, %v1324_v21 }
 0x266   :  { %v13045_v28 = vpop.f32.mrf.mxu0 }
 0x267   :  { %v1415_v29 = vrot.slane %v1401_v22, %v14982_v59  ;;  %v1416_v30 = vcombine.high %v1408_v24, %v1408_v24  ;;  %v12226_v55 = vrot.slane %v1408_v24, 9  ;;  %v1376_v32 = vmax.f32 %v1325_v25, 0.0 }
 0x269   :  { %v1417_v35 = vcombine.high %v1415_v29, %v1415_v29  ;;  %v12227_v36 = vrot.slane %v1416_v30, 9  ;;  %v12228_v38 = vrot.slane %v1415_v29, 9  ;;  %v1813_v52 = vmax.f32 %v1408_v24, %v12226_v55 }
 0x26a   :  { %v1418_v19 = vcombine.high %v1376_v32, %v1376_v32  ;;  %v1425_v39 = vrot.slane %v1376_v32, %v14982_v59 }
 0x26b   :  { %v12229_v40 = vrot.slane %v1417_v35, 9  ;;  %v1814_v41 = vmax.f32 %v1416_v30, %v12227_v36  ;;  %v1815_v57 = vmax.f32 %v1415_v29, %v12228_v38  ;;  %v1916_v47 = vrot.slane %v1813_v52, %v15251_v15 }
 0x26c   :  { %v1432_v42 = vrot.slane %v1418_v19, %v14982_v59  ;;  %v1433_v43 = vcombine.high %v1425_v39, %v1425_v39  ;;  %v12230_v31 = vrot.slane %v1425_v39, 9 }
 0x26d   :  { %v1920_v45 = vrot.slane %v1814_v41, %v15251_v15  ;;  %v1816_v46 = vmax.f32 %v1417_v35, %v12229_v40  ;;  %v1924_v44 = vrot.slane %v1815_v57, %v15251_v15 }
 0x26e   :  { %v1434_v48 = vcombine.high %v1432_v42, %v1432_v42  ;;  %v12231_v49 = vrot.slane %v1433_v43, 9  ;;  %v12232_v58 = vrot.slane %v1432_v42, 9  ;;  %v1817_v61 = vmax.f32 %v1425_v39, %v12230_v31 }
 0x26f   :  { %v2114_v8 = vsel %vm2113_vm12, %v1920_v45, %v1916_v47  ;;  %v1928_v54 = vrot.slane %v1816_v46, %v15251_v15 }
 0x270   :  { %v12233_v51 = vrot.slane %v1434_v48, 9  ;;  %v1329_v16 = vpop.f32.mrf.mxu0  ;;  %v2116_v0 = vsel %vm2115_vm13, %v1924_v44, %v2114_v8  ;;  %v1818_v6 = vmax.f32 %v1433_v43, %v12231_v49  ;;  %v1819_v12 = vmax.f32 %v1432_v42, %v12232_v58 }
 0x271   :  { %v1330_v53 = vadd.f32 %v15244_v23, %v1329_v16  ;;  %v1932_v13 = vrot.slane %v1817_v61, %v15251_v15  ;;  %v2118_v14 = vsel %vm17591_vm14, %v1928_v54, %v2116_v0 }
 0x272   :  { %v13048_v62 = vpop.f32.mrf.mxu0  ;;  %v1820_v3 = vmax.f32 %v1434_v48, %v12233_v51  ;;  %v1936_v25 = vrot.slane %v1818_v6, %v15251_v15  ;;  %v1940_v35 = vrot.slane %v1819_v12, %v15251_v15 }
 0x273   :  { %v1377_v7 = vmax.f32 %v1330_v53, 0.0  ;;  %v2120_v36 = vsel %vm17572_vm15, %v1932_v13, %v2118_v14 }
 0x274   :  { %v1332_v17 = vpop.f32.mrf.mxu0  ;;  %v1944_v28 = vrot.slane %v1820_v3, %v15251_v15  ;;  %v2122_v53 = vsel %vm17571_vm10, %v1936_v25, %v2120_v36 }
 0x275   :  { %v1435_v5 = vcombine.high %v1377_v7, %v1377_v7  ;;  %v1442_v9 = vrot.slane %v1377_v7, %v14982_v59  ;;  %v1333_v10 = vadd.f32 %v15244_v23, %v1332_v17  ;;  %v15288_v13 = vsel %vm17588_vm0, 0.0, %v2122_v53 }
 0x276   :  { %v13049_v18 = vpop.f32.mrf.mxu0  ;;  %v2124_v57 = vsel %vm17590_vm7, %v1944_v28, %v1940_v35 }
 0x277   :  { %v1449_v20 = vrot.slane %v1435_v5, %v14982_v59  ;;  %v1450_v21 = vcombine.high %v1442_v9, %v1442_v9  ;;  %v12234_v22 = vrot.slane %v1442_v9, 9  ;;  %v1378_v24 = vmax.f32 %v1333_v10, 0.0 }
 0x279   :  { %v1451_v29 = vcombine.high %v1449_v20, %v1449_v20  ;;  %v12235_v30 = vrot.slane %v1450_v21, 9  ;;  %v12236_v55 = vrot.slane %v1449_v20, 9  ;;  %v1821_v32 = vmax.f32 %v1442_v9, %v12234_v22 }
 0x27a   :  { %v1452_v38 = vcombine.high %v1378_v24, %v1378_v24  ;;  %v1459_v52 = vrot.slane %v1378_v24, %v14982_v59 }
 0x27b   :  { %v12237_v19 = vrot.slane %v1451_v29, 9  ;;  %v1822_v39 = vmax.f32 %v1450_v21, %v12235_v30  ;;  %v1823_v40 = vmax.f32 %v1449_v20, %v12236_v55  ;;  %v1948_v41 = vrot.slane %v1821_v32, %v15251_v15 }
 0x27c   :  { %v1466_v42 = vrot.slane %v1452_v38, %v14982_v59  ;;  %v1467_v43 = vcombine.high %v1459_v52, %v1459_v52  ;;  %v12238_v45 = vrot.slane %v1459_v52, 9  ;;  %v2179_v30 = vrot.slane %v15288_v13, 1 }
 0x27d   :  { %v1824_v46 = vmax.f32 %v1451_v29, %v12237_v19  ;;  %v1952_v47 = vrot.slane %v1822_v39, %v15251_v15  ;;  %v1956_v48 = vrot.slane %v1823_v40, %v15251_v15  ;;  %v2126_v31 = vsel %vm17589_vm8, %v1948_v41, %v2124_v57 }
 0x27e   :  { %v1468_v44 = vcombine.high %v1466_v42, %v1466_v42  ;;  %v12239_v8 = vrot.slane %v1467_v43, 9  ;;  %v1825_v49 = vmax.f32 %v1459_v52, %v12238_v45  ;;  %v12240_v58 = vrot.slane %v1466_v42, 9 }
 0x27f   :  { %v1960_v51 = vrot.slane %v1824_v46, %v15251_v15  ;;  %v2127_v16 = vsel %vm2113_vm12, %v1952_v47, %v2126_v31  ;;  %v2217_v19 = vrot.slane %v15288_v13, 2 }
 0x280   :  { %v2128_v54 = vsel %vm2115_vm13, %v1956_v48, %v2127_v16  ;;  %v12241_v61 = vrot.slane %v1468_v44, 9  ;;  %v1826_v62 = vmax.f32 %v1467_v43, %v12239_v8  ;;  %v1337_v0 = vpop.f32.mrf.mxu0  ;;  %v1964_v7 = vrot.slane %v1825_v49, %v15251_v15 }
 0x281   :  { %v2129_v6 = vsel %vm17591_vm14, %v1960_v51, %v2128_v54  ;;  %v1338_v3 = vadd.f32 %v15244_v23, %v1337_v0  ;;  %v1827_v14 = vmax.f32 %v1466_v42, %v12240_v58 }
 0x282   :  { %v1828_v17 = vmax.f32 %v1468_v44, %v12241_v61  ;;  %v1968_v5 = vrot.slane %v1826_v62, %v15251_v15  ;;  %v13052_v9 = vpop.f32.mrf.mxu0  ;;  %v2130_v10 = vsel %vm17572_vm15, %v1964_v7, %v2129_v6  ;;  %v2255_v6 = vrot.slane %v15288_v13, 3 }
 0x283   :  { %v1379_v12 = vmax.f32 %v1338_v3, 0.0  ;;  %v1972_v38 = vrot.slane %v1827_v14, %v15251_v15 }
 0x284   :  { %v1340_v18 = vpop.f32.mrf.mxu0  ;;  %v15291_v20 = vsel %vm17571_vm10, %v1968_v5, %v2130_v10  ;;  %v1976_v28 = vrot.slane %v1828_v17, %v15251_v15 }
 0x285   :  { %v1469_v21 = vcombine.high %v1379_v12, %v1379_v12  ;;  %v1476_v22 = vrot.slane %v1379_v12, %v14982_v59  ;;  %v1341_v24 = vadd.f32 %v15244_v23, %v1340_v18  ;;  %v2180_v25 = vrot.slane %v15291_v20, 1 }
 0x286   :  { %v13053_v29 = vpop.f32.mrf.mxu0  ;;  %v2218_v39 = vrot.slane %v15291_v20, 2  ;;  %v2132_v43 = vsel %vm17590_vm7, %v1976_v28, %v1972_v38  ;;  %v2256_v47 = vrot.slane %v15291_v20, 3 }
 0x287   :  { %v1483_v55 = vrot.slane %v1469_v21, %v14982_v59  ;;  %v1484_v32 = vcombine.high %v1476_v22, %v1476_v22  ;;  %v12242_v35 = vrot.slane %v1476_v22, 9  ;;  %v1380_v36 = vmax.f32 %v1341_v24, 0.0 }
 0x288   :  { %v2181_v52 = vsel %vm427_vm2, %v2179_v30, %v2180_v25  ;;  %v2219_v53 = vsel %vm496_vm1, %v2217_v19, %v2218_v39  ;;  %v2257_v10 = vsel %vm565_vm3, %v2255_v6, %v2256_v47 }
 0x289   :  { %v1485_v40 = vcombine.high %v1483_v55, %v1483_v55  ;;  %v12243_v41 = vrot.slane %v1484_v32, 9  ;;  %v12244_v57 = vrot.slane %v1483_v55, 9  ;;  %v1829_v42 = vmax.f32 %v1476_v22, %v12242_v35  ;;  %2193 = vrot.lane.b32.xlu0 %v2181_v52, %s14464_s15 }
 0x28a   :  { %v1486_v45 = vcombine.high %v1380_v36, %v1380_v36  ;;  %v1493_v46 = vrot.slane %v1380_v36, %v14982_v59 }
 0x28b   :  { %v12245_v48 = vrot.slane %v1485_v40, 9  ;;  %v1830_v31 = vmax.f32 %v1484_v32, %v12243_v41  ;;  %v1831_v44 = vmax.f32 %v1483_v55, %v12244_v57  ;;  %v1980_v8 = vrot.slane %v1829_v42, %v15251_v15 }
 0x28c   :  { %v1500_v49 = vrot.slane %v1486_v45, %v14982_v59  ;;  %v1501_v51 = vcombine.high %v1493_v46, %v1493_v46  ;;  %v12246_v16 = vrot.slane %v1493_v46, 9 }
 0x28d   :  { %v1832_v54 = vmax.f32 %v1485_v40, %v12245_v48  ;;  %v1984_v58 = vrot.slane %v1830_v31, %v15251_v15  ;;  %v1988_v61 = vrot.slane %v1831_v44, %v15251_v15  ;;  %v2133_v62 = vsel %vm17589_vm8, %v1980_v8, %v2132_v43  ;;  %2231 = vrot.lane.b32.xlu0 %v2219_v53, %s14431_s2 }
 0x28e   :  { %v12247_v0 = vrot.slane %v1501_v51, 9  ;;  %v1833_v7 = vmax.f32 %v1493_v46, %v12246_v16  ;;  %v1502_v12 = vcombine.high %v1500_v49, %v1500_v49  ;;  %v12248_v32 = vrot.slane %v1500_v49, 9 }
 0x28f   :  { %v1992_v3 = vrot.slane %v1832_v54, %v15251_v15  ;;  %v2134_v17 = vsel %vm2113_vm12, %v1984_v58, %v2133_v62 }
 0x290   :  { %v2135_v5 = vsel %vm2115_vm13, %v1988_v61, %v2134_v17  ;;  %v1834_v9 = vmax.f32 %v1501_v51, %v12247_v0  ;;  %v1996_v14 = vrot.slane %v1833_v7, %v15251_v15  ;;  %v12249_v28 = vrot.slane %v1502_v12, 9 }
 0x291   :  { %v2136_v18 = vsel %vm17591_vm14, %v1992_v3, %v2135_v5  ;;  %2269 = vrot.lane.b32.xlu0 %v2257_v10, %s14465_s29  ;;  %v1835_v43 = vmax.f32 %v1500_v49, %v12248_v32 }
 0x292   :  { %v2000_v21 = vrot.slane %v1834_v9, %v15251_v15  ;;  %v2137_v22 = vsel %vm17572_vm15, %v1996_v14, %v2136_v18  ;;  %v1836_v19 = vmax.f32 %v1502_v12, %v12249_v28 }
 0x293   :  { %v2004_v58 = vrot.slane %v1835_v43, %v15251_v15 }
 0x294   :  { %v15327_v24 = vsel %vm17571_vm10, %v2000_v21, %v2137_v22  ;;  %v2008_v51 = vrot.slane %v1836_v19, %v15251_v15 }
 0x295   :  { %v1345_v29 = vpop.f32.mrf.mxu0  ;;  %v2182_v30 = vrot.slane %v15327_v24, 1  ;;  %v2220_v38 = vrot.slane %v15327_v24, 2 }
 0x296   :  { %v1346_v55 = vadd.f32 %v15244_v23, %v1345_v29  ;;  %v2139_v10 = vsel %vm17590_vm7, %v2008_v51, %v2004_v58 }
 0x297   :  { %v2183_v35 = vsel %vm427_vm2, %v2180_v25, %v2182_v30  ;;  %v13056_v36 = vpop.f32.mrf.mxu0  ;;  %v2221_v45 = vsel %vm496_vm1, %v2218_v39, %v2220_v38  ;;  %v2258_v25 = vrot.slane %v15327_v24, 3 }
 0x298   :  { %v1381_v52 = vmax.f32 %v1346_v55, 0.0  ;;  %2195 = vrot.lane.b32.xlu1 %v2183_v35, %s14464_s15 }
 0x299   :  { %v1348_v40 = vpop.f32.mrf.mxu0  ;;  %v2259_v62 = vsel %vm565_vm3, %v2256_v47, %v2258_v25 }
 0x29a   :  { %v1503_v41 = vcombine.high %v1381_v52, %v1381_v52  ;;  %v1510_v57 = vrot.slane %v1381_v52, %v14982_v59  ;;  %v1349_v42 = vadd.f32 %v15244_v23, %v1348_v40 }
 0x29b   :  { %v13057_v46 = vpop.f32.mrf.mxu0 }
 0x29c   :  { %v1517_v48 = vrot.slane %v1503_v41, %v14982_v59  ;;  %v1518_v31 = vcombine.high %v1510_v57, %v1510_v57  ;;  %v12250_v44 = vrot.slane %v1510_v57, 9  ;;  %v1382_v8 = vmax.f32 %v1349_v42, 0.0  ;;  %2233 = vrot.lane.b32.xlu1 %v2221_v45, %s14431_s2 }
 0x29e   :  { %v1519_v16 = vcombine.high %v1517_v48, %v1517_v48  ;;  %v12251_v53 = vrot.slane %v1518_v31, 9  ;;  %v12252_v49 = vrot.slane %v1517_v48, 9  ;;  %v1837_v54 = vmax.f32 %v1510_v57, %v12250_v44  ;;  %v13173_v44 = vld [vmem:[%s17620_s16 + $0x38] sm:$0xff]  }
 0x29f   :  { %v1520_v39 = vcombine.high %v1382_v8, %v1382_v8  ;;  %v1527_v61 = vrot.slane %v1382_v8, %v14982_v59 }
 0x2a0   :  { %v12253_v0 = vrot.slane %v1519_v16, 9  ;;  %v1838_v7 = vmax.f32 %v1518_v31, %v12251_v53  ;;  %v1839_v6 = vmax.f32 %v1517_v48, %v12252_v49  ;;  %v2012_v3 = vrot.slane %v1837_v54, %v15251_v15  ;;  %2271 = vrot.lane.b32.xlu1 %v2259_v62, %s14465_s29 }
 0x2a1   :  { %v1534_v17 = vrot.slane %v1520_v39, %v14982_v59  ;;  %v1535_v5 = vcombine.high %v1527_v61, %v1527_v61  ;;  %v12254_v9 = vrot.slane %v1527_v61, 9  ;;  %v17573_v62 = vmov 0  }
 0x2a2   :  { %v1840_v12 = vmax.f32 %v1519_v16, %v12253_v0  ;;  %v2016_v14 = vrot.slane %v1838_v7, %v15251_v15  ;;  %v2020_v18 = vrot.slane %v1839_v6, %v15251_v15  ;;  %v2140_v47 = vsel %vm17589_vm8, %v2012_v3, %v2139_v10  ;;  %3212 = vmatprep.subr.bf16.mxu1 %v17573_v62  ;;  %v13174_v3 = vld [vmem:[%s17620_s16 + $0x30] sm:$0xff]  }
 0x2a3   :  { %v12255_v21 = vrot.slane %v1535_v5, 9  ;;  %v1841_v22 = vmax.f32 %v1527_v61, %v12254_v9  ;;  %v15361_v29 = vsel %vm17570_vm11, %v2140_v47, 0.0  ;;  %v1536_v32 = vcombine.high %v1534_v17, %v1534_v17  ;;  %4045 = vmatprep.subr.bf16.mxu0 %v17573_v62  ;;  %3213 = vmatpush1.bf16.msra.mxu1 %v13173_v44 }
 0x2a4   :  { %v2024_v28 = vrot.slane %v1840_v12, %v15251_v15  ;;  %v2141_v55 = vsel %vm2113_vm12, %v2020_v18, %v2016_v14  ;;  %v12256_v35 = vrot.slane %v1534_v17, 9  ;;  %v2260_v36 = vrot.slane %v15361_v29, 3  ;;  %3214 = vmatprep.subr.bf16.mxu1 %v17573_v62 }
 0x2a5   :  { %v2184_v52 = vrot.slane %v15361_v29, 1  ;;  %v1842_v19 = vmax.f32 %v1535_v5, %v12255_v21  ;;  %v2028_v40 = vrot.slane %v1841_v22, %v15251_v15  ;;  %v12257_v43 = vrot.slane %v1536_v32, 9 }
 0x2a6   :  { %v2142_v57 = vsel %vm2115_vm13, %v2024_v28, %v2141_v55  ;;  %2275 = vrot.lane.b32.xlu0 %v2260_v36, %s14465_s29  ;;  %v1843_v46 = vmax.f32 %v1534_v17, %v12256_v35  ;;  %v2222_v31 = vrot.slane %v15361_v29, 2  ;;  %v2261_v28 = vsel %vm565_vm3, %v2258_v25, %v2260_v36 }
 0x2a7   :  { %v1353_v41 = vpop.f32.mrf.mxu0  ;;  %2199 = vrot.lane.b32.xlu1 %v2184_v52, %s14464_s15  ;;  %v2032_v8 = vrot.slane %v1842_v19, %v15251_v15  ;;  %v2143_v51 = vsel %vm17591_vm14, %v2028_v40, %v2142_v57  ;;  %v2185_v16 = vsel %vm427_vm2, %v2182_v30, %v2184_v52  ;;  %v1844_v39 = vmax.f32 %v1536_v32, %v12257_v43  ;;  %v13175_v52 = vld [vmem:[%s17620_s16 + $0x28] sm:$0xff]  }
 0x2a8   :  { %v1354_v42 = vadd.f32 %v15244_v23, %v1353_v41  ;;  %v2036_v17 = vrot.slane %v1843_v46, %v15251_v15  ;;  %v2223_v5 = vsel %vm496_vm1, %v2220_v38, %v2222_v31  ;;  %3215 = vmatpush1.bf16.msra.mxu1 %v13174_v3 }
 0x2a9   :  { %v13060_v45 = vpop.f32.mrf.mxu0  ;;  %v2144_v9 = vsel %vm17572_vm15, %v2032_v8, %v2143_v51  ;;  %v2040_v47 = vrot.slane %v1844_v39, %v15251_v15  ;;  %3216 = vmatprep.subr.bf16.mxu1 %v17573_v62  ;;  %v13176_v51 = vld [vmem:[%s17620_s16 + $0x20] sm:$0xff]  }
 0x2aa   :  { %v1383_v48 = vmax.f32 %v1354_v42, 0.0  ;;  %2197 = vrot.lane.b32.xlu0 %v2185_v16, %s14464_s15  ;;  %v2145_v57 = vsel %vm17571_vm10, %v2036_v17, %v2144_v9  ;;  %v13177_v9 = vld [vmem:[%s17620_s16 + $0x18] sm:$0xff]  }
 0x2ab   :  { %v1356_v53 = vpop.f32.mrf.mxu0  ;;  %2237 = vrot.lane.b32.xlu1 %v2222_v31, %s14431_s2 }
 0x2ac   :  { %v1537_v49 = vcombine.high %v1383_v48, %v1383_v48  ;;  %v1544_v54 = vrot.slane %v1383_v48, %v14982_v59  ;;  %v1357_v58 = vadd.f32 %v15244_v23, %v1356_v53  ;;  %3217 = vmatpush1.bf16.msra.mxu1 %v13175_v52 }
 0x2ad   :  { %v13061_v61 = vpop.f32.mrf.mxu0  ;;  %3218 = vmatprep.subr.bf16.mxu1 %v17573_v62 }
 0x2ae   :  { %v1551_v0 = vrot.slane %v1537_v49, %v14982_v59  ;;  %v1552_v30 = vcombine.high %v1544_v54, %v1544_v54  ;;  %v12258_v7 = vrot.slane %v1544_v54, 9  ;;  %v1384_v6 = vmax.f32 %v1357_v58, 0.0  ;;  %2235 = vrot.lane.b32.xlu0 %v2223_v5, %s14431_s2 }
 0x2b0   :  { %v1553_v10 = vcombine.high %v1551_v0, %v1551_v0  ;;  %v12259_v12 = vrot.slane %v1552_v30, 9  ;;  %v12260_v14 = vrot.slane %v1551_v0, 9  ;;  %v1845_v18 = vmax.f32 %v1544_v54, %v12258_v7  ;;  %3219 = vmatpush1.bf16.msra.mxu1 %v13176_v51 }
 0x2b1   :  { %v1554_v21 = vcombine.high %v1384_v6, %v1384_v6  ;;  %v1561_v22 = vrot.slane %v1384_v6, %v14982_v59  ;;  %3220 = vmatprep.subr.bf16.mxu1 %v17573_v62 }
 0x2b2   :  { %v12261_v38 = vrot.slane %v1553_v10, 9  ;;  %v1846_v55 = vmax.f32 %v1552_v30, %v12259_v12  ;;  %v1847_v32 = vmax.f32 %v1551_v0, %v12260_v14  ;;  %v2044_v35 = vrot.slane %v1845_v18, %v15251_v15  ;;  %2273 = vrot.lane.b32.xlu0 %v2261_v28, %s14465_s29 }
 0x2b3   :  { %v1568_v19 = vrot.slane %v1554_v21, %v14982_v59  ;;  %v1569_v40 = vcombine.high %v1561_v22, %v1561_v22  ;;  %v12262_v41 = vrot.slane %v1561_v22, 9  ;;  %v15424_v30 = vsel %vm17588_vm0, 0.0, %v2145_v57 }
 0x2b4   :  { %v1848_v42 = vmax.f32 %v1553_v10, %v12261_v38  ;;  %v2048_v25 = vrot.slane %v1846_v55, %v15251_v15  ;;  %v2052_v36 = vrot.slane %v1847_v32, %v15251_v15  ;;  %v2146_v43 = vsel %vm17590_vm7, %v2044_v35, %v2040_v47  ;;  %3221 = vmatpush1.bf16.msra.mxu1 %v13177_v9 }
 0x2b5   :  { %v1570_v45 = vcombine.high %v1568_v19, %v1568_v19  ;;  %v12263_v46 = vrot.slane %v1569_v40, 9  ;;  %v12264_v48 = vrot.slane %v1568_v19, 9  ;;  %v1849_v31 = vmax.f32 %v1561_v22, %v12262_v41  ;;  %3222 = vmatprep.subr.bf16.mxu1 %v17573_v62 }
 0x2b6   :  { %v2056_v44 = vrot.slane %v1848_v42, %v15251_v15  ;;  %v2147_v8 = vsel %vm17589_vm8, %v2048_v25, %v2146_v43  ;;  %v2224_v18 = vrot.slane %v15424_v30, 2  ;;  %v2186_v32 = vrot.slane %v15424_v30, 1  ;;  %v13178_v42 = vld [vmem:[%s17620_s16 + $0x10] sm:$0xff]  }
 0x2b7   :  { %v2148_v16 = vsel %vm2113_vm12, %v2052_v36, %v2147_v8  ;;  %v12265_v53 = vrot.slane %v1570_v45, 9  ;;  %v1850_v49 = vmax.f32 %v1569_v40, %v12263_v46  ;;  %v1851_v54 = vmax.f32 %v1568_v19, %v12264_v48  ;;  %v1361_v58 = vpop.f32.mrf.mxu0 }
 0x2b8   :  { %v2060_v39 = vrot.slane %v1849_v31, %v15251_v15  ;;  %v2149_v61 = vsel %vm2115_vm13, %v2056_v44, %v2148_v16  ;;  %v1362_v0 = vadd.f32 %v15244_v23, %v1361_v58  ;;  %v2262_v46 = vrot.slane %v15424_v30, 3  ;;  %3223 = vmatpush1.bf16.msra.mxu1 %v13178_v42 }
 0x2b9   :  { %v2064_v7 = vrot.slane %v1850_v49, %v15251_v15  ;;  %v2068_v6 = vrot.slane %v1851_v54, %v15251_v15  ;;  %v13064_v3 = vpop.f32.mrf.mxu0  ;;  %v1852_v10 = vmax.f32 %v1570_v45, %v12265_v53  ;;  %3224 = vmatprep.subr.bf16.mxu1 %v17573_v62 }
 0x2ba   :  { %v2150_v17 = vsel %vm17591_vm14, %v2060_v39, %v2149_v61  ;;  %v1385_v5 = vmax.f32 %v1362_v0, 0.0 }
 0x2bb   :  { %v1364_v12 = vpop.f32.mrf.mxu0  ;;  %v2151_v14 = vsel %vm17572_vm15, %v2064_v7, %v2150_v17  ;;  %v2072_v25 = vrot.slane %v1852_v10, %v15251_v15  ;;  %v13179_v7 = vld [vmem:[%s17620_s16 + $0x8] sm:$0xff]  }
 0x2bc   :  { %v1571_v47 = vcombine.high %v1385_v5, %v1385_v5  ;;  %v1578_v21 = vrot.slane %v1385_v5, %v14982_v59  ;;  %v1365_v22 = vadd.f32 %v15244_v23, %v1364_v12  ;;  %v15438_v28 = vsel %vm17571_vm10, %v2068_v6, %v2151_v14  ;;  %3225 = vmatpush1.bf16.msra.mxu1 %v13179_v7 }
 0x2bd   :  { %v13065_v38 = vpop.f32.mrf.mxu0  ;;  %v2225_v55 = vrot.slane %v15438_v28, 2  ;;  %v2187_v35 = vrot.slane %v15438_v28, 1  ;;  %v2263_v52 = vrot.slane %v15438_v28, 3  ;;  %3226 = vmatprep.subr.bf16.mxu1 %v17573_v62 }
 0x2be   :  { %v1585_v19 = vrot.slane %v1571_v47, %v14982_v59  ;;  %v1586_v40 = vcombine.high %v1578_v21, %v1578_v21  ;;  %v12266_v41 = vrot.slane %v1578_v21, 9  ;;  %v1386_v57 = vmax.f32 %v1365_v22, 0.0 }
 0x2bf   :  { %v2226_v36 = vsel %vm496_vm1, %v2224_v18, %v2225_v55  ;;  %v2188_v43 = vsel %vm427_vm2, %v2186_v32, %v2187_v35  ;;  %v1369_v45 = vpop.f32.mrf.mxu0  ;;  %v2264_v54 = vsel %vm565_vm3, %v2262_v46, %v2263_v52  ;;  %v15474_v32 = vpop.permute.xlu0 %4228 }
 0x2c0   :  { %v1587_v48 = vcombine.high %v1585_v19, %v1585_v19  ;;  %v12267_v31 = vrot.slane %v1586_v40, 9  ;;  %v12268_v44 = vrot.slane %v1585_v19, 9  ;;  %v1853_v8 = vmax.f32 %v1578_v21, %v12266_v41  ;;  %2239 = vrot.lane.b32.xlu1 %v2226_v36, %s14431_s2  ;;  %2201 = vrot.lane.b32.xlu0 %v2188_v43, %s14464_s15 }
 0x2c1   :  { %v1588_v51 = vcombine.high %v1386_v57, %v1386_v57  ;;  %v1595_v16 = vrot.slane %v1386_v57, %v14982_v59  ;;  %v1370_v53 = vadd.f32 %v15244_v23, %v1369_v45  ;;  %v13068_v49 = vpop.f32.mrf.mxu0  ;;  %v13180_v57 = vld [vmem:[%s17620_s16] sm:$0xff]  }
 0x2c2   :  { %v12269_v58 = vrot.slane %v1587_v48, 9  ;;  %v1854_v39 = vmax.f32 %v1586_v40, %v12267_v31  ;;  %v1855_v61 = vmax.f32 %v1585_v19, %v12268_v44  ;;  %v2076_v0 = vrot.slane %v1853_v8, %v15251_v15  ;;  %3227 = vmatpush1.bf16.msra.mxu1 %v13180_v57 }
 0x2c3   :  { %v1602_v6 = vrot.slane %v1588_v51, %v14982_v59  ;;  %v1603_v3 = vcombine.high %v1595_v16, %v1595_v16  ;;  %v12270_v17 = vrot.slane %v1595_v16, 9  ;;  %v1387_v23 = vmax.f32 %v1370_v53, 0.0  ;;  %v1372_v5 = vpop.f32.mrf.mxu0  ;;  %3240 = vmatprep.subr.bf16.mxu1 %v17573_v62 }
 0x2c4   :  { %v1856_v9 = vmax.f32 %v1587_v48, %v12269_v58  ;;  %v2080_v10 = vrot.slane %v1854_v39, %v15251_v15  ;;  %v2084_v12 = vrot.slane %v1855_v61, %v15251_v15  ;;  %v2153_v14 = vsel %vm17590_vm7, %v2076_v0, %v2072_v25  ;;  %2277 = vrot.lane.b32.xlu1 %v2264_v54, %s14465_s29  ;;  %v13181_v54 = vld [vmem:[%s17620_s16 + $0x48] sm:$0xff]   ;;  %v15494_v61 = vpop.permute.xlu0 %4296  ;;  %v13182_v5 = vld [vmem:[%s17620_s16 + $0x40] sm:$0xff]  }
 0x2c5   :  { %v1604_v18 = vcombine.high %v1602_v6, %v1602_v6  ;;  %v12271_v47 = vrot.slane %v1603_v3, 9  ;;  %v12272_v21 = vrot.slane %v1602_v6, 9  ;;  %v1857_v22 = vmax.f32 %v1595_v16, %v12270_v17  ;;  %v13069_v38 = vpop.f32.mrf.mxu0 }
 0x2c6   :  { %v2088_v19 = vrot.slane %v1856_v9, %v15251_v15  ;;  %v2154_v40 = vsel %vm17589_vm8, %v2080_v10, %v2153_v14  ;;  %v1611_v41 = vrot.slane %v1387_v23, %v14982_v59  ;;  %3241 = vmatpush2.bf16.msra.mxu1 %v13181_v54  ;;  %v15528_v38 = vpop.permute.xlu1 %4230 }
 0x2c7   :  { %v2155_v42 = vsel %vm2113_vm12, %v2084_v12, %v2154_v40  ;;  %v12273_v25 = vrot.slane %v1604_v18, 9  ;;  %v1858_v36 = vmax.f32 %v1603_v3, %v12271_v47  ;;  %v1859_v43 = vmax.f32 %v1602_v6, %v12272_v21  ;;  %3242 = vmatprep.subr.bf16.mxu1 %v17573_v62 }
 0x2c8   :  { %v2092_v45 = vrot.slane %v1857_v22, %v15251_v15  ;;  %v2156_v46 = vsel %vm2115_vm13, %v2088_v19, %v2155_v42  ;;  %v1612_v48 = vcombine.high %v1611_v41, %v1611_v41  ;;  %v12274_v31 = vrot.slane %v1611_v41, 9 }
 0x2c9   :  { %v1860_v44 = vmax.f32 %v1604_v18, %v12273_v25  ;;  %v2096_v8 = vrot.slane %v1858_v36, %v15251_v15  ;;  %v2100_v51 = vrot.slane %v1859_v43, %v15251_v15  ;;  %v15517_v18 = vpop.permute.xlu0 %4364  ;;  %v4279_v25 = vrot.slane %v15207_v60, 2  ;;  %v355_v43 = vld [vmem:[%s17617_s11 + $0x38] sm:$0xff] }
 0x2ca   :  { %v2157_v16 = vsel %vm17591_vm14, %v2092_v45, %v2156_v46  ;;  %v12275_v53 = vrot.slane %v1612_v48, 9  ;;  %v1861_v49 = vmax.f32 %v1611_v41, %v12274_v31  ;;  %3243 = vmatpush2.bf16.msra.mxu1 %v13182_v5  ;;  %v356_v46 = vld [vmem:[%s17617_s11 + $0x40] sm:$0xff]  ;;  %vm4519_vm14 = vcmask 195584  }
 0x2cb   :  { %v2104_v58 = vrot.slane %v1860_v44, %v15251_v15  ;;  %v2158_v39 = vsel %vm17572_vm15, %v2096_v8, %v2157_v16  ;;  %13070 = vmatprep.subr.bf16.mxu1 %v17575_v63  ;;  %v4347_v8 = vrot.slane %v15207_v60, 3  ;;  %v4167_v16 = vrot.slane %v355_v43, 6 }
 0x2cc   :  { %v1862_v0 = vmax.f32 %v1612_v48, %v12275_v53  ;;  %v2108_v7 = vrot.slane %v1861_v49, %v15251_v15  ;;  %v15499_v6 = vsel %vm17571_vm10, %v2100_v51, %v2158_v39  ;;  %v4280_v48 = vsel %vm496_vm1, %v4277_v1, %v4279_v25  ;;  %v357_v49 = vld [vmem:[%s17617_s11 + $0x48] sm:$0xff] }
 0x2cd   :  { %v2189_v3 = vrot.slane %v15499_v6, 1  ;;  %v2227_v10 = vrot.slane %v15499_v6, 2  ;;  %v2265_v22 = vrot.slane %v15499_v6, 3  ;;  %v15534_v41 = vpop.permute.xlu0 %4432  ;;  %v4349_v51 = vrot.slane %v15236_v56, 3 }
 0x2ce   :  { %v2112_v17 = vrot.slane %v1862_v0, %v15251_v15  ;;  %v2160_v23 = vsel %vm17590_vm7, %v2108_v7, %v2104_v58  ;;  %v4168_v53 = vrot.slane %v356_v46, 6  ;;  %v4415_v1 = vrot.slane %v15207_v60, 4 }
 0x2cf   :  { %v2190_v9 = vsel %vm427_vm2, %v2187_v35, %v2189_v3  ;;  %v2228_v35 = vsel %vm496_vm1, %v2225_v55, %v2227_v10  ;;  %v2266_v40 = vsel %vm565_vm3, %v2263_v52, %v2265_v22  ;;  %v15538_v55 = vpop.permute.xlu1 %4298  ;;  %v4281_v52 = vrot.slane %v15236_v56, 2 }
 0x2d0   :  { %2203 = vrot.lane.b32.xlu1 %v2190_v9, %s14464_s15  ;;  %v2161_v12 = vsel %vm17589_vm8, %v2112_v17, %v2160_v23  ;;  %v4417_v58 = vrot.slane %v15236_v56, 4  ;;  %v4348_v39 = vsel %vm565_vm3, %v4345_v2, %v4347_v8  ;;  %v4350_v0 = vsel %vm565_vm3, %v4347_v8, %v4349_v51 }
 0x2d1   :  { %v15515_v14 = vsel %vm17570_vm11, %v2161_v12, 0.0  ;;  %v15546_v36 = vpop.permute.xlu0 %4232  ;;  %v4282_v44 = vsel %vm496_vm1, %v4279_v25, %v4281_v52  ;;  %v15583_v7 = vsel %vm17588_vm0, 0.0, %v4167_v16  ;;  %v15586_v17 = vsel %vm17588_vm0, %v4167_v16, %v4168_v53 }
 0x2d2   :  { %v2229_v47 = vrot.slane %v15515_v14, 2  ;;  %v2191_v21 = vrot.slane %v15515_v14, 1  ;;  %v2267_v42 = vrot.slane %v15515_v14, 3  ;;  %v4416_v2 = vsel %vm420_vm4, %v4413_v4, %v4415_v1 }
 0x2d3   :  { %v15560_v31 = vpop.permute.xlu1 %4366  ;;  %v4418_v5 = vsel %vm420_vm4, %v4415_v1, %v4417_v58  ;;  %v4215_v9 = vrot.slane %v15583_v7, 1  ;;  %v4216_v12 = vrot.slane %v15586_v17, 1  ;;  %vm2307_vm11 = vcmask 261120  }
 0x2d4   :  { %2245 = vrot.lane.b32.xlu0 %v2229_v47, %s14431_s2  ;;  %2241 = vrot.lane.b32.xlu1 %v2228_v35, %s14431_s2  ;;  %v2192_v19 = vsel %vm427_vm2, %v2189_v3, %v2191_v21  ;;  %v2230_v57 = vsel %vm496_vm1, %v2227_v10, %v2229_v47  ;;  %v2268_v45 = vsel %vm565_vm3, %v2265_v22, %v2267_v42  ;;  %v4170_v3 = vrot.slane %v357_v49, 6 }
 0x2d5   :  { %v15570_v54 = vpop.permute.xlu0 %4300  ;;  %v4283_v47 = vrot.slane %v15583_v7, 2  ;;  %v4284_v35 = vrot.slane %v15586_v17, 2  ;;  %vm2316_vm10 = vcmask 523264   ;;  %vm2325_vm15 = vcmask 785408  }
 0x2d6   :  { %vm4489_vm8 = vcmask 97280   ;;  %vm4504_vm7 = vcmask 146432  }
 0x2d7   :  { %v15588_v23 = vpop.permute.xlu1 %4434 }
 0x2d8   :  { %2205 = vrot.lane.b32.xlu0 %v2192_v19, %s14464_s15  ;;  %2279 = vrot.lane.b32.xlu1 %v2266_v40, %s14465_s29  ;;  %v4217_v19 = vsel %vm427_vm2, %v4215_v9, %v4216_v12  ;;  %v4285_v40 = vsel %vm496_vm1, %v4283_v47, %v4284_v35 }
 0x2d9   :  { %v15599_v10 = vpop.permute.xlu0 %4368 }
 0x2db   :  { %v15610_v22 = vpop.permute.xlu1 %4234 }
 0x2dc   :  { %2243 = vrot.lane.b32.xlu0 %v2230_v57, %s14431_s2  ;;  %2207 = vrot.lane.b32.xlu1 %v2191_v21, %s14464_s15  ;;  %v15605_v21 = vsel %vm17588_vm0, %v4168_v53, %v4170_v3  ;;  %v4351_v57 = vrot.slane %v15583_v7, 3 }
 0x2dd   :  { %17621 = vst [vmem:[#allocation47_spill] sm:$0xff] %v15605_v21  ;;  %v4218_v4 = vrot.slane %v15605_v21, 1  ;;  %v15616_v25 = vpop.permute.xlu0 %4436  ;;  %v4286_v46 = vrot.slane %v15605_v21, 2  ;;  %v4354_v1 = vrot.slane %v15605_v21, 3 }
 0x2df   :  { %v4219_v43 = vsel %vm427_vm2, %v4216_v12, %v4218_v4  ;;  %v15625_v8 = vpop.permute.xlu1 %4302  ;;  %v4287_v53 = vsel %vm496_vm1, %v4284_v35, %v4286_v46  ;;  %v14467_v12 = vmov 1966171168  }
 0x2e0   :  { %2281 = vrot.lane.b32.xlu0 %v2268_v45, %s14465_s29  ;;  %2283 = vrot.lane.b32.xlu1 %v2267_v42, %s14465_s29  ;;  %v4352_v42 = vrot.slane %v15586_v17, 3  ;;  %v2345_v47 = vunpack.c.l.s4 %v14467_v12 }
 0x2e1   :  { %v15629_v16 = vpop.permute.xlu0 %4236 }
 0x2e2   :  { %v4353_v45 = vsel %vm565_vm3, %v4351_v57, %v4352_v42 }
 0x2e4   :  { %4304 = vrot.lane.b32.xlu0 %v4280_v48, %s14461_s20  ;;  %4306 = vrot.lane.b32.xlu1 %v4282_v44, %s14461_s20  ;;  %v4419_v48 = vrot.slane %v15583_v7, 4  ;;  %v4420_v44 = vrot.slane %v15586_v17, 4 }
 0x2e6   :  { %v4421_v49 = vsel %vm420_vm4, %v4419_v48, %v4420_v44 }
 0x2e8   :  { %4372 = vrot.lane.b32.xlu0 %v4348_v39, %s14462_s13  ;;  %4374 = vrot.lane.b32.xlu1 %v4350_v0, %s14462_s13  ;;  %v358_v39 = vld [vmem:[%s17617_s11 + $0x50] sm:$0xff]  ;;  %v15639_v0 = vpop.permute.xlu1 %4370 }
 0x2e9   :  { %v4172_v9 = vrot.slane %v358_v39, 6 }
 0x2eb   :  { %v15652_v57 = vsel %vm17588_vm0, %v4170_v3, %v4172_v9 }
 0x2ec   :  { %4440 = vrot.lane.b32.xlu0 %v4416_v2, %s14463_s24  ;;  %4442 = vrot.lane.b32.xlu1 %v4418_v5, %s14463_s24  ;;  %v4355_v2 = vsel %vm565_vm3, %v4352_v42, %v4354_v1  ;;  %v4422_v5 = vrot.slane %v15605_v21, 4  ;;  %17622 = vst [vmem:[#allocation48_spill] sm:$0xff] %v15652_v57  ;;  %v15654_v42 = vpop.permute.xlu1 %4438  ;;  %v4288_v3 = vrot.slane %v15652_v57, 2 }
 0x2f0   :  { %4242 = vrot.lane.b32.xlu0 %v4217_v19, %s14460_s21  ;;  %4310 = vrot.lane.b32.xlu1 %v4285_v40, %s14461_s20  ;;  %v359_v19 = vld [vmem:[%s17617_s11 + $0x58] sm:$0xff]  ;;  %v4423_v40 = vsel %vm420_vm4, %v4420_v44, %v4422_v5  ;;  %v2293_v44 = vrot.slane %v15288_v13, 4 }
 0x2f4   :  { %4244 = vrot.lane.b32.xlu0 %v4219_v43, %s14460_s21  ;;  %4378 = vrot.lane.b32.xlu1 %v4353_v45, %s14462_s13  ;;  %v4174_v43 = vrot.slane %v359_v19, 6  ;;  %v2346_v45 = vunpack.c.0.s8 %v2345_v47 }
 0x2f6   :  { %v15667_v39 = vsel %vm17588_vm0, %v4172_v9, %v4174_v43 }
 0x2f7   :  { %17623 = vst [vmem:[#allocation49_spill] sm:$0xff] %v15667_v39 }
 0x2f8   :  { %4312 = vrot.lane.b32.xlu0 %v4287_v53, %s14461_s20  ;;  %4446 = vrot.lane.b32.xlu1 %v4421_v49, %s14463_s24  ;;  %v2294_v53 = vrot.slane %v15291_v20, 4 }
 0x2fa   :  { %v2295_v12 = vsel %vm420_vm4, %v2293_v44, %v2294_v53  ;;  %v4356_v44 = vrot.slane %v15652_v57, 3 }
 0x2fb   :  { %v2194_v35 = vpop.permute.xlu0 %2193 }
 0x2fc   :  { %4240 = vrot.lane.b32.xlu0 %v4213_v11, %s14460_s21  ;;  %4380 = vrot.lane.b32.xlu1 %v4355_v2, %s14462_s13  ;;  %v4220_v11 = vrot.slane %v15652_v57, 1  ;;  %v2308_v49 = vsel %vm2307_vm11, %v15288_v13, %v2194_v35  ;;  %v15670_v2 = vsub.s32 %v2346_v45, %v14975_v50  ;;  %v15681_v13 = vpop.permute.xlu1 %4238  ;;  %v4289_v35 = vsel %vm496_vm1, %v4286_v46, %v4288_v3 }
 0x2fd   :  { %v4426_v50 = vrot.slane %v15667_v39, 4 }
 0x2fe   :  { %v4221_v9 = vsel %vm427_vm2, %v4218_v4, %v4220_v11  ;;  %v361_v4 = vld [vmem:[%s17617_s11 + $0x68] sm:$0x3] }
 0x2ff   :  { %v2232_v48 = vpop.permute.xlu0 %2231  ;;  %v4178_v63 = vrot.slane %v361_v4, 6 }
 0x300   :  { %4308 = vrot.lane.b32.xlu0 %v4281_v52, %s14461_s20  ;;  %4448 = vrot.lane.b32.xlu1 %v4423_v40, %s14463_s24  ;;  %v2317_v52 = vsel %vm2316_vm10, %v2308_v49, %v2232_v48  ;;  %v4222_v48 = vrot.slane %v15667_v39, 1 }
 0x302   :  { %v4223_v46 = vsel %vm427_vm2, %v4220_v11, %v4222_v48 }
 0x303   :  { %v2270_v47 = vpop.permute.xlu0 %2269 }
 0x304   :  { %v2326_v19 = vsel %vm2325_vm15, %v2317_v52, %v2270_v47  ;;  %4376 = vrot.lane.b32.xlu0 %v4349_v51, %s14462_s13  ;;  %4444 = vrot.lane.b32.xlu1 %v4417_v58, %s14463_s24  ;;  %v360_v58 = vld [vmem:[%s17617_s11 + $0x60] sm:$0xff]  ;;  %v4357_v52 = vsel %vm565_vm3, %v4354_v1, %v4356_v44  ;;  %v4424_v47 = vrot.slane %v15652_v57, 4 }
 0x305   :  { %v2342_v40 = vcombine.low %v2326_v19, %v2295_v12  ;;  %v2343_v45 = vcombine.high %v2326_v19, %v2295_v12  ;;  %v4290_v12 = vrot.slane %v15667_v39, 2 }
 0x306   :  { %v4425_v1 = vsel %vm420_vm4, %v4422_v5, %v4424_v47 }
 0x307   :  { %v2350_v49 = vrot.slane %v2342_v40, %v15670_v2  ;;  %v2357_v51 = vrot.slane %v2343_v45, %v15670_v2  ;;  %v4176_v45 = vrot.slane %v360_v58, 6  ;;  %v4291_v11 = vsel %vm496_vm1, %v4288_v3, %v4290_v12 }
 0x308   :  { %4246 = vrot.lane.b32.xlu0 %v4221_v9, %s14460_s21  ;;  %4314 = vrot.lane.b32.xlu1 %v4289_v35, %s14461_s20  ;;  %v17583_v9 = vrot.slane %v15327_v24, 4  ;;  %v4358_v35 = vrot.slane %v15667_v39, 3 }
 0x309   :  { %v2358_v19 = vcombine.high %v2350_v49, %v2350_v49  ;;  %v2359_v62 = vcombine.high %v2357_v51, %v2357_v51  ;;  %v15710_v58 = vsel %vm17588_vm0, %v4174_v43, %v4176_v45 }
 0x30a   :  { %v2196_v40 = vpop.permute.xlu1 %2195  ;;  %17624 = vst [vmem:[#allocation50_spill] sm:$0xff] %v15710_v58  ;;  %v2297_v5 = vsel %vm420_vm4, %v2294_v53, %v17583_v9  ;;  %v4359_v3 = vsel %vm565_vm3, %v4356_v44, %v4358_v35 }
 0x30b   :  { %v2380_v15 = vrot.slane %v2358_v19, %v15670_v2  ;;  %v2387_v4 = vrot.slane %v2359_v62, %v15670_v2  ;;  %v2373_v19 = vrot.slane %v2357_v51, %v15670_v2  ;;  %v2309_v43 = vsel %vm2307_vm11, %v15291_v20, %v2196_v40 }
 0x30c   :  { %4248 = vrot.lane.b32.xlu0 %v4223_v46, %s14460_s21  ;;  %4382 = vrot.lane.b32.xlu1 %v4357_v52, %s14462_s13  ;;  %v4179_v46 = vsel %vm17588_vm0, %v4176_v45, %v4178_v63  ;;  %v2366_v52 = vrot.slane %v2350_v49, %v15670_v2  ;;  %v4427_v62 = vsel %vm420_vm4, %v4424_v47, %v4426_v50  ;;  %v4224_v63 = vrot.slane %v15710_v58, 1 }
 0x30d   :  { %v15729_v39 = vsel %vm420_vm4, %v4179_v46, 0.0  ;;  %v2674_v44 = vcombine.low %v2373_v19, %v2387_v4  ;;  %v12277_v9 = vcombine.high %v2373_v19, %v2387_v4  ;;  %v4360_v40 = vrot.slane %v15710_v58, 3 }
 0x30e   :  { %v2234_v57 = vpop.permute.xlu1 %2233  ;;  %v2672_v49 = vcombine.low %v2366_v52, %v2380_v15  ;;  %v12276_v53 = vcombine.high %v2366_v52, %v2380_v15  ;;  %v4225_v47 = vsel %vm427_vm2, %v4222_v48, %v4224_v63  ;;  %v4428_v52 = vrot.slane %v15710_v58, 4 }
 0x30f   :  { %v2318_v45 = vsel %vm2316_vm10, %v2309_v43, %v2234_v57  ;;  %v17585_v57 = vrot.slane %v15729_v39, 1  ;;  %v2696_v19 = vrot.slane %v2674_v44, %v15670_v2  ;;  %v2703_v48 = vrot.slane %v12277_v9, %v15670_v2 }
 0x310   :  { %4316 = vrot.lane.b32.xlu0 %v4291_v11, %s14461_s20  ;;  %4450 = vrot.lane.b32.xlu1 %v4425_v1, %s14463_s24  ;;  %v4292_v1 = vrot.slane %v15710_v58, 2  ;;  %vm4474_vm0 = vcmask 48128  }
 0x312   :  { %v2272_v11 = vpop.permute.xlu1 %2271  ;;  %v4293_v4 = vsel %vm496_vm1, %v4290_v12, %v4292_v1  ;;  %v4361_v12 = vsel %vm565_vm3, %v4358_v35, %v4360_v40 }
 0x313   :  { %v2327_v51 = vsel %vm2325_vm15, %v2318_v45, %v2272_v11 }
 0x314   :  { %v2392_v21 = vcombine.low %v2327_v51, %v2297_v5  ;;  %v2393_v20 = vcombine.high %v2327_v51, %v2297_v5  ;;  %4384 = vrot.lane.b32.xlu0 %v4359_v3, %s14462_s13  ;;  %4452 = vrot.lane.b32.xlu1 %v4427_v62, %s14463_s24  ;;  %v2682_v5 = vrot.slane %v2672_v49, %v15670_v2 }
 0x315   :  { %v2689_v3 = vrot.slane %v12276_v53, %v15670_v2  ;;  %v4429_v51 = vsel %vm420_vm4, %v4426_v50, %v4428_v52  ;;  %v2706_v50 = vcombine.low %v2696_v19, %v2703_v48 }
 0x316   :  { %v2400_v46 = vrot.slane %v2392_v21, %v15670_v2  ;;  %v2407_v15 = vrot.slane %v2393_v20, %v15670_v2  ;;  %v4227_v21 = vsel %vm427_vm2, %v4224_v63, %v17585_v57  ;;  %v2707_v63 = vcombine.high %v2696_v19, %v2703_v48 }
 0x318   :  { %v2408_v43 = vcombine.high %v2400_v46, %v2400_v46  ;;  %v2409_v62 = vcombine.high %v2407_v15, %v2407_v15  ;;  %4250 = vrot.lane.b32.xlu0 %v4225_v47, %s14460_s21  ;;  %4318 = vrot.lane.b32.xlu1 %v4293_v4, %s14461_s20  ;;  %v2416_v45 = vrot.slane %v2400_v46, %v15670_v2  ;;  %v15756_v44 = vpop.permute.xlu0 %2275  ;;  %v17625_v46 = vrot.slane %v15729_v39, 2 }
 0x319   :  { %v2423_v11 = vrot.slane %v2407_v15, %v15670_v2  ;;  %v2705_v47 = vcombine.high %v2682_v5, %v2689_v3 }
 0x31a   :  { %v2430_v9 = vrot.slane %v2408_v43, %v15670_v2  ;;  %v2437_v53 = vrot.slane %v2409_v62, %v15670_v2  ;;  %v4295_v15 = vsel %vm496_vm1, %v4292_v1, %v17625_v46  ;;  %v4430_v43 = vrot.slane %v15729_v39, 4 }
 0x31b   :  { %v2704_v62 = vcombine.low %v2682_v5, %v2689_v3  ;;  %v17626_v5 = vrot.slane %v15729_v39, 3 }
 0x31c   :  { %v2738_v4 = vcombine.low %v2416_v45, %v2430_v9  ;;  %v12278_v35 = vcombine.high %v2416_v45, %v2430_v9  ;;  %v2740_v57 = vcombine.low %v2423_v11, %v2437_v53  ;;  %v12279_v49 = vcombine.high %v2423_v11, %v2437_v53  ;;  %4252 = vrot.lane.b32.xlu0 %v4227_v21, %s14460_s21  ;;  %v2198_v58 = vpop.permute.xlu0 %2197 }
 0x31d   :  { %4386 = vrot.lane.b32.xlu1 %v4361_v12, %s14462_s13  ;;  %v2721_v21 = vrot.slane %v2705_v47, %v15670_v2  ;;  %v2735_v12 = vrot.slane %v2707_v63, %v15670_v2  ;;  %v4363_v3 = vsel %vm565_vm3, %v4360_v40, %v17626_v5  ;;  %v2714_v19 = vrot.slane %v2704_v62, %v15670_v2 }
 0x31e   :  { %v2748_v20 = vrot.slane %v2738_v4, %v15670_v2  ;;  %v2755_v56 = vrot.slane %v12278_v35, %v15670_v2  ;;  %v2762_v45 = vrot.slane %v2740_v57, %v15670_v2  ;;  %v2769_v11 = vrot.slane %v12279_v49, %v15670_v2  ;;  %v2200_v35 = vpop.permute.xlu1 %2199 }
 0x31f   :  { %v2728_v57 = vrot.slane %v2706_v50, %v15670_v2  ;;  %v4431_v47 = vsel %vm420_vm4, %v4428_v52, %v4430_v43  ;;  %v2298_v40 = vrot.slane %v15361_v29, 4  ;;  %v2737_v46 = vcombine.low %v2721_v21, %v2735_v12 }
 0x320   :  { %4320 = vrot.lane.b32.xlu0 %v4295_v15, %s14461_s20  ;;  %v2771_v1 = vcombine.high %v2748_v20, %v2755_v56  ;;  %v2773_v9 = vcombine.high %v2762_v45, %v2769_v11  ;;  %v2770_v53 = vcombine.low %v2748_v20, %v2755_v56  ;;  %v2772_v48 = vcombine.low %v2762_v45, %v2769_v11  ;;  %v2236_v49 = vpop.permute.xlu0 %2235  ;;  %v13183_v20 = vld [vmem:[#allocation10 + $0x8] sm:$0x7f]  }
 0x321   :  { %4454 = vrot.lane.b32.xlu1 %v4429_v51, %s14463_s24  ;;  %v2310_v62 = vsel %vm2307_vm11, %v15327_v24, %v2198_v58  ;;  %v2736_v52 = vcombine.low %v2714_v19, %v2728_v57  ;;  %v5042_v5 = vsel %vm427_vm2, %v13183_v20, 0  ;;  %v17628_v58 = vrot.slane %v15729_v39, 1 }
 0x322   :  { %v2787_v4 = vrot.slane %v2771_v1, %v15670_v2  ;;  %v2801_v63 = vrot.slane %v2773_v9, %v15670_v2  ;;  %v2780_v56 = vrot.slane %v2770_v53, %v15670_v2  ;;  %v2794_v51 = vrot.slane %v2772_v48, %v15670_v2  ;;  %v2238_v48 = vpop.permute.xlu1 %2237 }
 0x323   :  { %v2319_v45 = vsel %vm2316_vm10, %v2310_v62, %v2236_v49  ;;  %v17629_v57 = vrot.slane %v15729_v39, 2  ;;  %v13184_v49 = vld [vmem:[#allocation10] sm:$0xff]   ;;  %v17632_v20 = vmov 0  }
 0x324   :  { %4388 = vrot.lane.b32.xlu0 %v4363_v3, %s14462_s13  ;;  %v2803_v15 = vcombine.low %v2787_v4, %v2801_v63  ;;  %v2802_v50 = vcombine.low %v2780_v56, %v2794_v51  ;;  %v2274_v11 = vpop.permute.xlu0 %2273  ;;  %v17627_v3 = vrot.slane %v15327_v24, 4  ;;  %v2311_v24 = vsel %vm2307_vm11, %v15361_v29, %v2200_v35 }
 0x325   :  { %4456 = vrot.lane.b32.xlu1 %v4431_v47, %s14463_s24  ;;  %v2328_v9 = vsel %vm2325_vm15, %v2319_v45, %v2274_v11  ;;  %v17630_v47 = vmov 0.0   ;;  %v17631_v4 = vrot.slane %v15729_v39, 3  ;;  %v2320_v63 = vsel %vm2316_vm10, %v2311_v24, %v2238_v48 }
 0x326   :  { %v3106_v1 = vpack.c.bf16 %v2803_v15, %v2737_v46  ;;  %v3105_v53 = vpack.c.bf16 %v2802_v50, %v2736_v52  ;;  %v2299_v21 = vsel %vm420_vm4, %v17627_v3, %v2298_v40  ;;  %v2329_v46 = vsel %vm2325_vm15, %v2320_v63, %v15756_v44 }
 0x327   :  { %v2442_v12 = vcombine.low %v2328_v9, %v2299_v21  ;;  %v2443_v19 = vcombine.high %v2328_v9, %v2299_v21  ;;  %v2301_v52 = vrot.slane %v15438_v28, 4  ;;  %v2492_v50 = vcombine.low %v2329_v46, %v2298_v40 }
 0x328   :  { %4254 = vrot.lane.b32.xlu0 %v17628_v58, %s14460_s21  ;;  %12293 = vmatprep.mubr.msk.bf16.mxu1 %vm2307_vm11, %v3106_v1  ;;  %v2300_v11 = vrot.slane %v15424_v30, 4 }
 0x329   :  { %4322 = vrot.lane.b32.xlu1 %v17629_v57, %s14461_s20  ;;  %3245 = vmatmul.mubr.bf16.vlgmr.msra.gmra.mxu1 %v3105_v53  ;;  %v2450_v56 = vrot.slane %v2442_v12, %v15670_v2  ;;  %v2457_v51 = vrot.slane %v2443_v19, %v15670_v2  ;;  %s17670_s20 = sld [smem:[#allocation62_spill]] }
 0x32a   :  { %13071 = vmatpush3.bf16.msra.mxu1 %v5042_v5  ;;  %v2302_v44 = vsel %vm420_vm4, %v2300_v11, %v2301_v52  ;;  %v2499_v5 = vrot.slane %v2492_v50, %v15670_v2 }
 0x32b   :  { %13072 = vmatprep.subr.bf16.mxu1 %v17630_v47  ;;  %v2458_v15 = vcombine.high %v2450_v56, %v2450_v56  ;;  %v2459_v29 = vcombine.high %v2457_v51, %v2457_v51  ;;  %v2466_v40 = vrot.slane %v2450_v56, %v15670_v2  ;;  %v2473_v3 = vrot.slane %v2457_v51, %v15670_v2 }
 0x32c   :  { %4390 = vrot.lane.b32.xlu0 %v17631_v4, %s14462_s13  ;;  %v2506_v4 = vrot.slane %v2499_v5, %v15670_v2 }
 0x32d   :  { %4458 = vrot.lane.b32.xlu1 %v4430_v43, %s14463_s24  ;;  %v2480_v43 = vrot.slane %v2458_v15, %v15670_v2  ;;  %v2487_v1 = vrot.slane %v2459_v29, %v15670_v2 }
 0x32e   :  { %13073 = vmatpush3.bf16.msra.mxu1 %v13184_v49 }
 0x32f   :  { %7791 = vmatprep.subr.bf16.mxu1 %v17632_v20  ;;  %v2804_v12 = vcombine.low %v2466_v40, %v2480_v43  ;;  %v12280_v19 = vcombine.high %v2466_v40, %v2480_v43  ;;  %v2806_v57 = vcombine.low %v2473_v3, %v2487_v1  ;;  %v12281_v48 = vcombine.high %v2473_v3, %v2487_v1 }
 0x331   :  { %v2814_v15 = vrot.slane %v2804_v12, %v15670_v2  ;;  %v2821_v29 = vrot.slane %v12280_v19, %v15670_v2 }
 0x332   :  { %v2240_v35 = vpop.permute.xlu1 %2239  ;;  %v2202_v62 = vpop.permute.xlu0 %2201 }
 0x333   :  { %v2312_v45 = vsel %vm2307_vm11, %v15424_v30, %v2202_v62  ;;  %v2835_v62 = vrot.slane %v12281_v48, %v15670_v2  ;;  %v2837_v5 = vcombine.high %v2814_v15, %v2821_v29  ;;  %v2836_v3 = vcombine.low %v2814_v15, %v2821_v29 }
 0x334   :  { %v2321_v53 = vsel %vm2316_vm10, %v2312_v45, %v2240_v35  ;;  %v2828_v35 = vrot.slane %v2806_v57, %v15670_v2 }
 0x335   :  { %v2846_v15 = vrot.slane %v2836_v3, %v15670_v2 }
 0x336   :  { %v2278_v9 = vpop.permute.xlu1 %2277  ;;  %v2839_v40 = vcombine.high %v2828_v35, %v2835_v62  ;;  %v2838_v19 = vcombine.low %v2828_v35, %v2835_v62  ;;  %v2303_v35 = vrot.slane %v15499_v6, 4 }
 0x337   :  { %v2330_v21 = vsel %vm2325_vm15, %v2321_v53, %v2278_v9 }
 0x338   :  { %v2507_v30 = vcombine.low %v2330_v21, %v2302_v44  ;;  %v2508_v58 = vcombine.high %v2330_v21, %v2302_v44  ;;  %v2860_v29 = vrot.slane %v2838_v19, %v15670_v2  ;;  %v4476_v19 = vsel %vm4474_vm0, %v15099_v26, %v15528_v38 }
 0x339   :  { %v4491_v26 = vsel %vm4489_vm8, %v4476_v19, %v15538_v55  ;;  %v2305_v38 = vrot.slane %v15515_v14, 4 }
 0x33a   :  { %v2515_v49 = vrot.slane %v2507_v30, %v15670_v2  ;;  %v2522_v24 = vrot.slane %v2508_v58, %v15670_v2 }
 0x33c   :  { %v2523_v63 = vcombine.high %v2515_v49, %v2515_v49  ;;  %v2524_v46 = vcombine.high %v2522_v24, %v2522_v24  ;;  %v2531_v56 = vrot.slane %v2515_v49, %v15670_v2  ;;  %v2538_v51 = vrot.slane %v2522_v24, %v15670_v2 }
 0x33e   :  { %v2545_v50 = vrot.slane %v2523_v63, %v15670_v2  ;;  %v15840_v45 = vrot.slane %v2524_v46, %v15670_v2  ;;  %v2553_v11 = vcombine.high %v2531_v56, %v2531_v56  ;;  %v2554_v43 = vcombine.high %v2538_v51, %v2538_v51 }
 0x33f   :  { %v2870_v1 = vcombine.low %v2506_v4, %v2531_v56  ;;  %v2853_v4 = vrot.slane %v2837_v5, %v15670_v2  ;;  %v2867_v63 = vrot.slane %v2839_v40, %v15670_v2 }
 0x340   :  { %v2555_v44 = vcombine.high %v2545_v50, %v2545_v50  ;;  %v2871_v9 = vcombine.low %v2545_v50, %v2553_v11  ;;  %v2873_v53 = vcombine.low %v15840_v45, %v2554_v43 }
 0x341   :  { %v2880_v30 = vrot.slane %v2870_v1, %v15670_v2 }
 0x342   :  { %v2872_v21 = vcombine.low %v2555_v44, %v2538_v51  ;;  %v2887_v58 = vrot.slane %v2871_v9, %v15670_v2  ;;  %v2204_v12 = vpop.permute.xlu1 %2203  ;;  %v2901_v48 = vrot.slane %v2873_v53, %v15670_v2  ;;  %v4475_v44 = vsel %vm4474_vm0, %v15102_v27, %v15474_v32 }
 0x343   :  { %v2313_v9 = vsel %vm2307_vm11, %v15438_v28, %v2204_v12  ;;  %v2869_v53 = vcombine.low %v2853_v4, %v2867_v63  ;;  %v2304_v27 = vsel %vm420_vm4, %v2301_v52, %v2303_v35 }
 0x344   :  { %v2894_v57 = vrot.slane %v2872_v21, %v15670_v2  ;;  %v2903_v49 = vcombine.high %v2880_v30, %v2887_v58  ;;  %v2902_v24 = vcombine.low %v2880_v30, %v2887_v58  ;;  %v2868_v30 = vcombine.low %v2846_v15, %v2860_v29 }
 0x346   :  { %v2905_v46 = vcombine.high %v2894_v57, %v2901_v48  ;;  %v2246_v56 = vpop.permute.xlu0 %2245  ;;  %v2242_v51 = vpop.permute.xlu1 %2241  ;;  %v2904_v50 = vcombine.low %v2894_v57, %v2901_v48  ;;  %v2919_v62 = vrot.slane %v2903_v49, %v15670_v2  ;;  %v2912_v43 = vrot.slane %v2902_v24, %v15670_v2 }
 0x347   :  { %v2322_v5 = vsel %vm2316_vm10, %v2313_v9, %v2242_v51  ;;  %v4490_v24 = vsel %vm4489_vm8, %v4475_v44, %v15494_v61  ;;  %v4506_v44 = vsel %vm4504_vm7, %v4491_v26, %v15560_v31  ;;  %v2306_v9 = vsel %vm420_vm4, %v2303_v35, %v2305_v38 }
 0x348   :  { %v2933_v11 = vrot.slane %v2905_v46, %v15670_v2  ;;  %v2926_v1 = vrot.slane %v2904_v50, %v15670_v2  ;;  %v4477_v35 = vsel %vm4474_vm0, %v15159_v34, %v15546_v36  ;;  %v4478_v36 = vsel %vm4474_vm0, %v15165_v37, %v15610_v22 }
 0x34a   :  { %v2206_v40 = vpop.permute.xlu0 %2205  ;;  %v2280_v3 = vpop.permute.xlu1 %2279  ;;  %v2935_v21 = vcombine.low %v2919_v62, %v2933_v11  ;;  %v2934_v58 = vcombine.low %v2912_v43, %v2926_v1  ;;  %v4505_v62 = vsel %vm4504_vm7, %v4490_v24, %v15517_v18 }
 0x34b   :  { %v2331_v32 = vsel %vm2325_vm15, %v2322_v5, %v2280_v3  ;;  %v2314_v50 = vsel %vm2307_vm11, %v15499_v6, %v2206_v40 }
 0x34c   :  { %v2557_v12 = vcombine.low %v2331_v32, %v2304_v27  ;;  %v2558_v57 = vcombine.high %v2331_v32, %v2304_v27  ;;  %v3108_v48 = vpack.c.bf16 %v2935_v21, %v2869_v53  ;;  %v3107_v49 = vpack.c.bf16 %v2934_v58, %v2868_v30 }
 0x34d   :  { %v4521_v32 = vsel %vm4519_vm14, %v4506_v44, %v15588_v23 }
 0x34e   :  { %v2565_v4 = vrot.slane %v2557_v12, %v15670_v2  ;;  %v2572_v63 = vrot.slane %v2558_v57, %v15670_v2  ;;  %v2244_v46 = vpop.permute.xlu0 %2243  ;;  %v2208_v51 = vpop.permute.xlu1 %2207  ;;  %12294 = vmatprep.mubr.msk.bf16.mxu1 %vm2307_vm11, %v3108_v48  ;;  %v2556_v48 = vcombine.high %v15840_v45, %v15840_v45 }
 0x34f   :  { %v2315_v28 = vsel %vm2307_vm11, %v15515_v14, %v2208_v51  ;;  %3253 = vmatmul.mubr.bf16.gmra.mxu1 %v3107_v49  ;;  %v2323_v11 = vsel %vm2316_vm10, %v2314_v50, %v2244_v46 }
 0x350   :  { %v2573_v52 = vcombine.high %v2565_v4, %v2565_v4  ;;  %v2574_v61 = vcombine.high %v2572_v63, %v2572_v63  ;;  %v2581_v15 = vrot.slane %v2565_v4, %v15670_v2  ;;  %v2588_v29 = vrot.slane %v2572_v63, %v15670_v2 }
 0x351   :  { %v2324_v14 = vsel %vm2316_vm10, %v2315_v28, %v2246_v56  ;;  %v4520_v56 = vsel %vm4519_vm14, %v4505_v62, %v15534_v41 }
 0x352   :  { %v2595_v55 = vrot.slane %v2573_v52, %v15670_v2  ;;  %v2282_v43 = vpop.permute.xlu0 %2281  ;;  %v2284_v1 = vpop.permute.xlu1 %2283  ;;  %v2602_v5 = vrot.slane %v2574_v61, %v15670_v2  ;;  %v2603_v18 = vcombine.high %v2581_v15, %v2581_v15  ;;  %v2604_v40 = vcombine.high %v2588_v29, %v2588_v29 }
 0x353   :  { %v2332_v53 = vsel %vm2325_vm15, %v2323_v11, %v2282_v43  ;;  %v2333_v6 = vsel %vm2325_vm15, %v2324_v14, %v2284_v1  ;;  %v2936_v23 = vcombine.low %v2556_v48, %v2581_v15  ;;  %v4548_v1 = vcombine.high %v4520_v56, %v4520_v56 }
 0x354   :  { %v2605_v3 = vcombine.high %v2595_v55, %v2595_v55  ;;  %v2607_v21 = vcombine.low %v2332_v53, %v2306_v9  ;;  %v2608_v30 = vcombine.high %v2332_v53, %v2306_v9  ;;  %v2657_v58 = vcombine.low %v2333_v6, %v2305_v38 }
 0x355   :  { %v2937_v41 = vcombine.low %v2595_v55, %v2603_v18  ;;  %v2939_v49 = vcombine.low %v2602_v5, %v2604_v40  ;;  %v2606_v26 = vcombine.high %v2602_v5, %v2602_v5  ;;  %v2946_v14 = vrot.slane %v2936_v23, %v15670_v2 }
 0x356   :  { %v2938_v19 = vcombine.low %v2605_v3, %v2588_v29  ;;  %v15896_v27 = vpop.permute.xlu0 %4304  ;;  %v15898_v31 = vpop.permute.xlu1 %4306  ;;  %v2615_v12 = vrot.slane %v2607_v21, %v15670_v2  ;;  %v2622_v57 = vrot.slane %v2608_v30, %v15670_v2  ;;  %v2664_v24 = vrot.slane %v2657_v58, %v15670_v2 }
 0x357   :  { %v2953_v50 = vrot.slane %v2937_v41, %v15670_v2  ;;  %v2967_v62 = vrot.slane %v2939_v49, %v15670_v2  ;;  %v4492_v3 = vsel %vm4489_vm8, %v4477_v35, %v15570_v54  ;;  %v4565_v21 = vcombine.high %v4521_v32, %v4521_v32 }
 0x358   :  { %v2623_v4 = vcombine.high %v2615_v12, %v2615_v12  ;;  %v2624_v63 = vcombine.high %v2622_v57, %v2622_v57  ;;  %v2631_v46 = vrot.slane %v2615_v12, %v15670_v2  ;;  %v2638_v34 = vrot.slane %v2622_v57, %v15670_v2 }
 0x359   :  { %v2960_v51 = vrot.slane %v2938_v19, %v15670_v2  ;;  %v2671_v37 = vrot.slane %v2664_v24, %v15670_v2  ;;  %v4493_v30 = vsel %vm4489_vm8, %v4478_v36, %v15625_v8  ;;  %v2969_v58 = vcombine.high %v2946_v14, %v2953_v50 }
 0x35a   :  { %v15916_v28 = vpop.permute.xlu0 %4372  ;;  %v15918_v45 = vpop.permute.xlu1 %4374  ;;  %v2645_v38 = vrot.slane %v2623_v4, %v15670_v2  ;;  %v2652_v52 = vrot.slane %v2624_v63, %v15670_v2  ;;  %v2653_v61 = vcombine.high %v2631_v46, %v2631_v46  ;;  %v2654_v29 = vcombine.high %v2638_v34, %v2638_v34 }
 0x35b   :  { %v3002_v55 = vcombine.low %v2606_v26, %v2631_v46  ;;  %v2971_v44 = vcombine.high %v2960_v51, %v2967_v62  ;;  %v4555_v48 = vrot.slane %v4520_v56, %v14982_v59  ;;  %v4562_v41 = vrot.slane %v4548_v1, %v14982_v59 }
 0x35c   :  { %v2655_v22 = vcombine.high %v2645_v38, %v2645_v38  ;;  %v3003_v15 = vcombine.low %v2645_v38, %v2653_v61  ;;  %v3005_v11 = vcombine.low %v2652_v52, %v2654_v29  ;;  %v2656_v43 = vcombine.high %v2652_v52, %v2652_v52 }
 0x35d   :  { %v3012_v5 = vrot.slane %v3002_v55, %v15670_v2  ;;  %v2970_v54 = vcombine.low %v2960_v51, %v2967_v62  ;;  %v4507_v8 = vsel %vm4504_vm7, %v4492_v3, %v15599_v10  ;;  %v4572_v35 = vrot.slane %v4521_v32, %v14982_v59 }
 0x35e   :  { %v15926_v9 = vpop.permute.xlu0 %4440  ;;  %v15928_v53 = vpop.permute.xlu1 %4442  ;;  %v3004_v6 = vcombine.low %v2655_v22, %v2638_v34  ;;  %v3019_v18 = vrot.slane %v3003_v15, %v15670_v2  ;;  %v3068_v40 = vcombine.low %v2656_v43, %v2671_v37  ;;  %v3033_v12 = vrot.slane %v3005_v11, %v15670_v2 }
 0x35f   :  { %v2999_v46 = vrot.slane %v2971_v44, %v15670_v2  ;;  %v4579_v34 = vrot.slane %v4565_v21, %v14982_v59  ;;  %v4508_v56 = vsel %vm4504_vm7, %v4493_v30, %v15639_v0  ;;  %v2968_v36 = vcombine.low %v2946_v14, %v2953_v50 }
 0x360   :  { %v3026_v19 = vrot.slane %v3004_v6, %v15670_v2  ;;  %v3035_v57 = vcombine.high %v3012_v5, %v3019_v18  ;;  %v3075_v49 = vrot.slane %v3068_v40, %v15670_v2  ;;  %v3034_v23 = vcombine.low %v3012_v5, %v3019_v18 }
 0x361   :  { %v2985_v26 = vrot.slane %v2969_v58, %v15670_v2  ;;  %v4563_v10 = vcombine.high %v4555_v48, %v4555_v48  ;;  %v2992_v29 = vrot.slane %v2970_v54, %v15670_v2  ;;  %v4564_v55 = vcombine.high %v4562_v41, %v4562_v41 }
 0x362   :  { %v15941_v24 = vpop.permute.xlu0 %4242  ;;  %v15943_v4 = vpop.permute.xlu1 %4310  ;;  %v3037_v63 = vcombine.high %v3026_v19, %v3033_v12  ;;  %v3051_v38 = vrot.slane %v3035_v57, %v15670_v2  ;;  %v3036_v52 = vcombine.low %v3026_v19, %v3033_v12  ;;  %v3076_v62 = vcombine.high %v3075_v49, %v3075_v49 }
 0x363   :  { %v4522_v0 = vsel %vm4519_vm14, %v4507_v8, %v15616_v25  ;;  %v3001_v50 = vcombine.low %v2985_v26, %v2999_v46  ;;  %v4523_v22 = vsel %vm4519_vm14, %v4508_v56, %v15654_v42  ;;  %v2978_v15 = vrot.slane %v2968_v36, %v15670_v2 }
 0x364   :  { %v3065_v51 = vrot.slane %v3037_v63, %v15670_v2  ;;  %v3044_v11 = vrot.slane %v3034_v23, %v15670_v2  ;;  %v3058_v43 = vrot.slane %v3036_v52, %v15670_v2  ;;  %v4580_v1 = vcombine.high %v4572_v35, %v4572_v35 }
 0x365   :  { %v4581_v14 = vcombine.high %v4579_v34, %v4579_v34  ;;  %v3090_v6 = vrot.slane %v3076_v62, %v15670_v2  ;;  %v4582_v5 = vcombine.high %v4522_v0, %v4522_v0  ;;  %v3000_v40 = vcombine.low %v2978_v15, %v2992_v29 }
 0x366   :  { %v15955_v61 = vpop.permute.xlu0 %4244  ;;  %v15957_v32 = vpop.permute.xlu1 %4378  ;;  %v3067_v37 = vcombine.low %v3051_v38, %v3065_v51  ;;  %v3066_v3 = vcombine.low %v3044_v11, %v3058_v43  ;;  %v4599_v21 = vcombine.high %v4523_v22, %v4523_v22  ;;  %v4766_v42 = vcombine.low %v4555_v48, %v4563_v10 }
 0x367   :  { %v4767_v30 = vcombine.low %v4562_v41, %v4564_v55  ;;  %v4783_v19 = vcombine.low %v4572_v35, %v4580_v1  ;;  %v4784_v12 = vcombine.low %v4579_v34, %v4581_v14  ;;  %v4479_v57 = vsel %vm4474_vm0, %v15204_v33, %v15629_v16 }
 0x368   :  { %v3110_v44 = vpack.c.bf16 %v3067_v37, %v3001_v50  ;;  %v3109_v58 = vpack.c.bf16 %v3066_v3, %v3000_v40  ;;  %v3112_v54 = vpack.c.bf16 %v3090_v6, %v3090_v6  ;;  %v4589_v8 = vrot.slane %v4522_v0, %v14982_v59 }
 0x369   :  { %v4596_v63 = vrot.slane %v4582_v5, %v14982_v59  ;;  %v4480_v46 = vsel %vm4474_vm0, %v15207_v60, %v15681_v13  ;;  %v4494_v48 = vsel %vm4489_vm8, %v4479_v57, %v15896_v27  ;;  %v4606_v34 = vrot.slane %v4523_v22, %v14982_v59 }
 0x36a   :  { %v15968_v18 = vpop.permute.xlu0 %4312  ;;  %v15970_v25 = vpop.permute.xlu1 %4446  ;;  %12295 = vmatprep.mubr.msk.bf16.mxu1 %vm2307_vm11, %v3110_v44  ;;  %v4613_v56 = vrot.slane %v4599_v21, %v14982_v59  ;;  %v4495_v33 = vsel %vm4489_vm8, %v4480_v46, %v15898_v31  ;;  %v4509_v16 = vsel %vm4504_vm7, %v4494_v48, %v15916_v28  ;;  %v3083_v27 = vrot.slane %v3075_v49, %v15670_v2 }
 0x36b   :  { %3261 = vmatmul.mubr.bf16.gmra.mxu1 %v3109_v58  ;;  %v4510_v60 = vsel %vm4504_vm7, %v4495_v33, %v15918_v45  ;;  %v4524_v13 = vsel %vm4519_vm14, %v4509_v16, %v15926_v9  ;;  %v4774_v36 = vrot.slane %v4766_v42, %v14982_v59  ;;  %v4781_v23 = vrot.slane %v4767_v30, %v14982_v59 }
 0x36c   :  { %12296 = vmatprep.mubr.msk.bf16.mxu1 %vm2307_vm11, %v3112_v54  ;;  %v4525_v31 = vsel %vm4519_vm14, %v4510_v60, %v15928_v53  ;;  %v4791_v26 = vrot.slane %v4783_v19, %v14982_v59  ;;  %v4798_v28 = vrot.slane %v4784_v12, %v14982_v59  ;;  %v4597_v38 = vcombine.high %v4589_v8, %v4589_v8 }
 0x36d   :  { %v4598_v51 = vcombine.high %v4596_v63, %v4596_v63  ;;  %v4614_v10 = vcombine.high %v4606_v34, %v4606_v34  ;;  %v4615_v29 = vcombine.high %v4613_v56, %v4613_v56  ;;  %v4616_v9 = vcombine.high %v4524_v13, %v4524_v13 }
 0x36e   :  { %v4241_v41 = vpop.permute.xlu0 %4240  ;;  %v4381_v35 = vpop.permute.xlu1 %4380  ;;  %v4633_v62 = vcombine.high %v4525_v31, %v4525_v31  ;;  %v3111_v49 = vpack.c.bf16 %v3083_v27, %v3083_v27  ;;  %v4782_v55 = vcombine.low %v4774_v36, %v4781_v23  ;;  %v4799_v0 = vcombine.low %v4791_v26, %v4798_v28 }
 0x36f   :  { %v4800_v50 = vcombine.low %v4589_v8, %v4597_v38  ;;  %v4801_v37 = vcombine.low %v4596_v63, %v4598_v51  ;;  %v4817_v15 = vcombine.low %v4606_v34, %v4614_v10  ;;  %v4818_v11 = vcombine.low %v4613_v56, %v4615_v29 }
 0x370   :  { %v4623_v43 = vrot.slane %v4524_v13, %v14982_v59  ;;  %v4630_v1 = vrot.slane %v4616_v9, %v14982_v59  ;;  %v4647_v14 = vrot.slane %v4633_v62, %v14982_v59  ;;  %v4640_v44 = vrot.slane %v4525_v31, %v14982_v59 }
 0x371   :  { %v4482_v6 = vsel %vm4474_vm0, %v15583_v7, %v15941_v24  ;;  %v4991_v5 = vpack.c.bf16 %v4799_v0, %v4782_v55  ;;  %v4808_v40 = vrot.slane %v4800_v50, %v14982_v59  ;;  %v4815_v3 = vrot.slane %v4801_v37, %v14982_v59  ;;  %v17633_v24 = vld [vmem:[#allocation45_spill] sm:$0xff]  ;;  %v17635_v37 = vld [vmem:[#allocation48_spill] sm:$0xff] }
 0x372   :  { %v4309_v52 = vpop.permute.xlu0 %4308  ;;  %v4449_v45 = vpop.permute.xlu1 %4448  ;;  %v4825_v30 = vrot.slane %v4817_v15, %v14982_v59  ;;  %v4832_v58 = vrot.slane %v4818_v11, %v14982_v59  ;;  %v4631_v19 = vcombine.high %v4623_v43, %v4623_v43  ;;  %v4632_v12 = vcombine.high %v4630_v1, %v4630_v1 }
 0x373   :  { %3269 = vmatmul.mubr.bf16.gmra.mxu1 %v3111_v49  ;;  %v4649_v57 = vcombine.high %v4647_v14, %v4647_v14  ;;  %v4497_v54 = vsel %vm4489_vm8, %v4482_v6, %v15943_v4  ;;  %v4483_v7 = vsel %vm4474_vm0, %v15586_v17, %v15955_v61  ;;  %v4481_v8 = vsel %vm4474_vm0, %v17633_v24, %v4241_v41  ;;  %v17634_v17 = vld [vmem:[#allocation47_spill] sm:$0xff] }
 0x374   :  { %13074 = vmatprep.mubr.msk.bf16.mxu1 %vm14458_vm6, %v17630_v47  ;;  %v4648_v63 = vcombine.high %v4640_v44, %v4640_v44  ;;  %v4512_v46 = vsel %vm4504_vm7, %v4497_v54, %v15957_v32  ;;  %v4498_v48 = vsel %vm4489_vm8, %v4483_v7, %v15968_v18  ;;  %v4496_v34 = vsel %vm4489_vm8, %v4481_v8, %v4309_v52 }
 0x375   :  { %v4527_v56 = vsel %vm4519_vm14, %v4512_v46, %v15970_v25  ;;  %v4513_v4 = vsel %vm4504_vm7, %v4498_v48, %v4381_v35  ;;  %v4835_v32 = vcombine.low %v4630_v1, %v4632_v12  ;;  %v4816_v18 = vcombine.low %v4808_v40, %v4815_v3 }
 0x376   :  { %v4377_v22 = vpop.permute.xlu0 %4376  ;;  %v4445_v53 = vpop.permute.xlu1 %4444  ;;  %v4528_v60 = vsel %vm4519_vm14, %v4513_v4, %v4449_v45  ;;  %v4833_v13 = vcombine.low %v4825_v30, %v4832_v58  ;;  %v4834_v25 = vcombine.low %v4623_v43, %v4631_v19  ;;  %v4852_v27 = vcombine.low %v4647_v14, %v4649_v57 }
 0x377   :  { %v4511_v33 = vsel %vm4504_vm7, %v4496_v34, %v4377_v22  ;;  %v4851_v35 = vcombine.low %v4640_v44, %v4648_v63  ;;  %v4657_v36 = vcombine.high %v4527_v56, %v4527_v56  ;;  %v4664_v26 = vrot.slane %v4527_v56, %v14982_v59 }
 0x378   :  { %v4526_v23 = vsel %vm4519_vm14, %v4511_v33, %v4445_v53  ;;  %v4674_v28 = vcombine.high %v4528_v60, %v4528_v60  ;;  %v4681_v38 = vrot.slane %v4528_v60, %v14982_v59  ;;  %v4849_v10 = vrot.slane %v4835_v32, %v14982_v59 }
 0x379   :  { %v4842_v9 = vrot.slane %v4834_v25, %v14982_v59  ;;  %v4866_v62 = vrot.slane %v4852_v27, %v14982_v59  ;;  %v4656_v49 = vrot.slane %v4526_v23, %v14982_v59  ;;  %v4992_v55 = vpack.c.bf16 %v4833_v13, %v4816_v18 }
 0x37a   :  { %v4247_v21 = vpop.permute.xlu0 %4246  ;;  %v4315_v42 = vpop.permute.xlu1 %4314  ;;  %v4859_v0 = vrot.slane %v4851_v35, %v14982_v59  ;;  %v4671_v50 = vrot.slane %v4657_v36, %v14982_v59  ;;  %v4672_v15 = vcombine.high %v4664_v26, %v4664_v26  ;;  %v4688_v11 = vrot.slane %v4674_v28, %v14982_v59 }
 0x37b   :  { %v4484_v61 = vsel %vm4474_vm0, %v17634_v17, %v4247_v21  ;;  %13075 = vmatmul.mubr.msk.bf16.vlgmr.msra.gmra.mxu1 %vm732_vm9, %v4991_v5  ;;  %v4689_v43 = vcombine.high %v4681_v38, %v4681_v38  ;;  %v4850_v6 = vcombine.low %v4842_v9, %v4849_v10  ;;  %v4868_v3 = vcombine.low %v4656_v49, %v4664_v26  ;;  %v17637_v9 = vld [vmem:[#allocation50_spill] sm:$0xff] }
 0x37c   :  { %13078 = vmatprep.mubr.msk.bf16.mxu1 %vm14458_vm6, %v17630_v47  ;;  %v4499_v31 = vsel %vm4489_vm8, %v4484_v61, %v4315_v42  ;;  %v4867_v40 = vcombine.low %v4859_v0, %v4866_v62  ;;  %v4869_v12 = vcombine.low %v4672_v15, %v4671_v50  ;;  %v4673_v57 = vcombine.high %v4671_v50, %v4671_v50 }
 0x37d   :  { %v4886_v54 = vcombine.low %v4689_v43, %v4688_v11  ;;  %v4876_v48 = vrot.slane %v4868_v3, %v14982_v59  ;;  %v4690_v25 = vcombine.high %v4688_v11, %v4688_v11 }
 0x37e   :  { %v4249_v41 = vpop.permute.xlu0 %4248  ;;  %v4383_v16 = vpop.permute.xlu1 %4382  ;;  %v4885_v46 = vcombine.low %v4673_v57, %v4681_v38  ;;  %v4993_v56 = vpack.c.bf16 %v4867_v40, %v4850_v6  ;;  %v4883_v33 = vrot.slane %v4869_v12, %v14982_v59 }
 0x37f   :  { %v4514_v51 = vsel %vm4504_vm7, %v4499_v31, %v4383_v16  ;;  %v4485_v22 = vsel %vm4474_vm0, %v17635_v37, %v4249_v41  ;;  %v4900_v17 = vrot.slane %v4886_v54, %v14982_v59  ;;  %v17636_v16 = vld [vmem:[#allocation49_spill] sm:$0xff] }
 0x380   :  { %v4893_v18 = vrot.slane %v4885_v46, %v14982_v59  ;;  %v4884_v13 = vcombine.low %v4876_v48, %v4883_v33 }
 0x382   :  { %v4317_v52 = vpop.permute.xlu0 %4316  ;;  %v4451_v45 = vpop.permute.xlu1 %4450  ;;  %v4901_v36 = vcombine.low %v4893_v18, %v4900_v17 }
 0x383   :  { %v4529_v29 = vsel %vm4519_vm14, %v4514_v51, %v4451_v45  ;;  %v4500_v1 = vsel %vm4489_vm8, %v4485_v22, %v4317_v52  ;;  %13079 = vmatmul.mubr.msk.bf16.gmra.mxu1 %vm732_vm9, %v4992_v55 }
 0x384   :  { %v4691_v53 = vcombine.high %v4529_v29, %v4529_v29  ;;  %13082 = vmatprep.mubr.msk.bf16.mxu1 %vm14458_vm6, %v17630_v47  ;;  %v4698_v21 = vrot.slane %v4529_v29, %v14982_v59  ;;  %v4994_v10 = vpack.c.bf16 %v4901_v36, %v4884_v13  ;;  %v16107_v36 = vld [vmem:[#allocation6] ss:$0 sm:$0xff] }
 0x386   :  { %v4385_v14 = vpop.permute.xlu0 %4384  ;;  %v4453_v44 = vpop.permute.xlu1 %4452  ;;  %v4705_v30 = vrot.slane %v4691_v53, %v14982_v59  ;;  %v4706_v34 = vcombine.high %v4698_v21, %v4698_v21  ;;  %v4902_v23 = vcombine.low %v4690_v25, %v4698_v21 }
 0x387   :  { %v4515_v5 = vsel %vm4504_vm7, %v4500_v1, %v4385_v14 }
 0x388   :  { %v4530_v42 = vsel %vm4519_vm14, %v4515_v5, %v4453_v44  ;;  %v4707_v4 = vcombine.high %v4705_v30, %v4705_v30  ;;  %v4903_v27 = vcombine.low %v4706_v34, %v4705_v30  ;;  %v4910_v0 = vrot.slane %v4902_v23, %v14982_v59 }
 0x389   :  { %v4708_v58 = vcombine.high %v4530_v42, %v4530_v42  ;;  %v4715_v19 = vrot.slane %v4530_v42, %v14982_v59 }
 0x38a   :  { %v4251_v7 = vpop.permute.xlu0 %4250  ;;  %v4319_v63 = vpop.permute.xlu1 %4318  ;;  %v4917_v52 = vrot.slane %v4903_v27, %v14982_v59 }
 0x38b   :  { %v4722_v24 = vrot.slane %v4708_v58, %v14982_v59  ;;  %v4723_v8 = vcombine.high %v4715_v19, %v4715_v19  ;;  %13083 = vmatmul.mubr.msk.bf16.gmra.mxu1 %vm732_vm9, %v4993_v56  ;;  %v4486_v32 = vsel %vm4474_vm0, %v17636_v16, %v4251_v7  ;;  %v4919_v35 = vcombine.low %v4707_v4, %v4715_v19 }
 0x38c   :  { %13086 = vmatprep.mubr.msk.bf16.mxu1 %vm14458_vm6, %v17630_v47  ;;  %v4501_v31 = vsel %vm4489_vm8, %v4486_v32, %v4319_v63  ;;  %v4918_v14 = vcombine.low %v4910_v0, %v4917_v52 }
 0x38d   :  { %v4920_v41 = vcombine.low %v4723_v8, %v4722_v24  ;;  %v4927_v29 = vrot.slane %v4919_v35, %v14982_v59  ;;  %v4724_v5 = vcombine.high %v4722_v24, %v4722_v24 }
 0x38e   :  { %v4253_v61 = vpop.permute.xlu0 %4252 }
 0x38f   :  { %v4387_v60 = vpop.permute.xlu1 %4386  ;;  %v4934_v28 = vrot.slane %v4920_v41, %v14982_v59  ;;  %v4487_v62 = vsel %vm4474_vm0, %v17637_v9, %v4253_v61 }
 0x390   :  { %v4516_v38 = vsel %vm4504_vm7, %v4501_v31, %v4387_v60 }
 0x391   :  { %v4935_v22 = vcombine.low %v4927_v29, %v4934_v28 }
 0x392   :  { %v4321_v26 = vpop.permute.xlu0 %4320 }
 0x393   :  { %v4455_v51 = vpop.permute.xlu1 %4454  ;;  %v4502_v50 = vsel %vm4489_vm8, %v4487_v62, %v4321_v26  ;;  %13087 = vmatmul.mubr.msk.bf16.gmra.mxu1 %vm732_vm9, %v4994_v10  ;;  %v4995_v19 = vpack.c.bf16 %v4935_v22, %v4918_v14 }
 0x394   :  { %v4531_v45 = vsel %vm4519_vm14, %v4516_v38, %v4455_v51  ;;  %13090 = vmatprep.mubr.msk.bf16.mxu1 %vm14458_vm6, %v17630_v47 }
 0x395   :  { %v4725_v49 = vcombine.high %v4531_v45, %v4531_v45  ;;  %v4732_v55 = vrot.slane %v4531_v45, %v14982_v59 }
 0x396   :  { %v4389_v37 = vpop.permute.xlu0 %4388 }
 0x397   :  { %v4739_v53 = vrot.slane %v4725_v49, %v14982_v59  ;;  %v4740_v15 = vcombine.high %v4732_v55, %v4732_v55  ;;  %v4517_v11 = vsel %vm4504_vm7, %v4502_v50, %v4389_v37  ;;  %v4457_v43 = vpop.permute.xlu1 %4456  ;;  %v4936_v12 = vcombine.low %v4724_v5, %v4732_v55 }
 0x398   :  { %v4532_v1 = vsel %vm4519_vm14, %v4517_v11, %v4457_v43 }
 0x399   :  { %v4741_v44 = vcombine.high %v4739_v53, %v4739_v53  ;;  %v4742_v6 = vcombine.high %v4532_v1, %v4532_v1  ;;  %v4937_v40 = vcombine.low %v4740_v15, %v4739_v53  ;;  %v4749_v3 = vrot.slane %v4532_v1, %v14982_v59 }
 0x39a   :  { %v4255_v21 = vpop.permute.xlu0 %4254 }
 0x39b   :  { %v4756_v42 = vrot.slane %v4742_v6, %v14982_v59  ;;  %v4488_v30 = vsel %vm4474_vm0, %v15729_v39, %v4255_v21  ;;  %v4323_v58 = vpop.permute.xlu1 %4322  ;;  %v4757_v57 = vcombine.high %v4749_v3, %v4749_v3  ;;  %v4953_v54 = vcombine.low %v4741_v44, %v4749_v3  ;;  %13091 = vmatmul.mubr.msk.bf16.gmra.mxu1 %vm732_vm9, %v4995_v19 }
 0x39c   :  { %v4503_v7 = vsel %vm4489_vm8, %v4488_v30, %v4323_v58  ;;  %v4951_v8 = vrot.slane %v4937_v40, %v14982_v59  ;;  %13094 = vmatprep.mubr.msk.bf16.mxu1 %vm14458_vm6, %v17630_v47  ;;  %v4944_v39 = vrot.slane %v4936_v12, %v14982_v59  ;;  %vm17639_vm0 = vcmask 1045509  }
 0x39d   :  { %v4954_v63 = vcombine.low %v4757_v57, %v4756_v42  ;;  %v4961_v34 = vrot.slane %v4953_v54, %v14982_v59  ;;  %v4758_v41 = vcombine.high %v4756_v42, %v4756_v42  ;;  %vm17643_vm8 = vmmov %vm17639_vm0 }
 0x39e   :  { %v4391_v24 = vpop.permute.xlu0 %4390  ;;  %v4952_v17 = vcombine.low %v4944_v39, %v4951_v8 }
 0x39f   :  { %v4518_v46 = vsel %vm4504_vm7, %v4503_v7, %v4391_v24  ;;  %v4459_v48 = vpop.permute.xlu1 %4458  ;;  %v4968_v56 = vrot.slane %v4954_v63, %v14982_v59  ;;  %vm17642_vm7 = vcmask 1046534  }
 0x3a0   :  { %v4533_v4 = vsel %vm4519_vm14, %v4518_v46, %v4459_v48  ;;  %vm17641_vm14 = vcmask 1042434  }
 0x3a1   :  { %v4765_v33 = vrot.slane %v4533_v4, %v14982_v59  ;;  %v4969_v61 = vcombine.low %v4961_v34, %v4968_v56 }
 0x3a3   :  { %v4970_v16 = vcombine.low %v4758_v41, %v4765_v33  ;;  %v4996_v32 = vpack.c.bf16 %v4969_v61, %v4952_v17 }
 0x3a5   :  { %13095 = vmatmul.mubr.msk.bf16.gmra.mxu1 %vm732_vm9, %v4996_v32  ;;  %v4977_v60 = vrot.slane %v4970_v16, %v14982_v59 }
 0x3a6   :  { %13098 = vmatprep.mubr.msk.bf16.mxu1 %vm14458_vm6, %v17630_v47 }
 0x3a7   :  { %v4997_v18 = vpack.c.bf16 %v4977_v60, %v4977_v60 }
 0x3ad   :  { %13099 = vmatmul.mubr.msk.bf16.gmra.mxu1 %vm732_vm9, %v4997_v18  ;;  %vm17640_vm9 = vcmask 1041409  }
 0x3e9   :  { %v3246_v13 = vpop.f32.mrf.mxu1 }
 0x3ea   :  { %v3247_v23 = vadd.f32 %v16107_v36, %v3246_v13 }
 0x3eb   :  { %v3248_v25 = vpop.f32.mrf.mxu1 }
 0x3ec   :  { %v3276_v26 = vmax.f32 %v3247_v23, 0.0 }
 0x3ed   :  { %v3249_v27 = vpop.f32.mrf.mxu1 }
 0x3ee   :  { %v3250_v31 = vadd.f32 %v16107_v36, %v3249_v27  ;;  %v3290_v38 = vcombine.high %v3276_v26, %v3276_v26  ;;  %v3297_v45 = vrot.slane %v3276_v26, %v15670_v2 }
 0x3ef   :  { %v3251_v35 = vpop.f32.mrf.mxu1 }
 0x3f0   :  { %v3277_v28 = vmax.f32 %v3250_v31, 0.0  ;;  %v3304_v10 = vrot.slane %v3290_v38, %v15670_v2  ;;  %v3305_v62 = vcombine.high %v3297_v45, %v3297_v45  ;;  %v3313_v53 = vrot.slane %v3297_v45, %v15670_v2 }
 0x3f2   :  { %v3339_v51 = vcombine.high %v3277_v28, %v3277_v28  ;;  %v3346_v52 = vrot.slane %v3277_v28, %v15670_v2  ;;  %v3306_v49 = vcombine.high %v3304_v10, %v3304_v10  ;;  %v3327_v50 = vrot.slane %v3305_v62, %v15670_v2 }
 0x3f3   :  { %v3320_v15 = vrot.slane %v3304_v10, %v15670_v2  ;;  %v3335_v3 = vcombine.high %v3313_v53, %v3313_v53 }
 0x3f4   :  { %v3353_v29 = vrot.slane %v3339_v51, %v15670_v2  ;;  %v3354_v9 = vcombine.high %v3346_v52, %v3346_v52  ;;  %v3334_v37 = vrot.slane %v3306_v49, %v15670_v2  ;;  %v3362_v22 = vrot.slane %v3346_v52, %v15670_v2 }
 0x3f5   :  { %v3337_v1 = vcombine.high %v3327_v50, %v3327_v50  ;;  %v3336_v21 = vcombine.high %v3320_v15, %v3320_v15  ;;  %v3646_v46 = vmax.f32 %v3313_v53, %v3327_v50 }
 0x3f6   :  { %v3355_v55 = vcombine.high %v3353_v29, %v3353_v29  ;;  %v3376_v0 = vrot.slane %v3354_v9, %v15670_v2  ;;  %v3338_v14 = vcombine.high %v3334_v37, %v3334_v37  ;;  %v3369_v44 = vrot.slane %v3353_v29, %v15670_v2 }
 0x3f7   :  { %v3384_v6 = vcombine.high %v3362_v22, %v3362_v22  ;;  %v3647_v12 = vmax.f32 %v3335_v3, %v3337_v1  ;;  %v3648_v57 = vmax.f32 %v3320_v15, %v3334_v37  ;;  %v3694_v13 = vcombine.low %v3646_v46, %v3646_v46 }
 0x3f8   :  { %v3383_v11 = vrot.slane %v3355_v55, %v15670_v2  ;;  %v3386_v43 = vcombine.high %v3376_v0, %v3376_v0  ;;  %v3649_v54 = vmax.f32 %v3336_v21, %v3338_v14  ;;  %v3650_v7 = vmax.f32 %v3362_v22, %v3376_v0 }
 0x3f9   :  { %v3695_v61 = vcombine.low %v3647_v12, %v3648_v57  ;;  %v3385_v41 = vcombine.high %v3369_v44, %v3369_v44  ;;  %v3704_v62 = vrot.slane %v3694_v13, %v15670_v2 }
 0x3fa   :  { %v3651_v42 = vmax.f32 %v3384_v6, %v3386_v43  ;;  %v3652_v30 = vmax.f32 %v3369_v44, %v3383_v11  ;;  %v3387_v48 = vcombine.high %v3383_v11, %v3383_v11  ;;  %v3696_v16 = vcombine.low %v3649_v54, %v3650_v7 }
 0x3fb   :  { %v3711_v38 = vrot.slane %v3695_v61, %v15670_v2 }
 0x3fc   :  { %v3697_v39 = vcombine.low %v3651_v42, %v3652_v30  ;;  %v3653_v27 = vmax.f32 %v3385_v41, %v3387_v48  ;;  %v3718_v51 = vrot.slane %v3696_v16, %v15670_v2  ;;  %v13186_v41 = vld [vmem:[#allocation7 + $0x30] sm:$0xff]  }
 0x3fd   :  { %v3726_v22 = vcombine.low %v3704_v62, %v3711_v38 }
 0x3fe   :  { %v3725_v25 = vrot.slane %v3697_v39, %v15670_v2 }
 0x3ff   :  { %v3734_v6 = vrot.slane %v3726_v22, %v15670_v2 }
 0x400   :  { %v3727_v49 = vcombine.low %v3718_v51, %v3725_v25 }
 0x402   :  { %v3741_v43 = vrot.slane %v3727_v49, %v15670_v2 }
 0x404   :  { %v3742_v21 = vcombine.low %v3734_v6, %v3741_v43 }
 0x406   :  { %v16152_v54 = vsel %vm1283_vm5, 0.0, %v3742_v21 }
 0x407   :  { %v3882_v46 = vrot.slane %v16152_v54, 1 }
 0x40f   :  { %v3254_v5 = vpop.f32.mrf.mxu1 }
 0x410   :  { %v3255_v40 = vadd.f32 %v16107_v36, %v3254_v5 }
 0x411   :  { %v3256_v58 = vpop.f32.mrf.mxu1 }
 0x412   :  { %v3278_v19 = vmax.f32 %v3255_v40, 0.0 }
 0x413   :  { %v3257_v8 = vpop.f32.mrf.mxu1 }
 0x414   :  { %v3388_v63 = vcombine.high %v3278_v19, %v3278_v19  ;;  %v3395_v24 = vrot.slane %v3278_v19, %v15670_v2  ;;  %v3258_v34 = vadd.f32 %v16107_v36, %v3257_v8 }
 0x415   :  { %v3259_v56 = vpop.f32.mrf.mxu1 }
 0x416   :  { %v3402_v4 = vrot.slane %v3388_v63, %v15670_v2  ;;  %v3403_v33 = vcombine.high %v3395_v24, %v3395_v24  ;;  %v3411_v17 = vrot.slane %v3395_v24, %v15670_v2  ;;  %v3279_v35 = vmax.f32 %v3258_v34, 0.0 }
 0x418   :  { %v3404_v32 = vcombine.high %v3402_v4, %v3402_v4  ;;  %v3418_v60 = vrot.slane %v3402_v4, %v15670_v2  ;;  %v3425_v18 = vrot.slane %v3403_v33, %v15670_v2  ;;  %v3433_v31 = vcombine.high %v3411_v17, %v3411_v17  ;;  %v13185_v33 = vld [vmem:[#allocation7 + $0x38] sm:$0xff]  }
 0x419   :  { %v3437_v50 = vcombine.high %v3279_v35, %v3279_v35  ;;  %v3444_v37 = vrot.slane %v3279_v35, %v15670_v2  ;;  %4046 = vmatpush1.bf16.msra.mxu0 %v13185_v33 }
 0x41a   :  { %v3432_v23 = vrot.slane %v3404_v32, %v15670_v2  ;;  %v3435_v26 = vcombine.high %v3425_v18, %v3425_v18  ;;  %v3654_v28 = vmax.f32 %v3411_v17, %v3425_v18  ;;  %v3434_v52 = vcombine.high %v3418_v60, %v3418_v60  ;;  %4047 = vmatprep.subr.bf16.mxu0 %v17632_v20 }
 0x41b   :  { %v3451_v1 = vrot.slane %v3437_v50, %v15670_v2  ;;  %v3452_v14 = vcombine.high %v3444_v37, %v3444_v37  ;;  %v3460_v3 = vrot.slane %v3444_v37, %v15670_v2 }
 0x41c   :  { %v3436_v45 = vcombine.high %v3432_v23, %v3432_v23  ;;  %v3655_v10 = vmax.f32 %v3433_v31, %v3435_v26  ;;  %v3656_v29 = vmax.f32 %v3418_v60, %v3432_v23  ;;  %v3743_v9 = vcombine.low %v3653_v27, %v3654_v28  ;;  %v13187_v23 = vld [vmem:[#allocation7 + $0x28] sm:$0xff]  }
 0x41d   :  { %v3453_v42 = vcombine.high %v3451_v1, %v3451_v1  ;;  %v3467_v30 = vrot.slane %v3451_v1, %v15670_v2  ;;  %v3474_v58 = vrot.slane %v3452_v14, %v15670_v2  ;;  %v3482_v8 = vcombine.high %v3460_v3, %v3460_v3  ;;  %4048 = vmatpush1.bf16.msra.mxu0 %v13186_v41 }
 0x41e   :  { %v3657_v55 = vmax.f32 %v3434_v52, %v3436_v45  ;;  %v3744_v0 = vcombine.low %v3655_v10, %v3656_v29  ;;  %v3751_v53 = vrot.slane %v3743_v9, %v15670_v2  ;;  %4049 = vmatprep.subr.bf16.mxu0 %v17632_v20 }
 0x41f   :  { %v3481_v7 = vrot.slane %v3453_v42, %v15670_v2  ;;  %v3483_v63 = vcombine.high %v3467_v30, %v3467_v30  ;;  %v3484_v24 = vcombine.high %v3474_v58, %v3474_v58  ;;  %v3658_v48 = vmax.f32 %v3474_v58, %v3482_v8  ;;  %v16182_v8 = vld [vmem:[#allocation12] ss:$0 sm:$0xff] }
 0x420   :  { %v3758_v15 = vrot.slane %v3744_v0, %v15670_v2  ;;  %v3765_v11 = vrot.slane %v3657_v55, %v15670_v2 }
 0x421   :  { %v3659_v39 = vmax.f32 %v3484_v24, %v3467_v30  ;;  %v3660_v34 = vmax.f32 %v3481_v7, %v3483_v63  ;;  %v3782_v32 = vcombine.low %v3658_v48, %v3658_v48  ;;  %v3485_v45 = vcombine.high %v3481_v7, %v3481_v7  ;;  %4050 = vmatpush1.bf16.msra.mxu0 %v13187_v23  ;;  %v13189_v63 = vld [vmem:[#allocation7 + $0x18] sm:$0xff]  }
 0x422   :  { %v3766_v44 = vcombine.low %v3751_v53, %v3758_v15  ;;  %v3780_v40 = vrot.slane %v3765_v11, %v15670_v2  ;;  %v13188_v53 = vld [vmem:[#allocation7 + $0x20] sm:$0xff]   ;;  %4051 = vmatprep.subr.bf16.mxu0 %v17632_v20 }
 0x423   :  { %v3783_v60 = vcombine.low %v3659_v39, %v3660_v34  ;;  %v16167_v51 = vrot.slane %v3782_v32, %v15670_v2 }
 0x424   :  { %v3773_v5 = vrot.slane %v3766_v44, %v15670_v2 }
 0x425   :  { %v16170_v52 = vrot.slane %v3783_v60, %v15670_v2  ;;  %4052 = vmatpush1.bf16.msra.mxu0 %v13188_v53 }
 0x426   :  { %v3781_v19 = vcombine.low %v3773_v5, %v3780_v40  ;;  %4053 = vmatprep.subr.bf16.mxu0 %v17632_v20 }
 0x427   :  { %v3814_v24 = vcombine.low %v16167_v51, %v16170_v52  ;;  %v3900_v52 = vrot.slane %v16152_v54, 2 }
 0x428   :  { %v16148_v12 = vsel %vm565_vm3, %v3781_v19, 0.0 }
 0x429   :  { %v3883_v57 = vrot.slane %v16148_v12, 1  ;;  %4054 = vmatpush1.bf16.msra.mxu0 %v13189_v63 }
 0x42a   :  { %4055 = vmatprep.subr.bf16.mxu0 %v17632_v20 }
 0x42b   :  { %3890 = vrot.lane.b32.xlu0 %v3883_v57, %s14431_s2  ;;  %v3262_v56 = vpop.f32.mrf.mxu1  ;;  %v3884_v4 = vsel %vm427_vm2, %v3882_v46, %v3883_v57 }
 0x42c   :  { %v3263_v17 = vadd.f32 %v16107_v36, %v3262_v56 }
 0x42d   :  { %v3264_v61 = vpop.f32.mrf.mxu1 }
 0x42e   :  { %v3280_v16 = vmax.f32 %v3263_v17, 0.0 }
 0x42f   :  { %3888 = vrot.lane.b32.xlu0 %v3884_v4, %s14431_s2  ;;  %v3265_v18 = vpop.f32.mrf.mxu1 }
 0x430   :  { %v3486_v13 = vcombine.high %v3280_v16, %v3280_v16  ;;  %v3493_v25 = vrot.slane %v3280_v16, %v15670_v2  ;;  %v3266_v27 = vadd.f32 %v16107_v36, %v3265_v18 }
 0x431   :  { %v3267_v35 = vpop.f32.mrf.mxu1 }
 0x432   :  { %v3500_v31 = vrot.slane %v3486_v13, %v15670_v2  ;;  %v3501_v26 = vcombine.high %v3493_v25, %v3493_v25  ;;  %v3509_v28 = vrot.slane %v3493_v25, %v15670_v2  ;;  %v3281_v38 = vmax.f32 %v3266_v27, 0.0  ;;  %v13190_v35 = vld [vmem:[#allocation7 + $0x10] sm:$0xff]  }
 0x433   :  { %v3270_v10 = vpop.f32.mrf.mxu1  ;;  %4056 = vmatpush1.bf16.msra.mxu0 %v13190_v35 }
 0x434   :  { %v3502_v29 = vcombine.high %v3500_v31, %v3500_v31  ;;  %v3516_v9 = vrot.slane %v3500_v31, %v15670_v2  ;;  %v3523_v62 = vrot.slane %v3501_v26, %v15670_v2  ;;  %v3531_v49 = vcombine.high %v3509_v28, %v3509_v28  ;;  %4057 = vmatprep.subr.bf16.mxu0 %v17632_v20 }
 0x435   :  { %v3661_v55 = vmax.f32 %v3485_v45, %v3509_v28  ;;  %v3535_v0 = vcombine.high %v3281_v38, %v3281_v38  ;;  %v3542_v50 = vrot.slane %v3281_v38, %v15670_v2  ;;  %v3271_v37 = vadd.f32 %v16107_v36, %v3270_v10  ;;  %v3272_v22 = vpop.f32.mrf.mxu1 }
 0x436   :  { %v3530_v15 = vrot.slane %v3502_v29, %v15670_v2  ;;  %v3532_v11 = vcombine.high %v3516_v9, %v3516_v9  ;;  %v3533_v43 = vcombine.high %v3523_v62, %v3523_v62  ;;  %v3662_v1 = vmax.f32 %v3523_v62, %v3531_v49 }
 0x437   :  { %v3549_v14 = vrot.slane %v3535_v0, %v15670_v2  ;;  %v3550_v44 = vcombine.high %v3542_v50, %v3542_v50  ;;  %v3558_v6 = vrot.slane %v3542_v50, %v15670_v2  ;;  %v3282_v5 = vmax.f32 %v3271_v37, 0.0  ;;  %v3273_v40 = vpop.f32.mrf.mxu1  ;;  %v13191_v50 = vld [vmem:[#allocation7 + $0x8] sm:$0xff]  }
 0x438   :  { %v3663_v3 = vmax.f32 %v3533_v43, %v3516_v9  ;;  %v3664_v21 = vmax.f32 %v3530_v15, %v3532_v11  ;;  %v3784_v36 = vcombine.low %v3661_v55, %v3662_v1  ;;  %v3534_v42 = vcombine.high %v3530_v15, %v3530_v15  ;;  %4058 = vmatpush1.bf16.msra.mxu0 %v13191_v50 }
 0x439   :  { %v3551_v30 = vcombine.high %v3549_v14, %v3549_v14  ;;  %v3565_v58 = vrot.slane %v3549_v14, %v15670_v2  ;;  %v3572_v19 = vrot.slane %v3550_v44, %v15670_v2  ;;  %v3580_v57 = vcombine.high %v3558_v6, %v3558_v6  ;;  %v3274_v7 = vpop.f32.mrf.mxu1  ;;  %4059 = vmatprep.subr.bf16.mxu0 %v17632_v20 }
 0x43a   :  { %v3785_v46 = vcombine.low %v3663_v3, %v3664_v21  ;;  %v3665_v48 = vmax.f32 %v3534_v42, %v3558_v6  ;;  %v3590_v39 = vrot.slane %v3282_v5, %v15670_v2  ;;  %v3806_v61 = vrot.slane %v3784_v36, %v15670_v2 }
 0x43b   :  { %v3579_v34 = vrot.slane %v3551_v30, %v15670_v2  ;;  %v3581_v56 = vcombine.high %v3565_v58, %v3565_v58  ;;  %v3582_v4 = vcombine.high %v3572_v19, %v3572_v19  ;;  %v3666_v33 = vmax.f32 %v3572_v19, %v3580_v57  ;;  %v5078_v17 = vpop.f32.mrf.mxu1  ;;  %v13192_v19 = vld [vmem:[#allocation7] sm:$0xff]  }
 0x43c   :  { %v3813_v41 = vrot.slane %v3785_v46, %v15670_v2  ;;  %v3597_v16 = vrot.slane %v3590_v39, %v15670_v2  ;;  %v5079_v32 = vadd.f32 %v16182_v8, %v5078_v17  ;;  %v3901_v26 = vrot.slane %v16148_v12, 2  ;;  %4060 = vmatpush1.bf16.msra.mxu0 %v13192_v19 }
 0x43d   :  { %v3667_v60 = vmax.f32 %v3582_v4, %v3565_v58  ;;  %v3668_v18 = vmax.f32 %v3579_v34, %v3581_v56  ;;  %v3831_v13 = vcombine.low %v3665_v48, %v3666_v33  ;;  %v3583_v25 = vcombine.high %v3579_v34, %v3579_v34  ;;  %v13076_v27 = vpop.f32.mrf.mxu1  ;;  %4069 = vmatprep.subr.bf16.mxu0 %v17632_v20 }
 0x43e   :  { %v5132_v23 = vmax.f32 %v5079_v32, 0.0  ;;  %v3815_v31 = vcombine.low %v3806_v61, %v3813_v41  ;;  %v16202_v0 = vrot.slane %v3814_v24, %v15670_v2  ;;  %v16215_v44 = vsel %vm496_vm1, %v3900_v52, %v3901_v26  ;;  %v17638_v24 = vld [vmem:[#allocation46_spill] sm:$0xff] }
 0x43f   :  { %v3832_v28 = vcombine.low %v3667_v60, %v3668_v18  ;;  %v3669_v38 = vmax.f32 %v3583_v25, %v3597_v16  ;;  %v5081_v51 = vpop.f32.mrf.mxu1  ;;  %v3839_v9 = vrot.slane %v3831_v13, %v15670_v2  ;;  %v13193_v25 = vld [vmem:[#allocation7 + $0x58] sm:$0xff]  }
 0x440   :  { %v5158_v45 = vcombine.high %v5132_v23, %v5132_v23  ;;  %v5165_v10 = vrot.slane %v5132_v23, %v14982_v59  ;;  %v5082_v29 = vadd.f32 %v16182_v8, %v5081_v51  ;;  %v16210_v14 = vrot.slane %v3815_v31, %v15670_v2  ;;  %4070 = vmatpush2.bf16.msra.mxu0 %v13193_v25 }
 0x441   :  { %v3846_v62 = vrot.slane %v3832_v28, %v15670_v2  ;;  %v3853_v49 = vrot.slane %v3669_v38, %v15670_v2  ;;  %v13077_v55 = vpop.f32.mrf.mxu1  ;;  %4071 = vmatprep.subr.bf16.mxu0 %v17632_v20 }
 0x442   :  { %v5172_v37 = vrot.slane %v5158_v45, %v14982_v59  ;;  %v5173_v22 = vcombine.high %v5165_v10, %v5165_v10  ;;  %v12326_v53 = vrot.slane %v5165_v10, 9  ;;  %v5133_v15 = vmax.f32 %v5082_v29, 0.0 }
 0x443   :  { %v5086_v11 = vpop.f32.mrf.mxu1  ;;  %v3854_v43 = vcombine.low %v3839_v9, %v3846_v62  ;;  %v16207_v1 = vrot.slane %v3853_v49, %v15670_v2  ;;  %v3830_v62 = vcombine.low %v16202_v0, %v16210_v14 }
 0x444   :  { %v5174_v6 = vcombine.high %v5172_v37, %v5172_v37  ;;  %v12327_v5 = vrot.slane %v5173_v22, 9  ;;  %v12328_v40 = vrot.slane %v5172_v37, 9  ;;  %v5570_v3 = vmax.f32 %v5165_v10, %v12326_v53  ;;  %v13194_v53 = vld [vmem:[#allocation7 + $0x50] sm:$0xff]  }
 0x445   :  { %v5175_v21 = vcombine.high %v5133_v15, %v5133_v15  ;;  %v5182_v36 = vrot.slane %v5133_v15, %v14982_v59  ;;  %v5087_v42 = vadd.f32 %v16182_v8, %v5086_v11  ;;  %v13080_v30 = vpop.f32.mrf.mxu1  ;;  %v16220_v58 = vrot.slane %v3854_v43, %v15670_v2  ;;  %4072 = vmatpush2.bf16.msra.mxu0 %v13194_v53 }
 0x446   :  { %v12329_v57 = vrot.slane %v5174_v6, 9  ;;  %v5571_v7 = vmax.f32 %v5173_v22, %v12327_v5  ;;  %v5572_v63 = vmax.f32 %v5172_v37, %v12328_v40  ;;  %v5673_v46 = vrot.slane %v5570_v3, %v17638_v24  ;;  %4073 = vmatprep.subr.bf16.mxu0 %v17632_v20 }
 0x447   :  { %v5189_v48 = vrot.slane %v5175_v21, %v14982_v59  ;;  %v5190_v39 = vcombine.high %v5182_v36, %v5182_v36  ;;  %v12330_v34 = vrot.slane %v5182_v36, 9  ;;  %v5134_v56 = vmax.f32 %v5087_v42, 0.0  ;;  %v5089_v4 = vpop.f32.mrf.mxu1 }
 0x448   :  { %v5573_v33 = vmax.f32 %v5174_v6, %v12329_v57  ;;  %v5677_v17 = vrot.slane %v5571_v7, %v17638_v24  ;;  %v5681_v61 = vrot.slane %v5572_v63, %v17638_v24  ;;  %v5090_v41 = vadd.f32 %v16182_v8, %v5089_v4 }
 0x449   :  { %v5191_v16 = vcombine.high %v5189_v48, %v5189_v48  ;;  %v12331_v32 = vrot.slane %v5190_v39, 9  ;;  %v12332_v60 = vrot.slane %v5189_v48, 9  ;;  %v5574_v18 = vmax.f32 %v5182_v36, %v12330_v34  ;;  %v13081_v13 = vpop.f32.mrf.mxu1 }
 0x44a   :  { %v5685_v27 = vrot.slane %v5573_v33, %v17638_v24  ;;  %v5870_v35 = vsel %vm2113_vm12, %v5677_v17, %v5673_v46  ;;  %v5192_v23 = vcombine.high %v5134_v56, %v5134_v56  ;;  %v5199_v31 = vrot.slane %v5134_v56, %v14982_v59 }
 0x44b   :  { %v5871_v28 = vsel %vm2115_vm13, %v5681_v61, %v5870_v35  ;;  %v12333_v38 = vrot.slane %v5191_v16, 9  ;;  %v16233_v51 = vmax.f32 %v5190_v39, %v12331_v32  ;;  %v5576_v52 = vmax.f32 %v5189_v48, %v12332_v60  ;;  %v5094_v45 = vpop.f32.mrf.mxu1  ;;  %v13195_v48 = vld [vmem:[#allocation7 + $0x48] sm:$0xff]  }
 0x44c   :  { %v5689_v10 = vrot.slane %v5574_v18, %v17638_v24  ;;  %v5206_v29 = vrot.slane %v5192_v23, %v14982_v59  ;;  %v5207_v9 = vcombine.high %v5199_v31, %v5199_v31  ;;  %v5872_v50 = vsel %vm17639_vm0, %v5685_v27, %v5871_v28  ;;  %4074 = vmatpush2.bf16.msra.mxu0 %v13195_v48  ;;  %v13196_v23 = vld [vmem:[#allocation7 + $0x40] sm:$0xff]   ;;  %vm17644_vm0 = vmmov %vm17640_vm9 }
 0x44d   :  { %v5577_v49 = vmax.f32 %v5191_v16, %v12333_v38  ;;  %v5693_v55 = vrot.slane %v16233_v51, %v17638_v24  ;;  %v12334_v37 = vrot.slane %v5199_v31, 9  ;;  %v13084_v22 = vpop.f32.mrf.mxu1  ;;  %v5697_v15 = vrot.slane %v5576_v52, %v17638_v24  ;;  %4075 = vmatprep.subr.bf16.mxu0 %v17632_v20 }
 0x44e   :  { %v5208_v11 = vcombine.high %v5206_v29, %v5206_v29  ;;  %v12335_v43 = vrot.slane %v5207_v9, 9  ;;  %v12336_v6 = vrot.slane %v5206_v29, 9  ;;  %v5135_v14 = vmax.f32 %v5090_v41, 0.0 }
 0x44f   :  { %v5701_v5 = vrot.slane %v5577_v49, %v17638_v24  ;;  %v5578_v0 = vmax.f32 %v5199_v31, %v12334_v37  ;;  %v3869_v40 = vcombine.low %v16220_v58, %v16207_v1  ;;  %v5097_v3 = vpop.f32.mrf.mxu1  ;;  %v5095_v30 = vadd.f32 %v16182_v8, %v5094_v45 }
 0x450   :  { %v12337_v21 = vrot.slane %v5208_v11, 9  ;;  %v5579_v36 = vmax.f32 %v5207_v9, %v12335_v43  ;;  %v5580_v42 = vmax.f32 %v5206_v29, %v12336_v6  ;;  %v5209_v7 = vcombine.high %v5135_v14, %v5135_v14  ;;  %4076 = vmatpush2.bf16.msra.mxu0 %v13196_v23 }
 0x451   :  { %v5875_v19 = vsel %vm17640_vm9, %v5701_v5, %v5697_v15  ;;  %v5705_v57 = vrot.slane %v5578_v0, %v17638_v24  ;;  %v5216_v63 = vrot.slane %v5135_v14, %v14982_v59  ;;  %v13085_v46 = vpop.f32.mrf.mxu1  ;;  %v16254_v58 = vsel %vm565_vm3, %v3869_v40, 0.0  ;;  %6958 = vmatprep.subr.bf16.mxu0 %v17632_v20  ;;  %vm17645_vm9 = vmmov %vm17641_vm14 }
 0x452   :  { %v5581_v39 = vmax.f32 %v5208_v11, %v12337_v21  ;;  %v5709_v34 = vrot.slane %v5579_v36, %v17638_v24  ;;  %v5713_v1 = vrot.slane %v5580_v42, %v17638_v24  ;;  %v5223_v4 = vrot.slane %v5209_v7, %v14982_v59 }
 0x453   :  { %v5876_v56 = vsel %vm17641_vm14, %v5705_v57, %v5875_v19  ;;  %v5224_v33 = vcombine.high %v5216_v63, %v5216_v63  ;;  %v12338_v17 = vrot.slane %v5216_v63, 9  ;;  %v5102_v61 = vpop.f32.mrf.mxu1  ;;  %v16260_v41 = vsel %vm17642_vm7, %v5689_v10, %v5872_v50  ;;  %vm17646_vm14 = vmmov %vm17642_vm7 }
 0x454   :  { %v5717_v16 = vrot.slane %v5581_v39, %v17638_v24  ;;  %v5877_v32 = vsel %vm2113_vm12, %v5709_v34, %v5876_v56  ;;  %v3886_v60 = vrot.slane %v16254_v58, 1  ;;  %v5225_v13 = vcombine.high %v5223_v4, %v5223_v4  ;;  %vm17647_vm7 = vmmov %vm17643_vm8 }
 0x455   :  { %v5878_v18 = vsel %vm2115_vm13, %v5713_v1, %v5877_v32  ;;  %v12339_v25 = vrot.slane %v5224_v33, 9  ;;  %v12340_v27 = vrot.slane %v5223_v4, 9  ;;  %v13088_v35 = vpop.f32.mrf.mxu1  ;;  %v5582_v31 = vmax.f32 %v5216_v63, %v12338_v17 }
 0x456   :  { %v3904_v28 = vrot.slane %v16254_v58, 2  ;;  %3894 = vrot.lane.b32.xlu1 %v3886_v60, %s14431_s2  ;;  %v5136_v38 = vmax.f32 %v5095_v30, 0.0  ;;  %v16269_v52 = vsel %vm1283_vm5, 0.0, %v3830_v62  ;;  %v12341_v45 = vrot.slane %v5225_v13, 9 }
 0x457   :  { %v16272_v10 = vmax.f32 %v5224_v33, %v12339_v25  ;;  %v5584_v29 = vmax.f32 %v5223_v4, %v12340_v27  ;;  %v3885_v9 = vrot.slane %v16269_v52, 1  ;;  %v5105_v49 = vpop.f32.mrf.mxu1  ;;  %v5721_v50 = vrot.slane %v5582_v31, %v17638_v24 }
 0x458   :  { %v5879_v37 = vsel %vm17643_vm8, %v5717_v16, %v5878_v18  ;;  %v5226_v22 = vcombine.high %v5136_v38, %v5136_v38  ;;  %v5233_v53 = vrot.slane %v5136_v38, %v14982_v59  ;;  %v5585_v15 = vmax.f32 %v5225_v13, %v12341_v45 }
 0x459   :  { %v5725_v62 = vrot.slane %v16272_v10, %v17638_v24  ;;  %v3887_v11 = vsel %vm427_vm2, %v3885_v9, %v3886_v60  ;;  %v3903_v43 = vrot.slane %v16269_v52, 2  ;;  %v13089_v6 = vpop.f32.mrf.mxu1  ;;  %v5729_v5 = vrot.slane %v5584_v29, %v17638_v24 }
 0x45a   :  { %v5240_v0 = vrot.slane %v5226_v22, %v14982_v59  ;;  %v5241_v14 = vcombine.high %v5233_v53, %v5233_v53  ;;  %v12342_v40 = vrot.slane %v5233_v53, 9  ;;  %3892 = vrot.lane.b32.xlu1 %v3887_v11, %s14431_s2  ;;  %v5733_v21 = vrot.slane %v5585_v15, %v17638_v24 }
 0x45b   :  { %v5098_v36 = vadd.f32 %v16182_v8, %v5097_v3  ;;  %v16291_v42 = vsel %vm496_vm1, %v3903_v43, %v3904_v28  ;;  %v5103_v30 = vadd.f32 %v16182_v8, %v5102_v61  ;;  %v16294_v19 = vpop.f32.mrf.mxu1  ;;  %v5106_v43 = vadd.f32 %v16182_v8, %v5105_v49 }
 0x45c   :  { %v5242_v57 = vcombine.high %v5240_v0, %v5240_v0  ;;  %v12343_v7 = vrot.slane %v5241_v14, 9  ;;  %v12344_v63 = vrot.slane %v5240_v0, 9  ;;  %v5586_v46 = vmax.f32 %v5233_v53, %v12342_v40 }
 0x45d   :  { %v5882_v48 = vsel %vm17644_vm0, %v5733_v21, %v5729_v5  ;;  %v5137_v39 = vmax.f32 %v5098_v36, 0.0  ;;  %v12298_v3 = vcombine.low %v3901_v26, %v16291_v42  ;;  %v5138_v34 = vmax.f32 %v5103_v30, 0.0  ;;  %v13092_v1 = vpop.f32.mrf.mxu1  ;;  %vm17649_vm0 = vmmov %vm17646_vm14 }
 0x45e   :  { %v12345_v56 = vrot.slane %v5242_v57, 9  ;;  %v5587_v4 = vmax.f32 %v5241_v14, %v12343_v7  ;;  %v5588_v33 = vmax.f32 %v5240_v0, %v12344_v63  ;;  %v5737_v17 = vrot.slane %v5586_v46, %v17638_v24 }
 0x45f   :  { %v5243_v61 = vcombine.high %v5137_v39, %v5137_v39  ;;  %v5250_v16 = vrot.slane %v5137_v39, %v14982_v59  ;;  %v3933_v32 = vpack.c.bf16 %v12298_v3, %v16215_v44  ;;  %v5260_v60 = vcombine.high %v5138_v34, %v5138_v34  ;;  %v16303_v18 = vpop.f32.mrf.mxu1 }
 0x460   :  { %v5589_v13 = vmax.f32 %v5242_v57, %v12345_v56  ;;  %v5741_v25 = vrot.slane %v5587_v4, %v17638_v24  ;;  %v5745_v26 = vrot.slane %v5588_v33, %v17638_v24  ;;  %v5883_v27 = vsel %vm17645_vm9, %v5737_v17, %v5882_v48 }
 0x461   :  { %v5257_v35 = vrot.slane %v5243_v61, %v14982_v59  ;;  %v5258_v23 = vcombine.high %v5250_v16, %v5250_v16  ;;  %v12346_v31 = vrot.slane %v5250_v16, 9  ;;  %12314 = vmatprep.mubr.msk.bf16.mxu0 %vm2316_vm10, %v3933_v32  ;;  %v5267_v38 = vrot.slane %v5138_v34, %v14982_v59  ;;  %v13093_v45 = vpop.f32.mrf.mxu1 }
 0x462   :  { %v5880_v44 = vsel %vm17646_vm14, %v5721_v50, %v5879_v37  ;;  %v5749_v29 = vrot.slane %v5589_v13, %v17638_v24  ;;  %v5884_v9 = vsel %vm2113_vm12, %v5741_v25, %v5883_v27  ;;  %v5274_v22 = vrot.slane %v5260_v60, %v14982_v59 }
 0x463   :  { %v5259_v53 = vcombine.high %v5257_v35, %v5257_v35  ;;  %v12347_v15 = vrot.slane %v5258_v23, 9  ;;  %v12348_v11 = vrot.slane %v5257_v35, 9  ;;  %v5885_v5 = vsel %vm2115_vm13, %v5745_v26, %v5884_v9 }
 0x464   :  { %v5590_v0 = vmax.f32 %v5250_v16, %v12346_v31  ;;  %v5275_v14 = vcombine.high %v5267_v38, %v5267_v38  ;;  %v5276_v40 = vcombine.high %v5274_v22, %v5274_v22  ;;  %v12350_v36 = vrot.slane %v5267_v38, 9 }
 0x465   :  { %v16316_v6 = vpop.f32.mrf.mxu1  ;;  %v12349_v21 = vrot.slane %v5259_v53, 9  ;;  %v16319_v50 = vmax.f32 %v5258_v23, %v12347_v15  ;;  %v5592_v37 = vmax.f32 %v5257_v35, %v12348_v11  ;;  %v12352_v63 = vrot.slane %v5274_v22, 9 }
 0x466   :  { %v5753_v57 = vrot.slane %v5590_v0, %v17638_v24  ;;  %v12351_v7 = vrot.slane %v5275_v14, 9  ;;  %v12353_v46 = vrot.slane %v5276_v40, 9  ;;  %v5886_v39 = vsel %vm17647_vm7, %v5749_v29, %v5885_v5 }
 0x467   :  { %v13096_v30 = vpop.f32.mrf.mxu1  ;;  %v5593_v48 = vmax.f32 %v5259_v53, %v12349_v21  ;;  %v5757_v49 = vrot.slane %v16319_v50, %v17638_v24  ;;  %v5594_v3 = vmax.f32 %v5267_v38, %v12350_v36  ;;  %v5761_v1 = vrot.slane %v5592_v37, %v17638_v24 }
 0x468   :  { %v5595_v56 = vmax.f32 %v5275_v14, %v12351_v7  ;;  %v5596_v4 = vmax.f32 %v5274_v22, %v12352_v63  ;;  %v5597_v33 = vmax.f32 %v5276_v40, %v12353_v46  ;;  %v5139_v16 = vmax.f32 %v5106_v43, 0.0 }
 0x469   :  { %v16325_v34 = vpop.f32.mrf.mxu1  ;;  %v5765_v17 = vrot.slane %v5593_v48, %v17638_v24  ;;  %v5769_v61 = vrot.slane %v5594_v3, %v17638_v24  ;;  %vm17648_vm8 = vcmask 1047559   ;;  %v16336_v13 = vsel %vm17649_vm0, %v5753_v57, %v5886_v39 }
 0x46a   :  { %v5874_v32 = vsel %vm17648_vm8, %v5693_v55, %v16260_v41  ;;  %v5773_v25 = vrot.slane %v5595_v56, %v17638_v24  ;;  %v5777_v26 = vrot.slane %v5596_v4, %v17638_v24  ;;  %vm17650_vm9 = vmmov %vm17648_vm8  ;;  %vm17651_vm14 = vcmask 1041409  }
 0x46b   :  { %v13097_v60 = vpop.f32.mrf.mxu1  ;;  %v16344_v27 = vsel %vm17650_vm9, %v5725_v62, %v5880_v44  ;;  %v5889_v35 = vsel %vm17651_vm14, %v5765_v17, %v5761_v1  ;;  %v5277_v23 = vcombine.high %v5139_v16, %v5139_v16  ;;  %v5284_v51 = vrot.slane %v5139_v16, %v14982_v59 }
 0x46c   :  { %vm17652_vm7 = vcmask 1041408   ;;  %v5781_v31 = vrot.slane %v5597_v33, %v17638_v24  ;;  %vm17653_vm8 = vcmask 1042434   ;;  %v5929_v62 = vrot.slane %v16344_v27, 1 }
 0x46d   :  { %v16349_v55 = vsel %vm17652_vm7, 0.0, %v5874_v32  ;;  %v16351_v41 = vpop.f32.mrf.mxu1  ;;  %v16355_v38 = vsel %vm17653_vm8, %v5769_v61, %v5889_v35  ;;  %v5891_v45 = vsel %vm2113_vm12, %v5777_v26, %v5773_v25  ;;  %v5291_v44 = vrot.slane %v5277_v23, %v14982_v59  ;;  %vm17655_vm7 = vmmov %vm17653_vm8 }
 0x46e   :  { %v5928_v10 = vrot.slane %v16349_v55, 1  ;;  %v5292_v29 = vcombine.high %v5284_v51, %v5284_v51  ;;  %v12354_v9 = vrot.slane %v5284_v51, 9  ;;  %v5111_v15 = vadd.f32 %v16182_v8, %v16294_v19 }
 0x46f   :  { %v13100_v22 = vpop.f32.mrf.mxu1  ;;  %v5966_v11 = vrot.slane %v16349_v55, 2  ;;  %v5967_v43 = vrot.slane %v16344_v27, 2  ;;  %v5293_v5 = vcombine.high %v5291_v44, %v5291_v44  ;;  %v12356_v14 = vrot.slane %v5291_v44, 9 }
 0x470   :  { %v5930_v53 = vsel %vm427_vm2, %v5928_v10, %v5929_v62  ;;  %v12355_v0 = vrot.slane %v5292_v29, 9  ;;  %v5598_v40 = vmax.f32 %v5284_v51, %v12354_v9  ;;  %v5892_v37 = vsel %vm2115_vm13, %v5781_v31, %v5891_v45 }
 0x471   :  { %5942 = vrot.lane.b32.xlu1 %v5930_v53, %s14464_s15  ;;  %v5129_v21 = vpop.f32.mrf.mxu1  ;;  %v5140_v36 = vmax.f32 %v5111_v15, 0.0  ;;  %v5968_v30 = vsel %vm496_vm1, %v5966_v11, %v5967_v43  ;;  %v5114_v19 = vadd.f32 %v16182_v8, %v16303_v18  ;;  %v12357_v57 = vrot.slane %v5293_v5, 9 }
 0x472   :  { %v5599_v7 = vmax.f32 %v5292_v29, %v12355_v0  ;;  %v16375_v63 = vmax.f32 %v5291_v44, %v12356_v14  ;;  %v5785_v46 = vrot.slane %v5598_v40, %v17638_v24  ;;  %v6005_v56 = vrot.slane %v16344_v27, 3 }
 0x473   :  { %v13101_v48 = vpop.f32.mrf.mxu1  ;;  %v5294_v39 = vcombine.high %v5140_v36, %v5140_v36  ;;  %v5301_v3 = vrot.slane %v5140_v36, %v14982_v59  ;;  %v5141_v1 = vmax.f32 %v5114_v19, 0.0  ;;  %v5601_v4 = vmax.f32 %v5293_v5, %v12357_v57 }
 0x474   :  { %v5789_v33 = vrot.slane %v5599_v7, %v17638_v24  ;;  %v5793_v17 = vrot.slane %v16375_v63, %v17638_v24  ;;  %v6004_v18 = vrot.slane %v16349_v55, 3  ;;  %vm17654_vm0 = vcmask 1045509  }
 0x475   :  { %5980 = vrot.lane.b32.xlu1 %v5968_v30, %s14431_s2  ;;  %v5308_v61 = vrot.slane %v5294_v39, %v14982_v59  ;;  %v5309_v16 = vcombine.high %v5301_v3, %v5301_v3  ;;  %v12358_v32 = vrot.slane %v5301_v3, 9  ;;  %v5311_v60 = vcombine.high %v5141_v1, %v5141_v1 }
 0x476   :  { %v5797_v25 = vrot.slane %v5601_v4, %v17638_v24  ;;  %v5893_v26 = vsel %vm17654_vm0, %v5785_v46, %v5892_v37  ;;  %v5318_v35 = vrot.slane %v5141_v1, %v14982_v59  ;;  %v6006_v23 = vsel %vm565_vm3, %v6004_v18, %v6005_v56 }
 0x477   :  { %v5310_v51 = vcombine.high %v5308_v61, %v5308_v61  ;;  %v12359_v31 = vrot.slane %v5309_v16, 9  ;;  %v12360_v10 = vrot.slane %v5308_v61, 9  ;;  %v5602_v45 = vmax.f32 %v5301_v3, %v12358_v32 }
 0x478   :  { %v5325_v44 = vrot.slane %v5311_v60, %v14982_v59  ;;  %v5326_v29 = vcombine.high %v5318_v35, %v5318_v35  ;;  %v12362_v9 = vrot.slane %v5318_v35, 9  ;;  %v16399_v22 = vsel %vm17650_vm9, %v5757_v49, %v16336_v13 }
 0x479   :  { %6018 = vrot.lane.b32.xlu1 %v6006_v23, %s14465_s29  ;;  %v12361_v53 = vrot.slane %v5310_v51, 9  ;;  %v5603_v15 = vmax.f32 %v5309_v16, %v12359_v31  ;;  %v5604_v11 = vmax.f32 %v5308_v61, %v12360_v10  ;;  %v5801_v5 = vrot.slane %v5602_v45, %v17638_v24 }
 0x47a   :  { %v5327_v0 = vcombine.high %v5325_v44, %v5325_v44  ;;  %v12363_v14 = vrot.slane %v5326_v29, 9  ;;  %v12364_v40 = vrot.slane %v5325_v44, 9  ;;  %v5606_v21 = vmax.f32 %v5318_v35, %v12362_v9 }
 0x47b   :  { %v5605_v37 = vmax.f32 %v5310_v51, %v12361_v53  ;;  %v5805_v36 = vrot.slane %v5603_v15, %v17638_v24  ;;  %v5809_v30 = vrot.slane %v5604_v11, %v17638_v24  ;;  %v5896_v19 = vsel %vm17651_vm14, %v5801_v5, %v5797_v25 }
 0x47c   :  { %v12365_v50 = vrot.slane %v5327_v0, 9  ;;  %v16405_v57 = vmax.f32 %v5326_v29, %v12363_v14  ;;  %v16407_v49 = vmax.f32 %v5325_v44, %v12364_v40  ;;  %v5817_v13 = vrot.slane %v5606_v21, %v17638_v24 }
 0x47d   :  { %v5813_v7 = vrot.slane %v5605_v37, %v17638_v24  ;;  %v5897_v46 = vsel %vm17655_vm7, %v5805_v36, %v5896_v19  ;;  %v5931_v48 = vrot.slane %v16399_v22, 1  ;;  %v5119_v39 = vadd.f32 %v16182_v8, %v16316_v6 }
 0x47e   :  { %vm17656_vm8 = vcmask 1046534   ;;  %v5898_v1 = vsel %vm2113_vm12, %v5809_v30, %v5897_v46  ;;  %v5609_v4 = vmax.f32 %v5327_v0, %v12365_v50  ;;  %v5821_v18 = vrot.slane %v16405_v57, %v17638_v24 }
 0x47f   :  { %v16416_v3 = vsel %vm17656_vm8, %v5789_v33, %v5893_v26  ;;  %v5899_v61 = vsel %vm2115_vm13, %v5813_v7, %v5898_v1  ;;  %v5932_v16 = vsel %vm427_vm2, %v5929_v62, %v5931_v48  ;;  %v5142_v32 = vmax.f32 %v5119_v39, 0.0  ;;  %vm17659_vm7 = vmmov %vm17656_vm8 }
 0x480   :  { %v5969_v6 = vrot.slane %v16399_v22, 2  ;;  %v5825_v33 = vrot.slane %v16407_v49, %v17638_v24  ;;  %v5829_v60 = vrot.slane %v5609_v4, %v17638_v24  ;;  %5944 = vrot.lane.b32.xlu0 %v5932_v16, %s14464_s15  ;;  %vm17657_vm0 = vcmask 1042432  }
 0x481   :  { %v16434_v25 = vsel %vm17657_vm0, %v16355_v38, 0.0  ;;  %v5122_v26 = vadd.f32 %v16182_v8, %v16325_v34  ;;  %vm17658_vm9 = vcmask 1045509   ;;  %v5328_v62 = vcombine.high %v5142_v32, %v5142_v32 }
 0x482   :  { %v5900_v35 = vsel %vm17658_vm9, %v5817_v13, %v5899_v61  ;;  %v5335_v23 = vrot.slane %v5142_v32, %v14982_v59  ;;  %v5970_v51 = vsel %vm496_vm1, %v5967_v43, %v5969_v6  ;;  %v5933_v31 = vrot.slane %v16434_v25, 1 }
 0x483   :  { %v5143_v10 = vmax.f32 %v5122_v26, 0.0  ;;  %v6007_v38 = vrot.slane %v16399_v22, 3  ;;  %v5971_v45 = vrot.slane %v16434_v25, 2  ;;  %v5342_v34 = vrot.slane %v5328_v62, %v14982_v59 }
 0x484   :  { %v5343_v44 = vcombine.high %v5335_v23, %v5335_v23  ;;  %v12366_v29 = vrot.slane %v5335_v23, 9  ;;  %v5127_v9 = vadd.f32 %v16182_v8, %v16351_v41  ;;  %5982 = vrot.lane.b32.xlu0 %v5970_v51, %s14431_s2  ;;  %5948 = vrot.lane.b32.xlu1 %v5933_v31, %s14464_s15  ;;  %v6009_v11 = vrot.slane %v16434_v25, 3 }
 0x485   :  { %v5345_v53 = vcombine.high %v5143_v10, %v5143_v10  ;;  %v5352_v43 = vrot.slane %v5143_v10, %v14982_v59  ;;  %v6008_v15 = vsel %vm565_vm3, %v6005_v56, %v6007_v38  ;;  %v5344_v5 = vcombine.high %v5342_v34, %v5342_v34 }
 0x486   :  { %v12367_v0 = vrot.slane %v5343_v44, 9  ;;  %v12368_v14 = vrot.slane %v5342_v34, 9  ;;  %v5610_v40 = vmax.f32 %v5335_v23, %v12366_v29  ;;  %v5144_v37 = vmax.f32 %v5127_v9, 0.0 }
 0x487   :  { %v5359_v8 = vrot.slane %v5345_v53, %v14982_v59  ;;  %v5360_v41 = vcombine.high %v5352_v43, %v5352_v43  ;;  %v12370_v21 = vrot.slane %v5352_v43, 9  ;;  %v12369_v36 = vrot.slane %v5344_v5, 9 }
 0x488   :  { %v5611_v30 = vmax.f32 %v5343_v44, %v12367_v0  ;;  %v5612_v19 = vmax.f32 %v5342_v34, %v12368_v14  ;;  %v5833_v50 = vrot.slane %v5610_v40, %v17638_v24  ;;  %6020 = vrot.lane.b32.xlu0 %v6008_v15, %s14465_s29  ;;  %5986 = vrot.lane.b32.xlu1 %v5971_v45, %s14431_s2  ;;  %vm17660_vm8 = vcmask 1042434  }
 0x489   :  { %v5361_v57 = vcombine.high %v5359_v8, %v5359_v8  ;;  %v12371_v13 = vrot.slane %v5360_v41, 9  ;;  %v12372_v7 = vrot.slane %v5359_v8, 9  ;;  %v5614_v56 = vmax.f32 %v5352_v43, %v12370_v21 }
 0x48a   :  { %v5613_v46 = vmax.f32 %v5344_v5, %v12369_v36  ;;  %v5837_v39 = vrot.slane %v5611_v30, %v17638_v24  ;;  %v5841_v1 = vrot.slane %v5612_v19, %v17638_v24  ;;  %v5903_v4 = vsel %vm17651_vm14, %v5833_v50, %v5829_v60  ;;  %vm17665_vm14 = vmmov %vm17659_vm7 }
 0x48b   :  { %v12373_v61 = vrot.slane %v5361_v57, 9  ;;  %v5615_v16 = vmax.f32 %v5360_v41, %v12371_v13  ;;  %v5616_v32 = vmax.f32 %v5359_v8, %v12372_v7  ;;  %v5849_v26 = vrot.slane %v5614_v56, %v17638_v24 }
 0x48c   :  { %v5901_v62 = vsel %vm17659_vm7, %v5821_v18, %v5900_v35  ;;  %v5845_v23 = vrot.slane %v5613_v46, %v17638_v24  ;;  %v5904_v51 = vsel %vm17660_vm8, %v5837_v39, %v5903_v4  ;;  %v5368_v10 = vrot.slane %v5144_v37, %v14982_v59  ;;  %6024 = vrot.lane.b32.xlu0 %v6009_v11, %s14465_s29 }
 0x48d   :  { %v5905_v34 = vsel %vm2113_vm12, %v5841_v1, %v5904_v51  ;;  %v5617_v44 = vmax.f32 %v5361_v57, %v12373_v61  ;;  %v5853_v29 = vrot.slane %v5615_v16, %v17638_v24  ;;  %v5857_v60 = vrot.slane %v5616_v32, %v17638_v24  ;;  %vm17662_vm12 = vmmov %vm17658_vm9 }
 0x48e   :  { %v5906_v9 = vsel %vm2115_vm13, %v5845_v23, %v5905_v34  ;;  %v5369_v18 = vcombine.high %v5368_v10, %v5368_v10  ;;  %v12374_v35 = vrot.slane %v5368_v10, 9  ;;  %vm17661_vm0 = vcmask 1047559  }
 0x48f   :  { %v5895_v53 = vsel %vm17661_vm0, %v5793_v17, %v16416_v3  ;;  %v5907_v43 = vsel %vm17662_vm12, %v5849_v26, %v5906_v9  ;;  %v5934_v15 = vsel %vm427_vm2, %v5931_v48, %v5933_v31  ;;  %vm17663_vm9 = vmmov %vm17661_vm0  ;;  %vm17664_vm13 = vcmask 1041408  }
 0x490   :  { %v16494_v5 = vsel %vm17663_vm9, %v5825_v33, %v5901_v62  ;;  %v16497_v0 = vsel %vm17664_vm13, 0.0, %v5895_v53  ;;  %v5861_v14 = vrot.slane %v5617_v44, %v17638_v24  ;;  %v5908_v63 = vsel %vm17665_vm14, %v5853_v29, %v5907_v43  ;;  %5946 = vrot.lane.b32.xlu0 %v5934_v15, %s14464_s15  ;;  %vm17666_vm7 = vmmov %vm17661_vm0  ;;  %v13197_v43 = vld [vmem:[%s17670_s20 + $0x38] sm:$0xff]  }
 0x491   :  { %v12375_v17 = vrot.slane %v5369_v18, 9  ;;  %v5618_v3 = vmax.f32 %v5368_v10, %v12374_v35  ;;  %v5935_v40 = vrot.slane %v16497_v0, 1  ;;  %v5936_v48 = vrot.slane %v16494_v5, 1 }
 0x492   :  { %v16506_v33 = vsel %vm17666_vm7, %v5857_v60, %v5908_v63  ;;  %v6012_v41 = vrot.slane %v16494_v5, 3  ;;  %vm17667_vm8 = vcmask 1041409   ;;  %v5972_v36 = vsel %vm496_vm1, %v5969_v6, %v5971_v45  ;;  %v13201_v63 = vld [vmem:[%s17670_s20 + $0x18] sm:$0xff]  }
 0x493   :  { %v5619_v31 = vmax.f32 %v5369_v18, %v12375_v17  ;;  %v5865_v49 = vrot.slane %v5618_v3, %v17638_v24  ;;  %v5937_v8 = vsel %vm427_vm2, %v5935_v40, %v5936_v48  ;;  %v6011_v30 = vrot.slane %v16497_v0, 3  ;;  %v13202_v3 = vld [vmem:[%s17670_s20 + $0x10] sm:$0xff]  }
 0x494   :  { %5950 = vrot.lane.b32.xlu1 %v5937_v8, %s14464_s15  ;;  %5984 = vrot.lane.b32.xlu0 %v5972_v36, %s14431_s2  ;;  %v5938_v19 = vrot.slane %v16506_v33, 1  ;;  %vm17668_vm0 = vcmask 1042434   ;;  %vm17669_vm12 = vcmask 1042432   ;;  %v6010_v6 = vsel %vm565_vm3, %v6007_v38, %v6009_v11 }
 0x495   :  { %v5869_v21 = vrot.slane %v5619_v31, %v17638_v24  ;;  %v5910_v37 = vsel %vm17667_vm8, %v5865_v49, %v5861_v14  ;;  %v6013_v57 = vsel %vm565_vm3, %v6011_v30, %v6012_v41  ;;  %v5974_v45 = vrot.slane %v16494_v5, 2  ;;  %v13203_v31 = vld [vmem:[%s17670_s20 + $0x8] sm:$0xff]  }
 0x496   :  { %v5939_v7 = vsel %vm427_vm2, %v5936_v48, %v5938_v19  ;;  %v5973_v56 = vrot.slane %v16497_v0, 2  ;;  %v5976_v39 = vrot.slane %v16506_v33, 2  ;;  %v6014_v4 = vrot.slane %v16506_v33, 3 }
 0x497   :  { %v5911_v50 = vsel %vm17668_vm0, %v5869_v21, %v5910_v37  ;;  %v6043_v48 = vrot.slane %v16344_v27, 4  ;;  %v6042_v8 = vrot.slane %v16349_v55, 4 }
 0x498   :  { %v16524_v13 = vsel %vm17669_vm12, %v5911_v50, 0.0  ;;  %6026 = vrot.lane.b32.xlu1 %v6013_v57, %s14465_s29  ;;  %6022 = vrot.lane.b32.xlu0 %v6010_v6, %s14465_s29  ;;  %v5975_v1 = vsel %vm496_vm1, %v5973_v56, %v5974_v45  ;;  %v5977_v11 = vsel %vm496_vm1, %v5974_v45, %v5976_v39  ;;  %v6015_v16 = vsel %vm565_vm3, %v6012_v41, %v6014_v4  ;;  %v13204_v50 = vld [vmem:[%s17670_s20] sm:$0xff]   ;;  %v13205_v6 = vld [vmem:[%s17670_s20 + $0x48] sm:$0xff]  }
 0x499   :  { %v5940_v46 = vrot.slane %v16524_v13, 1  ;;  %v5978_v61 = vrot.slane %v16524_v13, 2  ;;  %v6016_v26 = vrot.slane %v16524_v13, 3  ;;  %v6044_v37 = vsel %vm420_vm4, %v6042_v8, %v6043_v48 }
 0x49b   :  { %v5941_v38 = vsel %vm427_vm2, %v5938_v19, %v5940_v46  ;;  %v5979_v32 = vsel %vm496_vm1, %v5976_v39, %v5978_v61  ;;  %v6017_v62 = vsel %vm565_vm3, %v6014_v4, %v6016_v26  ;;  %v13209_v39 = vld [vmem:[#allocation18 + $0x74] ss:$8 sps:$4 sm:$0xff]  }
 0x49c   :  { %5952 = vrot.lane.b32.xlu1 %v5939_v7, %s14464_s15  ;;  %5988 = vrot.lane.b32.xlu0 %v5975_v1, %s14431_s2 }
 0x49d   :  { %v3891_v23 = vpop.permute.xlu0 %3890 }
 0x49e   :  { %v3907_v60 = vsel %vm2316_vm10, %v16148_v12, %v3891_v23  ;;  %v13198_v12 = vld [vmem:[%s17670_s20 + $0x30] sm:$0xff]  }
 0x4a0   :  { %5990 = vrot.lane.b32.xlu1 %v5977_v11, %s14431_s2  ;;  %5954 = vrot.lane.b32.xlu0 %v5941_v38, %s14464_s15  ;;  %v6045_v11 = vrot.slane %v16399_v22, 4 }
 0x4a1   :  { %v3889_v44 = vpop.permute.xlu0 %3888 }
 0x4a2   :  { %v3906_v53 = vsel %vm2316_vm10, %v16152_v54, %v3889_v44  ;;  %v13199_v54 = vld [vmem:[%s17670_s20 + $0x28] sm:$0xff]   ;;  %v6046_v23 = vsel %vm420_vm4, %v6043_v48, %v6045_v11 }
 0x4a4   :  { %6028 = vrot.lane.b32.xlu1 %v6015_v16, %s14465_s29  ;;  %5992 = vrot.lane.b32.xlu0 %v5979_v32, %s14431_s2 }
 0x4a8   :  { %5956 = vrot.lane.b32.xlu1 %v5940_v46, %s14464_s15  ;;  %6030 = vrot.lane.b32.xlu0 %v6017_v62, %s14465_s29  ;;  %v13206_v46 = vld [vmem:[%s17670_s20 + $0x40] sm:$0xff]  }
 0x4ac   :  { %6032 = vrot.lane.b32.xlu1 %v6016_v26, %s14465_s29  ;;  %5994 = vrot.lane.b32.xlu0 %v5978_v61, %s14431_s2 }
 0x4c8   :  { %v3895_v51 = vpop.permute.xlu1 %3894 }
 0x4c9   :  { %v3909_v10 = vsel %vm2316_vm10, %v16254_v58, %v3895_v51 }
 0x4ca   :  { %v3919_v34 = vcombine.low %v3909_v10, %v3904_v28 }
 0x4cc   :  { %v3893_v29 = vpop.permute.xlu1 %3892  ;;  %v12300_v9 = vcombine.high %v16291_v42, %v3919_v34 }
 0x4cd   :  { %v3908_v18 = vsel %vm2316_vm10, %v16269_v52, %v3893_v29 }
 0x4ce   :  { %v12297_v35 = vcombine.low %v3907_v60, %v3908_v18  ;;  %v3918_v58 = vcombine.high %v3908_v18, %v16291_v42  ;;  %v3935_v15 = vpack.c.bf16 %v12300_v9, %v12300_v9  ;;  %v13200_v42 = vld [vmem:[%s17670_s20 + $0x20] sm:$0xff]  }
 0x4d0   :  { %v3932_v28 = vpack.c.bf16 %v12297_v35, %v3906_v53  ;;  %v12299_v52 = vcombine.low %v3918_v58, %v3909_v10 }
 0x4d2   :  { %4078 = vmatmul.mubr.bf16.vlgmr.msra.gmra.mxu0 %v3932_v28  ;;  %v3934_v14 = vpack.c.bf16 %v12299_v52, %v12299_v52 }
 0x4d3   :  { %12315 = vmatprep.mubr.msk.bf16.mxu0 %vm2316_vm10, %v3935_v15  ;;  %6959 = vmatpush1.bf16.msra.mxu0 %v13197_v43 }
 0x4d4   :  { %6960 = vmatprep.subr.bf16.mxu0 %v17632_v20 }
 0x4d7   :  { %6961 = vmatpush1.bf16.msra.mxu0 %v13198_v12 }
 0x4d8   :  { %6962 = vmatprep.subr.bf16.mxu0 %v17632_v20 }
 0x4da   :  { %4086 = vmatmul.mubr.bf16.gmra.mxu0 %v3934_v14 }
 0x4db   :  { %6963 = vmatpush1.bf16.msra.mxu0 %v13199_v54 }
 0x4dc   :  { %6964 = vmatprep.subr.bf16.mxu0 %v17632_v20 }
 0x4df   :  { %6965 = vmatpush1.bf16.msra.mxu0 %v13200_v42 }
 0x4e0   :  { %6966 = vmatprep.subr.bf16.mxu0 %v17632_v20 }
 0x4e3   :  { %v5943_v17 = vpop.permute.xlu1 %5942  ;;  %6967 = vmatpush1.bf16.msra.mxu0 %v13201_v63 }
 0x4e4   :  { %6968 = vmatprep.subr.bf16.mxu0 %v17632_v20  ;;  %v6056_v49 = vsel %vm2307_vm11, %v16349_v55, %v5943_v17 }
 0x4e7   :  { %v5981_v40 = vpop.permute.xlu1 %5980  ;;  %6969 = vmatpush1.bf16.msra.mxu0 %v13202_v3 }
 0x4e8   :  { %6970 = vmatprep.subr.bf16.mxu0 %v17632_v20  ;;  %v6064_v41 = vsel %vm2316_vm10, %v6056_v49, %v5981_v40 }
 0x4eb   :  { %v6019_v21 = vpop.permute.xlu1 %6018  ;;  %6971 = vmatpush1.bf16.msra.mxu0 %v13203_v31 }
 0x4ec   :  { %v6072_v36 = vsel %vm2325_vm15, %v6064_v41, %v6019_v21  ;;  %6972 = vmatprep.subr.bf16.mxu0 %v17632_v20 }
 0x4ed   :  { %v6088_v30 = vcombine.low %v6072_v36, %v6044_v37  ;;  %v6089_v19 = vcombine.high %v6072_v36, %v6044_v37 }
 0x4ef   :  { %v6096_v55 = vrot.slane %v6088_v30, %v15670_v2  ;;  %v6103_v57 = vrot.slane %v6089_v19, %v15670_v2  ;;  %6973 = vmatpush1.bf16.msra.mxu0 %v13204_v50  ;;  %v6047_v19 = vrot.slane %v16434_v25, 4 }
 0x4f0   :  { %6986 = vmatprep.subr.bf16.mxu0 %v17632_v20 }
 0x4f1   :  { %v6104_v45 = vcombine.high %v6096_v55, %v6096_v55  ;;  %v6105_v56 = vcombine.high %v6103_v57, %v6103_v57  ;;  %v6112_v61 = vrot.slane %v6096_v55, %v15670_v2  ;;  %v6119_v16 = vrot.slane %v6103_v57, %v15670_v2 }
 0x4f2   :  { %v5945_v7 = vpop.permute.xlu0 %5944 }
 0x4f3   :  { %6987 = vmatpush2.bf16.msra.mxu0 %v13205_v6  ;;  %v6126_v1 = vrot.slane %v6104_v45, %v15670_v2  ;;  %v6133_v4 = vrot.slane %v6105_v56, %v15670_v2  ;;  %v6057_v32 = vsel %vm2307_vm11, %v16344_v27, %v5945_v7 }
 0x4f4   :  { %6988 = vmatprep.subr.bf16.mxu0 %v17632_v20 }
 0x4f5   :  { %v6418_v26 = vcombine.low %v6112_v61, %v6126_v1  ;;  %v12376_v10 = vcombine.high %v6112_v61, %v6126_v1  ;;  %v6420_v34 = vcombine.low %v6119_v16, %v6133_v4  ;;  %v12377_v44 = vcombine.high %v6119_v16, %v6133_v4 }
 0x4f6   :  { %v5983_v38 = vpop.permute.xlu0 %5982  ;;  %v5949_v29 = vpop.permute.xlu1 %5948 }
 0x4f7   :  { %6989 = vmatpush2.bf16.msra.mxu0 %v13206_v46  ;;  %v6065_v62 = vsel %vm2316_vm10, %v6057_v32, %v5983_v38  ;;  %v6428_v43 = vrot.slane %v6418_v26, %v15670_v2  ;;  %v6435_v58 = vrot.slane %v12376_v10, %v15670_v2  ;;  %v6442_v28 = vrot.slane %v6420_v34, %v15670_v2 }
 0x4f8   :  { %10226 = vmatprep.subr.bf16.mxu0 %v13209_v39  ;;  %v6449_v15 = vrot.slane %v12377_v44, %v15670_v2  ;;  %v6059_v31 = vsel %vm2307_vm11, %v16434_v25, %v5949_v29 }
 0x4f9   :  { %v6451_v40 = vcombine.high %v6428_v43, %v6435_v58  ;;  %v6450_v37 = vcombine.low %v6428_v43, %v6435_v58 }
 0x4fa   :  { %v6021_v51 = vpop.permute.xlu0 %6020  ;;  %v5987_v54 = vpop.permute.xlu1 %5986  ;;  %v6453_v48 = vcombine.high %v6442_v28, %v6449_v15  ;;  %v6452_v36 = vcombine.low %v6442_v28, %v6449_v15  ;;  %v6049_v28 = vrot.slane %v16497_v0, 4  ;;  %v6050_v15 = vrot.slane %v16494_v5, 4 }
 0x4fb   :  { %v6073_v60 = vsel %vm2325_vm15, %v6065_v62, %v6021_v51  ;;  %v6067_v30 = vsel %vm2316_vm10, %v6059_v31, %v5987_v54  ;;  %v6467_v39 = vrot.slane %v6451_v40, %v15670_v2  ;;  %v6460_v16 = vrot.slane %v6450_v37, %v15670_v2  ;;  %v13212_v31 = vld [vmem:[#allocation18 + $0x64] ss:$8 sps:$4 sm:$0xff]  }
 0x4fc   :  { %v6138_v9 = vcombine.low %v6073_v60, %v6046_v23  ;;  %v6139_v18 = vcombine.high %v6073_v60, %v6046_v23  ;;  %v6481_v1 = vrot.slane %v6453_v48, %v15670_v2  ;;  %v6474_v32 = vrot.slane %v6452_v36, %v15670_v2 }
 0x4fd   :  { %v6048_v60 = vsel %vm420_vm4, %v6045_v11, %v6047_v19  ;;  %v6054_v48 = vrot.slane %v16524_v13, 4 }
 0x4fe   :  { %v6146_v35 = vrot.slane %v6138_v9, %v15670_v2  ;;  %v6153_v27 = vrot.slane %v6139_v18, %v15670_v2  ;;  %v6025_v53 = vpop.permute.xlu0 %6024  ;;  %v6483_v18 = vcombine.low %v6467_v39, %v6481_v1  ;;  %v13215_v39 = vld [vmem:[#allocation18 + $0x54] ss:$8 sps:$4 sm:$0xff]  }
 0x4ff   :  { %v6075_v56 = vsel %vm2325_vm15, %v6067_v30, %v6025_v53 }
 0x500   :  { %v6154_v12 = vcombine.high %v6146_v35, %v6146_v35  ;;  %v6155_v52 = vcombine.high %v6153_v27, %v6153_v27  ;;  %v6162_v14 = vrot.slane %v6146_v35, %v15670_v2  ;;  %v6169_v42 = vrot.slane %v6153_v27, %v15670_v2 }
 0x501   :  { %v6238_v29 = vcombine.low %v6075_v56, %v6047_v19 }
 0x502   :  { %v6176_v63 = vrot.slane %v6154_v12, %v15670_v2  ;;  %v6183_v17 = vrot.slane %v6155_v52, %v15670_v2  ;;  %v5947_v3 = vpop.permute.xlu0 %5946  ;;  %v6482_v12 = vcombine.low %v6460_v16, %v6474_v32  ;;  %v6052_v52 = vrot.slane %v16506_v33, 4 }
 0x503   :  { %v6058_v46 = vsel %vm2307_vm11, %v16399_v22, %v5947_v3 }
 0x504   :  { %v6484_v49 = vcombine.low %v6162_v14, %v6176_v63  ;;  %v12378_v8 = vcombine.high %v6162_v14, %v6176_v63  ;;  %v6486_v41 = vcombine.low %v6169_v42, %v6183_v17  ;;  %v12379_v21 = vcombine.high %v6169_v42, %v6183_v17  ;;  %v13207_v63 = vld [vmem:[#allocation18 + $0x70] ss:$8 sps:$4 sm:$0xff]  }
 0x505   :  { %v6245_v17 = vrot.slane %v6238_v29, %v15670_v2  ;;  %v6053_v56 = vsel %vm420_vm4, %v6050_v15, %v6052_v52 }
 0x506   :  { %v5951_v50 = vpop.permute.xlu1 %5950  ;;  %v6494_v55 = vrot.slane %v6484_v49, %v15670_v2  ;;  %v6501_v57 = vrot.slane %v12378_v8, %v15670_v2  ;;  %v6508_v6 = vrot.slane %v6486_v41, %v15670_v2  ;;  %v6515_v45 = vrot.slane %v12379_v21, %v15670_v2  ;;  %v5985_v7 = vpop.permute.xlu0 %5984 }
 0x507   :  { %v6066_v26 = vsel %vm2316_vm10, %v6058_v46, %v5985_v7  ;;  %v6060_v22 = vsel %vm2307_vm11, %v16497_v0, %v5951_v50  ;;  %v6051_v21 = vsel %vm420_vm4, %v6049_v28, %v6050_v15  ;;  %v16688_v46 = vsel %vm420_vm4, %v6052_v52, %v6054_v48  ;;  %vm17671_vm4 = vmmov %vm17667_vm8 }
 0x508   :  { %v6516_v25 = vcombine.low %v6494_v55, %v6501_v57  ;;  %v6517_v38 = vcombine.high %v6494_v55, %v6501_v57  ;;  %v6518_v4 = vcombine.low %v6508_v6, %v6515_v45  ;;  %v6519_v61 = vcombine.high %v6508_v6, %v6515_v45  ;;  %v13210_v6 = vld [vmem:[#allocation18 + $0x60] ss:$8 sps:$4 sm:$0xff]   ;;  %vm17673_vm9 = vmmov %vm17671_vm4 }
 0x509   :  { %v6252_v45 = vrot.slane %v6245_v17, %v15670_v2  ;;  %vm17674_vm13 = vmmov %vm17671_vm4 }
 0x50a   :  { %v6027_v62 = vpop.permute.xlu1 %6026  ;;  %v6526_v23 = vrot.slane %v6516_v25, %v15670_v2  ;;  %v6540_v51 = vrot.slane %v6518_v4, %v15670_v2  ;;  %v6023_v10 = vpop.permute.xlu0 %6022  ;;  %v6533_v34 = vrot.slane %v6517_v38, %v15670_v2  ;;  %v6547_v44 = vrot.slane %v6519_v61, %v15670_v2  ;;  %vm17675_vm14 = vmmov %vm17671_vm4 }
 0x50b   :  { %v6074_v9 = vsel %vm2325_vm15, %v6066_v26, %v6023_v10  ;;  %vm17676_vm7 = vmmov %vm17671_vm4 }
 0x50c   :  { %v6188_v35 = vcombine.low %v6074_v9, %v6048_v60  ;;  %v6189_v27 = vcombine.high %v6074_v9, %v6048_v60  ;;  %v6549_v53 = vcombine.low %v6533_v34, %v6547_v44  ;;  %v6548_v43 = vcombine.low %v6526_v23, %v6540_v51  ;;  %v13213_v44 = vld [vmem:[#allocation18 + $0x50] ss:$8 sps:$4 sm:$0xff]   ;;  %vm17677_vm8 = vmmov %vm17671_vm4 }
 0x50d   :  { %vm17678_vm0 = vmmov %vm17671_vm4 }
 0x50e   :  { %v5953_v58 = vpop.permute.xlu1 %5952  ;;  %v6196_v11 = vrot.slane %v6188_v35, %v15670_v2  ;;  %v6203_v54 = vrot.slane %v6189_v27, %v15670_v2  ;;  %v5989_v14 = vpop.permute.xlu0 %5988  ;;  %v6852_v42 = vpack.c.bf16 %v6549_v53, %v6483_v18  ;;  %v6851_v40 = vpack.c.bf16 %v6548_v43, %v6482_v12  ;;  %v13218_v18 = vld [vmem:[#allocation18 + $0x44] ss:$8 sps:$4 sm:$0xff]   ;;  %vm17679_vm12 = vmmov %vm17678_vm0 }
 0x50f   :  { %v6068_v3 = vsel %vm2316_vm10, %v6060_v22, %v5989_v14  ;;  %v6061_v7 = vsel %vm2307_vm11, %v16494_v5, %v5953_v58 }
 0x510   :  { %v6204_v49 = vcombine.high %v6196_v11, %v6196_v11  ;;  %v6205_v8 = vcombine.high %v6203_v54, %v6203_v54  ;;  %12393 = vmatprep.mubr.msk.bf16.mxu0 %vm2307_vm11, %v6852_v42  ;;  %v6212_v0 = vrot.slane %v6196_v11, %v15670_v2  ;;  %v6219_v41 = vrot.slane %v6203_v54, %v15670_v2 }
 0x511   :  { %v6076_v37 = vsel %vm2325_vm15, %v6068_v3, %v6027_v62  ;;  %6991 = vmatmul.mubr.bf16.vlgmr.msra.gmra.mxu0 %v6851_v40 }
 0x512   :  { %v5991_v36 = vpop.permute.xlu1 %5990  ;;  %v6226_v30 = vrot.slane %v6204_v49, %v15670_v2  ;;  %v6233_v19 = vrot.slane %v6205_v8, %v15670_v2  ;;  %v6253_v50 = vcombine.low %v6076_v37, %v6051_v21  ;;  %v6254_v55 = vcombine.high %v6076_v37, %v6051_v21  ;;  %v5955_v57 = vpop.permute.xlu0 %5954  ;;  %10227 = vmatpush1.bf16.msra.mxu0 %v13207_v63  ;;  %v13216_v63 = vld [vmem:[#allocation18 + $0x40] ss:$8 sps:$4 sm:$0xff]   ;;  %v13221_v49 = vld [vmem:[#allocation18 + $0x34] ss:$8 sps:$4 sm:$0xff]  }
 0x513   :  { %10228 = vmatprep.subr.bf16.mxu0 %v13212_v31  ;;  %v6069_v32 = vsel %vm2316_vm10, %v6061_v7, %v5991_v36  ;;  %v6062_v5 = vsel %vm2307_vm11, %v16506_v33, %v5955_v57  ;;  %v13219_v7 = vld [vmem:[#allocation18 + $0x30] ss:$8 sps:$4 sm:$0xff]  }
 0x514   :  { %v6550_v1 = vcombine.low %v6212_v0, %v6226_v30  ;;  %v12380_v25 = vcombine.high %v6212_v0, %v6226_v30  ;;  %v6552_v38 = vcombine.low %v6219_v41, %v6233_v19  ;;  %v12381_v4 = vcombine.high %v6219_v41, %v6233_v19 }
 0x515   :  { %v6261_v61 = vrot.slane %v6253_v50, %v15670_v2  ;;  %v6268_v16 = vrot.slane %v6254_v55, %v15670_v2 }
 0x516   :  { %v6029_v26 = vpop.permute.xlu1 %6028  ;;  %v16696_v62 = vrot.slane %v6550_v1, %v15670_v2  ;;  %v16699_v23 = vrot.slane %v12380_v25, %v15670_v2  ;;  %v16702_v51 = vrot.slane %v6552_v38, %v15670_v2  ;;  %v16705_v10 = vrot.slane %v12381_v4, %v15670_v2  ;;  %v5993_v34 = vpop.permute.xlu0 %5992  ;;  %10229 = vmatpush1.bf16.msra.mxu0 %v13210_v6  ;;  %v13224_v38 = vld [vmem:[#allocation18 + $0x24] ss:$8 sps:$4 sm:$0xff]  }
 0x517   :  { %v6269_v29 = vcombine.high %v6261_v61, %v6261_v61  ;;  %v6270_v60 = vcombine.high %v6268_v16, %v6268_v16  ;;  %v6277_v33 = vrot.slane %v6261_v61, %v15670_v2  ;;  %v6284_v9 = vrot.slane %v6268_v16, %v15670_v2  ;;  %10230 = vmatprep.subr.bf16.mxu0 %v13215_v39 }
 0x518   :  { %v6583_v35 = vcombine.high %v16696_v62, %v16699_v23  ;;  %v6585_v27 = vcombine.high %v16702_v51, %v16705_v10  ;;  %v6077_v53 = vsel %vm2325_vm15, %v6069_v32, %v6029_v26  ;;  %v6070_v43 = vsel %vm2316_vm10, %v6062_v5, %v5993_v34 }
 0x519   :  { %v6291_v58 = vrot.slane %v6269_v29, %v15670_v2  ;;  %v6298_v28 = vrot.slane %v6270_v60, %v15670_v2  ;;  %v6299_v15 = vcombine.high %v6277_v33, %v6277_v33  ;;  %v6300_v12 = vcombine.high %v6284_v9, %v6284_v9 }
 0x51a   :  { %v5957_v52 = vpop.permute.xlu1 %5956  ;;  %v6616_v22 = vcombine.low %v6252_v45, %v6277_v33  ;;  %v6303_v11 = vcombine.low %v6077_v53, %v6053_v56  ;;  %v6304_v54 = vcombine.high %v6077_v53, %v6053_v56  ;;  %v6031_v42 = vpop.permute.xlu0 %6030  ;;  %10231 = vmatpush1.bf16.msra.mxu0 %v13213_v44 }
 0x51b   :  { %v6063_v14 = vsel %vm2307_vm11, %v16524_v13, %v5957_v52  ;;  %v6301_v17 = vcombine.high %v6291_v58, %v6291_v58  ;;  %v6617_v3 = vcombine.low %v6291_v58, %v6299_v15  ;;  %v6619_v40 = vcombine.low %v6298_v28, %v6300_v12  ;;  %10232 = vmatprep.subr.bf16.mxu0 %v13218_v18 }
 0x51c   :  { %v6302_v31 = vcombine.high %v6298_v28, %v6298_v28  ;;  %v16720_v8 = vrot.slane %v6616_v22, %v15670_v2  ;;  %v6311_v0 = vrot.slane %v6303_v11, %v15670_v2  ;;  %v6318_v41 = vrot.slane %v6304_v54, %v15670_v2  ;;  %v13227_v28 = vld [vmem:[#allocation18 + $0x14] ss:$8 sps:$4 sm:$0xff]  }
 0x51d   :  { %v6078_v21 = vsel %vm2325_vm15, %v6070_v43, %v6031_v42  ;;  %v6618_v37 = vcombine.low %v6301_v17, %v6284_v9  ;;  %v16726_v36 = vrot.slane %v6617_v3, %v15670_v2  ;;  %v16729_v30 = vrot.slane %v6619_v40, %v15670_v2  ;;  %v13222_v9 = vld [vmem:[#allocation18 + $0x20] ss:$8 sps:$4 sm:$0xff]  }
 0x51e   :  { %v6353_v19 = vcombine.low %v6078_v21, %v16688_v46  ;;  %v6319_v50 = vcombine.high %v6311_v0, %v6311_v0  ;;  %v6320_v55 = vcombine.high %v6318_v41, %v6318_v41  ;;  %v6327_v57 = vrot.slane %v6311_v0, %v15670_v2  ;;  %v5995_v45 = vpop.permute.xlu0 %5994  ;;  %10233 = vmatpush1.bf16.msra.mxu0 %v13216_v63  ;;  %v6033_v63 = vpop.permute.xlu1 %6032 }
 0x51f   :  { %v6334_v6 = vrot.slane %v6318_v41, %v15670_v2  ;;  %v16735_v56 = vrot.slane %v6618_v37, %v15670_v2  ;;  %v6354_v39 = vcombine.high %v6078_v21, %v16688_v46  ;;  %v6071_v25 = vsel %vm2316_vm10, %v6063_v14, %v5995_v45  ;;  %10234 = vmatprep.subr.bf16.mxu0 %v13221_v49  ;;  %v13225_v49 = vld [vmem:[#allocation18 + $0x10] ss:$8 sps:$4 sm:$0xff]  }
 0x520   :  { %v6361_v1 = vrot.slane %v6353_v19, %v15670_v2  ;;  %v6341_v4 = vrot.slane %v6319_v50, %v15670_v2  ;;  %v6348_v61 = vrot.slane %v6320_v55, %v15670_v2  ;;  %v6349_v16 = vcombine.high %v6327_v57, %v6327_v57  ;;  %v13230_v19 = vld [vmem:[#allocation18 + $0x4] ss:$8 sps:$4 sm:$0xff]  }
 0x521   :  { %v6350_v32 = vcombine.high %v6334_v6, %v6334_v6  ;;  %v6682_v5 = vcombine.low %v6302_v31, %v6327_v57  ;;  %v6368_v26 = vrot.slane %v6354_v39, %v15670_v2  ;;  %v6079_v31 = vsel %vm2325_vm15, %v6071_v25, %v6033_v63  ;;  %v13234_v63 = vld [vmem:[#allocation18 + $0xe0] ss:$8 sps:$4 sm:$0xff]   ;;  %vm17672_vm15 = vmmov %vm17671_vm4 }
 0x522   :  { %v6369_v34 = vcombine.high %v6361_v1, %v6361_v1  ;;  %v6377_v44 = vrot.slane %v6361_v1, %v15670_v2  ;;  %v6351_v29 = vcombine.high %v6341_v4, %v6341_v4  ;;  %v6683_v46 = vcombine.low %v6341_v4, %v6349_v16  ;;  %10235 = vmatpush1.bf16.msra.mxu0 %v13219_v7 }
 0x523   :  { %v6685_v60 = vcombine.low %v6348_v61, %v6350_v32  ;;  %v6352_v33 = vcombine.high %v6348_v61, %v6348_v61  ;;  %v16745_v18 = vrot.slane %v6682_v5, %v15670_v2  ;;  %v6370_v53 = vcombine.high %v6368_v26, %v6368_v26  ;;  %10236 = vmatprep.subr.bf16.mxu0 %v13224_v38  ;;  %v13228_v38 = vld [vmem:[#allocation18] ss:$8 sps:$4 sm:$0xff]   ;;  %v13233_v32 = vld [vmem:[#allocation18 + $0xf4] ss:$8 sps:$4 sm:$0xff]  }
 0x524   :  { %v6384_v43 = vrot.slane %v6368_v26, %v15670_v2  ;;  %v6391_v58 = vrot.slane %v6369_v34, %v15670_v2  ;;  %v6684_v15 = vcombine.low %v6351_v29, %v6334_v6  ;;  %v16750_v12 = vrot.slane %v6683_v46, %v15670_v2 }
 0x525   :  { %v16753_v52 = vrot.slane %v6685_v60, %v15670_v2  ;;  %v6399_v22 = vcombine.high %v6377_v44, %v6377_v44  ;;  %v6398_v11 = vrot.slane %v6370_v53, %v15670_v2  ;;  %v6748_v42 = vcombine.low %v6352_v33, %v6377_v44 }
 0x526   :  { %v6400_v54 = vcombine.high %v6384_v43, %v6384_v43  ;;  %v6401_v14 = vcombine.high %v6391_v58, %v6391_v58  ;;  %v6706_v17 = vrot.slane %v6684_v15, %v15670_v2  ;;  %v6715_v3 = vcombine.high %v16745_v18, %v16750_v12  ;;  %10237 = vmatpush1.bf16.msra.mxu0 %v13222_v9  ;;  %v13231_v9 = vld [vmem:[#allocation18 + $0xf0] ss:$8 sps:$4 sm:$0xff]  }
 0x527   :  { %v6749_v40 = vcombine.low %v6391_v58, %v6399_v22  ;;  %v6402_v0 = vcombine.high %v6398_v11, %v6398_v11  ;;  %v6758_v37 = vrot.slane %v6748_v42, %v15670_v2  ;;  %10238 = vmatprep.subr.bf16.mxu0 %v13227_v28  ;;  %v6403_v57 = vcombine.low %v6079_v31, %v6054_v48 }
 0x528   :  { %v6750_v41 = vcombine.low %v6401_v14, %v6384_v43  ;;  %v6751_v21 = vcombine.low %v6398_v11, %v6400_v54  ;;  %v6717_v50 = vcombine.high %v6706_v17, %v16753_v52  ;;  %v6599_v6 = vrot.slane %v6583_v35, %v15670_v2 }
 0x529   :  { %v6765_v55 = vrot.slane %v6749_v40, %v15670_v2  ;;  %v6613_v39 = vrot.slane %v6585_v27, %v15670_v2  ;;  %v6649_v1 = vcombine.high %v16720_v8, %v16726_v36  ;;  %v6410_v13 = vrot.slane %v6403_v57, %v15670_v2 }
 0x52a   :  { %v6772_v45 = vrot.slane %v6750_v41, %v15670_v2  ;;  %v6779_v7 = vrot.slane %v6751_v21, %v15670_v2  ;;  %v6651_v48 = vcombine.high %v16735_v56, %v16729_v30  ;;  %v6582_v35 = vcombine.low %v16696_v62, %v16699_v23  ;;  %10239 = vmatpush1.bf16.msra.mxu0 %v13225_v49  ;;  %v13242_v21 = vld [vmem:[#allocation18 + $0xc4] ss:$8 sps:$4 sm:$0xff]  }
 0x52b   :  { %v6781_v25 = vcombine.high %v6758_v37, %v6765_v55  ;;  %v6615_v61 = vcombine.low %v6599_v6, %v6613_v39  ;;  %v6665_v16 = vrot.slane %v6649_v1, %v15670_v2  ;;  %v6584_v27 = vcombine.low %v16702_v51, %v16705_v10  ;;  %10240 = vmatprep.subr.bf16.mxu0 %v13230_v19  ;;  %v13243_v6 = vld [vmem:[#allocation18 + $0xb0] ss:$8 sps:$4 sm:$0xff]   ;;  %v13246_v39 = vld [vmem:[#allocation18 + $0xa0] ss:$8 sps:$4 sm:$0xff]  }
 0x52c   :  { %v6783_v4 = vcombine.high %v6772_v45, %v6779_v7  ;;  %v6417_v5 = vrot.slane %v6410_v13, %v15670_v2  ;;  %v6679_v26 = vrot.slane %v6651_v48, %v15670_v2  ;;  %v6592_v34 = vrot.slane %v6582_v35, %v15670_v2  ;;  %v13249_v13 = vld [vmem:[#allocation18 + $0x90] ss:$8 sps:$4 sm:$0xff]   ;;  %v13254_v48 = vld [vmem:[#allocation18 + $0x84] ss:$8 sps:$4 sm:$0xff]   ;;  %v13252_v35 = vld [vmem:[#allocation18 + $0x80] ss:$8 sps:$4 sm:$0xff]  }
 0x52d   :  { %v6648_v62 = vcombine.low %v16720_v8, %v16726_v36  ;;  %v6606_v23 = vrot.slane %v6584_v27, %v15670_v2  ;;  %v6650_v44 = vcombine.low %v16735_v56, %v16729_v30  ;;  %v6731_v29 = vrot.slane %v6715_v3, %v15670_v2  ;;  %v13236_v30 = vld [vmem:[#allocation18 + $0xe4] ss:$8 sps:$4 sm:$0xff]  }
 0x52e   :  { %v6745_v51 = vrot.slane %v6717_v50, %v15670_v2  ;;  %v6814_v10 = vcombine.low %v6402_v0, %v6417_v5  ;;  %v6681_v46 = vcombine.low %v6665_v16, %v6679_v26  ;;  %v6797_v33 = vrot.slane %v6781_v25, %v15670_v2  ;;  %10241 = vmatpush1.bf16.msra.mxu0 %v13228_v38  ;;  %v13237_v0 = vld [vmem:[#allocation18 + $0xd0] ss:$8 sps:$4 sm:$0xff]   ;;  %v13240_v50 = vld [vmem:[#allocation18 + $0xc0] ss:$8 sps:$4 sm:$0xff]   ;;  %v13251_v25 = vld [vmem:[#allocation18 + $0x94] ss:$8 sps:$4 sm:$0xff]  }
 0x52f   :  { %v6658_v60 = vrot.slane %v6648_v62, %v15670_v2  ;;  %v6614_v53 = vcombine.low %v6592_v34, %v6606_v23  ;;  %v6672_v8 = vrot.slane %v6650_v44, %v15670_v2  ;;  %v6811_v43 = vrot.slane %v6783_v4, %v15670_v2  ;;  %10242 = vmatprep.subr.bf16.mxu0 %v13233_v32  ;;  %v13257_v38 = vld [vmem:[#allocation18 + $0x274] ss:$8 sps:$4 sm:$0xff]   ;;  %v12301_v4 = vld [vmem:[#allocation9] ss:$0 sm:$0xff] }
 0x530   :  { %v6747_v36 = vcombine.low %v6731_v29, %v6745_v51  ;;  %v6854_v56 = vpack.c.bf16 %v6681_v46, %v6615_v61  ;;  %v6714_v58 = vcombine.low %v16745_v18, %v16750_v12  ;;  %v6716_v28 = vcombine.low %v6706_v17, %v16753_v52  ;;  %v13239_v12 = vld [vmem:[#allocation18 + $0xd4] ss:$8 sps:$4 sm:$0xff]  }
 0x531   :  { %v6780_v15 = vcombine.low %v6758_v37, %v6765_v55  ;;  %v6680_v22 = vcombine.low %v6658_v60, %v6672_v8  ;;  %v6813_v11 = vcombine.low %v6797_v33, %v6811_v43  ;;  %v6782_v54 = vcombine.low %v6772_v45, %v6779_v7  ;;  %v13245_v55 = vld [vmem:[#allocation18 + $0xb4] ss:$8 sps:$4 sm:$0xff]   ;;  %v13248_v7 = vld [vmem:[#allocation18 + $0xa4] ss:$8 sps:$4 sm:$0xff]  }
 0x532   :  { %v6821_v14 = vrot.slane %v6814_v10, %v15670_v2  ;;  %12394 = vmatprep.mubr.msk.bf16.mxu0 %vm2307_vm11, %v6854_v56  ;;  %v6738_v42 = vrot.slane %v6716_v28, %v15670_v2  ;;  %10243 = vmatpush2.bf16.msra.mxu0 %v13231_v9  ;;  %v6724_v17 = vrot.slane %v6714_v58, %v15670_v2  ;;  %v13255_v28 = vld [vmem:[#allocation18 + $0x270] ss:$8 sps:$4 sm:$0xff]  }
 0x533   :  { %v6853_v3 = vpack.c.bf16 %v6680_v22, %v6614_v53  ;;  %v6856_v40 = vpack.c.bf16 %v6813_v11, %v6747_v36  ;;  %v6790_v31 = vrot.slane %v6780_v15, %v15670_v2  ;;  %v6804_v18 = vrot.slane %v6782_v54, %v15670_v2  ;;  %10244 = vmatprep.subr.bf16.mxu0 %v13236_v30 }
 0x534   :  { %v6822_v52 = vcombine.high %v6821_v14, %v6821_v14  ;;  %v6746_v41 = vcombine.low %v6724_v17, %v6738_v42  ;;  %v6829_v45 = vrot.slane %v6821_v14, %v15670_v2  ;;  %v13260_v14 = vld [vmem:[#allocation18 + $0x264] ss:$8 sps:$4 sm:$0xff]  }
 0x535   :  { %6999 = vmatmul.mubr.bf16.gmra.mxu0 %v6853_v3  ;;  %v6812_v49 = vcombine.low %v6790_v31, %v6804_v18 }
 0x536   :  { %12395 = vmatprep.mubr.msk.bf16.mxu0 %vm2307_vm11, %v6856_v40  ;;  %10245 = vmatpush2.bf16.msra.mxu0 %v13234_v63  ;;  %v6836_v37 = vrot.slane %v6822_v52, %v15670_v2  ;;  %v6857_v1 = vpack.c.bf16 %v6829_v45, %v6829_v45 }
 0x537   :  { %10246 = vmatprep.subr.bf16.mxu0 %v13239_v12  ;;  %v6855_v19 = vpack.c.bf16 %v6812_v49, %v6746_v41  ;;  %v13258_v49 = vld [vmem:[#allocation18 + $0x260] ss:$8 sps:$4 sm:$0xff]  }
 0x538   :  { %v6858_v57 = vpack.c.bf16 %v6836_v37, %v6836_v37 }
 0x53a   :  { %10247 = vmatpush2.bf16.msra.mxu0 %v13237_v0 }
 0x53b   :  { %10248 = vmatprep.subr.bf16.mxu0 %v13242_v21 }
 0x53d   :  { %7007 = vmatmul.mubr.bf16.gmra.mxu0 %v6855_v19  ;;  %v13263_v19 = vld [vmem:[#allocation18 + $0x254] ss:$8 sps:$4 sm:$0xff]  }
 0x53e   :  { %12396 = vmatprep.mubr.msk.bf16.mxu0 %vm2307_vm11, %v6858_v57  ;;  %10249 = vmatpush2.bf16.msra.mxu0 %v13240_v50 }
 0x53f   :  { %10250 = vmatprep.subr.bf16.mxu0 %v13245_v55 }
 0x542   :  { %10251 = vmatpush2.bf16.msra.mxu0 %v13243_v6 }
 0x543   :  { %10252 = vmatprep.subr.bf16.mxu0 %v13248_v7 }
 0x545   :  { %7015 = vmatmul.mubr.bf16.gmra.mxu0 %v6857_v1 }
 0x546   :  { %10253 = vmatpush2.bf16.msra.mxu0 %v13246_v39  ;;  %v13261_v39 = vld [vmem:[#allocation18 + $0x250] ss:$8 sps:$4 sm:$0xff]  }
 0x547   :  { %10254 = vmatprep.subr.bf16.mxu0 %v13251_v25 }
 0x54a   :  { %10255 = vmatpush2.bf16.msra.mxu0 %v13249_v13  ;;  %v13266_v13 = vld [vmem:[#allocation18 + $0x244] ss:$8 sps:$4 sm:$0xff]  }
 0x54b   :  { %10256 = vmatprep.subr.bf16.mxu0 %v13254_v48 }
 0x54e   :  { %10257 = vmatpush2.bf16.msra.mxu0 %v13252_v35 }
 0x54f   :  { %10308 = vmatprep.subr.bf16.mxu0 %v13257_v38  ;;  %v13264_v38 = vld [vmem:[#allocation18 + $0x240] ss:$8 sps:$4 sm:$0xff]  }
 0x592   :  { %v4079_v61 = vpop.f32.mrf.mxu0 }
 0x593   :  { %v4080_v16 = vadd.f32 %v12301_v4, %v4079_v61 }
 0x594   :  { %v4081_v27 = vpop.f32.mrf.mxu0 }
 0x595   :  { %v16812_v32 = vmax.f32 %v4080_v16, 0.0 }
 0x596   :  { %v4082_v5 = vpop.f32.mrf.mxu0 }
 0x597   :  { %v4083_v26 = vadd.f32 %v12301_v4, %v4082_v5  ;;  %v4099_v62 = vrot.slane %v16812_v32, 1  ;;  %v4115_v29 = vrot.slane %v16812_v32, 5  ;;  %v4096_v9 = vsel %vm1283_vm5, %v16812_v32, 0.0  ;;  %v13269_v5 = vld [vmem:[#allocation18 + $0x234] ss:$8 sps:$4 sm:$0xff]  }
 0x598   :  { %v4084_v34 = vpop.f32.mrf.mxu0  ;;  %v4107_v30 = vrot.slane %v16812_v32, 3  ;;  %v4103_v11 = vrot.slane %v16812_v32, 2  ;;  %v4122_v37 = vrot.slane %v16812_v32, 7  ;;  %v4118_v1 = vrot.slane %v16812_v32, 6 }
 0x599   :  { %v16815_v23 = vmax.f32 %v4083_v26, 0.0  ;;  %v4100_v33 = vsel %vm1283_vm5, %v4099_v62, 0.0  ;;  %v4116_v22 = vsel %vm1283_vm5, %v4115_v29, 0.0  ;;  %v13352_v34 = vld [vmem:[#allocation15 + $0x30] sm:$0xff]  }
 0x59a   :  { %v4087_v44 = vpop.f32.mrf.mxu0  ;;  %v4108_v41 = vsel %vm1283_vm5, %v4107_v30, 0.0  ;;  %v4104_v21 = vsel %vm1283_vm5, %v4103_v11, 0.0  ;;  %v4123_v6 = vsel %vm1283_vm5, %v4122_v37, 0.0  ;;  %v4119_v61 = vsel %vm1283_vm5, %v4118_v1, 0.0  ;;  %v13267_v29 = vld [vmem:[#allocation18 + $0x230] ss:$8 sps:$4 sm:$0xff]  }
 0x59b   :  { %v4088_v51 = vadd.f32 %v12301_v4, %v4087_v44  ;;  %v4101_v10 = vrot.slane %v16815_v23, 4  ;;  %v4097_v46 = vrot.slane %v16815_v23, 3  ;;  %v4129_v53 = vrot.slane %v16815_v23, 1  ;;  %v13351_v4 = vld [vmem:[#allocation15 + $0x38] sm:$0xff]   ;;  %v13356_v30 = vld [vmem:[#allocation15 + $0x10] sm:$0xff]  }
 0x59c   :  { %v4089_v60 = vpop.f32.mrf.mxu0  ;;  %v4109_v18 = vrot.slane %v16815_v23, 6  ;;  %v4126_v52 = vsel %vm1283_vm5, %v16815_v23, 0.0  ;;  %v4105_v17 = vrot.slane %v16815_v23, 5  ;;  %v4133_v16 = vrot.slane %v16815_v23, 2  ;;  %7792 = vmatpush1.bf16.msra.mxu1 %v13351_v4  ;;  %v13272_v23 = vld [vmem:[#allocation18 + $0x224] ss:$8 sps:$4 sm:$0xff]  }
 0x59d   :  { %v16824_v8 = vmax.f32 %v4088_v51, 0.0  ;;  %v4102_v36 = vsel %vm17671_vm4, %v4101_v10, %v4100_v33  ;;  %v4098_v43 = vsel %vm17672_vm15, %v4097_v46, %v4096_v9  ;;  %v4130_v40 = vsel %vm1283_vm5, %v4129_v53, 0.0  ;;  %vm17680_vm4 = vmmov %vm17678_vm0  ;;  %7793 = vmatprep.subr.bf16.mxu1 %v17632_v20  ;;  %v13353_v51 = vld [vmem:[#allocation15 + $0x28] sm:$0xff]   ;;  %v13354_v60 = vld [vmem:[#allocation15 + $0x20] sm:$0xff]  }
 0x59e   :  { %v4090_v56 = vpop.f32.mrf.mxu0  ;;  %v7887_v58 = vpack.c.bf16 %v4102_v36, %v4102_v36  ;;  %v7886_v15 = vpack.c.bf16 %v4098_v43, %v4098_v43  ;;  %v16850_v50 = vsel %vm17676_vm7, %v4109_v18, %v4108_v41  ;;  %v16853_v55 = vsel %vm17677_vm8, %v4105_v17, %v4104_v21  ;;  %vm17681_vm15 = vmmov %vm17678_vm0  ;;  %v13270_v10 = vld [vmem:[#allocation18 + $0x220] ss:$8 sps:$4 sm:$0xff]   ;;  %v13273_v33 = vld [vmem:[#allocation18 + $0x210] ss:$8 sps:$4 sm:$0xff]  }
 0x59f   :  { %v4117_v54 = vsel %vm17673_vm9, %v16824_v8, %v4116_v22  ;;  %v4131_v42 = vrot.slane %v16824_v8, 4  ;;  %v4127_v31 = vrot.slane %v16824_v8, 3  ;;  %v4124_v57 = vrot.slane %v16824_v8, 2  ;;  %v13278_v9 = vld [vmem:[#allocation18 + $0x204] ss:$8 sps:$4 sm:$0xff]   ;;  %v13355_v53 = vld [vmem:[#allocation15 + $0x18] sm:$0xff]   ;;  %vm17682_vm9 = vmmov %vm17678_vm0 }
 0x5a0   :  { %v4091_v63 = vpop.f32.mrf.mxu0  ;;  %10258 = vmatprep.mubr.bf16.mxu0 %v7887_v58  ;;  %v7891_v3 = vpack.c.bf16 %v4117_v54, %v4117_v54  ;;  %v4138_v7 = vrot.slane %v16824_v8, 6  ;;  %v4137_v25 = vsel %vm1283_vm5, %v4097_v46, 0.0  ;;  %v4120_v48 = vrot.slane %v16824_v8, 1  ;;  %7794 = vmatpush1.bf16.msra.mxu1 %v13352_v34  ;;  %v13275_v46 = vld [vmem:[#allocation18 + $0x214] ss:$8 sps:$4 sm:$0xff]   ;;  %vm17689_vm7 = vmmov %vm17678_vm0 }
 0x5a1   :  { %10259 = vmatmul.mubr.bf16.vlgmr.msra.gmra.mxu0 %v7886_v15  ;;  %v16838_v12 = vsel %vm17674_vm13, %v4131_v42, %v4130_v40  ;;  %v16844_v0 = vsel %vm17675_vm14, %v4127_v31, %v4126_v52  ;;  %v16858_v45 = vsel %vm17678_vm0, %v4124_v57, %v4123_v6  ;;  %v4135_v27 = vrot.slane %v16824_v8, 5  ;;  %7795 = vmatprep.subr.bf16.mxu1 %v17632_v20  ;;  %v13276_v36 = vld [vmem:[#allocation18 + $0x200] ss:$8 sps:$4 sm:$0xff]   ;;  %v13281_v43 = vld [vmem:[#allocation18 + $0x2f4] ss:$8 sps:$4 sm:$0xff]   ;;  %vm17687_vm13 = vmmov %vm17678_vm0 }
 0x5a2   :  { %10309 = vmatpush1.bf16.msra.mxu0 %v13255_v28  ;;  %10340 = vmatprep.mubr.bf16.mxu0 %v7891_v3  ;;  %v16865_v35 = vsel %vm17679_vm12, %v4138_v7, %v4137_v25  ;;  %v16871_v26 = vsel %vm17680_vm4, %v4120_v48, %v4119_v61  ;;  %v4134_v62 = vsel %vm1283_vm5, %v4133_v16, 0.0  ;;  %v13279_v56 = vld [vmem:[#allocation18 + $0x2f0] ss:$8 sps:$4 sm:$0xff]   ;;  %v13284_v58 = vld [vmem:[#allocation18 + $0x2e4] ss:$8 sps:$4 sm:$0xff]   ;;  %v4111_v57 = vrot.slane %v16812_v32, 4  ;;  %vm17688_vm14 = vmmov %vm17678_vm0 }
 0x5a3   :  { %10310 = vmatprep.subr.bf16.mxu0 %v13260_v14  ;;  %v16876_v44 = vsel %vm17681_vm15, %v4135_v27, %v4134_v62  ;;  %v13357_v28 = vld [vmem:[#allocation15 + $0x8] sm:$0xff]   ;;  %v13287_v22 = vld [vmem:[#allocation18 + $0x2d4] ss:$8 sps:$4 sm:$0xff]   ;;  %v13285_v11 = vld [vmem:[#allocation18 + $0x2d0] ss:$8 sps:$4 sm:$0xff]   ;;  %v4113_v7 = vrot.slane %v16824_v8, 7 }
 0x5a4   :  { %7796 = vmatpush1.bf16.msra.mxu1 %v13353_v51  ;;  %v13282_v15 = vld [vmem:[#allocation18 + $0x2e0] ss:$8 sps:$4 sm:$0xff]   ;;  %v13290_v54 = vld [vmem:[#allocation18 + $0x2c4] ss:$8 sps:$4 sm:$0xff]   ;;  %v13293_v42 = vld [vmem:[#allocation18 + $0x2b4] ss:$8 sps:$4 sm:$0xff]  }
 0x5a5   :  { %7797 = vmatprep.subr.bf16.mxu1 %v17632_v20  ;;  %v13288_v14 = vld [vmem:[#allocation18 + $0x2c0] ss:$8 sps:$4 sm:$0xff]   ;;  %v13291_v63 = vld [vmem:[#allocation18 + $0x2b0] ss:$8 sps:$4 sm:$0xff]   ;;  %v13296_v3 = vld [vmem:[#allocation18 + $0x2a4] ss:$8 sps:$4 sm:$0xff]  }
 0x5a6   :  { %10311 = vmatpush1.bf16.msra.mxu0 %v13258_v49  ;;  %v16884_v31 = vld [vmem:[#allocation13] ss:$0 sm:$0xff]  ;;  %v13294_v52 = vld [vmem:[#allocation18 + $0x2a0] ss:$8 sps:$4 sm:$0xff]   ;;  %v13297_v37 = vld [vmem:[#allocation18 + $0x290] ss:$8 sps:$4 sm:$0xff]  }
 0x5a7   :  { %10312 = vmatprep.subr.bf16.mxu0 %v13263_v19  ;;  %v13299_v17 = vld [vmem:[#allocation18 + $0x294] ss:$8 sps:$4 sm:$0xff]   ;;  %v13302_v19 = vld [vmem:[#allocation18 + $0x284] ss:$8 sps:$4 sm:$0xff]   ;;  %v13300_v1 = vld [vmem:[#allocation18 + $0x280] ss:$8 sps:$4 sm:$0xff]  }
 0x5a8   :  { %7798 = vmatpush1.bf16.msra.mxu1 %v13354_v60  ;;  %v4112_v25 = vsel %vm1283_vm5, %v4111_v57, 0.0  ;;  %v13303_v16 = vld [vmem:[#allocation18 + $0x470] ss:$8 sps:$4 sm:$0xff]   ;;  %v13308_v27 = vld [vmem:[#allocation18 + $0x464] ss:$8 sps:$4 sm:$0xff]   ;;  %vm17690_vm8 = vmmov %vm17678_vm0 }
 0x5a9   :  { %7799 = vmatprep.subr.bf16.mxu1 %v17632_v20  ;;  %v4114_v4 = vsel %vm17682_vm9, %v4113_v7, %v4112_v25  ;;  %v13358_v51 = vld [vmem:[#allocation15] sm:$0xff]   ;;  %vm17692_vm12 = vmmov %vm17678_vm0 }
 0x5aa   :  { %10313 = vmatpush1.bf16.msra.mxu0 %v13261_v39  ;;  %v7890_v32 = vpack.c.bf16 %v4114_v4, %v4114_v4  ;;  %v13323_v25 = vld [vmem:[#allocation18 + $0x414] ss:$8 sps:$4 sm:$0xff]   ;;  %vm17693_vm4 = vmmov %vm17678_vm0 }
 0x5ab   :  { %10314 = vmatprep.subr.bf16.mxu0 %v13266_v13  ;;  %v13305_v13 = vld [vmem:[#allocation18 + $0x474] ss:$8 sps:$4 sm:$0xff]   ;;  %vm17694_vm15 = vmmov %vm17678_vm0 }
 0x5ac   :  { %7800 = vmatpush1.bf16.msra.mxu1 %v13355_v53 }
 0x5ad   :  { %7801 = vmatprep.subr.bf16.mxu1 %v17632_v20 }
 0x5ae   :  { %10315 = vmatpush1.bf16.msra.mxu0 %v13264_v38 }
 0x5af   :  { %10316 = vmatprep.subr.bf16.mxu0 %v13269_v5 }
 0x5b0   :  { %7802 = vmatpush1.bf16.msra.mxu1 %v13356_v30 }
 0x5b1   :  { %7803 = vmatprep.subr.bf16.mxu1 %v17632_v20 }
 0x5b2   :  { %10317 = vmatpush1.bf16.msra.mxu0 %v13267_v29  ;;  %v7895_v29 = vpack.c.bf16 %v16838_v12, %v16838_v12  ;;  %v13314_v12 = vld [vmem:[#allocation18 + $0x444] ss:$8 sps:$4 sm:$0xff]  }
 0x5b3   :  { %10318 = vmatprep.subr.bf16.mxu0 %v13272_v23  ;;  %v13306_v23 = vld [vmem:[#allocation18 + $0x460] ss:$8 sps:$4 sm:$0xff]  }
 0x5b4   :  { %7804 = vmatpush1.bf16.msra.mxu1 %v13357_v28 }
 0x5b5   :  { %7805 = vmatprep.subr.bf16.mxu1 %v17632_v20 }
 0x5b6   :  { %10319 = vmatpush1.bf16.msra.mxu0 %v13270_v10  ;;  %v13311_v10 = vld [vmem:[#allocation18 + $0x454] ss:$8 sps:$4 sm:$0xff]  }
 0x5b7   :  { %10320 = vmatprep.subr.bf16.mxu0 %v13275_v46 }
 0x5b8   :  { %7806 = vmatpush1.bf16.msra.mxu1 %v13358_v51 }
 0x5b9   :  { %7815 = vmatprep.subr.bf16.mxu1 %v17632_v20 }
 0x5ba   :  { %10321 = vmatpush1.bf16.msra.mxu0 %v13273_v33 }
 0x5bb   :  { %10322 = vmatprep.subr.bf16.mxu0 %v13278_v9 }
 0x5be   :  { %10323 = vmatpush1.bf16.msra.mxu0 %v13276_v36  ;;  %v13309_v36 = vld [vmem:[#allocation18 + $0x450] ss:$8 sps:$4 sm:$0xff]  }
 0x5bf   :  { %10324 = vmatprep.subr.bf16.mxu0 %v13281_v43 }
 0x5c2   :  { %10325 = vmatpush2.bf16.msra.mxu0 %v13279_v56 }
 0x5c3   :  { %10326 = vmatprep.subr.bf16.mxu0 %v13284_v58 }
 0x5c6   :  { %10327 = vmatpush2.bf16.msra.mxu0 %v13282_v15 }
 0x5c7   :  { %10328 = vmatprep.subr.bf16.mxu0 %v13287_v22  ;;  %v13312_v22 = vld [vmem:[#allocation18 + $0x440] ss:$8 sps:$4 sm:$0xff]  }
 0x5ca   :  { %10329 = vmatpush2.bf16.msra.mxu0 %v13285_v11 }
 0x5cb   :  { %10330 = vmatprep.subr.bf16.mxu0 %v13290_v54  ;;  %v13317_v54 = vld [vmem:[#allocation18 + $0x434] ss:$8 sps:$4 sm:$0xff]  }
 0x5ce   :  { %10331 = vmatpush2.bf16.msra.mxu0 %v13288_v14 }
 0x5cf   :  { %10332 = vmatprep.subr.bf16.mxu0 %v13293_v42 }
 0x5d1   :  { %v6992_v40 = vpop.f32.mrf.mxu0 }
 0x5d2   :  { %10333 = vmatpush2.bf16.msra.mxu0 %v13291_v63  ;;  %v6993_v49 = vadd.f32 %v16884_v31, %v6992_v40 }
 0x5d3   :  { %v6994_v18 = vpop.f32.mrf.mxu0  ;;  %10334 = vmatprep.subr.bf16.mxu0 %v13296_v3 }
 0x5d4   :  { %v7022_v6 = vmax.f32 %v6993_v49, 0.0 }
 0x5d5   :  { %v6995_v41 = vpop.f32.mrf.mxu0 }
 0x5d6   :  { %10335 = vmatpush2.bf16.msra.mxu0 %v13294_v52  ;;  %v6996_v39 = vadd.f32 %v16884_v31, %v6995_v41  ;;  %v7036_v48 = vcombine.high %v7022_v6, %v7022_v6  ;;  %v7043_v38 = vrot.slane %v7022_v6, %v15670_v2  ;;  %v13315_v52 = vld [vmem:[#allocation18 + $0x430] ss:$8 sps:$4 sm:$0xff]   ;;  %v13320_v41 = vld [vmem:[#allocation18 + $0x424] ss:$8 sps:$4 sm:$0xff]  }
 0x5d7   :  { %v6997_v21 = vpop.f32.mrf.mxu0  ;;  %10336 = vmatprep.subr.bf16.mxu0 %v13299_v17 }
 0x5d8   :  { %v7023_v61 = vmax.f32 %v6996_v39, 0.0  ;;  %v7050_v8 = vrot.slane %v7036_v48, %v15670_v2  ;;  %v7051_v5 = vcombine.high %v7043_v38, %v7043_v38  ;;  %v7059_v53 = vrot.slane %v7043_v38, %v15670_v2 }
 0x5da   :  { %10337 = vmatpush2.bf16.msra.mxu0 %v13297_v37  ;;  %v7085_v34 = vcombine.high %v7023_v61, %v7023_v61  ;;  %v7092_v62 = vrot.slane %v7023_v61, %v15670_v2  ;;  %v7052_v46 = vcombine.high %v7050_v8, %v7050_v8  ;;  %v7073_v60 = vrot.slane %v7051_v5, %v15670_v2  ;;  %v13326_v5 = vld [vmem:[#allocation18 + $0x404] ss:$8 sps:$4 sm:$0xff]  }
 0x5db   :  { %10338 = vmatprep.subr.bf16.mxu0 %v13302_v19  ;;  %v7066_v28 = vrot.slane %v7050_v8, %v15670_v2  ;;  %v7081_v15 = vcombine.high %v7059_v53, %v7059_v53 }
 0x5dc   :  { %v7099_v33 = vrot.slane %v7085_v34, %v15670_v2  ;;  %v7100_v9 = vcombine.high %v7092_v62, %v7092_v62  ;;  %v7080_v43 = vrot.slane %v7052_v46, %v15670_v2  ;;  %v7083_v30 = vcombine.high %v7073_v60, %v7073_v60 }
 0x5dd   :  { %v7108_v11 = vrot.slane %v7092_v62, %v15670_v2  ;;  %v7392_v18 = vmax.f32 %v7059_v53, %v7073_v60  ;;  %v7082_v21 = vcombine.high %v7066_v28, %v7066_v28  ;;  %v13324_v53 = vld [vmem:[#allocation18 + $0x400] ss:$8 sps:$4 sm:$0xff]  }
 0x5de   :  { %10339 = vmatpush2.bf16.msra.mxu0 %v13300_v1  ;;  %v7101_v56 = vcombine.high %v7099_v33, %v7099_v33  ;;  %v7122_v58 = vrot.slane %v7100_v9, %v15670_v2  ;;  %v7393_v14 = vmax.f32 %v7081_v15, %v7083_v30  ;;  %v7394_v42 = vmax.f32 %v7066_v28, %v7080_v43  ;;  %v13318_v1 = vld [vmem:[#allocation18 + $0x420] ss:$8 sps:$4 sm:$0xff]  }
 0x5df   :  { %10390 = vmatprep.subr.bf16.mxu0 %v13305_v13  ;;  %v7084_v40 = vcombine.high %v7080_v43, %v7080_v43  ;;  %v7115_v17 = vrot.slane %v7099_v33, %v15670_v2  ;;  %v7130_v49 = vcombine.high %v7108_v11, %v7108_v11  ;;  %v7440_v6 = vcombine.low %v7392_v18, %v7392_v18 }
 0x5e0   :  { %v7129_v63 = vrot.slane %v7101_v56, %v15670_v2  ;;  %v7132_v3 = vcombine.high %v7122_v58, %v7122_v58  ;;  %v7441_v37 = vcombine.low %v7393_v14, %v7394_v42  ;;  %v7396_v39 = vmax.f32 %v7108_v11, %v7122_v58  ;;  %v13329_v56 = vld [vmem:[#allocation18 + $0x4f4] ss:$8 sps:$4 sm:$0xff]  }
 0x5e1   :  { %10341 = vmatmul.mubr.bf16.vlgmr.msra.gmra.mxu0 %v7890_v32  ;;  %v7395_v7 = vmax.f32 %v7082_v21, %v7084_v40  ;;  %v7450_v61 = vrot.slane %v7440_v6, %v15670_v2  ;;  %v7131_v60 = vcombine.high %v7115_v17, %v7115_v17 }
 0x5e2   :  { %10391 = vmatpush1.bf16.msra.mxu0 %v13303_v16  ;;  %10422 = vmatprep.mubr.bf16.mxu0 %v7895_v29  ;;  %v7397_v19 = vmax.f32 %v7130_v49, %v7132_v3  ;;  %v7398_v57 = vmax.f32 %v7115_v17, %v7129_v63  ;;  %v7457_v13 = vrot.slane %v7441_v37, %v15670_v2  ;;  %v13332_v37 = vld [vmem:[#allocation18 + $0x4e4] ss:$8 sps:$4 sm:$0xff]  }
 0x5e3   :  { %10392 = vmatprep.subr.bf16.mxu0 %v13308_v27  ;;  %v7442_v16 = vcombine.low %v7395_v7, %v7396_v39  ;;  %v13321_v27 = vld [vmem:[#allocation18 + $0x410] ss:$8 sps:$4 sm:$0xff]   ;;  %v7133_v62 = vcombine.high %v7129_v63, %v7129_v63 }
 0x5e4   :  { %v7443_v38 = vcombine.low %v7397_v19, %v7398_v57  ;;  %v16910_v34 = vcombine.low %v7450_v61, %v7457_v13 }
 0x5e5   :  { %v7464_v33 = vrot.slane %v7442_v16, %v15670_v2  ;;  %v7399_v58 = vmax.f32 %v7131_v60, %v7133_v62 }
 0x5e6   :  { %10393 = vmatpush1.bf16.msra.mxu0 %v13306_v23  ;;  %v7471_v23 = vrot.slane %v7443_v38, %v15670_v2  ;;  %v7480_v15 = vrot.slane %v16910_v34, %v15670_v2 }
 0x5e7   :  { %10394 = vmatprep.subr.bf16.mxu0 %v13311_v10 }
 0x5ea   :  { %10395 = vmatpush1.bf16.msra.mxu0 %v13309_v36 }
 0x5eb   :  { %10396 = vmatprep.subr.bf16.mxu0 %v13314_v12 }
 0x5ee   :  { %10397 = vmatpush1.bf16.msra.mxu0 %v13312_v22  ;;  %v16920_v22 = vcombine.low %v7464_v33, %v7471_v23  ;;  %v13335_v23 = vld [vmem:[#allocation18 + $0x4d4] ss:$8 sps:$4 sm:$0xff]  }
 0x5ef   :  { %10398 = vmatprep.subr.bf16.mxu0 %v13317_v54 }
 0x5f2   :  { %10399 = vmatpush1.bf16.msra.mxu0 %v13315_v52  ;;  %v13327_v52 = vld [vmem:[#allocation18 + $0x4f0] ss:$8 sps:$4 sm:$0xff]  }
 0x5f3   :  { %10400 = vmatprep.subr.bf16.mxu0 %v13320_v41 }
 0x5f5   :  { %v7000_v48 = vpop.f32.mrf.mxu0 }
 0x5f6   :  { %v7001_v4 = vadd.f32 %v16884_v31, %v7000_v48  ;;  %10401 = vmatpush1.bf16.msra.mxu0 %v13318_v1 }
 0x5f7   :  { %v7002_v32 = vpop.f32.mrf.mxu0  ;;  %10402 = vmatprep.subr.bf16.mxu0 %v13323_v25 }
 0x5f8   :  { %v7024_v8 = vmax.f32 %v7001_v4, 0.0 }
 0x5f9   :  { %v7003_v29 = vpop.f32.mrf.mxu0 }
 0x5fa   :  { %v7134_v51 = vcombine.high %v7024_v8, %v7024_v8  ;;  %v7141_v10 = vrot.slane %v7024_v8, %v15670_v2  ;;  %v7004_v46 = vadd.f32 %v16884_v31, %v7003_v29  ;;  %10403 = vmatpush1.bf16.msra.mxu0 %v13321_v27  ;;  %v13330_v27 = vld [vmem:[#allocation18 + $0x4e0] ss:$8 sps:$4 sm:$0xff]   ;;  %v7487_v29 = vrot.slane %v16920_v22, %v15670_v2  ;;  %v13345_v22 = vld [vmem:[#allocation18 + $0x490] ss:$8 sps:$4 sm:$0xff]  }
 0x5fb   :  { %v7005_v9 = vpop.f32.mrf.mxu0  ;;  %10404 = vmatprep.subr.bf16.mxu0 %v13326_v5 }
 0x5fc   :  { %v7148_v36 = vrot.slane %v7134_v51, %v15670_v2  ;;  %v7149_v12 = vcombine.high %v7141_v10, %v7141_v10  ;;  %v7157_v43 = vrot.slane %v7141_v10, %v15670_v2  ;;  %v7025_v30 = vmax.f32 %v7004_v46, 0.0 }
 0x5fd   :  { %v7008_v28 = vpop.f32.mrf.mxu0 }
 0x5fe   :  { %v7150_v11 = vcombine.high %v7148_v36, %v7148_v36  ;;  %v7164_v54 = vrot.slane %v7148_v36, %v15670_v2  ;;  %v7171_v14 = vrot.slane %v7149_v12, %v15670_v2  ;;  %v7179_v42 = vcombine.high %v7157_v43, %v7157_v43  ;;  %10405 = vmatpush1.bf16.msra.mxu0 %v13324_v53 }
 0x5ff   :  { %v7183_v63 = vcombine.high %v7025_v30, %v7025_v30  ;;  %v7190_v3 = vrot.slane %v7025_v30, %v15670_v2  ;;  %v7009_v40 = vadd.f32 %v16884_v31, %v7008_v28  ;;  %v7010_v18 = vpop.f32.mrf.mxu0  ;;  %10406 = vmatprep.subr.bf16.mxu0 %v13329_v56 }
 0x600   :  { %v7178_v17 = vrot.slane %v7150_v11, %v15670_v2  ;;  %v7180_v49 = vcombine.high %v7164_v54, %v7164_v54  ;;  %v7181_v41 = vcombine.high %v7171_v14, %v7171_v14  ;;  %v7400_v21 = vmax.f32 %v7157_v43, %v7171_v14  ;;  %v13333_v11 = vld [vmem:[#allocation18 + $0x4d0] ss:$8 sps:$4 sm:$0xff]  }
 0x601   :  { %v7197_v19 = vrot.slane %v7183_v63, %v15670_v2  ;;  %v7198_v57 = vcombine.high %v7190_v3, %v7190_v3  ;;  %v7206_v6 = vrot.slane %v7190_v3, %v15670_v2  ;;  %v7026_v7 = vmax.f32 %v7009_v40, 0.0  ;;  %v7011_v39 = vpop.f32.mrf.mxu0  ;;  %v13338_v3 = vld [vmem:[#allocation18 + $0x4c4] ss:$8 sps:$4 sm:$0xff]  }
 0x602   :  { %v7182_v1 = vcombine.high %v7178_v17, %v7178_v17  ;;  %v7401_v25 = vmax.f32 %v7179_v42, %v7181_v41  ;;  %v7402_v13 = vmax.f32 %v7164_v54, %v7178_v17  ;;  %v16929_v48 = vcombine.low %v7399_v58, %v7400_v21  ;;  %10407 = vmatpush2.bf16.msra.mxu0 %v13327_v52 }
 0x603   :  { %v7199_v38 = vcombine.high %v7197_v19, %v7197_v19  ;;  %v7213_v4 = vrot.slane %v7197_v19, %v15670_v2  ;;  %v7220_v61 = vrot.slane %v7198_v57, %v15670_v2  ;;  %v7228_v16 = vcombine.high %v7206_v6, %v7206_v6  ;;  %v7013_v32 = vpop.f32.mrf.mxu0  ;;  %10408 = vmatprep.subr.bf16.mxu0 %v13332_v37 }
 0x604   :  { %v16933_v8 = vmax.f32 %v7180_v49, %v7182_v1  ;;  %v16935_v5 = vcombine.low %v7401_v25, %v7402_v13  ;;  %v7232_v62 = vcombine.high %v7026_v7, %v7026_v7  ;;  %v7497_v9 = vrot.slane %v16929_v48, %v15670_v2  ;;  %v13336_v25 = vld [vmem:[#allocation18 + $0x4c0] ss:$8 sps:$4 sm:$0xff]  }
 0x605   :  { %v7227_v51 = vrot.slane %v7199_v38, %v15670_v2  ;;  %v7229_v10 = vcombine.high %v7213_v4, %v7213_v4  ;;  %v7230_v46 = vcombine.high %v7220_v61, %v7220_v61  ;;  %v7404_v60 = vmax.f32 %v7220_v61, %v7228_v16  ;;  %v7016_v33 = vpop.f32.mrf.mxu0  ;;  %v13341_v61 = vld [vmem:[#allocation18 + $0x4b4] ss:$8 sps:$4 sm:$0xff]  }
 0x606   :  { %v7239_v53 = vrot.slane %v7026_v7, %v15670_v2  ;;  %v7246_v36 = vrot.slane %v7232_v62, %v15670_v2  ;;  %v7012_v12 = vadd.f32 %v16884_v31, %v7011_v39  ;;  %10409 = vmatpush2.bf16.msra.mxu0 %v13330_v27  ;;  %v7017_v17 = vadd.f32 %v16884_v31, %v7016_v33 }
 0x607   :  { %v7405_v43 = vmax.f32 %v7230_v46, %v7213_v4  ;;  %v7406_v30 = vmax.f32 %v7227_v51, %v7229_v10  ;;  %v7528_v56 = vcombine.low %v7404_v60, %v7404_v60  ;;  %v7231_v58 = vcombine.high %v7227_v51, %v7227_v51  ;;  %v7018_v28 = vpop.f32.mrf.mxu0  ;;  %10410 = vmatprep.subr.bf16.mxu0 %v13335_v23  ;;  %v13359_v60 = vld [vmem:[#allocation15 + $0x58] sm:$0xff]  }
 0x608   :  { %v7247_v54 = vcombine.high %v7239_v53, %v7239_v53  ;;  %v7248_v14 = vcombine.high %v7246_v36, %v7246_v36  ;;  %v7255_v42 = vrot.slane %v7239_v53, %v15670_v2  ;;  %v7262_v63 = vrot.slane %v7246_v36, %v15670_v2  ;;  %v13344_v28 = vld [vmem:[#allocation18 + $0x4a4] ss:$8 sps:$4 sm:$0xff]   ;;  %7816 = vmatpush2.bf16.msra.mxu1 %v13359_v60 }
 0x609   :  { %v7529_v40 = vcombine.low %v7405_v43, %v7406_v30  ;;  %v16948_v18 = vrot.slane %v7528_v56, %v15670_v2  ;;  %v7027_v52 = vmax.f32 %v7012_v12, 0.0  ;;  %v7019_v49 = vpop.f32.mrf.mxu0  ;;  %v7504_v16 = vrot.slane %v16935_v5, %v15670_v2  ;;  %v13339_v5 = vld [vmem:[#allocation18 + $0x4b0] ss:$8 sps:$4 sm:$0xff]   ;;  %7817 = vmatprep.subr.bf16.mxu1 %v17632_v20 }
 0x60a   :  { %v7269_v41 = vrot.slane %v7247_v54, %v15670_v2  ;;  %v7276_v21 = vrot.slane %v7248_v14, %v15670_v2  ;;  %v7277_v37 = vcombine.high %v7255_v42, %v7255_v42  ;;  %v7278_v19 = vcombine.high %v7262_v63, %v7262_v63  ;;  %10411 = vmatpush2.bf16.msra.mxu0 %v13333_v11 }
 0x60b   :  { %v16954_v57 = vrot.slane %v7529_v40, %v15670_v2  ;;  %v7407_v6 = vmax.f32 %v7231_v58, %v7255_v42  ;;  %v7281_v7 = vcombine.high %v7027_v52, %v7027_v52  ;;  %v7288_v39 = vrot.slane %v7027_v52, %v15670_v2  ;;  %v7020_v1 = vpop.f32.mrf.mxu0  ;;  %10412 = vmatprep.subr.bf16.mxu0 %v13338_v3 }
 0x60c   :  { %v7279_v13 = vcombine.high %v7269_v41, %v7269_v41  ;;  %v7408_v38 = vmax.f32 %v7269_v41, %v7277_v37  ;;  %v7410_v31 = vmax.f32 %v7276_v21, %v7278_v19  ;;  %v7280_v4 = vcombine.high %v7276_v21, %v7276_v21  ;;  %v13342_v21 = vld [vmem:[#allocation18 + $0x4a0] ss:$8 sps:$4 sm:$0xff]  }
 0x60d   :  { %v7295_v32 = vrot.slane %v7281_v7, %v15670_v2  ;;  %v7296_v27 = vcombine.high %v7288_v39, %v7288_v39  ;;  %v7304_v62 = vrot.slane %v7288_v39, %v15670_v2  ;;  %v7560_v23 = vcombine.low %v16948_v18, %v16954_v57 }
 0x60e   :  { %v7409_v51 = vmax.f32 %v7279_v13, %v7262_v63  ;;  %v7530_v10 = vcombine.low %v7407_v6, %v7408_v38  ;;  %v7028_v46 = vmax.f32 %v7017_v17, 0.0  ;;  %10413 = vmatpush2.bf16.msra.mxu0 %v13336_v25  ;;  %v7511_v58 = vrot.slane %v16933_v8, %v15670_v2  ;;  %v13360_v8 = vld [vmem:[#allocation15 + $0x50] sm:$0xff]  }
 0x60f   :  { %v7297_v33 = vcombine.high %v7295_v32, %v7295_v32  ;;  %v7311_v53 = vrot.slane %v7295_v32, %v15670_v2  ;;  %v7318_v36 = vrot.slane %v7296_v27, %v15670_v2  ;;  %v7326_v12 = vcombine.high %v7304_v62, %v7304_v62  ;;  %10414 = vmatprep.subr.bf16.mxu0 %v13341_v61  ;;  %v13347_v6 = vld [vmem:[#allocation18 + $0x494] ss:$8 sps:$4 sm:$0xff]  }
 0x610   :  { %v7531_v43 = vcombine.low %v7409_v51, %v7410_v31  ;;  %v7411_v30 = vmax.f32 %v7280_v4, %v7304_v62  ;;  %v7336_v56 = vrot.slane %v7028_v46, %v15670_v2  ;;  %v7552_v63 = vrot.slane %v7530_v10, %v15670_v2  ;;  %7818 = vmatpush2.bf16.msra.mxu1 %v13360_v8  ;;  %v13362_v27 = vld [vmem:[#allocation15 + $0x40] sm:$0xff]  }
 0x611   :  { %v7325_v11 = vrot.slane %v7297_v33, %v15670_v2  ;;  %v7327_v54 = vcombine.high %v7311_v53, %v7311_v53  ;;  %v7328_v14 = vcombine.high %v7318_v36, %v7318_v36  ;;  %v7412_v42 = vmax.f32 %v7318_v36, %v7326_v12  ;;  %7819 = vmatprep.subr.bf16.mxu1 %v17632_v20  ;;  %v13348_v51 = vld [vmem:[#allocation18 + $0x480] ss:$8 sps:$4 sm:$0xff]  }
 0x612   :  { %v7559_v3 = vrot.slane %v7531_v43, %v15670_v2  ;;  %v7343_v40 = vrot.slane %v7336_v56, %v15670_v2  ;;  %v7512_v18 = vcombine.low %v7497_v9, %v7504_v16  ;;  %10415 = vmatpush2.bf16.msra.mxu0 %v13339_v5  ;;  %v7526_v57 = vrot.slane %v7511_v58, %v15670_v2  ;;  %v13361_v9 = vld [vmem:[#allocation15 + $0x48] sm:$0xff]  }
 0x613   :  { %v7413_v52 = vmax.f32 %v7328_v14, %v7311_v53  ;;  %v7414_v17 = vmax.f32 %v7325_v11, %v7327_v54  ;;  %v7577_v49 = vcombine.low %v7411_v30, %v7412_v42  ;;  %v7329_v41 = vcombine.high %v7325_v11, %v7325_v11  ;;  %10416 = vmatprep.subr.bf16.mxu0 %v13344_v28 }
 0x614   :  { %v7561_v37 = vcombine.low %v7552_v63, %v7559_v3  ;;  %v7519_v19 = vrot.slane %v7512_v18, %v15670_v2  ;;  %v7488_v48 = vcombine.low %v7480_v15, %v7487_v29  ;;  %v7568_v4 = vrot.slane %v7560_v23, %v15670_v2  ;;  %v13350_v15 = vld [vmem:[#allocation18 + $0x484] ss:$8 sps:$4 sm:$0xff]   ;;  %7820 = vmatpush2.bf16.msra.mxu1 %v13361_v9  ;;  %v13366_v9 = vld [vmem:[#allocation18 + $0x160] ss:$8 sps:$4 sm:$0xff]  }
 0x615   :  { %v7578_v7 = vcombine.low %v7413_v52, %v7414_v17  ;;  %v7415_v39 = vmax.f32 %v7329_v41, %v7343_v40  ;;  %v7585_v13 = vrot.slane %v7577_v49, %v15670_v2  ;;  %7821 = vmatprep.subr.bf16.mxu1 %v17632_v20  ;;  %v7894_v12 = vpack.c.bf16 %v16844_v0, %v16844_v0 }
 0x616   :  { %v7527_v1 = vcombine.low %v7519_v19, %v7526_v57  ;;  %v7575_v25 = vrot.slane %v7561_v37, %v15670_v2  ;;  %10417 = vmatpush2.bf16.msra.mxu0 %v13342_v21  ;;  %v7620_v16 = vsel %vm1283_vm5, 0.0, %v7488_v48  ;;  %v13363_v37 = vld [vmem:[#allocation18 + $0x170] ss:$8 sps:$4 sm:$0xff]  }
 0x617   :  { %v7592_v38 = vrot.slane %v7578_v7, %v15670_v2  ;;  %v7599_v31 = vrot.slane %v7415_v39, %v15670_v2  ;;  %10418 = vmatprep.subr.bf16.mxu0 %v13347_v6  ;;  %v7628_v10 = vrot.slane %v7620_v16, 1  ;;  %v7646_v58 = vrot.slane %v7620_v16, 2  ;;  %v13368_v6 = vld [vmem:[#allocation18 + $0x164] ss:$8 sps:$4 sm:$0xff]  }
 0x618   :  { %v7622_v34 = vsel %vm565_vm3, %v7527_v1, 0.0  ;;  %v7576_v32 = vcombine.low %v7568_v4, %v7575_v25  ;;  %7822 = vmatpush2.bf16.msra.mxu1 %v13362_v27  ;;  %v13375_v27 = vld [vmem:[#allocation18 + $0x130] ss:$8 sps:$4 sm:$0xff]  }
 0x619   :  { %v7600_v29 = vcombine.low %v7585_v13, %v7592_v38  ;;  %v7629_v61 = vrot.slane %v7622_v34, 1  ;;  %v7614_v62 = vrot.slane %v7599_v31, %v15670_v2  ;;  %v7647_v53 = vrot.slane %v7622_v34, 2  ;;  %v13371_v13 = vld [vmem:[#allocation18 + $0x154] ss:$8 sps:$4 sm:$0xff]   ;;  %v13369_v31 = vld [vmem:[#allocation18 + $0x150] ss:$8 sps:$4 sm:$0xff]  }
 0x61a   :  { %10419 = vmatpush2.bf16.msra.mxu0 %v13345_v22  ;;  %v7621_v60 = vsel %vm1283_vm5, 0.0, %v7576_v32  ;;  %v13374_v22 = vld [vmem:[#allocation18 + $0x144] ss:$8 sps:$4 sm:$0xff]  }
 0x61b   :  { %7636 = vrot.lane.b32.xlu0 %v7629_v61, %s14431_s2  ;;  %v7607_v23 = vrot.slane %v7600_v29, %v15670_v2  ;;  %10420 = vmatprep.subr.bf16.mxu0 %v13350_v15  ;;  %v7630_v33 = vsel %vm427_vm2, %v7628_v10, %v7629_v61  ;;  %v13365_v2 = vld [vmem:[#allocation18 + $0x174] ss:$8 sps:$4 sm:$0xff]   ;;  %v7631_v5 = vrot.slane %v7621_v60, 1  ;;  %v7649_v30 = vrot.slane %v7621_v60, 2  ;;  %v13372_v29 = vld [vmem:[#allocation18 + $0x140] ss:$8 sps:$4 sm:$0xff]  }
 0x61c   :  { %10267 = vmatprep.subr.bf16.mxu1 %v13365_v2  ;;  %v7648_v14 = vsel %vm496_vm1, %v7646_v58, %v7647_v53  ;;  %v13380_v10 = vld [vmem:[#allocation18 + $0x124] ss:$8 sps:$4 sm:$0xff]   ;;  %v13387_v58 = vld [vmem:[#allocation18 + $0x1f0] ss:$8 sps:$4 sm:$0xff]  }
 0x61d   :  { %v7615_v46 = vcombine.low %v7607_v23, %v7614_v62  ;;  %v13471_v23 = vld [vmem:[#allocation18 + $0x670] ss:$8 sps:$4 sm:$0xff]   ;;  %v13386_v2 = vld [vmem:[#allocation18 + $0x104] ss:$8 sps:$4 sm:$0xff]  }
 0x61e   :  { %10421 = vmatpush2.bf16.msra.mxu0 %v13348_v51  ;;  %v13473_v51 = vld [vmem:[#allocation18 + $0x674] ss:$8 sps:$4 sm:$0xff]  }
 0x61f   :  { %7634 = vrot.lane.b32.xlu0 %v7630_v33, %s14431_s2  ;;  %v7623_v36 = vsel %vm565_vm3, %v7615_v46, 0.0  ;;  %10472 = vmatprep.subr.bf16.mxu0 %v13473_v51  ;;  %v13477_v46 = vld [vmem:[#allocation18 + $0x660] ss:$8 sps:$4 sm:$0xff]   ;;  %v13383_v33 = vld [vmem:[#allocation18 + $0x114] ss:$8 sps:$4 sm:$0xff]   ;;  %v7893_v51 = vpack.c.bf16 %v16858_v45, %v16858_v45  ;;  %vm17685_vm3 = vmmov %vm17678_vm0 }
 0x620   :  { %v7632_v43 = vrot.slane %v7623_v36, 1  ;;  %v7650_v56 = vrot.slane %v7623_v36, 2  ;;  %v13557_v45 = vld [vmem:[#allocation18 + $0x694] ss:$8 sps:$4 sm:$0xff]  }
 0x621   :  { %10423 = vmatmul.mubr.bf16.vlgmr.msra.gmra.mxu0 %v7894_v12  ;;  %v13485_v12 = vld [vmem:[#allocation18 + $0x654] ss:$8 sps:$4 sm:$0xff]  }
 0x622   :  { %v7633_v28 = vsel %vm427_vm2, %v7631_v5, %v7632_v43  ;;  %v7651_v11 = vsel %vm496_vm1, %v7649_v30, %v7650_v56  ;;  %10473 = vmatpush1.bf16.msra.mxu0 %v13471_v23  ;;  %v13384_v5 = vld [vmem:[#allocation18 + $0x100] ss:$8 sps:$4 sm:$0xff]   ;;  %v13491_v30 = vld [vmem:[#allocation18 + $0x644] ss:$8 sps:$4 sm:$0xff]   ;;  %vm17683_vm1 = vmmov %vm17678_vm0 }
 0x623   :  { %7638 = vrot.lane.b32.xlu1 %v7633_v28, %s14431_s2  ;;  %v12398_v54 = vcombine.low %v7647_v53, %v7651_v11  ;;  %v13381_v53 = vld [vmem:[#allocation18 + $0x110] ss:$8 sps:$4 sm:$0xff]   ;;  %v13416_v23 = vld [vmem:[#allocation18 + $0x364] ss:$8 sps:$4 sm:$0xff]   ;;  %vm17684_vm2 = vmmov %vm17678_vm0 }
 0x624   :  { %v13495_v28 = vld [vmem:[#allocation18 + $0x630] ss:$8 sps:$4 sm:$0xff]  }
 0x625   :  { %v7679_v42 = vpack.c.bf16 %v12398_v54, %v7648_v14  ;;  %v13392_v54 = vld [vmem:[#allocation18 + $0x1e4] ss:$8 sps:$4 sm:$0xff]   ;;  %v13390_v14 = vld [vmem:[#allocation18 + $0x1e0] ss:$8 sps:$4 sm:$0xff]  }
 0x627   :  { %12414 = vmatprep.mubr.msk.bf16.mxu1 %vm2316_vm10, %v7679_v42  ;;  %7640 = vrot.lane.b32.xlu1 %v7632_v43, %s14431_s2  ;;  %v13489_v43 = vld [vmem:[#allocation18 + $0x640] ss:$8 sps:$4 sm:$0xff]  }
 0x628   :  { %v13501_v42 = vld [vmem:[#allocation18 + $0x620] ss:$8 sps:$4 sm:$0xff]  }
 0x661   :  { %v17008_v0 = vpop.f32.mrf.mxu0 }
 0x663   :  { %v17010_v63 = vpop.f32.mrf.mxu0 }
 0x665   :  { %v10264_v3 = vpop.f32.mrf.mxu0 }
 0x666   :  { %v13503_v3 = vld [vmem:[#allocation18 + $0x624] ss:$8 sps:$4 sm:$0xff]  }
 0x667   :  { %v10265_v40 = vpop.f32.mrf.mxu0 }
 0x668   :  { %v13395_v40 = vld [vmem:[#allocation18 + $0x1d4] ss:$8 sps:$4 sm:$0xff]  }
 0x68d   :  { %v7637_v18 = vpop.permute.xlu0 %7636 }
 0x68e   :  { %v7653_v17 = vsel %vm2316_vm10, %v7622_v34, %v7637_v18  ;;  %v7889_v34 = vpack.c.bf16 %v16850_v50, %v16850_v50  ;;  %v13378_v50 = vld [vmem:[#allocation18 + $0x120] ss:$8 sps:$4 sm:$0xff]   ;;  %v13393_v18 = vld [vmem:[#allocation18 + $0x1d0] ss:$8 sps:$4 sm:$0xff]  }
 0x691   :  { %v7635_v8 = vpop.permute.xlu0 %7634 }
 0x692   :  { %v7652_v21 = vsel %vm2316_vm10, %v7620_v16, %v7635_v8  ;;  %v13377_v16 = vld [vmem:[#allocation18 + $0x134] ss:$8 sps:$4 sm:$0xff]   ;;  %v13507_v8 = vld [vmem:[#allocation18 + $0x610] ss:$8 sps:$4 sm:$0xff]  }
 0x695   :  { %v7639_v52 = vpop.permute.xlu1 %7638 }
 0x696   :  { %v7654_v49 = vsel %vm2316_vm10, %v7621_v60, %v7639_v52  ;;  %v13479_v60 = vld [vmem:[#allocation18 + $0x664] ss:$8 sps:$4 sm:$0xff]   ;;  %v13509_v52 = vld [vmem:[#allocation18 + $0x614] ss:$8 sps:$4 sm:$0xff]  }
 0x697   :  { %v12397_v41 = vcombine.low %v7653_v17, %v7654_v49  ;;  %v7664_v39 = vcombine.high %v7654_v49, %v7651_v11  ;;  %10474 = vmatprep.subr.bf16.mxu0 %v13479_v60  ;;  %v13398_v17 = vld [vmem:[#allocation18 + $0x1c4] ss:$8 sps:$4 sm:$0xff]   ;;  %v13396_v49 = vld [vmem:[#allocation18 + $0x1c0] ss:$8 sps:$4 sm:$0xff]  }
 0x698   :  { %10475 = vmatpush1.bf16.msra.mxu0 %v13477_v46  ;;  %v13549_v46 = vld [vmem:[#allocation18 + $0x6a0] ss:$8 sps:$4 sm:$0xff]   ;;  %v13551_v60 = vld [vmem:[#allocation18 + $0x6a4] ss:$8 sps:$4 sm:$0xff]  }
 0x699   :  { %v7678_v19 = vpack.c.bf16 %v12397_v41, %v7652_v21  ;;  %v7641_v57 = vpop.permute.xlu1 %7640  ;;  %10476 = vmatprep.subr.bf16.mxu0 %v13485_v12  ;;  %v13513_v41 = vld [vmem:[#allocation18 + $0x600] ss:$8 sps:$4 sm:$0xff]   ;;  %v13515_v21 = vld [vmem:[#allocation18 + $0x604] ss:$8 sps:$4 sm:$0xff]  }
 0x69a   :  { %v7655_v7 = vsel %vm2316_vm10, %v7623_v36, %v7641_v57  ;;  %v13483_v36 = vld [vmem:[#allocation18 + $0x650] ss:$8 sps:$4 sm:$0xff]   ;;  %v13420_v12 = vld [vmem:[#allocation18 + $0x340] ss:$8 sps:$4 sm:$0xff]  }
 0x69b   :  { %v7665_v48 = vcombine.low %v7655_v7, %v7650_v56  ;;  %7824 = vmatmul.mubr.bf16.vlgmr.msra.gmra.mxu1 %v7678_v19  ;;  %v12399_v1 = vcombine.low %v7664_v39, %v7655_v7  ;;  %v13389_v56 = vld [vmem:[#allocation18 + $0x1f4] ss:$8 sps:$4 sm:$0xff]   ;;  %v13399_v19 = vld [vmem:[#allocation18 + $0x1b0] ss:$8 sps:$4 sm:$0xff]   ;;  %v13404_v7 = vld [vmem:[#allocation18 + $0x1a4] ss:$8 sps:$4 sm:$0xff]  }
 0x69c   :  { %10268 = vmatpush1.bf16.msra.mxu1 %v13363_v37  ;;  %10477 = vmatpush1.bf16.msra.mxu0 %v13483_v36  ;;  %v13401_v37 = vld [vmem:[#allocation18 + $0x1b4] ss:$8 sps:$4 sm:$0xff]   ;;  %v13519_v57 = vld [vmem:[#allocation18 + $0x6f0] ss:$8 sps:$4 sm:$0xff]   ;;  %v13402_v39 = vld [vmem:[#allocation18 + $0x1a0] ss:$8 sps:$4 sm:$0xff]  }
 0x69d   :  { %v12400_v25 = vcombine.high %v7651_v11, %v7665_v48  ;;  %10269 = vmatprep.subr.bf16.mxu1 %v13368_v6  ;;  %v7680_v4 = vpack.c.bf16 %v12399_v1, %v12399_v1  ;;  %10478 = vmatprep.subr.bf16.mxu0 %v13491_v30  ;;  %v13497_v11 = vld [vmem:[#allocation18 + $0x634] ss:$8 sps:$4 sm:$0xff]   ;;  %v13525_v48 = vld [vmem:[#allocation18 + $0x6e0] ss:$8 sps:$4 sm:$0xff]   ;;  %v13555_v36 = vld [vmem:[#allocation18 + $0x690] ss:$8 sps:$4 sm:$0xff]  }
 0x69e   :  { %v13521_v6 = vld [vmem:[#allocation18 + $0x6f4] ss:$8 sps:$4 sm:$0xff]   ;;  %v13561_v30 = vld [vmem:[#allocation18 + $0x680] ss:$8 sps:$4 sm:$0xff]  }
 0x69f   :  { %v7681_v38 = vpack.c.bf16 %v12400_v25, %v12400_v25  ;;  %v13407_v1 = vld [vmem:[#allocation18 + $0x194] ss:$8 sps:$4 sm:$0xff]   ;;  %v13405_v25 = vld [vmem:[#allocation18 + $0x190] ss:$8 sps:$4 sm:$0xff]  }
 0x6a0   :  { %10270 = vmatpush1.bf16.msra.mxu1 %v13366_v9  ;;  %10479 = vmatpush1.bf16.msra.mxu0 %v13489_v43  ;;  %v13527_v9 = vld [vmem:[#allocation18 + $0x6e4] ss:$8 sps:$4 sm:$0xff]  }
 0x6a1   :  { %12415 = vmatprep.mubr.msk.bf16.mxu1 %vm2316_vm10, %v7681_v38  ;;  %10271 = vmatprep.subr.bf16.mxu1 %v13371_v13  ;;  %v17019_v15 = vpop.f32.mrf.mxu0  ;;  %v13531_v13 = vld [vmem:[#allocation18 + $0x6d0] ss:$8 sps:$4 sm:$0xff]   ;;  %v13533_v38 = vld [vmem:[#allocation18 + $0x6d4] ss:$8 sps:$4 sm:$0xff]   ;;  %vm17686_vm10 = vmmov %vm17678_vm0 }
 0x6a2   :  { %10480 = vmatprep.subr.bf16.mxu0 %v13497_v11  ;;  %v13428_v11 = vld [vmem:[#allocation18 + $0x324] ss:$8 sps:$4 sm:$0xff]  }
 0x6a3   :  { %7832 = vmatmul.mubr.bf16.gmra.mxu1 %v7680_v4  ;;  %v17021_v61 = vpop.f32.mrf.mxu0  ;;  %v13408_v4 = vld [vmem:[#allocation18 + $0x180] ss:$8 sps:$4 sm:$0xff]  }
 0x6a4   :  { %10272 = vmatpush1.bf16.msra.mxu1 %v13369_v31  ;;  %10299 = vmatprep.mubr.bf16.mxu1 %v7889_v34  ;;  %v13410_v31 = vld [vmem:[#allocation18 + $0x184] ss:$8 sps:$4 sm:$0xff]  }
 0x6a5   :  { %10273 = vmatprep.subr.bf16.mxu1 %v13374_v22  ;;  %v10346_v32 = vpop.f32.mrf.mxu0  ;;  %10481 = vmatpush1.bf16.msra.mxu0 %v13495_v28  ;;  %v13537_v22 = vld [vmem:[#allocation18 + $0x6c0] ss:$8 sps:$4 sm:$0xff]   ;;  %v13539_v34 = vld [vmem:[#allocation18 + $0x6c4] ss:$8 sps:$4 sm:$0xff]  }
 0x6a6   :  { %10482 = vmatprep.subr.bf16.mxu0 %v13503_v3  ;;  %v13543_v32 = vld [vmem:[#allocation18 + $0x6b0] ss:$8 sps:$4 sm:$0xff]  }
 0x6a7   :  { %v10347_v62 = vpop.f32.mrf.mxu0  ;;  %v13429_v3 = vld [vmem:[#allocation18 + $0x310] ss:$8 sps:$4 sm:$0xff]  }
 0x6a8   :  { %10274 = vmatpush1.bf16.msra.mxu1 %v13372_v29  ;;  %v13413_v29 = vld [vmem:[#allocation18 + $0x374] ss:$8 sps:$4 sm:$0xff]   ;;  %v7888_v62 = vpack.c.bf16 %v16853_v55, %v16853_v55  ;;  %v13422_v55 = vld [vmem:[#allocation18 + $0x344] ss:$8 sps:$4 sm:$0xff]  }
 0x6a9   :  { %10275 = vmatprep.subr.bf16.mxu1 %v13377_v16  ;;  %10483 = vmatpush1.bf16.msra.mxu0 %v13501_v42  ;;  %v13411_v16 = vld [vmem:[#allocation18 + $0x370] ss:$8 sps:$4 sm:$0xff]   ;;  %v13431_v42 = vld [vmem:[#allocation18 + $0x314] ss:$8 sps:$4 sm:$0xff]  }
 0x6aa   :  { %10484 = vmatprep.subr.bf16.mxu0 %v13509_v52  ;;  %v13435_v52 = vld [vmem:[#allocation18 + $0x3f0] ss:$8 sps:$4 sm:$0xff]  }
 0x6ac   :  { %10276 = vmatpush1.bf16.msra.mxu1 %v13375_v27  ;;  %v13545_v27 = vld [vmem:[#allocation18 + $0x6b4] ss:$8 sps:$4 sm:$0xff]  }
 0x6ad   :  { %10277 = vmatprep.subr.bf16.mxu1 %v13380_v10  ;;  %10485 = vmatpush1.bf16.msra.mxu0 %v13507_v8  ;;  %v13414_v10 = vld [vmem:[#allocation18 + $0x360] ss:$8 sps:$4 sm:$0xff]   ;;  %v13437_v8 = vld [vmem:[#allocation18 + $0x3f4] ss:$8 sps:$4 sm:$0xff]  }
 0x6ae   :  { %10486 = vmatprep.subr.bf16.mxu0 %v13515_v21  ;;  %v13441_v21 = vld [vmem:[#allocation18 + $0x3d0] ss:$8 sps:$4 sm:$0xff]  }
 0x6b0   :  { %10278 = vmatpush1.bf16.msra.mxu1 %v13378_v50  ;;  %v13419_v50 = vld [vmem:[#allocation18 + $0x354] ss:$8 sps:$4 sm:$0xff]  }
 0x6b1   :  { %10279 = vmatprep.subr.bf16.mxu1 %v13383_v33  ;;  %10487 = vmatpush1.bf16.msra.mxu0 %v13513_v41  ;;  %v13417_v33 = vld [vmem:[#allocation18 + $0x350] ss:$8 sps:$4 sm:$0xff]   ;;  %v13443_v41 = vld [vmem:[#allocation18 + $0x3d4] ss:$8 sps:$4 sm:$0xff]  }
 0x6b2   :  { %10488 = vmatprep.subr.bf16.mxu0 %v13521_v6  ;;  %v13447_v6 = vld [vmem:[#allocation18 + $0x3b0] ss:$8 sps:$4 sm:$0xff]  }
 0x6b4   :  { %10280 = vmatpush1.bf16.msra.mxu1 %v13381_v53 }
 0x6b5   :  { %10281 = vmatprep.subr.bf16.mxu1 %v13386_v2  ;;  %10489 = vmatpush2.bf16.msra.mxu0 %v13519_v57  ;;  %v13449_v57 = vld [vmem:[#allocation18 + $0x3b4] ss:$8 sps:$4 sm:$0xff]  }
 0x6b6   :  { %10490 = vmatprep.subr.bf16.mxu0 %v13527_v9  ;;  %v13453_v9 = vld [vmem:[#allocation18 + $0x390] ss:$8 sps:$4 sm:$0xff]  }
 0x6b8   :  { %10282 = vmatpush1.bf16.msra.mxu1 %v13384_v5  ;;  %v13425_v5 = vld [vmem:[#allocation18 + $0x334] ss:$8 sps:$4 sm:$0xff]  }
 0x6b9   :  { %10283 = vmatprep.subr.bf16.mxu1 %v13389_v56  ;;  %10491 = vmatpush2.bf16.msra.mxu0 %v13525_v48  ;;  %v13563_v56 = vld [vmem:[#allocation18 + $0x684] ss:$8 sps:$4 sm:$0xff]   ;;  %v13455_v48 = vld [vmem:[#allocation18 + $0x394] ss:$8 sps:$4 sm:$0xff]  }
 0x6ba   :  { %10492 = vmatprep.subr.bf16.mxu0 %v13533_v38  ;;  %v13459_v38 = vld [vmem:[#allocation18 + $0x570] ss:$8 sps:$4 sm:$0xff]  }
 0x6bc   :  { %10284 = vmatpush2.bf16.msra.mxu1 %v13387_v58  ;;  %v13423_v58 = vld [vmem:[#allocation18 + $0x330] ss:$8 sps:$4 sm:$0xff]  }
 0x6bd   :  { %10285 = vmatprep.subr.bf16.mxu1 %v13392_v54  ;;  %10493 = vmatpush2.bf16.msra.mxu0 %v13531_v13  ;;  %v13569_v54 = vld [vmem:[#allocation18 + $0x874] ss:$8 sps:$4 sm:$0xff]  }
 0x6be   :  { %10494 = vmatprep.subr.bf16.mxu0 %v13539_v34  ;;  %v13461_v13 = vld [vmem:[#allocation18 + $0x574] ss:$8 sps:$4 sm:$0xff]   ;;  %v13462_v34 = vld [vmem:[#allocation18 + $0x560] ss:$8 sps:$4 sm:$0xff]  }
 0x6c0   :  { %10286 = vmatpush2.bf16.msra.mxu1 %v13390_v14  ;;  %v13426_v14 = vld [vmem:[#allocation18 + $0x320] ss:$8 sps:$4 sm:$0xff]  }
 0x6c1   :  { %10287 = vmatprep.subr.bf16.mxu1 %v13395_v40  ;;  %10495 = vmatpush2.bf16.msra.mxu0 %v13537_v22  ;;  %v13434_v40 = vld [vmem:[#allocation18 + $0x304] ss:$8 sps:$4 sm:$0xff]   ;;  %v7897_v22 = vpack.c.bf16 %v16865_v35, %v16865_v35  ;;  %v13480_v35 = vld [vmem:[#allocation18 + $0x520] ss:$8 sps:$4 sm:$0xff]  }
 0x6c2   :  { %10496 = vmatprep.subr.bf16.mxu0 %v13545_v27  ;;  %v13468_v27 = vld [vmem:[#allocation18 + $0x540] ss:$8 sps:$4 sm:$0xff]  }
 0x6c4   :  { %10288 = vmatpush2.bf16.msra.mxu1 %v13393_v18  ;;  %v13432_v18 = vld [vmem:[#allocation18 + $0x300] ss:$8 sps:$4 sm:$0xff]  }
 0x6c5   :  { %10289 = vmatprep.subr.bf16.mxu1 %v13398_v17  ;;  %10497 = vmatpush2.bf16.msra.mxu0 %v13543_v32  ;;  %v13440_v17 = vld [vmem:[#allocation18 + $0x3e4] ss:$8 sps:$4 sm:$0xff]  }
 0x6c6   :  { %10498 = vmatprep.subr.bf16.mxu0 %v13551_v60  ;;  %v13470_v32 = vld [vmem:[#allocation18 + $0x544] ss:$8 sps:$4 sm:$0xff]   ;;  %v13500_v60 = vld [vmem:[#allocation18 + $0x5f4] ss:$8 sps:$4 sm:$0xff]  }
 0x6c8   :  { %10290 = vmatpush2.bf16.msra.mxu1 %v13396_v49  ;;  %v13438_v49 = vld [vmem:[#allocation18 + $0x3e0] ss:$8 sps:$4 sm:$0xff]  }
 0x6c9   :  { %10291 = vmatprep.subr.bf16.mxu1 %v13401_v37  ;;  %10499 = vmatpush2.bf16.msra.mxu0 %v13549_v46  ;;  %v13446_v37 = vld [vmem:[#allocation18 + $0x3c4] ss:$8 sps:$4 sm:$0xff]   ;;  %v13492_v46 = vld [vmem:[#allocation18 + $0x500] ss:$8 sps:$4 sm:$0xff]  }
 0x6ca   :  { %10500 = vmatprep.subr.bf16.mxu0 %v13557_v45  ;;  %v13512_v45 = vld [vmem:[#allocation18 + $0x5d4] ss:$8 sps:$4 sm:$0xff]  }
 0x6cc   :  { %10292 = vmatpush2.bf16.msra.mxu1 %v13399_v19  ;;  %v13444_v19 = vld [vmem:[#allocation18 + $0x3c0] ss:$8 sps:$4 sm:$0xff]  }
 0x6cd   :  { %10293 = vmatprep.subr.bf16.mxu1 %v13404_v7  ;;  %10501 = vmatpush2.bf16.msra.mxu0 %v13555_v36  ;;  %v13452_v7 = vld [vmem:[#allocation18 + $0x3a4] ss:$8 sps:$4 sm:$0xff]   ;;  %v13504_v36 = vld [vmem:[#allocation18 + $0x5e0] ss:$8 sps:$4 sm:$0xff]  }
 0x6ce   :  { %10502 = vmatprep.subr.bf16.mxu0 %v13563_v56  ;;  %v13522_v56 = vld [vmem:[#allocation18 + $0x5b0] ss:$8 sps:$4 sm:$0xff]  }
 0x6d0   :  { %10294 = vmatpush2.bf16.msra.mxu1 %v13402_v39  ;;  %v13450_v39 = vld [vmem:[#allocation18 + $0x3a0] ss:$8 sps:$4 sm:$0xff]  }
 0x6d1   :  { %10295 = vmatprep.subr.bf16.mxu1 %v13407_v1  ;;  %10503 = vmatpush2.bf16.msra.mxu0 %v13561_v30  ;;  %v13458_v1 = vld [vmem:[#allocation18 + $0x384] ss:$8 sps:$4 sm:$0xff]   ;;  %v13524_v30 = vld [vmem:[#allocation18 + $0x5b4] ss:$8 sps:$4 sm:$0xff]  }
 0x6d2   :  { %10554 = vmatprep.subr.bf16.mxu0 %v13569_v54  ;;  %v13534_v54 = vld [vmem:[#allocation18 + $0x590] ss:$8 sps:$4 sm:$0xff]  }
 0x6d4   :  { %10296 = vmatpush2.bf16.msra.mxu1 %v13405_v25  ;;  %v13456_v25 = vld [vmem:[#allocation18 + $0x380] ss:$8 sps:$4 sm:$0xff]  }
 0x6d5   :  { %10297 = vmatprep.subr.bf16.mxu1 %v13410_v31  ;;  %v7892_v31 = vpack.c.bf16 %v16871_v26, %v16871_v26  ;;  %v13474_v26 = vld [vmem:[#allocation18 + $0x530] ss:$8 sps:$4 sm:$0xff]  }
 0x6d8   :  { %10298 = vmatpush2.bf16.msra.mxu1 %v13408_v4  ;;  %v13464_v4 = vld [vmem:[#allocation18 + $0x564] ss:$8 sps:$4 sm:$0xff]  }
 0x6d9   :  { %10349 = vmatprep.subr.bf16.mxu1 %v13413_v29  ;;  %v13467_v29 = vld [vmem:[#allocation18 + $0x554] ss:$8 sps:$4 sm:$0xff]  }
 0x6db   :  { %10300 = vmatmul.mubr.bf16.vlgmr.msra.gmra.mxu1 %v7888_v62  ;;  %v13476_v62 = vld [vmem:[#allocation18 + $0x534] ss:$8 sps:$4 sm:$0xff]  }
 0x6dc   :  { %10350 = vmatpush1.bf16.msra.mxu1 %v13411_v16  ;;  %10381 = vmatprep.mubr.bf16.mxu1 %v7893_v51  ;;  %v13465_v16 = vld [vmem:[#allocation18 + $0x550] ss:$8 sps:$4 sm:$0xff]   ;;  %v13488_v51 = vld [vmem:[#allocation18 + $0x514] ss:$8 sps:$4 sm:$0xff]  }
 0x6dd   :  { %10351 = vmatprep.subr.bf16.mxu1 %v13416_v23  ;;  %v13482_v23 = vld [vmem:[#allocation18 + $0x524] ss:$8 sps:$4 sm:$0xff]  }
 0x6e0   :  { %10352 = vmatpush1.bf16.msra.mxu1 %v13414_v10  ;;  %v13486_v10 = vld [vmem:[#allocation18 + $0x510] ss:$8 sps:$4 sm:$0xff]  }
 0x6e1   :  { %10353 = vmatprep.subr.bf16.mxu1 %v13419_v50  ;;  %v17027_v53 = vpop.f32.mrf.mxu0  ;;  %v13494_v50 = vld [vmem:[#allocation18 + $0x504] ss:$8 sps:$4 sm:$0xff]  }
 0x6e3   :  { %v17029_v2 = vpop.f32.mrf.mxu0 }
 0x6e4   :  { %10354 = vmatpush1.bf16.msra.mxu1 %v13417_v33  ;;  %v13498_v33 = vld [vmem:[#allocation18 + $0x5f0] ss:$8 sps:$4 sm:$0xff]  }
 0x6e5   :  { %10355 = vmatprep.subr.bf16.mxu1 %v13422_v55  ;;  %v10428_v43 = vpop.f32.mrf.mxu0  ;;  %v13506_v55 = vld [vmem:[#allocation18 + $0x5e4] ss:$8 sps:$4 sm:$0xff]  }
 0x6e6   :  { %v13516_v43 = vld [vmem:[#allocation18 + $0x5c0] ss:$8 sps:$4 sm:$0xff]  }
 0x6e7   :  { %v10429_v28 = vpop.f32.mrf.mxu0 }
 0x6e8   :  { %10356 = vmatpush1.bf16.msra.mxu1 %v13420_v12  ;;  %v13510_v12 = vld [vmem:[#allocation18 + $0x5d0] ss:$8 sps:$4 sm:$0xff]   ;;  %v13528_v28 = vld [vmem:[#allocation18 + $0x5a0] ss:$8 sps:$4 sm:$0xff]  }
 0x6e9   :  { %10357 = vmatprep.subr.bf16.mxu1 %v13425_v5  ;;  %v13518_v5 = vld [vmem:[#allocation18 + $0x5c4] ss:$8 sps:$4 sm:$0xff]  }
 0x6ec   :  { %10358 = vmatpush1.bf16.msra.mxu1 %v13423_v58  ;;  %v13530_v58 = vld [vmem:[#allocation18 + $0x5a4] ss:$8 sps:$4 sm:$0xff]  }
 0x6ed   :  { %10359 = vmatprep.subr.bf16.mxu1 %v13428_v11  ;;  %v13536_v11 = vld [vmem:[#allocation18 + $0x594] ss:$8 sps:$4 sm:$0xff]  }
 0x6f0   :  { %10360 = vmatpush1.bf16.msra.mxu1 %v13426_v14  ;;  %v13542_v14 = vld [vmem:[#allocation18 + $0x584] ss:$8 sps:$4 sm:$0xff]  }
 0x6f1   :  { %10361 = vmatprep.subr.bf16.mxu1 %v13431_v42  ;;  %v13540_v42 = vld [vmem:[#allocation18 + $0x580] ss:$8 sps:$4 sm:$0xff]  }
 0x6f4   :  { %10362 = vmatpush1.bf16.msra.mxu1 %v13429_v3  ;;  %v13548_v3 = vld [vmem:[#allocation18 + $0x774] ss:$8 sps:$4 sm:$0xff]  }
 0x6f5   :  { %10363 = vmatprep.subr.bf16.mxu1 %v13434_v40  ;;  %v13546_v40 = vld [vmem:[#allocation18 + $0x770] ss:$8 sps:$4 sm:$0xff]  }
 0x6f8   :  { %10364 = vmatpush1.bf16.msra.mxu1 %v13432_v18  ;;  %v7896_v18 = vpack.c.bf16 %v16876_v44, %v16876_v44  ;;  %v13566_v44 = vld [vmem:[#allocation18 + $0x744] ss:$8 sps:$4 sm:$0xff]  }
 0x6f9   :  { %10365 = vmatprep.subr.bf16.mxu1 %v13437_v8  ;;  %v12401_v8 = vld [vmem:[#allocation16] ss:$0 sm:$0xff] }
 0x6fc   :  { %10366 = vmatpush2.bf16.msra.mxu1 %v13435_v52  ;;  %v13554_v52 = vld [vmem:[#allocation18 + $0x764] ss:$8 sps:$4 sm:$0xff]  }
 0x6fd   :  { %10367 = vmatprep.subr.bf16.mxu1 %v13440_v17 }
 0x700   :  { %10368 = vmatpush2.bf16.msra.mxu1 %v13438_v49 }
 0x701   :  { %10369 = vmatprep.subr.bf16.mxu1 %v13443_v41  ;;  %v13552_v41 = vld [vmem:[#allocation18 + $0x760] ss:$8 sps:$4 sm:$0xff]  }
 0x704   :  { %10370 = vmatpush2.bf16.msra.mxu1 %v13441_v21 }
 0x705   :  { %10371 = vmatprep.subr.bf16.mxu1 %v13446_v37  ;;  %v13560_v37 = vld [vmem:[#allocation18 + $0x754] ss:$8 sps:$4 sm:$0xff]  }
 0x708   :  { %10372 = vmatpush2.bf16.msra.mxu1 %v13444_v19 }
 0x709   :  { %10373 = vmatprep.subr.bf16.mxu1 %v13449_v57 }
 0x70c   :  { %10374 = vmatpush2.bf16.msra.mxu1 %v13447_v6 }
 0x70d   :  { %10375 = vmatprep.subr.bf16.mxu1 %v13452_v7  ;;  %v13558_v7 = vld [vmem:[#allocation18 + $0x750] ss:$8 sps:$4 sm:$0xff]  }
 0x710   :  { %10376 = vmatpush2.bf16.msra.mxu1 %v13450_v39 }
 0x711   :  { %10377 = vmatprep.subr.bf16.mxu1 %v13455_v48 }
 0x714   :  { %10378 = vmatpush2.bf16.msra.mxu1 %v13453_v9 }
 0x715   :  { %10379 = vmatprep.subr.bf16.mxu1 %v13458_v1 }
 0x718   :  { %10380 = vmatpush2.bf16.msra.mxu1 %v13456_v25 }
 0x719   :  { %10431 = vmatprep.subr.bf16.mxu1 %v13461_v13 }
 0x71b   :  { %10382 = vmatmul.mubr.bf16.vlgmr.msra.gmra.mxu1 %v7892_v31  ;;  %v13564_v31 = vld [vmem:[#allocation18 + $0x740] ss:$8 sps:$4 sm:$0xff]  }
 0x71c   :  { %10432 = vmatpush1.bf16.msra.mxu1 %v13459_v38  ;;  %10463 = vmatprep.mubr.bf16.mxu1 %v7897_v22 }
 0x71d   :  { %10433 = vmatprep.subr.bf16.mxu1 %v13464_v4 }
 0x720   :  { %10434 = vmatpush1.bf16.msra.mxu1 %v13462_v34 }
 0x721   :  { %10435 = vmatprep.subr.bf16.mxu1 %v13467_v29 }
 0x724   :  { %10436 = vmatpush1.bf16.msra.mxu1 %v13465_v16 }
 0x725   :  { %10437 = vmatprep.subr.bf16.mxu1 %v13470_v32 }
 0x728   :  { %10438 = vmatpush1.bf16.msra.mxu1 %v13468_v27 }
 0x729   :  { %10439 = vmatprep.subr.bf16.mxu1 %v13476_v62 }
 0x72c   :  { %10440 = vmatpush1.bf16.msra.mxu1 %v13474_v26 }
 0x72d   :  { %10441 = vmatprep.subr.bf16.mxu1 %v13482_v23 }
 0x730   :  { %10442 = vmatpush1.bf16.msra.mxu1 %v13480_v35 }
 0x731   :  { %10443 = vmatprep.subr.bf16.mxu1 %v13488_v51 }
 0x734   :  { %10444 = vmatpush1.bf16.msra.mxu1 %v13486_v10  ;;  %v13572_v10 = vld [vmem:[#allocation18 + $0x734] ss:$8 sps:$4 sm:$0xff]  }
 0x735   :  { %10445 = vmatprep.subr.bf16.mxu1 %v13494_v50 }
 0x738   :  { %10446 = vmatpush1.bf16.msra.mxu1 %v13492_v46 }
 0x739   :  { %10447 = vmatprep.subr.bf16.mxu1 %v13500_v60 }
 0x73c   :  { %10448 = vmatpush2.bf16.msra.mxu1 %v13498_v33  ;;  %v13567_v33 = vld [vmem:[#allocation18 + $0x870] ss:$8 sps:$4 sm:$0xff]  }
 0x73d   :  { %10449 = vmatprep.subr.bf16.mxu1 %v13506_v55 }
 0x740   :  { %10450 = vmatpush2.bf16.msra.mxu1 %v13504_v36 }
 0x741   :  { %10451 = vmatprep.subr.bf16.mxu1 %v13512_v45  ;;  %v13570_v45 = vld [vmem:[#allocation18 + $0x730] ss:$8 sps:$4 sm:$0xff]  }
 0x744   :  { %10452 = vmatpush2.bf16.msra.mxu1 %v13510_v12 }
 0x745   :  { %10453 = vmatprep.subr.bf16.mxu1 %v13518_v5  ;;  %v13575_v5 = vld [vmem:[#allocation18 + $0x864] ss:$8 sps:$4 sm:$0xff]  }
 0x748   :  { %10454 = vmatpush2.bf16.msra.mxu1 %v13516_v43 }
 0x749   :  { %10455 = vmatprep.subr.bf16.mxu1 %v13524_v30 }
 0x74c   :  { %10456 = vmatpush2.bf16.msra.mxu1 %v13522_v56  ;;  %v13578_v56 = vld [vmem:[#allocation18 + $0x724] ss:$8 sps:$4 sm:$0xff]  }
 0x74d   :  { %10457 = vmatprep.subr.bf16.mxu1 %v13530_v58 }
 0x750   :  { %10458 = vmatpush2.bf16.msra.mxu1 %v13528_v28 }
 0x751   :  { %10459 = vmatprep.subr.bf16.mxu1 %v13536_v11  ;;  %v13573_v11 = vld [vmem:[#allocation18 + $0x860] ss:$8 sps:$4 sm:$0xff]  }
 0x754   :  { %10460 = vmatpush2.bf16.msra.mxu1 %v13534_v54 }
 0x755   :  { %10461 = vmatprep.subr.bf16.mxu1 %v13542_v14 }
 0x758   :  { %10462 = vmatpush2.bf16.msra.mxu1 %v13540_v42 }
 0x759   :  { %10513 = vmatprep.subr.bf16.mxu1 %v13548_v3  ;;  %v13576_v3 = vld [vmem:[#allocation18 + $0x720] ss:$8 sps:$4 sm:$0xff]  }
 0x75b   :  { %10464 = vmatmul.mubr.bf16.vlgmr.msra.gmra.mxu1 %v7896_v18  ;;  %v7825_v17 = vpop.f32.mrf.mxu1 }
 0x75c   :  { %v7826_v49 = vadd.f32 %v12401_v8, %v7825_v17  ;;  %10514 = vmatpush1.bf16.msra.mxu1 %v13546_v40  ;;  %v13581_v40 = vld [vmem:[#allocation18 + $0x854] ss:$8 sps:$4 sm:$0xff]  }
 0x75d   :  { %v7827_v21 = vpop.f32.mrf.mxu1  ;;  %10515 = vmatprep.subr.bf16.mxu1 %v13554_v52 }
 0x75e   :  { %v17037_v19 = vmax.f32 %v7826_v49, 0.0  ;;  %v13584_v49 = vld [vmem:[#allocation18 + $0x714] ss:$8 sps:$4 sm:$0xff]  }
 0x75f   :  { %v7828_v57 = vpop.f32.mrf.mxu1 }
 0x760   :  { %v7829_v6 = vadd.f32 %v12401_v8, %v7828_v57  ;;  %10516 = vmatpush1.bf16.msra.mxu1 %v13552_v41  ;;  %v7845_v48 = vrot.slane %v17037_v19, 1  ;;  %v7853_v9 = vrot.slane %v17037_v19, 3  ;;  %v7861_v13 = vrot.slane %v17037_v19, 5  ;;  %v13579_v57 = vld [vmem:[#allocation18 + $0x850] ss:$8 sps:$4 sm:$0xff]  }
 0x761   :  { %v7830_v39 = vpop.f32.mrf.mxu1  ;;  %10517 = vmatprep.subr.bf16.mxu1 %v13560_v37  ;;  %v7842_v27 = vsel %vm1283_vm5, %v17037_v19, 0.0  ;;  %v7864_v62 = vrot.slane %v17037_v19, 6 }
 0x762   :  { %v17041_v1 = vmax.f32 %v7829_v6, 0.0  ;;  %v7846_v16 = vsel %vm1283_vm5, %v7845_v48, 0.0  ;;  %v7854_v32 = vsel %vm1283_vm5, %v7853_v9, 0.0  ;;  %v7862_v36 = vsel %vm1283_vm5, %v7861_v13, 0.0  ;;  %v13587_v39 = vld [vmem:[#allocation18 + $0x844] ss:$8 sps:$4 sm:$0xff]  }
 0x763   :  { %v7833_v25 = vpop.f32.mrf.mxu1  ;;  %v7865_v54 = vsel %vm1283_vm5, %v7864_v62, 0.0  ;;  %v13585_v48 = vld [vmem:[#allocation18 + $0x840] ss:$8 sps:$4 sm:$0xff]   ;;  %v13596_v13 = vld [vmem:[#allocation18 + $0x7f4] ss:$8 sps:$4 sm:$0xff]  }
 0x764   :  { %v7834_v38 = vadd.f32 %v12401_v8, %v7833_v25  ;;  %10518 = vmatpush1.bf16.msra.mxu1 %v13558_v7  ;;  %v7847_v4 = vrot.slane %v17041_v1, 4  ;;  %v7855_v22 = vrot.slane %v17041_v1, 6  ;;  %v7843_v34 = vrot.slane %v17041_v1, 3  ;;  %v13582_v7 = vld [vmem:[#allocation18 + $0x710] ss:$8 sps:$4 sm:$0xff]  }
 0x765   :  { %v7835_v29 = vpop.f32.mrf.mxu1  ;;  %10519 = vmatprep.subr.bf16.mxu1 %v13566_v44  ;;  %v7872_v52 = vsel %vm1283_vm5, %v17041_v1, 0.0  ;;  %v7879_v17 = vrot.slane %v17041_v1, 2  ;;  %v13590_v44 = vld [vmem:[#allocation18 + $0x704] ss:$8 sps:$4 sm:$0xff]   ;;  %v13588_v9 = vld [vmem:[#allocation18 + $0x700] ss:$8 sps:$4 sm:$0xff]  }
 0x766   :  { %v17052_v26 = vmax.f32 %v7834_v38, 0.0  ;;  %v7848_v23 = vsel %vm17683_vm1, %v7847_v4, %v7846_v16  ;;  %v7856_v35 = vsel %vm17684_vm2, %v7855_v22, %v7854_v32  ;;  %v7844_v51 = vsel %vm17685_vm3, %v7843_v34, %v7842_v27  ;;  %v13593_v25 = vld [vmem:[#allocation18 + $0x834] ss:$8 sps:$4 sm:$0xff]   ;;  %v13591_v38 = vld [vmem:[#allocation18 + $0x830] ss:$8 sps:$4 sm:$0xff]  }
 0x767   :  { %v7836_v50 = vpop.f32.mrf.mxu1  ;;  %v7899_v46 = vpack.c.bf16 %v7848_v23, %v7848_v23  ;;  %v7901_v60 = vpack.c.bf16 %v7856_v35, %v7856_v35  ;;  %v7898_v55 = vpack.c.bf16 %v7844_v51, %v7844_v51  ;;  %v7883_v14 = vsel %vm1283_vm5, %v7843_v34, 0.0  ;;  %v13599_v4 = vld [vmem:[#allocation18 + $0x824] ss:$8 sps:$4 sm:$0xff]   ;;  %v13597_v34 = vld [vmem:[#allocation18 + $0x820] ss:$8 sps:$4 sm:$0xff]  }
 0x768   :  { %10520 = vmatpush1.bf16.msra.mxu1 %v13564_v31  ;;  %v7863_v12 = vsel %vm17686_vm10, %v17052_v26, %v7862_v36  ;;  %v7866_v58 = vrot.slane %v17052_v26, 1  ;;  %v7884_v28 = vrot.slane %v17052_v26, 6  ;;  %v7873_v42 = vrot.slane %v17052_v26, 3  ;;  %v13594_v31 = vld [vmem:[#allocation18 + $0x7f0] ss:$8 sps:$4 sm:$0xff]  }
 0x769   :  { %v7837_v43 = vpop.f32.mrf.mxu1  ;;  %10504 = vmatprep.mubr.bf16.mxu0 %v7899_v46  ;;  %10545 = vmatprep.mubr.bf16.mxu1 %v7901_v60  ;;  %v7903_v30 = vpack.c.bf16 %v7863_v12, %v7863_v12  ;;  %v7881_v21 = vrot.slane %v17052_v26, 5  ;;  %v7880_v37 = vsel %vm1283_vm5, %v7879_v17, 0.0  ;;  %v13602_v22 = vld [vmem:[#allocation18 + $0x7e4] ss:$8 sps:$4 sm:$0xff]   ;;  %v13600_v29 = vld [vmem:[#allocation18 + $0x7e0] ss:$8 sps:$4 sm:$0xff]  }
 0x76a   :  { %10505 = vmatmul.mubr.bf16.vlgmr.msra.gmra.mxu0 %v7898_v55  ;;  %10521 = vmatprep.subr.bf16.mxu1 %v13572_v10  ;;  %v17066_v18 = vsel %vm17687_vm13, %v7866_v58, %v7865_v54  ;;  %v17069_v8 = vsel %vm17688_vm14, %v7884_v28, %v7883_v14  ;;  %v17075_v41 = vsel %vm17689_vm7, %v7873_v42, %v7872_v52  ;;  %v13605_v16 = vld [vmem:[#allocation18 + $0x814] ss:$8 sps:$4 sm:$0xff]   ;;  %v13603_v27 = vld [vmem:[#allocation18 + $0x810] ss:$8 sps:$4 sm:$0xff]   ;;  %v13611_v23 = vld [vmem:[#allocation18 + $0x804] ss:$8 sps:$4 sm:$0xff]  }
 0x76b   :  { %10555 = vmatpush1.bf16.msra.mxu0 %v13567_v33  ;;  %10586 = vmatprep.mubr.bf16.mxu0 %v7903_v30  ;;  %v17080_v6 = vsel %vm17690_vm8, %v7881_v21, %v7880_v37  ;;  %v13608_v32 = vld [vmem:[#allocation18 + $0x7d4] ss:$8 sps:$4 sm:$0xff]   ;;  %v13606_v62 = vld [vmem:[#allocation18 + $0x7d0] ss:$8 sps:$4 sm:$0xff]   ;;  %v13614_v35 = vld [vmem:[#allocation18 + $0x7c4] ss:$8 sps:$4 sm:$0xff]  }
 0x76c   :  { %10522 = vmatpush1.bf16.msra.mxu1 %v13570_v45  ;;  %10556 = vmatprep.subr.bf16.mxu0 %v13575_v5  ;;  %v13609_v51 = vld [vmem:[#allocation18 + $0x800] ss:$8 sps:$4 sm:$0xff]   ;;  %v13617_v50 = vld [vmem:[#allocation18 + $0x8f4] ss:$8 sps:$4 sm:$0xff]   ;;  %v13615_v60 = vld [vmem:[#allocation18 + $0x8f0] ss:$8 sps:$4 sm:$0xff]  }
 0x76d   :  { %10523 = vmatprep.subr.bf16.mxu1 %v13578_v56  ;;  %v13612_v10 = vld [vmem:[#allocation18 + $0x7c0] ss:$8 sps:$4 sm:$0xff]   ;;  %v13620_v46 = vld [vmem:[#allocation18 + $0x7b4] ss:$8 sps:$4 sm:$0xff]   ;;  %v13618_v33 = vld [vmem:[#allocation18 + $0x7b0] ss:$8 sps:$4 sm:$0xff]  }
 0x76e   :  { %v13623_v55 = vld [vmem:[#allocation18 + $0x8e4] ss:$8 sps:$4 sm:$0xff]   ;;  %v13621_v45 = vld [vmem:[#allocation18 + $0x8e0] ss:$8 sps:$4 sm:$0xff]   ;;  %v13629_v5 = vld [vmem:[#allocation18 + $0x8d4] ss:$8 sps:$4 sm:$0xff]  }
 0x76f   :  { %10557 = vmatpush1.bf16.msra.mxu0 %v13573_v11  ;;  %v13626_v36 = vld [vmem:[#allocation18 + $0x7a4] ss:$8 sps:$4 sm:$0xff]   ;;  %v13624_v12 = vld [vmem:[#allocation18 + $0x7a0] ss:$8 sps:$4 sm:$0xff]   ;;  %v13632_v43 = vld [vmem:[#allocation18 + $0x794] ss:$8 sps:$4 sm:$0xff]  }
 0x770   :  { %10524 = vmatpush1.bf16.msra.mxu1 %v13576_v3  ;;  %10558 = vmatprep.subr.bf16.mxu0 %v13581_v40  ;;  %v13627_v30 = vld [vmem:[#allocation18 + $0x8d0] ss:$8 sps:$4 sm:$0xff]   ;;  %v13635_v58 = vld [vmem:[#allocation18 + $0x8c4] ss:$8 sps:$4 sm:$0xff]   ;;  %v7849_v11 = vrot.slane %v17037_v19, 2  ;;  %v7851_v54 = vrot.slane %v17041_v1, 5 }
 0x771   :  { %10525 = vmatprep.subr.bf16.mxu1 %v13584_v49  ;;  %v13630_v56 = vld [vmem:[#allocation18 + $0x790] ss:$8 sps:$4 sm:$0xff]   ;;  %v13638_v28 = vld [vmem:[#allocation18 + $0x784] ss:$8 sps:$4 sm:$0xff]   ;;  %v7868_v14 = vrot.slane %v17037_v19, 7  ;;  %v7870_v40 = vrot.slane %v17052_v26, 2 }
 0x772   :  { %v8294_v42 = vld [vmem:[#allocation19] sm:$0x3]  ;;  %v17691_v52 = vld [vmem:[#allocation44_spill] sm:$0xff]  ;;  %v13641_v21 = vld [vmem:[#allocation18 + $0x8b4] ss:$8 sps:$4 sm:$0xff]   ;;  %v7850_v37 = vsel %vm1283_vm5, %v7849_v11, 0.0 }
 0x773   :  { %10559 = vmatpush1.bf16.msra.mxu0 %v13579_v57  ;;  %v13633_v3 = vld [vmem:[#allocation18 + $0x8c0] ss:$8 sps:$4 sm:$0xff]   ;;  %v17087_v17 = vsub.s32 1, %v17691_v52  ;;  %v13644_v57 = vld [vmem:[#allocation18 + $0x974] ss:$8 sps:$4 sm:$0xff]   ;;  %vm12190_vm1 = vcmask 259076  }
 0x774   :  { %10526 = vmatpush1.bf16.msra.mxu1 %v13582_v7  ;;  %10560 = vmatprep.subr.bf16.mxu0 %v13587_v39  ;;  %v13636_v49 = vld [vmem:[#allocation18 + $0x780] ss:$8 sps:$4 sm:$0xff]   ;;  %v8299_v7 = vrot.slane %v8294_v42, %v17638_v24  ;;  %v7852_v39 = vsel %vm17678_vm0, %v7851_v54, %v7850_v37  ;;  %v13666_v54 = vld [vmem:[#allocation18 + $0x930] ss:$8 sps:$4 sm:$0xff]   ;;  %v13680_v37 = vld [vmem:[#allocation18 + $0x914] ss:$8 sps:$4 sm:$0xff]  }
 0x775   :  { %10527 = vmatprep.subr.bf16.mxu1 %v13590_v44  ;;  %v7869_v44 = vsel %vm1283_vm5, %v7868_v14, 0.0  ;;  %v13671_v14 = vld [vmem:[#allocation18 + $0xa64] ss:$8 sps:$4 sm:$0xff]  }
 0x777   :  { %10561 = vmatpush1.bf16.msra.mxu0 %v13585_v48  ;;  %v13639_v48 = vld [vmem:[#allocation18 + $0x8b0] ss:$8 sps:$4 sm:$0xff]  }
 0x778   :  { %10528 = vmatpush1.bf16.msra.mxu1 %v13588_v9  ;;  %10562 = vmatprep.subr.bf16.mxu0 %v13593_v25  ;;  %v7871_v9 = vsel %vm17692_vm12, %v7870_v40, %v7869_v44  ;;  %v8303_v25 = vrot.slane %v8294_v42, %v17087_v17  ;;  %v13669_v40 = vld [vmem:[#allocation18 + $0xa60] ss:$8 sps:$4 sm:$0xff]   ;;  %v13686_v44 = vld [vmem:[#allocation18 + $0x904] ss:$8 sps:$4 sm:$0xff]  }
 0x779   :  { %10529 = vmatprep.subr.bf16.mxu1 %v13596_v13  ;;  %v13642_v13 = vld [vmem:[#allocation18 + $0x970] ss:$8 sps:$4 sm:$0xff]  }
 0x77b   :  { %10563 = vmatpush1.bf16.msra.mxu0 %v13591_v38  ;;  %v7900_v38 = vpack.c.bf16 %v7852_v39, %v7852_v39  ;;  %v13683_v39 = vld [vmem:[#allocation18 + $0xa44] ss:$8 sps:$4 sm:$0xff]  }
 0x77c   :  { %10530 = vmatpush2.bf16.msra.mxu1 %v13594_v31  ;;  %10564 = vmatprep.subr.bf16.mxu0 %v13599_v4  ;;  %v13647_v31 = vld [vmem:[#allocation18 + $0x8a4] ss:$8 sps:$4 sm:$0xff]  }
 0x77d   :  { %10531 = vmatprep.subr.bf16.mxu1 %v13602_v22  ;;  %v13650_v4 = vld [vmem:[#allocation18 + $0x964] ss:$8 sps:$4 sm:$0xff]   ;;  %v10261_v22 = vadd.f32 %v17008_v0, %v8299_v7  ;;  %v13678_v7 = vld [vmem:[#allocation18 + $0x910] ss:$8 sps:$4 sm:$0xff]  }
 0x77f   :  { %10565 = vmatpush1.bf16.msra.mxu0 %v13597_v34  ;;  %v7905_v34 = vpack.c.bf16 %v7871_v9, %v7871_v9  ;;  %v13684_v9 = vld [vmem:[#allocation18 + $0x900] ss:$8 sps:$4 sm:$0xff]  }
 0x780   :  { %10532 = vmatpush2.bf16.msra.mxu1 %v13600_v29  ;;  %10566 = vmatprep.subr.bf16.mxu0 %v13605_v16  ;;  %v13645_v16 = vld [vmem:[#allocation18 + $0x8a0] ss:$8 sps:$4 sm:$0xff]  }
 0x781   :  { %10533 = vmatprep.subr.bf16.mxu1 %v13608_v32  ;;  %v10263_v32 = vadd.f32 %v17010_v63, %v8303_v25  ;;  %v7857_v63 = vrot.slane %v17037_v19, 4  ;;  %v13689_v25 = vld [vmem:[#allocation18 + $0xa34] ss:$8 sps:$4 sm:$0xff]  }
 0x783   :  { %10567 = vmatpush1.bf16.msra.mxu0 %v13603_v27 }
 0x784   :  { %10534 = vmatpush2.bf16.msra.mxu1 %v13606_v62  ;;  %10568 = vmatprep.subr.bf16.mxu0 %v13611_v23  ;;  %v13648_v62 = vld [vmem:[#allocation18 + $0x960] ss:$8 sps:$4 sm:$0xff]   ;;  %v13653_v23 = vld [vmem:[#allocation18 + $0x894] ss:$8 sps:$4 sm:$0xff]  }
 0x785   :  { %10535 = vmatprep.subr.bf16.mxu1 %v13614_v35 }
 0x787   :  { %10569 = vmatpush1.bf16.msra.mxu0 %v13609_v51  ;;  %v13656_v51 = vld [vmem:[#allocation18 + $0x954] ss:$8 sps:$4 sm:$0xff]  }
 0x788   :  { %10536 = vmatpush2.bf16.msra.mxu1 %v13612_v10  ;;  %10570 = vmatprep.subr.bf16.mxu0 %v13617_v50  ;;  %v13651_v50 = vld [vmem:[#allocation18 + $0x890] ss:$8 sps:$4 sm:$0xff]  }
 0x789   :  { %10537 = vmatprep.subr.bf16.mxu1 %v13620_v46  ;;  %v13654_v46 = vld [vmem:[#allocation18 + $0x950] ss:$8 sps:$4 sm:$0xff]  }
 0x78b   :  { %10571 = vmatpush2.bf16.msra.mxu0 %v13615_v60  ;;  %v13659_v60 = vld [vmem:[#allocation18 + $0x884] ss:$8 sps:$4 sm:$0xff]  }
 0x78c   :  { %10538 = vmatpush2.bf16.msra.mxu1 %v13618_v33  ;;  %10572 = vmatprep.subr.bf16.mxu0 %v13623_v55  ;;  %v13662_v55 = vld [vmem:[#allocation18 + $0x944] ss:$8 sps:$4 sm:$0xff]  }
 0x78d   :  { %10539 = vmatprep.subr.bf16.mxu1 %v13626_v36  ;;  %v7859_v36 = vrot.slane %v17052_v26, 7 }
 0x78f   :  { %10573 = vmatpush2.bf16.msra.mxu0 %v13621_v45  ;;  %v7875_v45 = vrot.slane %v17041_v1, 1  ;;  %v13663_v1 = vld [vmem:[#allocation18 + $0xa70] ss:$8 sps:$4 sm:$0xff]  }
 0x790   :  { %10540 = vmatpush2.bf16.msra.mxu1 %v13624_v12  ;;  %10574 = vmatprep.subr.bf16.mxu0 %v13629_v5  ;;  %v7877_v12 = vrot.slane %v17052_v26, 4  ;;  %v13657_v5 = vld [vmem:[#allocation18 + $0x880] ss:$8 sps:$4 sm:$0xff]  }
 0x791   :  { %10541 = vmatprep.subr.bf16.mxu1 %v13632_v43  ;;  %v13660_v43 = vld [vmem:[#allocation18 + $0x940] ss:$8 sps:$4 sm:$0xff]  }
 0x793   :  { %10575 = vmatpush2.bf16.msra.mxu0 %v13627_v30  ;;  %v7858_v30 = vsel %vm1283_vm5, %v7857_v63, 0.0  ;;  %v13711_v63 = vld [vmem:[#allocation18 + $0xaf0] ss:$8 sps:$4 sm:$0xff]  }
 0x794   :  { %10542 = vmatpush2.bf16.msra.mxu1 %v13630_v56  ;;  %10576 = vmatprep.subr.bf16.mxu0 %v13635_v58  ;;  %v13665_v56 = vld [vmem:[#allocation18 + $0xa74] ss:$8 sps:$4 sm:$0xff]   ;;  %v7860_v19 = vsel %vm17693_vm4, %v7859_v36, %v7858_v30  ;;  %v13722_v36 = vld [vmem:[#allocation18 + $0x9a4] ss:$8 sps:$4 sm:$0xff]   ;;  %v13723_v30 = vld [vmem:[#allocation18 + $0xad0] ss:$8 sps:$4 sm:$0xff]  }
 0x795   :  { %10543 = vmatprep.subr.bf16.mxu1 %v13638_v28  ;;  %v13668_v58 = vld [vmem:[#allocation18 + $0x934] ss:$8 sps:$4 sm:$0xff]   ;;  %v7876_v28 = vsel %vm1283_vm5, %v7875_v45, 0.0  ;;  %v7902_v26 = vpack.c.bf16 %v7860_v19, %v7860_v19  ;;  %v13717_v45 = vld [vmem:[#allocation18 + $0xae0] ss:$8 sps:$4 sm:$0xff]   ;;  %vm12193_vm5 = vcmask 517120  }
 0x796   :  { %v7878_v11 = vsel %vm17694_vm15, %v7877_v12, %v7876_v28  ;;  %v13720_v12 = vld [vmem:[#allocation18 + $0x9a0] ss:$8 sps:$4 sm:$0xff]   ;;  %v13731_v19 = vld [vmem:[#allocation18 + $0xac4] ss:$8 sps:$4 sm:$0xff]  }
 0x797   :  { %10577 = vmatpush2.bf16.msra.mxu0 %v13633_v3  ;;  %v7907_v42 = vpack.c.bf16 %v7878_v11, %v7878_v11  ;;  %v13674_v3 = vld [vmem:[#allocation18 + $0x924] ss:$8 sps:$4 sm:$0xff]   ;;  %v13729_v28 = vld [vmem:[#allocation18 + $0xac0] ss:$8 sps:$4 sm:$0xff]  }
 0x798   :  { %10544 = vmatpush2.bf16.msra.mxu1 %v13636_v49  ;;  %10578 = vmatprep.subr.bf16.mxu0 %v13641_v21  ;;  %v13672_v49 = vld [vmem:[#allocation18 + $0x920] ss:$8 sps:$4 sm:$0xff]   ;;  %v13677_v21 = vld [vmem:[#allocation18 + $0xa54] ss:$8 sps:$4 sm:$0xff]  }
 0x799   :  { %10595 = vmatprep.subr.bf16.mxu1 %v13644_v57  ;;  %v13675_v57 = vld [vmem:[#allocation18 + $0xa50] ss:$8 sps:$4 sm:$0xff]   ;;  %v13732_v11 = vld [vmem:[#allocation18 + $0x980] ss:$8 sps:$4 sm:$0xff]  }
 0x79b   :  { %v10301_v29 = vpop.f32.mrf.mxu1  ;;  %10546 = vmatmul.mubr.bf16.vlgmr.msra.gmra.mxu1 %v7900_v38  ;;  %10579 = vmatpush2.bf16.msra.mxu0 %v13639_v48  ;;  %v13681_v48 = vld [vmem:[#allocation18 + $0xa40] ss:$8 sps:$4 sm:$0xff]   ;;  %v13687_v38 = vld [vmem:[#allocation18 + $0xa30] ss:$8 sps:$4 sm:$0xff]  }
 0x79c   :  { %v17097_v27 = vadd.f32 %v10301_v29, %v10261_v22  ;;  %10596 = vmatpush1.bf16.msra.mxu1 %v13642_v13  ;;  %10627 = vmatprep.mubr.bf16.mxu1 %v7905_v34  ;;  %v13692_v13 = vld [vmem:[#allocation18 + $0x9f4] ss:$8 sps:$4 sm:$0xff]   ;;  %v13698_v22 = vld [vmem:[#allocation18 + $0x9e4] ss:$8 sps:$4 sm:$0xff]   ;;  %v13693_v34 = vld [vmem:[#allocation18 + $0xa20] ss:$8 sps:$4 sm:$0xff]  }
 0x79d   :  { %v10303_v35 = vpop.f32.mrf.mxu1  ;;  %10580 = vmatprep.subr.bf16.mxu0 %v13647_v31  ;;  %10597 = vmatprep.subr.bf16.mxu1 %v13650_v4  ;;  %v13690_v31 = vld [vmem:[#allocation18 + $0x9f0] ss:$8 sps:$4 sm:$0xff]   ;;  %v13695_v4 = vld [vmem:[#allocation18 + $0xa24] ss:$8 sps:$4 sm:$0xff]   ;;  %v13696_v29 = vld [vmem:[#allocation18 + $0x9e0] ss:$8 sps:$4 sm:$0xff]  }
 0x79e   :  { %v17099_v10 = vadd.f32 %v10303_v35, %v10263_v32  ;;  %v13704_v32 = vld [vmem:[#allocation18 + $0x9d4] ss:$8 sps:$4 sm:$0xff]   ;;  %v13707_v35 = vld [vmem:[#allocation18 + $0xa04] ss:$8 sps:$4 sm:$0xff]  }
 0x79f   :  { %v10305_v0 = vpop.f32.mrf.mxu1  ;;  %10581 = vmatpush2.bf16.msra.mxu0 %v13645_v16  ;;  %v13701_v16 = vld [vmem:[#allocation18 + $0xa14] ss:$8 sps:$4 sm:$0xff]  }
 0x7a0   :  { %10598 = vmatpush1.bf16.msra.mxu1 %v13648_v62  ;;  %10582 = vmatprep.subr.bf16.mxu0 %v13653_v23  ;;  %v13699_v62 = vld [vmem:[#allocation18 + $0xa10] ss:$8 sps:$4 sm:$0xff]   ;;  %v13705_v0 = vld [vmem:[#allocation18 + $0xa00] ss:$8 sps:$4 sm:$0xff]  }
 0x7a1   :  { %v10306_v33 = vpop.f32.mrf.mxu1  ;;  %10599 = vmatprep.subr.bf16.mxu1 %v13656_v51  ;;  %v13702_v23 = vld [vmem:[#allocation18 + $0x9d0] ss:$8 sps:$4 sm:$0xff]   ;;  %v13710_v51 = vld [vmem:[#allocation18 + $0x9c4] ss:$8 sps:$4 sm:$0xff]  }
 0x7a2   :  { %v13714_v33 = vld [vmem:[#allocation18 + $0x9b0] ss:$8 sps:$4 sm:$0xff]  }
 0x7a3   :  { %10583 = vmatpush2.bf16.msra.mxu0 %v13651_v50  ;;  %v13708_v50 = vld [vmem:[#allocation18 + $0x9c0] ss:$8 sps:$4 sm:$0xff]  }
 0x7a4   :  { %10600 = vmatpush1.bf16.msra.mxu1 %v13654_v46  ;;  %10584 = vmatprep.subr.bf16.mxu0 %v13659_v60  ;;  %v13713_v46 = vld [vmem:[#allocation18 + $0xaf4] ss:$8 sps:$4 sm:$0xff]  }
 0x7a5   :  { %10601 = vmatprep.subr.bf16.mxu1 %v13662_v55  ;;  %v13716_v60 = vld [vmem:[#allocation18 + $0x9b4] ss:$8 sps:$4 sm:$0xff]   ;;  %v13719_v55 = vld [vmem:[#allocation18 + $0xae4] ss:$8 sps:$4 sm:$0xff]  }
 0x7a7   :  { %10585 = vmatpush2.bf16.msra.mxu0 %v13657_v5  ;;  %v13725_v5 = vld [vmem:[#allocation18 + $0xad4] ss:$8 sps:$4 sm:$0xff]  }
 0x7a8   :  { %10602 = vmatpush1.bf16.msra.mxu1 %v13660_v43  ;;  %10636 = vmatprep.subr.bf16.mxu0 %v13665_v56  ;;  %v13728_v43 = vld [vmem:[#allocation18 + $0x994] ss:$8 sps:$4 sm:$0xff]   ;;  %v13726_v56 = vld [vmem:[#allocation18 + $0x990] ss:$8 sps:$4 sm:$0xff]  }
 0x7a9   :  { %10603 = vmatprep.subr.bf16.mxu1 %v13668_v58  ;;  %v13734_v58 = vld [vmem:[#allocation18 + $0x984] ss:$8 sps:$4 sm:$0xff]  }
 0x7aa   :  { %10587 = vmatmul.mubr.bf16.vlgmr.msra.gmra.mxu0 %v7902_v26  ;;  %v13740_v26 = vld [vmem:[#allocation18 + $0xb74] ss:$8 sps:$4 sm:$0xff]  }
 0x7ab   :  { %10637 = vmatpush1.bf16.msra.mxu0 %v13663_v1  ;;  %10668 = vmatprep.mubr.bf16.mxu0 %v7907_v42  ;;  %v13737_v1 = vld [vmem:[#allocation18 + $0xab4] ss:$8 sps:$4 sm:$0xff]   ;;  %v7904_v42 = vpack.c.bf16 %v17066_v18, %v17066_v18  ;;  %v10345_v18 = vadd.f32 %v17021_v61, %v17099_v10  ;;  %v13753_v61 = vld [vmem:[#allocation18 + $0xa80] ss:$8 sps:$4 sm:$0xff]  }
 0x7ac   :  { %10604 = vmatpush1.bf16.msra.mxu1 %v13666_v54  ;;  %10638 = vmatprep.subr.bf16.mxu0 %v13671_v14  ;;  %v13735_v54 = vld [vmem:[#allocation18 + $0xab0] ss:$8 sps:$4 sm:$0xff]   ;;  %v13756_v10 = vld [vmem:[#allocation18 + $0xb40] ss:$8 sps:$4 sm:$0xff]  }
 0x7ad   :  { %10605 = vmatprep.subr.bf16.mxu1 %v13674_v3  ;;  %v13738_v14 = vld [vmem:[#allocation18 + $0xb70] ss:$8 sps:$4 sm:$0xff]   ;;  %v13743_v3 = vld [vmem:[#allocation18 + $0xaa4] ss:$8 sps:$4 sm:$0xff]  }
 0x7af   :  { %10639 = vmatpush1.bf16.msra.mxu0 %v13669_v40  ;;  %v13746_v40 = vld [vmem:[#allocation18 + $0xb64] ss:$8 sps:$4 sm:$0xff]  }
 0x7b0   :  { %10606 = vmatpush1.bf16.msra.mxu1 %v13672_v49  ;;  %10640 = vmatprep.subr.bf16.mxu0 %v13677_v21  ;;  %v10343_v49 = vadd.f32 %v17019_v15, %v17097_v27  ;;  %v7909_v21 = vpack.c.bf16 %v17069_v8, %v17069_v8  ;;  %v13752_v15 = vld [vmem:[#allocation18 + $0xb54] ss:$8 sps:$4 sm:$0xff]  }
 0x7b1   :  { %10607 = vmatprep.subr.bf16.mxu1 %v13680_v37 }
 0x7b3   :  { %10641 = vmatpush1.bf16.msra.mxu0 %v13675_v57  ;;  %v13741_v57 = vld [vmem:[#allocation18 + $0xaa0] ss:$8 sps:$4 sm:$0xff]  }
 0x7b4   :  { %10608 = vmatpush1.bf16.msra.mxu1 %v13678_v7  ;;  %10642 = vmatprep.subr.bf16.mxu0 %v13683_v39  ;;  %v13744_v39 = vld [vmem:[#allocation18 + $0xb60] ss:$8 sps:$4 sm:$0xff]  }
 0x7b5   :  { %10609 = vmatprep.subr.bf16.mxu1 %v13686_v44  ;;  %v13749_v44 = vld [vmem:[#allocation18 + $0xa94] ss:$8 sps:$4 sm:$0xff]  }
 0x7b7   :  { %10643 = vmatpush1.bf16.msra.mxu0 %v13681_v48 }
 0x7b8   :  { %10610 = vmatpush1.bf16.msra.mxu1 %v13684_v9  ;;  %10644 = vmatprep.subr.bf16.mxu0 %v13689_v25  ;;  %v13747_v9 = vld [vmem:[#allocation18 + $0xa90] ss:$8 sps:$4 sm:$0xff]  }
 0x7b9   :  { %10611 = vmatprep.subr.bf16.mxu1 %v13692_v13  ;;  %v13750_v25 = vld [vmem:[#allocation18 + $0xb50] ss:$8 sps:$4 sm:$0xff]   ;;  %v13755_v13 = vld [vmem:[#allocation18 + $0xa84] ss:$8 sps:$4 sm:$0xff]  }
 0x7bb   :  { %10645 = vmatpush1.bf16.msra.mxu0 %v13687_v38 }
 0x7bc   :  { %10612 = vmatpush2.bf16.msra.mxu1 %v13690_v31  ;;  %10646 = vmatprep.subr.bf16.mxu0 %v13695_v4  ;;  %v13758_v31 = vld [vmem:[#allocation18 + $0xb44] ss:$8 sps:$4 sm:$0xff]   ;;  %v13761_v4 = vld [vmem:[#allocation18 + $0xb34] ss:$8 sps:$4 sm:$0xff]  }
 0x7bd   :  { %10613 = vmatprep.subr.bf16.mxu1 %v13698_v22  ;;  %v7906_v22 = vpack.c.bf16 %v17075_v41, %v17075_v41  ;;  %v13776_v41 = vld [vmem:[#allocation18 + $0xbe4] ss:$8 sps:$4 sm:$0xff]  }
 0x7bf   :  { %10647 = vmatpush1.bf16.msra.mxu0 %v13693_v34  ;;  %v13759_v34 = vld [vmem:[#allocation18 + $0xb30] ss:$8 sps:$4 sm:$0xff]  }
 0x7c0   :  { %10614 = vmatpush2.bf16.msra.mxu1 %v13696_v29  ;;  %10648 = vmatprep.subr.bf16.mxu0 %v13701_v16  ;;  %v13764_v29 = vld [vmem:[#allocation18 + $0xb24] ss:$8 sps:$4 sm:$0xff]   ;;  %v13762_v16 = vld [vmem:[#allocation18 + $0xb20] ss:$8 sps:$4 sm:$0xff]  }
 0x7c1   :  { %10615 = vmatprep.subr.bf16.mxu1 %v13704_v32  ;;  %v13767_v32 = vld [vmem:[#allocation18 + $0xb14] ss:$8 sps:$4 sm:$0xff]  }
 0x7c3   :  { %10649 = vmatpush1.bf16.msra.mxu0 %v13699_v62  ;;  %v13765_v62 = vld [vmem:[#allocation18 + $0xb10] ss:$8 sps:$4 sm:$0xff]  }
 0x7c4   :  { %10616 = vmatpush2.bf16.msra.mxu1 %v13702_v23  ;;  %10650 = vmatprep.subr.bf16.mxu0 %v13707_v35  ;;  %v13770_v23 = vld [vmem:[#allocation18 + $0xb04] ss:$8 sps:$4 sm:$0xff]   ;;  %v13768_v35 = vld [vmem:[#allocation18 + $0xb00] ss:$8 sps:$4 sm:$0xff]  }
 0x7c5   :  { %10617 = vmatprep.subr.bf16.mxu1 %v13710_v51  ;;  %v13773_v51 = vld [vmem:[#allocation18 + $0xbf4] ss:$8 sps:$4 sm:$0xff]  }
 0x7c7   :  { %10651 = vmatpush1.bf16.msra.mxu0 %v13705_v0  ;;  %v13771_v0 = vld [vmem:[#allocation18 + $0xbf0] ss:$8 sps:$4 sm:$0xff]  }
 0x7c8   :  { %10618 = vmatpush2.bf16.msra.mxu1 %v13708_v50  ;;  %10652 = vmatprep.subr.bf16.mxu0 %v13713_v46  ;;  %v13774_v50 = vld [vmem:[#allocation18 + $0xbe0] ss:$8 sps:$4 sm:$0xff]   ;;  %v13779_v46 = vld [vmem:[#allocation18 + $0xbd4] ss:$8 sps:$4 sm:$0xff]  }
 0x7c9   :  { %10619 = vmatprep.subr.bf16.mxu1 %v13716_v60  ;;  %v13777_v60 = vld [vmem:[#allocation18 + $0xbd0] ss:$8 sps:$4 sm:$0xff]  }
 0x7cb   :  { %10653 = vmatpush2.bf16.msra.mxu0 %v13711_v63  ;;  %v13782_v63 = vld [vmem:[#allocation18 + $0xbc4] ss:$8 sps:$4 sm:$0xff]  }
 0x7cc   :  { %10620 = vmatpush2.bf16.msra.mxu1 %v13714_v33  ;;  %10654 = vmatprep.subr.bf16.mxu0 %v13719_v55  ;;  %v13780_v33 = vld [vmem:[#allocation18 + $0xbc0] ss:$8 sps:$4 sm:$0xff]   ;;  %v13785_v55 = vld [vmem:[#allocation18 + $0xbb4] ss:$8 sps:$4 sm:$0xff]  }
 0x7cd   :  { %10621 = vmatprep.subr.bf16.mxu1 %v13722_v36  ;;  %v13783_v36 = vld [vmem:[#allocation18 + $0xbb0] ss:$8 sps:$4 sm:$0xff]  }
 0x7cf   :  { %10655 = vmatpush2.bf16.msra.mxu0 %v13717_v45  ;;  %v13788_v45 = vld [vmem:[#allocation18 + $0xba4] ss:$8 sps:$4 sm:$0xff]  }
 0x7d0   :  { %10622 = vmatpush2.bf16.msra.mxu1 %v13720_v12  ;;  %10656 = vmatprep.subr.bf16.mxu0 %v13725_v5  ;;  %v13786_v12 = vld [vmem:[#allocation18 + $0xba0] ss:$8 sps:$4 sm:$0xff]   ;;  %v13791_v5 = vld [vmem:[#allocation18 + $0xb94] ss:$8 sps:$4 sm:$0xff]  }
 0x7d1   :  { %10623 = vmatprep.subr.bf16.mxu1 %v13728_v43  ;;  %v13789_v43 = vld [vmem:[#allocation18 + $0xb90] ss:$8 sps:$4 sm:$0xff]  }
 0x7d3   :  { %10657 = vmatpush2.bf16.msra.mxu0 %v13723_v30  ;;  %v13794_v30 = vld [vmem:[#allocation18 + $0xb84] ss:$8 sps:$4 sm:$0xff]  }
 0x7d4   :  { %10624 = vmatpush2.bf16.msra.mxu1 %v13726_v56  ;;  %10658 = vmatprep.subr.bf16.mxu0 %v13731_v19  ;;  %v13792_v56 = vld [vmem:[#allocation18 + $0xb80] ss:$8 sps:$4 sm:$0xff]   ;;  %v7908_v19 = vpack.c.bf16 %v17080_v6, %v17080_v6 }
 0x7d5   :  { %10625 = vmatprep.subr.bf16.mxu1 %v13734_v58 }
 0x7d7   :  { %10659 = vmatpush2.bf16.msra.mxu0 %v13729_v28 }
 0x7d8   :  { %10626 = vmatpush2.bf16.msra.mxu1 %v13732_v11  ;;  %10660 = vmatprep.subr.bf16.mxu0 %v13737_v1 }
 0x7d9   :  { %10677 = vmatprep.subr.bf16.mxu1 %v13740_v26 }
 0x7db   :  { %v10383_v37 = vpop.f32.mrf.mxu1  ;;  %10628 = vmatmul.mubr.bf16.vlgmr.msra.gmra.mxu1 %v7904_v42  ;;  %10661 = vmatpush2.bf16.msra.mxu0 %v13735_v54 }
 0x7dc   :  { %v17115_v7 = vadd.f32 %v10383_v37, %v10343_v49  ;;  %10678 = vmatpush1.bf16.msra.mxu1 %v13738_v14  ;;  %10709 = vmatprep.mubr.bf16.mxu1 %v7909_v21 }
 0x7dd   :  { %v10385_v48 = vpop.f32.mrf.mxu1  ;;  %10662 = vmatprep.subr.bf16.mxu0 %v13743_v3  ;;  %10679 = vmatprep.subr.bf16.mxu1 %v13746_v40 }
 0x7de   :  { %v17119_v27 = vadd.f32 %v10385_v48, %v10345_v18  ;;  %v10425_v58 = vadd.f32 %v17027_v53, %v17115_v7  ;;  %v13795_v53 = vld [vmem:[#allocation21 + $0x78] sm:$0xff]   ;;  %v13797_v7 = vld [vmem:[#allocation21 + $0x70] sm:$0xff]   ;;  %v13802_v48 = vld [vmem:[#allocation21 + $0x20] sm:$0xff]  }
 0x7df   :  { %v10387_v8 = vpop.f32.mrf.mxu1  ;;  %10663 = vmatpush2.bf16.msra.mxu0 %v13741_v57  ;;  %v13796_v57 = vld [vmem:[#allocation21 + $0x38] sm:$0xff]   ;;  %v13798_v18 = vld [vmem:[#allocation21 + $0x30] sm:$0xff]  }
 0x7e0   :  { %10680 = vmatpush1.bf16.msra.mxu1 %v13744_v39  ;;  %10664 = vmatprep.subr.bf16.mxu0 %v13749_v44  ;;  %v10427_v1 = vadd.f32 %v17029_v2, %v17119_v27  ;;  %v13799_v2 = vld [vmem:[#allocation21 + $0x68] sm:$0xff]   ;;  %v13801_v44 = vld [vmem:[#allocation21 + $0x60] sm:$0xff]   ;;  %v13804_v27 = vld [vmem:[#allocation21 + $0x18] sm:$0xff]  }
 0x7e1   :  { %v10388_v38 = vpop.f32.mrf.mxu1  ;;  %10681 = vmatprep.subr.bf16.mxu1 %v13752_v15  ;;  %v13800_v39 = vld [vmem:[#allocation21 + $0x28] sm:$0xff]   ;;  %v13803_v15 = vld [vmem:[#allocation21 + $0x58] sm:$0xff]   ;;  %v13805_v8 = vld [vmem:[#allocation21 + $0x50] sm:$0xff]  }
 0x7e3   :  { %10665 = vmatpush2.bf16.msra.mxu0 %v13747_v9  ;;  %v13806_v9 = vld [vmem:[#allocation21 + $0x10] sm:$0xff]  }
 0x7e4   :  { %10682 = vmatpush1.bf16.msra.mxu1 %v13750_v25  ;;  %10666 = vmatprep.subr.bf16.mxu0 %v13755_v13 }
 0x7e5   :  { %10683 = vmatprep.subr.bf16.mxu1 %v13758_v31 }
 0x7e7   :  { %10667 = vmatpush2.bf16.msra.mxu0 %v13753_v61 }
 0x7e8   :  { %10684 = vmatpush1.bf16.msra.mxu1 %v13756_v10  ;;  %12978 = vmatprep.subr.bf16.mxu0 %v13795_v53 }
 0x7e9   :  { %10685 = vmatprep.subr.bf16.mxu1 %v13761_v4  ;;  %v13807_v4 = vld [vmem:[#allocation21 + $0x48] sm:$0xff]  }
 0x7ea   :  { %10669 = vmatmul.mubr.bf16.vlgmr.msra.gmra.mxu0 %v7906_v22  ;;  %v13808_v22 = vld [vmem:[#allocation21 + $0x8] sm:$0xff]  }
 0x7eb   :  { %12979 = vmatpush3.bf16.msra.mxu0 %v13796_v57  ;;  %v12800_v57 = vld [vmem:[#allocation22] ss:$0 sm:$0xff] }
 0x7ec   :  { %10686 = vmatpush1.bf16.msra.mxu1 %v13759_v34  ;;  %12980 = vmatprep.subr.bf16.mxu0 %v13797_v7  ;;  %v13809_v34 = vld [vmem:[#allocation21 + $0x40] sm:$0xff]  }
 0x7ed   :  { %10687 = vmatprep.subr.bf16.mxu1 %v13764_v29  ;;  %v13810_v29 = vld [vmem:[#allocation21] sm:$0xff]  }
 0x7ef   :  { %12981 = vmatpush3.bf16.msra.mxu0 %v13798_v18 }
 0x7f0   :  { %10688 = vmatpush1.bf16.msra.mxu1 %v13762_v16  ;;  %12982 = vmatprep.subr.bf16.mxu0 %v13799_v2  ;;  %v13811_v16 = vld [vmem:[%s17554_s19 + $0x38] sm:$0xff]  }
 0x7f1   :  { %10689 = vmatprep.subr.bf16.mxu1 %v13767_v32  ;;  %v13812_v32 = vld [vmem:[%s17554_s19 + $0x30] sm:$0xff]  }
 0x7f3   :  { %12983 = vmatpush3.bf16.msra.mxu0 %v13800_v39 }
 0x7f4   :  { %10690 = vmatpush1.bf16.msra.mxu1 %v13765_v62  ;;  %12984 = vmatprep.subr.bf16.mxu0 %v13801_v44 }
 0x7f5   :  { %10691 = vmatprep.subr.bf16.mxu1 %v13770_v23 }
 0x7f7   :  { %12985 = vmatpush3.bf16.msra.mxu0 %v13802_v48 }
 0x7f8   :  { %10692 = vmatpush1.bf16.msra.mxu1 %v13768_v35  ;;  %12986 = vmatprep.subr.bf16.mxu0 %v13803_v15  ;;  %v13813_v35 = vld [vmem:[%s17554_s19 + $0x28] sm:$0xff]  }
 0x7f9   :  { %10693 = vmatprep.subr.bf16.mxu1 %v13773_v51 }
 0x7fb   :  { %12987 = vmatpush3.bf16.msra.mxu0 %v13804_v27  ;;  %v13819_v27 = vld [vmem:[#allocation25 + $0x8] sm:$0xff]  }
 0x7fc   :  { %10694 = vmatpush2.bf16.msra.mxu1 %v13771_v0  ;;  %12988 = vmatprep.subr.bf16.mxu0 %v13805_v8  ;;  %v12817_v8 = vld [vmem:[#allocation24] ss:$0 sm:$0xff] }
 0x7fd   :  { %10695 = vmatprep.subr.bf16.mxu1 %v13776_v41 }
 0x7ff   :  { %12989 = vmatpush3.bf16.msra.mxu0 %v13806_v9 }
 0x800   :  { %10696 = vmatpush2.bf16.msra.mxu1 %v13774_v50  ;;  %12990 = vmatprep.subr.bf16.mxu0 %v13807_v4  ;;  %v13814_v50 = vld [vmem:[%s17554_s19 + $0x20] sm:$0xff]  }
 0x801   :  { %10697 = vmatprep.subr.bf16.mxu1 %v13779_v46  ;;  %v13820_v4 = vld [vmem:[#allocation25] sm:$0xff]  }
 0x803   :  { %12991 = vmatpush3.bf16.msra.mxu0 %v13808_v22  ;;  %v13823_v22 = vld [vmem:[#allocation28 + $0x74] ss:$8 sps:$4 sm:$0xff]  }
 0x804   :  { %10698 = vmatpush2.bf16.msra.mxu1 %v13777_v60  ;;  %12992 = vmatprep.subr.bf16.mxu0 %v13809_v34  ;;  %v13815_v60 = vld [vmem:[%s17554_s19 + $0x18] sm:$0xff]  }
 0x805   :  { %10699 = vmatprep.subr.bf16.mxu1 %v13782_v63 }
 0x807   :  { %12993 = vmatpush3.bf16.msra.mxu0 %v13810_v29 }
 0x808   :  { %10700 = vmatpush2.bf16.msra.mxu1 %v13780_v33  ;;  %13122 = vmatprep.subr.bf16.mxu0 %v17630_v47 }
 0x809   :  { %10701 = vmatprep.subr.bf16.mxu1 %v13785_v55 }
 0x80c   :  { %10702 = vmatpush2.bf16.msra.mxu1 %v13783_v36 }
 0x80d   :  { %10703 = vmatprep.subr.bf16.mxu1 %v13788_v45 }
 0x810   :  { %10704 = vmatpush2.bf16.msra.mxu1 %v13786_v12 }
 0x811   :  { %10705 = vmatprep.subr.bf16.mxu1 %v13791_v5 }
 0x814   :  { %10706 = vmatpush2.bf16.msra.mxu1 %v13789_v43 }
 0x815   :  { %10707 = vmatprep.subr.bf16.mxu1 %v13794_v30 }
 0x818   :  { %10708 = vmatpush2.bf16.msra.mxu1 %v13792_v56 }
 0x819   :  { %13102 = vmatprep.subr.bf16.mxu1 %v17630_v47 }
 0x81b   :  { %v10465_v28 = vpop.f32.mrf.mxu1  ;;  %10710 = vmatmul.mubr.bf16.vlgmr.msra.gmra.mxu1 %v7908_v19 }
 0x81c   :  { %v10466_v11 = vadd.f32 %v10465_v28, %v10425_v58  ;;  %13118 = vmatprep.mubr.msk.bf16.mxu1 %vm14458_vm6, %v17630_v47  ;;  %13103 = vmatpush3.bf16.msra.mxu1 %v13811_v16 }
 0x81d   :  { %v10467_v26 = vpop.f32.mrf.mxu1  ;;  %13104 = vmatprep.subr.bf16.mxu1 %v17630_v47 }
 0x81e   :  { %v10468_v54 = vadd.f32 %v10467_v26, %v10427_v1 }
 0x81f   :  { %v10469_v14 = vpop.f32.mrf.mxu1 }
 0x820   :  { %13105 = vmatpush3.bf16.msra.mxu1 %v13812_v32 }
 0x821   :  { %v10470_v42 = vpop.f32.mrf.mxu1  ;;  %13106 = vmatprep.subr.bf16.mxu1 %v17630_v47 }
 0x824   :  { %13107 = vmatpush3.bf16.msra.mxu1 %v13813_v35  ;;  %v13826_v35 = vld [vmem:[#allocation28 + $0x64] ss:$8 sps:$4 sm:$0xff]  }
 0x825   :  { %13108 = vmatprep.subr.bf16.mxu1 %v17630_v47 }
 0x828   :  { %13109 = vmatpush3.bf16.msra.mxu1 %v13814_v50  ;;  %v13832_v50 = vld [vmem:[#allocation28 + $0x44] ss:$8 sps:$4 sm:$0xff]  }
 0x829   :  { %13110 = vmatprep.subr.bf16.mxu1 %v17630_v47 }
 0x82a   :  { %v10506_v3 = vpop.f32.mrf.mxu0 }
 0x82b   :  { %v10507_v6 = vadd.f32 %v10506_v3, %v10466_v11 }
 0x82c   :  { %v10508_v40 = vpop.f32.mrf.mxu0  ;;  %13111 = vmatpush3.bf16.msra.mxu1 %v13815_v60  ;;  %v13835_v60 = vld [vmem:[#allocation28 + $0x34] ss:$8 sps:$4 sm:$0xff]  }
 0x82d   :  { %v10509_v49 = vadd.f32 %v10508_v40, %v10468_v54  ;;  %13112 = vmatprep.subr.bf16.mxu1 %v17630_v47 }
 0x82e   :  { %v10510_v21 = vpop.f32.mrf.mxu0 }
 0x82f   :  { %v13817_v21 = vld [vmem:[%s17554_s19 + $0x8] sm:$0xff]  }
 0x830   :  { %v10511_v37 = vpop.f32.mrf.mxu0 }
 0x831   :  { %v13818_v37 = vld [vmem:[%s17554_s19] sm:$0xff]  }
 0x85b   :  { %v10547_v25 = vpop.f32.mrf.mxu1 }
 0x85c   :  { %v10548_v13 = vadd.f32 %v10547_v25, %v10507_v6 }
 0x85d   :  { %v10549_v38 = vpop.f32.mrf.mxu1 }
 0x85e   :  { %v10550_v31 = vadd.f32 %v10549_v38, %v10509_v49  ;;  %v13816_v49 = vld [vmem:[%s17554_s19 + $0x10] sm:$0xff]  }
 0x85f   :  { %v10551_v61 = vpop.f32.mrf.mxu1  ;;  %13113 = vmatpush3.bf16.msra.mxu1 %v13816_v49  ;;  %v13887_v49 = vld [vmem:[%s17560_s25] ss:$28 sps:$4 sm:$0xff]  }
 0x860   :  { %13114 = vmatprep.subr.bf16.mxu1 %v17630_v47 }
 0x861   :  { %v10552_v10 = vpop.f32.mrf.mxu1 }
 0x863   :  { %13115 = vmatpush3.bf16.msra.mxu1 %v13817_v21  ;;  %v13895_v21 = vld [vmem:[%s17560_s25 + $0x34c] ss:$28 sps:$4 sm:$0xff]  }
 0x864   :  { %13116 = vmatprep.subr.bf16.mxu1 %v17630_v47 }
 0x867   :  { %13117 = vmatpush3.bf16.msra.mxu1 %v13818_v37  ;;  %v13893_v37 = vld [vmem:[%s17560_s25 + $0x348] ss:$28 sps:$4 sm:$0xff]  }
 0x86a   :  { %v10588_v62 = vpop.f32.mrf.mxu0 }
 0x86b   :  { %v10589_v23 = vadd.f32 %v10588_v62, %v10548_v13  ;;  %v13821_v62 = vld [vmem:[#allocation28 + $0x70] ss:$8 sps:$4 sm:$0xff]  }
 0x86c   :  { %v10590_v51 = vpop.f32.mrf.mxu0 }
 0x86d   :  { %v10591_v0 = vadd.f32 %v10590_v51, %v10550_v31  ;;  %v13824_v51 = vld [vmem:[#allocation28 + $0x60] ss:$8 sps:$4 sm:$0xff]  }
 0x86e   :  { %v10592_v41 = vpop.f32.mrf.mxu0 }
 0x86f   :  { %v13827_v41 = vld [vmem:[#allocation28 + $0x50] ss:$8 sps:$4 sm:$0xff]  }
 0x870   :  { %v10593_v46 = vpop.f32.mrf.mxu0 }
 0x871   :  { %v13830_v46 = vld [vmem:[#allocation28 + $0x40] ss:$8 sps:$4 sm:$0xff]  }
 0x89b   :  { %v10629_v63 = vpop.f32.mrf.mxu1 }
 0x89c   :  { %v10630_v30 = vadd.f32 %v10629_v63, %v10589_v23  ;;  %v13833_v63 = vld [vmem:[#allocation28 + $0x30] ss:$8 sps:$4 sm:$0xff]  }
 0x89d   :  { %v10631_v33 = vpop.f32.mrf.mxu1 }
 0x89e   :  { %v10632_v56 = vadd.f32 %v10631_v33, %v10591_v0  ;;  %v13829_v0 = vld [vmem:[#allocation28 + $0x54] ss:$8 sps:$4 sm:$0xff]   ;;  %v13838_v33 = vld [vmem:[#allocation28 + $0x24] ss:$8 sps:$4 sm:$0xff]  }
 0x89f   :  { %v10633_v55 = vpop.f32.mrf.mxu1 }
 0x8a0   :  { %v13836_v55 = vld [vmem:[#allocation28 + $0x20] ss:$8 sps:$4 sm:$0xff]  }
 0x8a1   :  { %v10634_v36 = vpop.f32.mrf.mxu1 }
 0x8a2   :  { %v13841_v36 = vld [vmem:[#allocation28 + $0x14] ss:$8 sps:$4 sm:$0xff]  }
 0x8aa   :  { %v10670_v45 = vpop.f32.mrf.mxu0 }
 0x8ab   :  { %v10671_v19 = vadd.f32 %v10670_v45, %v10630_v30  ;;  %v13842_v45 = vld [vmem:[#allocation28] ss:$8 sps:$4 sm:$0xff]  }
 0x8ac   :  { %v10672_v12 = vpop.f32.mrf.mxu0  ;;  %v13850_v30 = vld [vmem:[%s17560_s25 + $0x194] ss:$28 sps:$4 sm:$0xff]  }
 0x8ad   :  { %v10673_v28 = vadd.f32 %v10672_v12, %v10632_v56  ;;  %v13844_v12 = vld [vmem:[#allocation28 + $0x4] ss:$8 sps:$4 sm:$0xff]   ;;  %v13853_v56 = vld [vmem:[%s17560_s25 + $0x154] ss:$28 sps:$4 sm:$0xff]  }
 0x8ae   :  { %v10674_v5 = vpop.f32.mrf.mxu0 }
 0x8af   :  { %v13845_v5 = vld [vmem:[%s17560_s25 + $0x188] ss:$28 sps:$4 sm:$0xff]  }
 0x8b0   :  { %v10675_v43 = vpop.f32.mrf.mxu0 }
 0x8b1   :  { %v13847_v43 = vld [vmem:[%s17560_s25 + $0x18c] ss:$28 sps:$4 sm:$0xff]  }
 0x8b2   :  { %11982 = vmatprep.subr.bf16.mxu1 %v13847_v43  ;;  %v13920_v43 = vld [vmem:[%s17560_s25 + $0x270] ss:$28 sps:$4 sm:$0xff]  }
 0x8db   :  { %v10711_v58 = vpop.f32.mrf.mxu1 }
 0x8dc   :  { %v10712_v11 = vadd.f32 %v10711_v58, %v10671_v19  ;;  %v13851_v19 = vld [vmem:[%s17560_s25 + $0x150] ss:$28 sps:$4 sm:$0xff]   ;;  %v13859_v58 = vld [vmem:[%s17560_s25 + $0x11c] ss:$28 sps:$4 sm:$0xff]  }
 0x8dd   :  { %v10713_v1 = vpop.f32.mrf.mxu1 }
 0x8de   :  { %v10714_v26 = vadd.f32 %v10713_v1, %v10673_v28  ;;  %v10718_v54 = vmax.f32 %v10712_v11, 0.0  ;;  %v13857_v28 = vld [vmem:[%s17560_s25 + $0x118] ss:$28 sps:$4 sm:$0xff]   ;;  %v13865_v11 = vld [vmem:[%s17560_s25 + $0xe4] ss:$28 sps:$4 sm:$0xff]  }
 0x8df   :  { %v10715_v14 = vpop.f32.mrf.mxu1  ;;  %v13863_v1 = vld [vmem:[%s17560_s25 + $0xe0] ss:$28 sps:$4 sm:$0xff]  }
 0x8e0   :  { %v10719_v42 = vmax.f32 %v10714_v26, 0.0  ;;  %v10720_v40 = vpack.c.bf16 %v10718_v54, %v10718_v54  ;;  %v13871_v26 = vld [vmem:[%s17560_s25 + $0xac] ss:$28 sps:$4 sm:$0xff]   ;;  %v13877_v14 = vld [vmem:[%s17560_s25 + $0x74] ss:$28 sps:$4 sm:$0xff]  }
 0x8e1   :  { %v10716_v3 = vpop.f32.mrf.mxu1  ;;  %v13869_v54 = vld [vmem:[%s17560_s25 + $0xa8] ss:$28 sps:$4 sm:$0xff]  }
 0x8e2   :  { %v10721_v6 = vpack.c.bf16 %v10719_v42, %v10719_v42  ;;  %v13875_v42 = vld [vmem:[%s17560_s25 + $0x70] ss:$28 sps:$4 sm:$0xff]   ;;  %v13883_v3 = vld [vmem:[%s17560_s25 + $0x3c] ss:$28 sps:$4 sm:$0xff]  }
 0x8e4   :  { %10889 = vmatprep.mubr.bf16.mxu0 %v10721_v6  ;;  %v13881_v6 = vld [vmem:[%s17560_s25 + $0x38] ss:$28 sps:$4 sm:$0xff]  }
 0x8e5   :  { %10890 = vmatmul.mubr.bf16.vlgmr.msra.gmra.mxu0 %v10720_v40  ;;  %v13889_v40 = vld [vmem:[%s17560_s25 + $0x4] ss:$28 sps:$4 sm:$0xff]  }
 0x8e6   :  { %13126 = vmatprep.mubr.msk.bf16.mxu0 %vm14458_vm6, %v17630_v47  ;;  %13123 = vmatpush3.bf16.msra.mxu0 %v13819_v27  ;;  %v13923_v27 = vld [vmem:[%s17560_s25 + $0x230] ss:$28 sps:$4 sm:$0xff]   ;;  %vm12188_vm6 = vcmask 1043458  }
 0x8e7   :  { %13124 = vmatprep.subr.bf16.mxu0 %v17630_v47  ;;  %v362_v47 = vld [vmem:[#allocation2] sm:$0x3] }
 0x8ea   :  { %13125 = vmatpush3.bf16.msra.mxu0 %v13820_v4  ;;  %v13856_v4 = vld [vmem:[%s17560_s25 + $0x15c] ss:$28 sps:$4 sm:$0xff]  }
 0x8eb   :  { %11196 = vmatprep.subr.bf16.mxu0 %v13823_v22 }
 0x9a5   :  { %v12994_v53 = vpop.f32.mrf.mxu0 }
 0x9a7   :  { %v12995_v7 = vpop.f32.mrf.mxu0 }
 0x9a8   :  { %v12996_v18 = vadd.f32 %v12995_v7, %v12994_v53  ;;  %v13901_v53 = vld [vmem:[%s17560_s25 + $0x314] ss:$28 sps:$4 sm:$0xff]   ;;  %v13907_v7 = vld [vmem:[%s17560_s25 + $0x2dc] ss:$28 sps:$4 sm:$0xff]  }
 0x9a9   :  { %v12997_v2 = vpop.f32.mrf.mxu0 }
 0x9aa   :  { %v10892_v39 = vadd.f32 %v12996_v18, %v12800_v57  ;;  %v13899_v57 = vld [vmem:[%s17560_s25 + $0x310] ss:$28 sps:$4 sm:$0xff]   ;;  %v13905_v18 = vld [vmem:[%s17560_s25 + $0x2d8] ss:$28 sps:$4 sm:$0xff]   ;;  %v13913_v2 = vld [vmem:[%s17560_s25 + $0x2a4] ss:$28 sps:$4 sm:$0xff]  }
 0x9ab   :  { %v12998_v44 = vpop.f32.mrf.mxu0 }
 0x9ac   :  { %v10897_v48 = vmax.f32 %v10892_v39, 0.0  ;;  %v13911_v39 = vld [vmem:[%s17560_s25 + $0x2a0] ss:$28 sps:$4 sm:$0xff]   ;;  %v13919_v44 = vld [vmem:[%s17560_s25 + $0x26c] ss:$28 sps:$4 sm:$0xff]  }
 0x9ae   :  { %v10898_v15 = vpack.c.bf16 %v10897_v48, %v10897_v48  ;;  %v13917_v48 = vld [vmem:[%s17560_s25 + $0x268] ss:$28 sps:$4 sm:$0xff]  }
 0x9b0   :  { %13119 = vmatmul.mubr.bf16.vlgmr.msra.gmra.mxu1 %v10898_v15  ;;  %v13925_v15 = vld [vmem:[%s17560_s25 + $0x234] ss:$28 sps:$4 sm:$0xff]  }
 0x9b1   :  { %11983 = vmatpush1.bf16.msra.mxu1 %v13845_v5  ;;  %v13922_v5 = vld [vmem:[%s17560_s25 + $0x274] ss:$28 sps:$4 sm:$0xff]  }
 0x9b2   :  { %11984 = vmatprep.subr.bf16.mxu1 %v13853_v56  ;;  %v13926_v56 = vld [vmem:[%s17560_s25 + $0x238] ss:$28 sps:$4 sm:$0xff]  }
 0x9b5   :  { %11985 = vmatpush1.bf16.msra.mxu1 %v13851_v19  ;;  %v13929_v19 = vld [vmem:[%s17560_s25 + $0x1f8] ss:$28 sps:$4 sm:$0xff]  }
 0x9b6   :  { %11986 = vmatprep.subr.bf16.mxu1 %v13859_v58  ;;  %v13931_v58 = vld [vmem:[%s17560_s25 + $0x1fc] ss:$28 sps:$4 sm:$0xff]  }
 0x9b9   :  { %11987 = vmatpush1.bf16.msra.mxu1 %v13857_v28  ;;  %v13932_v28 = vld [vmem:[%s17560_s25 + $0x200] ss:$28 sps:$4 sm:$0xff]  }
 0x9ba   :  { %11988 = vmatprep.subr.bf16.mxu1 %v13865_v11  ;;  %v13934_v11 = vld [vmem:[%s17560_s25 + $0x204] ss:$28 sps:$4 sm:$0xff]  }
 0x9bd   :  { %11989 = vmatpush1.bf16.msra.mxu1 %v13863_v1  ;;  %v13937_v1 = vld [vmem:[%s17560_s25 + $0x1c4] ss:$28 sps:$4 sm:$0xff]  }
 0x9be   :  { %11990 = vmatprep.subr.bf16.mxu1 %v13871_v26  ;;  %v13935_v26 = vld [vmem:[%s17560_s25 + $0x1c0] ss:$28 sps:$4 sm:$0xff]  }
 0x9c1   :  { %11991 = vmatpush1.bf16.msra.mxu1 %v13869_v54  ;;  %v13940_v54 = vld [vmem:[%s17560_s25 + $0x1cc] ss:$28 sps:$4 sm:$0xff]  }
 0x9c2   :  { %11992 = vmatprep.subr.bf16.mxu1 %v13877_v14  ;;  %v13938_v14 = vld [vmem:[%s17560_s25 + $0x1c8] ss:$28 sps:$4 sm:$0xff]  }
 0x9c5   :  { %11993 = vmatpush1.bf16.msra.mxu1 %v13875_v42  ;;  %v13943_v42 = vld [vmem:[%s17560_s25 + $0x19c] ss:$28 sps:$4 sm:$0xff]  }
 0x9c6   :  { %11994 = vmatprep.subr.bf16.mxu1 %v13883_v3  ;;  %v13944_v3 = vld [vmem:[%s17560_s25 + $0x360] ss:$28 sps:$4 sm:$0xff]  }
 0x9c9   :  { %11995 = vmatpush1.bf16.msra.mxu1 %v13881_v6  ;;  %v11104_v6 = vld [vmem:[#allocation30] sm:$0x3] }
 0x9ca   :  { %11996 = vmatprep.subr.bf16.mxu1 %v13889_v40  ;;  %v11109_v40 = vrot.slane %v11104_v6, %v17638_v24 }
 0x9cd   :  { %11997 = vmatpush1.bf16.msra.mxu1 %v13887_v49  ;;  %v11113_v49 = vrot.slane %v11104_v6, %v17087_v17  ;;  %v11385_v6 = vsub.s32 3, %v17691_v52 }
 0x9ce   :  { %11998 = vmatprep.subr.bf16.mxu1 %v13895_v21 }
 0x9d1   :  { %11999 = vmatpush2.bf16.msra.mxu1 %v13893_v37 }
 0x9d2   :  { %12000 = vmatprep.subr.bf16.mxu1 %v13901_v53 }
 0x9d5   :  { %12001 = vmatpush2.bf16.msra.mxu1 %v13899_v57 }
 0x9d6   :  { %12002 = vmatprep.subr.bf16.mxu1 %v13907_v7 }
 0x9d9   :  { %12003 = vmatpush2.bf16.msra.mxu1 %v13905_v18 }
 0x9da   :  { %12004 = vmatprep.subr.bf16.mxu1 %v13913_v2 }
 0x9dd   :  { %12005 = vmatpush2.bf16.msra.mxu1 %v13911_v39 }
 0x9de   :  { %12006 = vmatprep.subr.bf16.mxu1 %v13919_v44 }
 0x9e1   :  { %12007 = vmatpush2.bf16.msra.mxu1 %v13917_v48  ;;  %v13941_v48 = vld [vmem:[%s17560_s25 + $0x198] ss:$28 sps:$4 sm:$0xff]  }
 0x9e2   :  { %12008 = vmatprep.subr.bf16.mxu1 %v13925_v15  ;;  %v13945_v15 = vld [vmem:[%s17560_s25 + $0x1a0] ss:$28 sps:$4 sm:$0xff]  }
 0x9e5   :  { %12009 = vmatpush2.bf16.msra.mxu1 %v13923_v27 }
 0x9e6   :  { %12010 = vmatprep.subr.bf16.mxu1 %v13931_v58  ;;  %v13995_v58 = vld [vmem:[%s17560_s25 + $0x27c] ss:$28 sps:$4 sm:$0xff]  }
 0x9e9   :  { %12011 = vmatpush2.bf16.msra.mxu1 %v13929_v19  ;;  %v13990_v19 = vld [vmem:[%s17560_s25 + $0x2b0] ss:$28 sps:$4 sm:$0xff]  }
 0x9ea   :  { %12012 = vmatprep.subr.bf16.mxu1 %v13937_v1  ;;  %v13996_v1 = vld [vmem:[%s17560_s25 + $0x240] ss:$28 sps:$4 sm:$0xff]  }
 0x9ed   :  { %12013 = vmatpush2.bf16.msra.mxu1 %v13935_v26  ;;  %v14001_v26 = vld [vmem:[%s17560_s25 + $0x20c] ss:$28 sps:$4 sm:$0xff]  }
 0x9ee   :  { %12064 = vmatprep.subr.bf16.mxu1 %v13943_v42  ;;  %v14002_v42 = vld [vmem:[%s17560_s25 + $0x1d0] ss:$28 sps:$4 sm:$0xff]  }
 0xa70   :  { %v11004_v9 = vpop.f32.mrf.mxu1 }
 0xa71   :  { %v11005_v25 = vadd.f32 %v12817_v8, %v11004_v9  ;;  %v12826_v8 = vld [vmem:[#allocation27] ss:$0 sm:$0xff] }
 0xa72   :  { %v13120_v13 = vpop.f32.mrf.mxu1 }
 0xa73   :  { %v11010_v38 = vmul.f32 0.5, %v11005_v25  ;;  %12194 = vst.msk [vmem:[%s17563_s28] sm:$0x3] %vm12193_vm5, %v11005_v25 }
 0xa74   :  { %v11007_v31 = vpop.f32.mrf.mxu1 }
 0xa75   :  { %v11011_v61 = vmul.f32 1.442695, %v11010_v38 }
 0xa76   :  { %v13121_v10 = vpop.f32.mrf.mxu1 }
 0xa77   :  { %14005 = vpow2.f32 %v11011_v61  ;;  %v13848_v61 = vld [vmem:[%s17560_s25 + $0x190] ss:$28 sps:$4 sm:$0xff]  }
 0xa84   :  { %v14006_v34 = vpop.eup %14005 }
 0xa85   :  { %11014 = vrot.lane.b32.xlu0 %v14006_v34, %s14465_s29  ;;  %v13854_v34 = vld [vmem:[%s17560_s25 + $0x158] ss:$28 sps:$4 sm:$0xff]  }
 0xaf7   :  { %v11015_v29 = vpop.permute.xlu0 %11014 }
 0xaf8   :  { %v11017_v16 = vmul.f32 %v11015_v29, %v362_v47  ;;  %v13862_v47 = vld [vmem:[%s17560_s25 + $0x124] ss:$28 sps:$4 sm:$0xff]  }
 0xaf9   :  { %v13860_v29 = vld [vmem:[%s17560_s25 + $0x120] ss:$28 sps:$4 sm:$0xff]  }
 0xafa   :  { %v11018_v32 = vadd.f32 %v11017_v16, %v11005_v25  ;;  %v13868_v16 = vld [vmem:[%s17560_s25 + $0xec] ss:$28 sps:$4 sm:$0xff]  }
 0xafc   :  { %v11019_v23 = vpack.c.bf16 %v11018_v32, %v11018_v32  ;;  %v13866_v32 = vld [vmem:[%s17560_s25 + $0xe8] ss:$28 sps:$4 sm:$0xff]  }
 0xafe   :  { %13127 = vmatmul.mubr.msk.bf16.vlgmr.msra.gmra.mxu0 %vm2307_vm11, %v11019_v23  ;;  %v13872_v23 = vld [vmem:[%s17560_s25 + $0xb0] ss:$28 sps:$4 sm:$0xff]   ;;  %vm17696_vm11 = vcmask 1041408  }
 0xaff   :  { %11197 = vmatpush1.bf16.msra.mxu0 %v13821_v62  ;;  %11228 = vmatprep.mubr.bf16.mxu0 %v17632_v20  ;;  %v13839_v20 = vld [vmem:[#allocation28 + $0x10] ss:$8 sps:$4 sm:$0xff]   ;;  %vm12189_vm9 = vmor %vm12188_vm6, %vm17696_vm11 }
 0xb00   :  { %11198 = vmatprep.subr.bf16.mxu0 %v13826_v35  ;;  %v13874_v62 = vld [vmem:[%s17560_s25 + $0xb4] ss:$28 sps:$4 sm:$0xff]   ;;  %v13880_v35 = vld [vmem:[%s17560_s25 + $0x7c] ss:$28 sps:$4 sm:$0xff]   ;;  %vm12191_vm2 = vmor %vm12190_vm1, %vm12189_vm9 }
 0xb03   :  { %11199 = vmatpush1.bf16.msra.mxu0 %v13824_v51  ;;  %v13878_v51 = vld [vmem:[%s17560_s25 + $0x78] ss:$28 sps:$4 sm:$0xff]  }
 0xb04   :  { %11200 = vmatprep.subr.bf16.mxu0 %v13829_v0  ;;  %v13886_v0 = vld [vmem:[%s17560_s25 + $0x44] ss:$28 sps:$4 sm:$0xff]  }
 0xb07   :  { %11201 = vmatpush1.bf16.msra.mxu0 %v13827_v41  ;;  %v13884_v41 = vld [vmem:[%s17560_s25 + $0x40] ss:$28 sps:$4 sm:$0xff]  }
 0xb08   :  { %11202 = vmatprep.subr.bf16.mxu0 %v13832_v50  ;;  %v13892_v50 = vld [vmem:[%s17560_s25 + $0xc] ss:$28 sps:$4 sm:$0xff]  }
 0xb0b   :  { %11203 = vmatpush1.bf16.msra.mxu0 %v13830_v46  ;;  %v13890_v46 = vld [vmem:[%s17560_s25 + $0x8] ss:$28 sps:$4 sm:$0xff]  }
 0xb0c   :  { %11204 = vmatprep.subr.bf16.mxu0 %v13835_v60  ;;  %v13898_v60 = vld [vmem:[%s17560_s25 + $0x354] ss:$28 sps:$4 sm:$0xff]  }
 0xb0f   :  { %11205 = vmatpush1.bf16.msra.mxu0 %v13833_v63  ;;  %v13896_v63 = vld [vmem:[%s17560_s25 + $0x350] ss:$28 sps:$4 sm:$0xff]  }
 0xb10   :  { %11206 = vmatprep.subr.bf16.mxu0 %v13838_v33  ;;  %v13904_v33 = vld [vmem:[%s17560_s25 + $0x31c] ss:$28 sps:$4 sm:$0xff]  }
 0xb13   :  { %11207 = vmatpush1.bf16.msra.mxu0 %v13836_v55  ;;  %v13902_v55 = vld [vmem:[%s17560_s25 + $0x318] ss:$28 sps:$4 sm:$0xff]  }
 0xb14   :  { %11208 = vmatprep.subr.bf16.mxu0 %v13841_v36  ;;  %v13910_v36 = vld [vmem:[%s17560_s25 + $0x2e4] ss:$28 sps:$4 sm:$0xff]  }
 0xb17   :  { %11209 = vmatpush1.bf16.msra.mxu0 %v13839_v20  ;;  %v13908_v20 = vld [vmem:[%s17560_s25 + $0x2e0] ss:$28 sps:$4 sm:$0xff]  }
 0xb18   :  { %11210 = vmatprep.subr.bf16.mxu0 %v13844_v12  ;;  %v13914_v12 = vld [vmem:[%s17560_s25 + $0x2a8] ss:$28 sps:$4 sm:$0xff]  }
 0xb1b   :  { %11211 = vmatpush1.bf16.msra.mxu0 %v13842_v45  ;;  %v13916_v45 = vld [vmem:[%s17560_s25 + $0x2ac] ss:$28 sps:$4 sm:$0xff]  }
 0xb1c   :  { %12023 = vmatprep.subr.bf16.mxu0 %v13850_v30  ;;  %v13928_v30 = vld [vmem:[%s17560_s25 + $0x23c] ss:$28 sps:$4 sm:$0xff]  }
 0xbbe   :  { %v11080_v9 = vpop.f32.mrf.mxu0 }
 0xbbf   :  { %v11081_v25 = vadd.f32 %v12826_v8, %v11080_v9  ;;  %v13948_v8 = vld [vmem:[%s17560_s25 + $0x164] ss:$28 sps:$4 sm:$0xff]  }
 0xbc0   :  { %v13128_v13 = vpop.f32.mrf.mxu0  ;;  %v13949_v9 = vld [vmem:[%s17560_s25 + $0x328] ss:$28 sps:$4 sm:$0xff]  }
 0xbc1   :  { %v11086_v38 = vmax.f32 %v11081_v25, 0.0  ;;  %v13946_v25 = vld [vmem:[%s17560_s25 + $0x160] ss:$28 sps:$4 sm:$0xff]   ;;  %v13950_v13 = vld [vmem:[%s17560_s25 + $0x168] ss:$28 sps:$4 sm:$0xff]  }
 0xbc2   :  { %v11083_v31 = vpop.f32.mrf.mxu0 }
 0xbc3   :  { %v11087_v10 = vpack.c.bf16 %v11086_v38, %v11086_v38  ;;  %v13953_v38 = vld [vmem:[%s17560_s25 + $0x12c] ss:$28 sps:$4 sm:$0xff]  }
 0xbc4   :  { %v13129_v22 = vpop.f32.mrf.mxu0  ;;  %v13954_v31 = vld [vmem:[%s17560_s25 + $0x2f0] ss:$28 sps:$4 sm:$0xff]  }
 0xbc5   :  { %11229 = vmatmul.mubr.bf16.vlgmr.msra.gmra.mxu0 %v11087_v10  ;;  %v13955_v10 = vld [vmem:[%s17560_s25 + $0x130] ss:$28 sps:$4 sm:$0xff]   ;;  %v13959_v22 = vld [vmem:[%s17560_s25 + $0x2b8] ss:$28 sps:$4 sm:$0xff]  }
 0xbc6   :  { %12024 = vmatpush1.bf16.msra.mxu0 %v13848_v61  ;;  %v13951_v61 = vld [vmem:[%s17560_s25 + $0x128] ss:$28 sps:$4 sm:$0xff]  }
 0xbc7   :  { %12025 = vmatprep.subr.bf16.mxu0 %v13856_v4  ;;  %v13958_v4 = vld [vmem:[%s17560_s25 + $0xf4] ss:$28 sps:$4 sm:$0xff]  }
 0xbca   :  { %12026 = vmatpush1.bf16.msra.mxu0 %v13854_v34  ;;  %v13956_v34 = vld [vmem:[%s17560_s25 + $0xf0] ss:$28 sps:$4 sm:$0xff]  }
 0xbcb   :  { %12027 = vmatprep.subr.bf16.mxu0 %v13862_v47  ;;  %v13960_v47 = vld [vmem:[%s17560_s25 + $0xf8] ss:$28 sps:$4 sm:$0xff]  }
 0xbce   :  { %12028 = vmatpush1.bf16.msra.mxu0 %v13860_v29  ;;  %v13963_v29 = vld [vmem:[%s17560_s25 + $0xbc] ss:$28 sps:$4 sm:$0xff]  }
 0xbcf   :  { %12029 = vmatprep.subr.bf16.mxu0 %v13868_v16  ;;  %v13964_v16 = vld [vmem:[%s17560_s25 + $0x280] ss:$28 sps:$4 sm:$0xff]  }
 0xbd2   :  { %12030 = vmatpush1.bf16.msra.mxu0 %v13866_v32  ;;  %v13961_v32 = vld [vmem:[%s17560_s25 + $0xb8] ss:$28 sps:$4 sm:$0xff]  }
 0xbd3   :  { %12031 = vmatprep.subr.bf16.mxu0 %v13874_v62  ;;  %v13965_v62 = vld [vmem:[%s17560_s25 + $0xc0] ss:$28 sps:$4 sm:$0xff]  }
 0xbd6   :  { %12032 = vmatpush1.bf16.msra.mxu0 %v13872_v23  ;;  %v13968_v23 = vld [vmem:[%s17560_s25 + $0x84] ss:$28 sps:$4 sm:$0xff]  }
 0xbd7   :  { %12033 = vmatprep.subr.bf16.mxu0 %v13880_v35  ;;  %v13969_v35 = vld [vmem:[%s17560_s25 + $0x248] ss:$28 sps:$4 sm:$0xff]  }
 0xbda   :  { %12034 = vmatpush1.bf16.msra.mxu0 %v13878_v51  ;;  %v13966_v51 = vld [vmem:[%s17560_s25 + $0x80] ss:$28 sps:$4 sm:$0xff]  }
 0xbdb   :  { %12035 = vmatprep.subr.bf16.mxu0 %v13886_v0  ;;  %v13970_v0 = vld [vmem:[%s17560_s25 + $0x88] ss:$28 sps:$4 sm:$0xff]  }
 0xbde   :  { %12036 = vmatpush1.bf16.msra.mxu0 %v13884_v41  ;;  %v13973_v41 = vld [vmem:[%s17560_s25 + $0x4c] ss:$28 sps:$4 sm:$0xff]  }
 0xbdf   :  { %12037 = vmatprep.subr.bf16.mxu0 %v13892_v50  ;;  %v13974_v50 = vld [vmem:[%s17560_s25 + $0x210] ss:$28 sps:$4 sm:$0xff]  }
 0xbe2   :  { %12038 = vmatpush1.bf16.msra.mxu0 %v13890_v46  ;;  %v13971_v46 = vld [vmem:[%s17560_s25 + $0x48] ss:$28 sps:$4 sm:$0xff]  }
 0xbe3   :  { %12039 = vmatprep.subr.bf16.mxu0 %v13898_v60  ;;  %v13975_v60 = vld [vmem:[%s17560_s25 + $0x50] ss:$28 sps:$4 sm:$0xff]  }
 0xbe6   :  { %12040 = vmatpush2.bf16.msra.mxu0 %v13896_v63  ;;  %v13978_v63 = vld [vmem:[%s17560_s25 + $0x14] ss:$28 sps:$4 sm:$0xff]  }
 0xbe7   :  { %12041 = vmatprep.subr.bf16.mxu0 %v13904_v33  ;;  %v13979_v33 = vld [vmem:[%s17560_s25 + $0x1d8] ss:$28 sps:$4 sm:$0xff]  }
 0xbea   :  { %12042 = vmatpush2.bf16.msra.mxu0 %v13902_v55  ;;  %v13976_v55 = vld [vmem:[%s17560_s25 + $0x10] ss:$28 sps:$4 sm:$0xff]  }
 0xbeb   :  { %12043 = vmatprep.subr.bf16.mxu0 %v13910_v36  ;;  %v13980_v36 = vld [vmem:[%s17560_s25 + $0x18] ss:$28 sps:$4 sm:$0xff]  }
 0xbee   :  { %12044 = vmatpush2.bf16.msra.mxu0 %v13908_v20  ;;  %v13983_v20 = vld [vmem:[%s17560_s25 + $0x35c] ss:$28 sps:$4 sm:$0xff]  }
 0xbef   :  { %12045 = vmatprep.subr.bf16.mxu0 %v13916_v45  ;;  %v13981_v45 = vld [vmem:[%s17560_s25 + $0x358] ss:$28 sps:$4 sm:$0xff]  }
 0xbf2   :  { %12046 = vmatpush2.bf16.msra.mxu0 %v13914_v12  ;;  %v13986_v12 = vld [vmem:[%s17560_s25 + $0x324] ss:$28 sps:$4 sm:$0xff]  }
 0xbf3   :  { %12047 = vmatprep.subr.bf16.mxu0 %v13922_v5  ;;  %v13984_v5 = vld [vmem:[%s17560_s25 + $0x320] ss:$28 sps:$4 sm:$0xff]  }
 0xbf6   :  { %12048 = vmatpush2.bf16.msra.mxu0 %v13920_v43  ;;  %v13989_v43 = vld [vmem:[%s17560_s25 + $0x2ec] ss:$28 sps:$4 sm:$0xff]  }
 0xbf7   :  { %12049 = vmatprep.subr.bf16.mxu0 %v13928_v30  ;;  %v13987_v30 = vld [vmem:[%s17560_s25 + $0x2e8] ss:$28 sps:$4 sm:$0xff]  }
 0xbfa   :  { %12050 = vmatpush2.bf16.msra.mxu0 %v13926_v56  ;;  %v13992_v56 = vld [vmem:[%s17560_s25 + $0x2b4] ss:$28 sps:$4 sm:$0xff]  }
 0xbfb   :  { %12051 = vmatprep.subr.bf16.mxu0 %v13934_v11  ;;  %v13998_v11 = vld [vmem:[%s17560_s25 + $0x244] ss:$28 sps:$4 sm:$0xff]  }
 0xbfe   :  { %12052 = vmatpush2.bf16.msra.mxu0 %v13932_v28  ;;  %v13993_v28 = vld [vmem:[%s17560_s25 + $0x278] ss:$28 sps:$4 sm:$0xff]  }
 0xbff   :  { %12053 = vmatprep.subr.bf16.mxu0 %v13940_v54  ;;  %v13999_v54 = vld [vmem:[%s17560_s25 + $0x208] ss:$28 sps:$4 sm:$0xff]  }
 0xc02   :  { %12054 = vmatpush2.bf16.msra.mxu0 %v13938_v14  ;;  %v14004_v14 = vld [vmem:[%s17560_s25 + $0x1d4] ss:$28 sps:$4 sm:$0xff]  }
 0xc03   :  { %13012 = vmatprep.subr.bf16.mxu0 %v13944_v3  ;;  %v11381_v3 = vsub.s32 2, %v17691_v52 }
 0xc85   :  { %v11230_v21 = vpop.f32.mrf.mxu0 }
 0xc86   :  { %v11231_v37 = vadd.f32 %v11230_v21, %v11109_v40  ;;  %v11369_v40 = vld [vmem:[#allocation31] sm:$0x7f] }
 0xc87   :  { %v11232_v53 = vpop.f32.mrf.mxu0  ;;  %v11382_v21 = vrot.slane %v11369_v40, %v11381_v3 }
 0xc88   :  { %v11233_v57 = vadd.f32 %v11232_v53, %v11113_v49  ;;  %v11237_v7 = vmax.f32 %v11231_v37, 0.0  ;;  %v11374_v49 = vrot.slane %v11369_v40, %v17638_v24  ;;  %v11378_v37 = vrot.slane %v11369_v40, %v17087_v17 }
 0xc89   :  { %v11234_v18 = vpop.f32.mrf.mxu0  ;;  %v11386_v53 = vrot.slane %v11369_v40, %v11385_v6 }
 0xc8a   :  { %v11238_v2 = vmax.f32 %v11233_v57, 0.0  ;;  %v17379_v27 = vpack.c.bf16 %v11237_v7, %v11237_v7 }
 0xc8b   :  { %v11235_v39 = vpop.f32.mrf.mxu0 }
 0xc8c   :  { %v11240_v44 = vpack.c.bf16 %v11238_v2, %v11238_v2 }
 0xc8e   :  { %12014 = vmatprep.mubr.bf16.mxu1 %v11240_v44  ;;  %12055 = vmatprep.mubr.bf16.mxu0 %v11240_v44 }
 0xc8f   :  { %12015 = vmatmul.mubr.bf16.vlgmr.msra.gmra.mxu1 %v17379_v27  ;;  %12056 = vmatmul.mubr.bf16.vlgmr.msra.gmra.mxu0 %v17379_v27 }
 0xc90   :  { %12065 = vmatpush1.bf16.msra.mxu1 %v13941_v48  ;;  %13013 = vmatpush3.bf16.msra.mxu0 %v13945_v15 }
 0xc91   :  { %12096 = vmatprep.mubr.bf16.mxu1 %v11240_v44  ;;  %12137 = vmatprep.mubr.bf16.mxu0 %v11240_v44 }
 0xc92   :  { %12066 = vmatprep.subr.bf16.mxu1 %v13948_v8  ;;  %13014 = vmatprep.subr.bf16.mxu0 %v13949_v9 }
 0xc94   :  { %12067 = vmatpush1.bf16.msra.mxu1 %v13946_v25  ;;  %13015 = vmatpush3.bf16.msra.mxu0 %v13950_v13 }
 0xc95   :  { %12068 = vmatprep.subr.bf16.mxu1 %v13953_v38  ;;  %13016 = vmatprep.subr.bf16.mxu0 %v13954_v31 }
 0xc98   :  { %12069 = vmatpush1.bf16.msra.mxu1 %v13951_v61  ;;  %13017 = vmatpush3.bf16.msra.mxu0 %v13955_v10 }
 0xc99   :  { %12070 = vmatprep.subr.bf16.mxu1 %v13958_v4  ;;  %13018 = vmatprep.subr.bf16.mxu0 %v13959_v22 }
 0xc9c   :  { %12071 = vmatpush1.bf16.msra.mxu1 %v13956_v34  ;;  %13019 = vmatpush3.bf16.msra.mxu0 %v13960_v47  ;;  %v11397_v34 = vsub.s32 6, %v17691_v52  ;;  %v11389_v47 = vsub.s32 4, %v17691_v52 }
 0xc9d   :  { %12072 = vmatprep.subr.bf16.mxu1 %v13963_v29  ;;  %13020 = vmatprep.subr.bf16.mxu0 %v13964_v16  ;;  %v11393_v29 = vsub.s32 5, %v17691_v52 }
 0xc9e   :  { %v11398_v16 = vrot.slane %v11369_v40, %v11397_v34 }
 0xca0   :  { %12073 = vmatpush1.bf16.msra.mxu1 %v13961_v32  ;;  %13021 = vmatpush3.bf16.msra.mxu0 %v13965_v62  ;;  %v11390_v62 = vrot.slane %v11369_v40, %v11389_v47 }
 0xca1   :  { %12074 = vmatprep.subr.bf16.mxu1 %v13968_v23  ;;  %13022 = vmatprep.subr.bf16.mxu0 %v13969_v35  ;;  %v11394_v23 = vrot.slane %v11369_v40, %v11393_v29 }
 0xca4   :  { %12075 = vmatpush1.bf16.msra.mxu1 %v13966_v51  ;;  %13023 = vmatpush3.bf16.msra.mxu0 %v13970_v0 }
 0xca5   :  { %12076 = vmatprep.subr.bf16.mxu1 %v13973_v41  ;;  %13024 = vmatprep.subr.bf16.mxu0 %v13974_v50 }
 0xca8   :  { %12077 = vmatpush1.bf16.msra.mxu1 %v13971_v46  ;;  %13025 = vmatpush3.bf16.msra.mxu0 %v13975_v60 }
 0xca9   :  { %12078 = vmatprep.subr.bf16.mxu1 %v13978_v63  ;;  %13026 = vmatprep.subr.bf16.mxu0 %v13979_v33 }
 0xcac   :  { %12079 = vmatpush1.bf16.msra.mxu1 %v13976_v55  ;;  %13027 = vmatpush3.bf16.msra.mxu0 %v13980_v36 }
 0xcad   :  { %12080 = vmatprep.subr.bf16.mxu1 %v13983_v20 }
 0xcaf   :  { %12138 = vmatmul.mubr.bf16.vlgmr.msra.gmra.mxu0 %v17379_v27 }
 0xcb0   :  { %12081 = vmatpush2.bf16.msra.mxu1 %v13981_v45 }
 0xcb1   :  { %12082 = vmatprep.subr.bf16.mxu1 %v13986_v12 }
 0xcb4   :  { %12083 = vmatpush2.bf16.msra.mxu1 %v13984_v5 }
 0xcb5   :  { %12084 = vmatprep.subr.bf16.mxu1 %v13989_v43 }
 0xcb8   :  { %12085 = vmatpush2.bf16.msra.mxu1 %v13987_v30 }
 0xcb9   :  { %12086 = vmatprep.subr.bf16.mxu1 %v13992_v56 }
 0xcbc   :  { %12087 = vmatpush2.bf16.msra.mxu1 %v13990_v19 }
 0xcbd   :  { %12088 = vmatprep.subr.bf16.mxu1 %v13995_v58 }
 0xcc0   :  { %12089 = vmatpush2.bf16.msra.mxu1 %v13993_v28 }
 0xcc1   :  { %12090 = vmatprep.subr.bf16.mxu1 %v13998_v11 }
 0xcc4   :  { %12091 = vmatpush2.bf16.msra.mxu1 %v13996_v1 }
 0xcc5   :  { %12092 = vmatprep.subr.bf16.mxu1 %v14001_v26 }
 0xcc8   :  { %12093 = vmatpush2.bf16.msra.mxu1 %v13999_v54 }
 0xcc9   :  { %12094 = vmatprep.subr.bf16.mxu1 %v14004_v14 }
 0xccc   :  { %12095 = vmatpush2.bf16.msra.mxu1 %v14002_v42 }
 0xccf   :  { %12097 = vmatmul.mubr.bf16.vlgmr.msra.gmra.mxu1 %v17379_v27 }
 0xd4f   :  { %v12016_v57 = vpop.f32.mrf.mxu1  ;;  %v12057_v7 = vpop.f32.mrf.mxu0 }
 0xd50   :  { %v12017_v39 = vadd.f32 %v12016_v57, %v11374_v49  ;;  %v12058_v44 = vadd.f32 %v12057_v7, %v11382_v21 }
 0xd51   :  { %v12018_v18 = vpop.f32.mrf.mxu1  ;;  %v12059_v2 = vpop.f32.mrf.mxu0 }
 0xd52   :  { %v12019_v48 = vadd.f32 %v12018_v18, %v11378_v37  ;;  %v12060_v15 = vadd.f32 %v12059_v2, %v11386_v53 }
 0xd53   :  { %v12020_v27 = vpop.f32.mrf.mxu1  ;;  %v12061_v8 = vpop.f32.mrf.mxu0 }
 0xd54   :  { %v12152_v9 = vcombine.low %v12017_v39, %v12019_v48  ;;  %v12153_v25 = vcombine.low %v12058_v44, %v12060_v15 }
 0xd55   :  { %v12021_v13 = vpop.f32.mrf.mxu1  ;;  %v12062_v38 = vpop.f32.mrf.mxu0 }
 0xd56   :  { %v12160_v24 = vrot.slane %v12152_v9, %v14982_v59  ;;  %v12167_v31 = vrot.slane %v12153_v25, %v14982_v59 }
 0xd58   :  { %v12168_v17 = vcombine.low %v12160_v24, %v12167_v31 }
 0xd5a   :  { %12187 = vst [vmem:[%s17695_s22] sm:$0xff] %v12168_v17 }
 0xd6f   :  { %v13028_v61 = vpop.f32.mrf.mxu0 }
 0xd71   :  { %v13029_v10 = vpop.f32.mrf.mxu0 }
 0xd72   :  { %v13030_v32 = vadd.f32 %v13029_v10, %v13028_v61 }
 0xd73   :  { %v13031_v4 = vpop.f32.mrf.mxu0 }
 0xd74   :  { %v12140_v0 = vadd.f32 %v13030_v32, %v11398_v16 }
 0xd75   :  { %v13032_v22 = vpop.f32.mrf.mxu0 }
 0xd76   :  { %v12183_v33 = vrot.slane %v12140_v0, %v14982_v59 }
 0xd8f   :  { %v12098_v35 = vpop.f32.mrf.mxu1 }
 0xd90   :  { %v12099_v41 = vadd.f32 %v12098_v35, %v11390_v62 }
 0xd91   :  { %v12100_v51 = vpop.f32.mrf.mxu1 }
 0xd92   :  { %v12101_v50 = vadd.f32 %v12100_v51, %v11394_v23 }
 0xd93   :  { %v12102_v46 = vpop.f32.mrf.mxu1 }
 0xd94   :  { %v12169_v60 = vcombine.low %v12099_v41, %v12101_v50 }
 0xd95   :  { %v12103_v63 = vpop.f32.mrf.mxu1 }
 0xd96   :  { %v12176_v52 = vrot.slane %v12169_v60, %v14982_v59 }
 0xd98   :  { %v12184_v55 = vcombine.low %v12176_v52, %v12183_v33 }
 0xd9a   :  { %12192 = vst.msk [vmem:[%s17695_s22 + $0x8] sm:$0x3f] %vm12191_vm2, %v12184_v55 }
 0xd9b   :  { %12203 = vsyncpa [#allocation3], 1 }
 0xd9c   :  { %12204 = vsyncpa [#allocation5], 1 }
 0xd9d   :  { %12205 = vsyncpa [#allocation8], 1 }
 0xd9e   :  { %12206 = vsyncpa [#allocation11], 1 }
 0xd9f   :  { %12207 = vsyncpa [#allocation14], 1 }
 0xda0   :  { %12208 = vsyncpa [#allocation17], 1 }
 0xda1   :  { %12209 = vsyncpa [#allocation20], 1 }
 0xda2   :  { %12210 = vsyncpa [#allocation23], 1 }
 0xda3   :  { %12211 = vsyncpa [#allocation26], 1 }
 0xda4   :  { %12212 = vsyncpa [#allocation29], 1 }
 0xda5   :  { %12213 = vsyncpa [#allocation32], 1 }

</bundles_post_ra>
